<compile_context>
chip_gen: v5e
topology: v5e:2x2
jax: 0.10.0
libtpu: 0.0.40
codegen_flags: <defaults>
</compile_context>

<pallas_src>
import functools

import jax
import jax.numpy as jnp
from jax.experimental import pallas as pl
from jax.experimental.pallas import tpu as pltpu

TM = 512  # row tile for all matmul-style kernels (tail blocks masked by Pallas)


# ----------------------------- Pallas kernels -----------------------------

def _mm_bias_kernel(x_ref, w_ref, b_ref, o_ref):
    """o = x @ w + b — used for the start 1x1 conv."""
    o_ref[...] = (jnp.dot(x_ref[...], w_ref[...], preferred_element_type=jnp.float32)
                  + b_ref[...])


def _gated_skip_kernel(x_ref, wfg_ref, bfg_ref, ws_ref, bs_ref, g_ref, s_ref, *, cd):
    """Fused dilated (1,2) temporal conv pair + gating + skip conv.

    x_ref holds [left_tap | right_tap] concatenated on lanes (K = 2*Cin) so the
    filter and gate convs are ONE (TB, 2Cin) @ (2Cin, 2Cd) dot; the 1x1 skip
    conv consumes the gated activation without leaving VMEM.
    """
    fg = (jnp.dot(x_ref[...], wfg_ref[...], preferred_element_type=jnp.float32)
          + bfg_ref[...])
    gated = jnp.tanh(fg[:, :cd]) * jax.nn.sigmoid(fg[:, cd:])
    g_ref[...] = gated
    s_ref[...] = (jnp.dot(gated, ws_ref[...], preferred_element_type=jnp.float32)
                  + bs_ref[...])


def _graph_res_bn_kernel(x_ref, r_ref, w_ref, b_ref, scale_ref, shift_ref, o_ref):
    """Fused GraphConvNet + residual add + eval-mode BatchNorm affine.

    The order-2 adjacency powers are pre-folded into w_ref (shape (V*Cd, V*Cr)),
    so the whole graph conv is a single lane-dense matmul; the (+residual)*scale
    + shift epilogue runs on the accumulator before the store.
    """
    g = (jnp.dot(x_ref[...], w_ref[...], preferred_element_type=jnp.float32)
         + b_ref[...])
    o_ref[...] = (g + r_ref[...]) * scale_ref[...] + shift_ref[...]


def _end_kernel(x_ref, w1_ref, b1_ref, w2_ref, b2_ref, o_ref):
    """relu(skip) -> end_conv_1 (+relu) -> end_conv_2, intermediate stays in VMEM."""
    h = jnp.maximum(x_ref[...], 0.0)
    h = jnp.dot(h, w1_ref[...], preferred_element_type=jnp.float32) + b1_ref[...]
    h = jnp.maximum(h, 0.0)
    o_ref[...] = (jnp.dot(h, w2_ref[...], preferred_element_type=jnp.float32)
                  + b2_ref[...])


# ----------------------------- kernel wrappers -----------------------------

def _row_tile(m):
    """Full-array block when small, else TM rows with a masked ragged tail."""
    tb = m if m <= TM else TM
    return tb, pl.cdiv(m, tb)


def matmul_bias(x, w, b):
    m, k = x.shape
    nout = w.shape[1]
    tb, grid = _row_tile(m)
    return pl.pallas_call(
        _mm_bias_kernel,
        out_shape=jax.ShapeDtypeStruct((m, nout), jnp.float32),
        grid=(grid,),
        in_specs=[
            pl.BlockSpec((tb, k), lambda i: (i, 0)),
            pl.BlockSpec((k, nout), lambda i: (0, 0)),
            pl.BlockSpec((1, nout), lambda i: (0, 0)),
        ],
        out_specs=pl.BlockSpec((tb, nout), lambda i: (i, 0)),
        compiler_params=pltpu.CompilerParams(dimension_semantics=("parallel",)),
    )(x, w, b)


def gated_skip(xlr, wfg, bfg, ws, bs, cd):
    """xlr: (M, 2*Cin); returns (gated (M, Cd), skip_contrib (M, Cs))."""
    m, k2 = xlr.shape
    cs = ws.shape[1]
    tb, grid = _row_tile(m)
    return pl.pallas_call(
        functools.partial(_gated_skip_kernel, cd=cd),
        out_shape=(jax.ShapeDtypeStruct((m, cd), jnp.float32),
                   jax.ShapeDtypeStruct((m, cs), jnp.float32)),
        grid=(grid,),
        in_specs=[
            pl.BlockSpec((tb, k2), lambda i: (i, 0)),
            pl.BlockSpec((k2, 2 * cd), lambda i: (0, 0)),
            pl.BlockSpec((1, 2 * cd), lambda i: (0, 0)),
            pl.BlockSpec((cd, cs), lambda i: (0, 0)),
            pl.BlockSpec((1, cs), lambda i: (0, 0)),
        ],
        out_specs=(pl.BlockSpec((tb, cd), lambda i: (i, 0)),
                   pl.BlockSpec((tb, cs), lambda i: (i, 0))),
        compiler_params=pltpu.CompilerParams(dimension_semantics=("parallel",)),
    )(xlr, wfg, bfg, ws, bs)


def graph_res_bn(xg, res, wbig, b, scale, shift):
    """xg/res: (M, V*C); wbig: (V*Cd, V*Cr); b/scale/shift: (1, V*Cr)."""
    m, kin = xg.shape
    nout = wbig.shape[1]
    tb, grid = _row_tile(m)
    return pl.pallas_call(
        _graph_res_bn_kernel,
        out_shape=jax.ShapeDtypeStruct((m, nout), jnp.float32),
        grid=(grid,),
        in_specs=[
            pl.BlockSpec((tb, kin), lambda i: (i, 0)),
            pl.BlockSpec((tb, nout), lambda i: (i, 0)),
            pl.BlockSpec((kin, nout), lambda i: (0, 0)),
            pl.BlockSpec((1, nout), lambda i: (0, 0)),
            pl.BlockSpec((1, nout), lambda i: (0, 0)),
            pl.BlockSpec((1, nout), lambda i: (0, 0)),
        ],
        out_specs=pl.BlockSpec((tb, nout), lambda i: (i, 0)),
        compiler_params=pltpu.CompilerParams(dimension_semantics=("parallel",)),
    )(xg, res, wbig, b, scale, shift)


def end_convs(x, w1, b1, w2, b2):
    m, k = x.shape
    ch = w1.shape[1]
    od = w2.shape[1]
    tb, grid = _row_tile(m)
    return pl.pallas_call(
        _end_kernel,
        out_shape=jax.ShapeDtypeStruct((m, od), jnp.float32),
        grid=(grid,),
        in_specs=[
            pl.BlockSpec((tb, k), lambda i: (i, 0)),
            pl.BlockSpec((k, ch), lambda i: (0, 0)),
            pl.BlockSpec((1, ch), lambda i: (0, 0)),
            pl.BlockSpec((ch, od), lambda i: (0, 0)),
            pl.BlockSpec((1, od), lambda i: (0, 0)),
        ],
        out_specs=pl.BlockSpec((tb, od), lambda i: (i, 0)),
        compiler_params=pltpu.CompilerParams(dimension_semantics=("parallel",)),
    )(x, w1, b1, w2, b2)


# ----------------------------- parameters -----------------------------

def dilation_schedule(kernel_size, blocks, layers):
    dils = []
    rf = 1
    for _ in range(blocks):
        additional_scope = kernel_size - 1
        d = 1
        for _ in range(layers):
            dils.append(d)
            d *= 2
            rf += additional_scope
            additional_scope *= 2
    return tuple(dils), rf


def init_params(key, num_nodes, in_dim, out_dim, residual_channels,
                dilation_channels, skip_channels, end_channels,
                kernel_size, blocks, layers, apt_size):
    keys = iter(jax.random.split(key, 256))

    def conv_init(cin, cout, k=1):
        fan = float(cin * k)
        shape = (k, cin, cout) if k > 1 else (cin, cout)
        w = jax.random.normal(next(keys), shape, jnp.float32) / jnp.sqrt(fan)
        b = jax.random.normal(next(keys), (cout,), jnp.float32) * 0.01
        return w, b

    p = {}
    sw, sb = conv_init(in_dim, residual_channels)
    p["start_w"], p["start_b"] = sw, sb.reshape(1, -1)
    p["nodevec1"] = jax.random.normal(next(keys), (num_nodes, apt_size), jnp.float32)
    p["nodevec2"] = jax.random.normal(next(keys), (apt_size, num_nodes), jnp.float32)

    supports_len = 1  # adaptive adjacency only (no fixed supports)
    order = 2
    gc_cin = (order * supports_len + 1) * dilation_channels
    eps = 1e-5
    cd = dilation_channels

    layer_params = []
    for _ in range(blocks * layers):
        lp = {}
        fw, fb = conv_init(residual_channels, dilation_channels, k=kernel_size)
        gw, gb = conv_init(residual_channels, dilation_channels, k=kernel_size)
        # Fuse filter & gate over both temporal taps: (2*Cin, 2*Cd), cols=[filter|gate]
        lp["wfg"] = jnp.concatenate(
            [jnp.concatenate([fw[0], gw[0]], axis=1),
             jnp.concatenate([fw[1], gw[1]], axis=1)], axis=0)
        lp["bfg"] = jnp.concatenate([fb, gb]).reshape(1, -1)
        skw, skb = conv_init(dilation_channels, skip_channels)
        lp["skip_w"], lp["skip_b"] = skw, skb.reshape(1, -1)
        gc_w, gc_b = conv_init(gc_cin, residual_channels)
        lp["gc_w0"] = gc_w[:cd]           # multiplies x
        lp["gc_w1"] = gc_w[cd:2 * cd]     # multiplies x @ A
        lp["gc_w2"] = gc_w[2 * cd:]       # multiplies x @ A^2
        lp["gc_b"] = gc_b
        # BatchNorm2d eval-mode fold (torch default running stats / affine init).
        lp["bn_scale"] = jnp.ones((residual_channels,), jnp.float32) / jnp.sqrt(1.0 + eps)
        lp["bn_shift"] = jnp.zeros((residual_channels,), jnp.float32)
        layer_params.append(lp)
    p["layers"] = layer_params

    e1w, e1b = conv_init(skip_channels, end_channels)
    e2w, e2b = conv_init(end_channels, out_dim)
    p["end1_w"], p["end1_b"] = e1w, e1b.reshape(1, -1)
    p["end2_w"], p["end2_b"] = e2w, e2b.reshape(1, -1)
    return p


# ----------------------------- forward -----------------------------

def gwnet_forward(params, x_nchw, *, dilations, receptive_field):
    """x_nchw: (N, in_dim, V, L) PyTorch layout. Returns (N, out_dim, V, L_out)."""
    n, cin, v, in_len = x_nchw.shape
    if in_len < receptive_field:
        x_nchw = jnp.pad(x_nchw, ((0, 0), (0, 0), (0, 0), (receptive_field - in_len, 0)))
    l0 = x_nchw.shape[3]

    # channels-last with V next to C: (N, L, V, C)
    x = jnp.transpose(x_nchw, (0, 3, 2, 1))

    # start_conv (1x1)
    cr = params["start_w"].shape[1]
    x = matmul_bias(x.reshape(-1, cin), params["start_w"], params["start_b"])
    x = x.reshape(n, l0, v, cr)

    # adaptive adjacency: 16x16 softmax(relu(...)) — pure XLA, no kernel launch.
    adp = jax.nn.softmax(jax.nn.relu(params["nodevec1"] @ params["nodevec2"]), axis=1)
    adp2 = adp @ adp
    eye = jnp.eye(v, dtype=jnp.float32)

    skip = None
    n_layers = len(params["layers"])
    for i, lp in enumerate(params["layers"]):
        d = dilations[i]
        residual = x
        lout = x.shape[1] - d
        cd = lp["skip_w"].shape[0]
        cs = lp["skip_w"].shape[1]

        # fused filter+gate+skip: both temporal taps concatenated on lanes (K=2*Cin)
        xlr = jnp.concatenate([x[:, :lout], x[:, d:]], axis=-1).reshape(-1, 2 * cr)
        gated, s = gated_skip(xlr, lp["wfg"], lp["bfg"], lp["skip_w"], lp["skip_b"], cd)

        s = s.reshape(n, lout, v, cs)
        skip = s if skip is None else s + skip[:, -lout:]

        if i == n_layers - 1:
            break

        # GraphConvNet: [x, x@A, x@A^2] @ [W0;W1;W2] rewritten as one matmul with
        # Wbig[(v,c),(w,r)] = I[v,w]*W0[c,r] + A[v,w]*W1[c,r] + A2[v,w]*W2[c,r].
        # TODO(synk): Wbig is O(V^2*Cd*Cr) — fine for small V; large graphs should
        # keep the adjacency contraction in-kernel instead of folding it here.
        wbig = (eye[:, None, :, None] * lp["gc_w0"][None, :, None, :]
                + adp[:, None, :, None] * lp["gc_w1"][None, :, None, :]
                + adp2[:, None, :, None] * lp["gc_w2"][None, :, None, :]
                ).reshape(v * cd, v * cr)
        b_t = jnp.tile(lp["gc_b"], v).reshape(1, v * cr)
        sc_t = jnp.tile(lp["bn_scale"], v).reshape(1, v * cr)
        sh_t = jnp.tile(lp["bn_shift"], v).reshape(1, v * cr)

        xg = gated.reshape(n * lout, v * cd)
        resf = residual[:, d:].reshape(n * lout, v * cr)
        # TODO(synk): F.dropout on graph-conv output skipped (eval-mode identity).
        x = graph_res_bn(xg, resf, wbig, b_t, sc_t, sh_t).reshape(n, lout, v, cr)

    # end convs: relu(skip) -> relu(end_conv_1) -> end_conv_2 (fused, one launch)
    lf = skip.shape[1]
    cs = skip.shape[-1]
    out = end_convs(skip.reshape(-1, cs), params["end1_w"], params["end1_b"],
                    params["end2_w"], params["end2_b"])
    od = params["end2_w"].shape[1]
    out = out.reshape(n, lf, v, od)
    # back to PyTorch NCHW: (N, out_dim, V, L_out)
    return jnp.transpose(out, (0, 3, 2, 1))


# ----------------------------- main -----------------------------

if __name__ == "__main__":
    cfg = dict(num_nodes=16, in_dim=2, out_dim=12,
               residual_channels=32, dilation_channels=32,
               skip_channels=64, end_channels=128,
               kernel_size=2, blocks=2, layers=2, apt_size=10)

    key = jax.random.PRNGKey(0)
    kp, kx = jax.random.split(key)
    params = init_params(kp, **cfg)
    dils, rf = dilation_schedule(cfg["kernel_size"], cfg["blocks"], cfg["layers"])

    batch, in_len = 2, 6  # in_len < receptive_field (7) exercises the left-pad branch
    x = jax.random.normal(kx, (batch, cfg["in_dim"], cfg["num_nodes"], in_len), jnp.float32)

    fwd = jax.jit(functools.partial(gwnet_forward, dilations=dils, receptive_field=rf))
    out = jax.block_until_ready(fwd(params, x))
    assert out.shape == (batch, cfg["out_dim"], cfg["num_nodes"], 1), out.shape
    assert bool(jnp.all(jnp.isfinite(out)))
    print("KERNEL_OK")
</pallas_src>

<mosaic_0001>
module attributes {stable_mosaic.version = 11 : i64} {
  func.func @_mm_bias_kernel(%arg0: i32, %arg1: memref<224x2xf32, #tpu.memory_space<vmem>>, %arg2: memref<2x32xf32, #tpu.memory_space<vmem>>, %arg3: memref<1x32xf32, #tpu.memory_space<vmem>>, %arg4: memref<224x32xf32, #tpu.memory_space<vmem>>) attributes {dimension_semantics = [#tpu.dimension_semantics<parallel>], iteration_bounds = array<i64: 1>, scalar_prefetch = 0 : i64, scratch_operands = 0 : i64, tpu.core_type = #tpu.core_type<tc>, window_params = [{transform_indices = @transform_0, window_bounds = array<i64: 224, 2>}, {pipeline_mode = #tpu.pipeline_mode<synchronous>, transform_indices = @transform_1, window_bounds = array<i64: 2, 32>}, {pipeline_mode = #tpu.pipeline_mode<synchronous>, transform_indices = @transform_2, window_bounds = array<i64: 1, 32>}, {transform_indices = @transform_3, window_bounds = array<i64: 224, 32>}]} {
    %c0 = arith.constant 0 : index
    %c0_0 = arith.constant 0 : index
    %0 = vector.load %arg1[%c0, %c0_0] : memref<224x2xf32, #tpu.memory_space<vmem>>, vector<224x2xf32>
    %c0_1 = arith.constant 0 : index
    %c0_2 = arith.constant 0 : index
    %1 = vector.load %arg2[%c0_1, %c0_2] : memref<2x32xf32, #tpu.memory_space<vmem>>, vector<2x32xf32>
    %cst = arith.constant dense<0.000000e+00> : vector<224x32xf32>
    %2 = tpu.matmul %0, %1, %cst {dimension_numbers = #tpu.dot_dimension_numbers<[1], [0], [0], [1], [0, 0, 1, 1], [], []>} : vector<224x2xf32>, vector<2x32xf32>, vector<224x32xf32> -> vector<224x32xf32>
    %c0_3 = arith.constant 0 : index
    %c0_4 = arith.constant 0 : index
    %3 = vector.load %arg3[%c0_3, %c0_4] : memref<1x32xf32, #tpu.memory_space<vmem>>, vector<1x32xf32>
    %4 = vector.broadcast %3 : vector<1x32xf32> to vector<224x32xf32>
    %5 = arith.addf %2, %4 : vector<224x32xf32>
    %c0_5 = arith.constant 0 : index
    %c0_6 = arith.constant 0 : index
    %6 = vector.load %arg4[%c0_5, %c0_6] : memref<224x32xf32, #tpu.memory_space<vmem>>, vector<224x32xf32>
    tpu.vector_store %arg4[%c0_5, %c0_6], %5 {strides = array<i32>} : memref<224x32xf32, #tpu.memory_space<vmem>>, vector<224x32xf32>,
    return
  }
  func.func @transform_0(%arg0: i32) -> (i32, i32) {
    %c0_i32 = arith.constant 0 : i32
    %c0_i32_0 = arith.constant 0 : i32
    return %arg0, %c0_i32 : i32, i32
  }
  func.func @transform_1(%arg0: i32) -> (i32, i32) {
    %c0_i32 = arith.constant 0 : i32
    %c0_i32_0 = arith.constant 0 : i32
    %c0_i32_1 = arith.constant 0 : i32
    return %c0_i32, %c0_i32_0 : i32, i32
  }
  func.func @transform_2(%arg0: i32) -> (i32, i32) {
    %c0_i32 = arith.constant 0 : i32
    %c0_i32_0 = arith.constant 0 : i32
    %c0_i32_1 = arith.constant 0 : i32
    return %c0_i32, %c0_i32_0 : i32, i32
  }
  func.func @transform_3(%arg0: i32) -> (i32, i32) {
    %c0_i32 = arith.constant 0 : i32
    %c0_i32_0 = arith.constant 0 : i32
    return %arg0, %c0_i32 : i32, i32
  }
}

module attributes {stable_mosaic.version = 11 : i64} {
  func.func @_gated_skip_kernel(%arg0: i32, %arg1: memref<192x64xf32, #tpu.memory_space<vmem>>, %arg2: memref<64x64xf32, #tpu.memory_space<vmem>>, %arg3: memref<1x64xf32, #tpu.memory_space<vmem>>, %arg4: memref<32x64xf32, #tpu.memory_space<vmem>>, %arg5: memref<1x64xf32, #tpu.memory_space<vmem>>, %arg6: memref<192x32xf32, #tpu.memory_space<vmem>>, %arg7: memref<192x64xf32, #tpu.memory_space<vmem>>) attributes {dimension_semantics = [#tpu.dimension_semantics<parallel>], iteration_bounds = array<i64: 1>, scalar_prefetch = 0 : i64, scratch_operands = 0 : i64, tpu.core_type = #tpu.core_type<tc>, window_params = [{transform_indices = @transform_0, window_bounds = array<i64: 192, 64>}, {pipeline_mode = #tpu.pipeline_mode<synchronous>, transform_indices = @transform_1, window_bounds = array<i64: 64, 64>}, {pipeline_mode = #tpu.pipeline_mode<synchronous>, transform_indices = @transform_2, window_bounds = array<i64: 1, 64>}, {pipeline_mode = #tpu.pipeline_mode<synchronous>, transform_indices = @transform_3, window_bounds = array<i64: 32, 64>}, {pipeline_mode = #tpu.pipeline_mode<synchronous>, transform_indices = @transform_4, window_bounds = array<i64: 1, 64>}, {transform_indices = @transform_5, window_bounds = array<i64: 192, 32>}, {transform_indices = @transform_6, window_bounds = array<i64: 192, 64>}]} {
    %c0 = arith.constant 0 : index
    %c0_0 = arith.constant 0 : index
    %0 = vector.load %arg1[%c0, %c0_0] : memref<192x64xf32, #tpu.memory_space<vmem>>, vector<192x64xf32>
    %c0_1 = arith.constant 0 : index
    %c0_2 = arith.constant 0 : index
    %1 = vector.load %arg2[%c0_1, %c0_2] : memref<64x64xf32, #tpu.memory_space<vmem>>, vector<64x64xf32>
    %cst = arith.constant dense<0.000000e+00> : vector<192x64xf32>
    %2 = tpu.matmul %0, %1, %cst {dimension_numbers = #tpu.dot_dimension_numbers<[1], [0], [0], [1], [0, 0, 1, 1], [], []>} : vector<192x64xf32>, vector<64x64xf32>, vector<192x64xf32> -> vector<192x64xf32>
    %c0_3 = arith.constant 0 : index
    %c0_4 = arith.constant 0 : index
    %3 = vector.load %arg3[%c0_3, %c0_4] : memref<1x64xf32, #tpu.memory_space<vmem>>, vector<1x64xf32>
    %4 = vector.broadcast %3 : vector<1x64xf32> to vector<192x64xf32>
    %5 = arith.addf %2, %4 : vector<192x64xf32>
    %6 = vector.extract_strided_slice %5 {offsets = [0, 0], sizes = [192, 32], strides = [1, 1]} : vector<192x64xf32> to vector<192x32xf32>
    %7 = math.tanh %6 : vector<192x32xf32>
    %8 = vector.extract_strided_slice %5 {offsets = [0, 32], sizes = [192, 32], strides = [1, 1]} : vector<192x64xf32> to vector<192x32xf32>
    %9 = arith.negf %8 : vector<192x32xf32>
    %10 = math.exp %9 : vector<192x32xf32>
    %cst_5 = arith.constant 1.000000e+00 : f32
    %11 = vector.broadcast %cst_5 : f32 to vector<192x32xf32>
    %12 = arith.addf %11, %10 : vector<192x32xf32>
    %13 = arith.divf %11, %12 : vector<192x32xf32>
    %14 = arith.mulf %7, %13 : vector<192x32xf32>
    %c0_6 = arith.constant 0 : index
    %c0_7 = arith.constant 0 : index
    %15 = vector.load %arg6[%c0_6, %c0_7] : memref<192x32xf32, #tpu.memory_space<vmem>>, vector<192x32xf32>
    tpu.vector_store %arg6[%c0_6, %c0_7], %14 {strides = array<i32>} : memref<192x32xf32, #tpu.memory_space<vmem>>, vector<192x32xf32>,
    %c0_8 = arith.constant 0 : index
    %c0_9 = arith.constant 0 : index
    %16 = vector.load %arg4[%c0_8, %c0_9] : memref<32x64xf32, #tpu.memory_space<vmem>>, vector<32x64xf32>
    %cst_10 = arith.constant dense<0.000000e+00> : vector<192x64xf32>
    %17 = tpu.matmul %14, %16, %cst_10 {dimension_numbers = #tpu.dot_dimension_numbers<[1], [0], [0], [1], [0, 0, 1, 1], [], []>} : vector<192x32xf32>, vector<32x64xf32>, vector<192x64xf32> -> vector<192x64xf32>
    %c0_11 = arith.constant 0 : index
    %c0_12 = arith.constant 0 : index
    %18 = vector.load %arg5[%c0_11, %c0_12] : memref<1x64xf32, #tpu.memory_space<vmem>>, vector<1x64xf32>
    %19 = vector.broadcast %18 : vector<1x64xf32> to vector<192x64xf32>
    %20 = arith.addf %17, %19 : vector<192x64xf32>
    %c0_13 = arith.constant 0 : index
    %c0_14 = arith.constant 0 : index
    %21 = vector.load %arg7[%c0_13, %c0_14] : memref<192x64xf32, #tpu.memory_space<vmem>>, vector<192x64xf32>
    tpu.vector_store %arg7[%c0_13, %c0_14], %20 {strides = array<i32>} : memref<192x64xf32, #tpu.memory_space<vmem>>, vector<192x64xf32>,
    return
  }
  func.func @transform_0(%arg0: i32) -> (i32, i32) {
    %c0_i32 = arith.constant 0 : i32
    %c0_i32_0 = arith.constant 0 : i32
    return %arg0, %c0_i32 : i32, i32
  }
  func.func @transform_1(%arg0: i32) -> (i32, i32) {
    %c0_i32 = arith.constant 0 : i32
    %c0_i32_0 = arith.constant 0 : i32
    %c0_i32_1 = arith.constant 0 : i32
    return %c0_i32, %c0_i32_0 : i32, i32
  }
  func.func @transform_2(%arg0: i32) -> (i32, i32) {
    %c0_i32 = arith.constant 0 : i32
    %c0_i32_0 = arith.constant 0 : i32
    %c0_i32_1 = arith.constant 0 : i32
    return %c0_i32, %c0_i32_0 : i32, i32
  }
  func.func @transform_3(%arg0: i32) -> (i32, i32) {
    %c0_i32 = arith.constant 0 : i32
    %c0_i32_0 = arith.constant 0 : i32
    %c0_i32_1 = arith.constant 0 : i32
    return %c0_i32, %c0_i32_0 : i32, i32
  }
  func.func @transform_4(%arg0: i32) -> (i32, i32) {
    %c0_i32 = arith.constant 0 : i32
    %c0_i32_0 = arith.constant 0 : i32
    %c0_i32_1 = arith.constant 0 : i32
    return %c0_i32, %c0_i32_0 : i32, i32
  }
  func.func @transform_5(%arg0: i32) -> (i32, i32) {
    %c0_i32 = arith.constant 0 : i32
    %c0_i32_0 = arith.constant 0 : i32
    return %arg0, %c0_i32 : i32, i32
  }
  func.func @transform_6(%arg0: i32) -> (i32, i32) {
    %c0_i32 = arith.constant 0 : i32
    %c0_i32_0 = arith.constant 0 : i32
    return %arg0, %c0_i32 : i32, i32
  }
}

module attributes {stable_mosaic.version = 11 : i64} {
  func.func @_graph_res_bn_kernel(%arg0: i32, %arg1: memref<12x512xf32, #tpu.memory_space<vmem>>, %arg2: memref<12x512xf32, #tpu.memory_space<vmem>>, %arg3: memref<512x512xf32, #tpu.memory_space<vmem>>, %arg4: memref<1x512xf32, #tpu.memory_space<vmem>>, %arg5: memref<1x512xf32, #tpu.memory_space<vmem>>, %arg6: memref<1x512xf32, #tpu.memory_space<vmem>>, %arg7: memref<12x512xf32, #tpu.memory_space<vmem>>) attributes {dimension_semantics = [#tpu.dimension_semantics<parallel>], iteration_bounds = array<i64: 1>, scalar_prefetch = 0 : i64, scratch_operands = 0 : i64, tpu.core_type = #tpu.core_type<tc>, window_params = [{transform_indices = @transform_0, window_bounds = array<i64: 12, 512>}, {transform_indices = @transform_1, window_bounds = array<i64: 12, 512>}, {pipeline_mode = #tpu.pipeline_mode<synchronous>, transform_indices = @transform_2, window_bounds = array<i64: 512, 512>}, {pipeline_mode = #tpu.pipeline_mode<synchronous>, transform_indices = @transform_3, window_bounds = array<i64: 1, 512>}, {pipeline_mode = #tpu.pipeline_mode<synchronous>, transform_indices = @transform_4, window_bounds = array<i64: 1, 512>}, {pipeline_mode = #tpu.pipeline_mode<synchronous>, transform_indices = @transform_5, window_bounds = array<i64: 1, 512>}, {transform_indices = @transform_6, window_bounds = array<i64: 12, 512>}]} {
    %c0 = arith.constant 0 : index
    %c0_0 = arith.constant 0 : index
    %0 = vector.load %arg1[%c0, %c0_0] : memref<12x512xf32, #tpu.memory_space<vmem>>, vector<12x512xf32>
    %c0_1 = arith.constant 0 : index
    %c0_2 = arith.constant 0 : index
    %1 = vector.load %arg3[%c0_1, %c0_2] : memref<512x512xf32, #tpu.memory_space<vmem>>, vector<512x512xf32>
    %cst = arith.constant dense<0.000000e+00> : vector<12x512xf32>
    %2 = tpu.matmul %0, %1, %cst {dimension_numbers = #tpu.dot_dimension_numbers<[1], [0], [0], [1], [0, 0, 1, 1], [], []>} : vector<12x512xf32>, vector<512x512xf32>, vector<12x512xf32> -> vector<12x512xf32>
    %c0_3 = arith.constant 0 : index
    %c0_4 = arith.constant 0 : index
    %3 = vector.load %arg4[%c0_3, %c0_4] : memref<1x512xf32, #tpu.memory_space<vmem>>, vector<1x512xf32>
    %4 = vector.broadcast %3 : vector<1x512xf32> to vector<12x512xf32>
    %5 = arith.addf %2, %4 : vector<12x512xf32>
    %c0_5 = arith.constant 0 : index
    %c0_6 = arith.constant 0 : index
    %6 = vector.load %arg2[%c0_5, %c0_6] : memref<12x512xf32, #tpu.memory_space<vmem>>, vector<12x512xf32>
    %7 = arith.addf %5, %6 : vector<12x512xf32>
    %c0_7 = arith.constant 0 : index
    %c0_8 = arith.constant 0 : index
    %8 = vector.load %arg5[%c0_7, %c0_8] : memref<1x512xf32, #tpu.memory_space<vmem>>, vector<1x512xf32>
    %9 = vector.broadcast %8 : vector<1x512xf32> to vector<12x512xf32>
    %10 = arith.mulf %7, %9 : vector<12x512xf32>
    %c0_9 = arith.constant 0 : index
    %c0_10 = arith.constant 0 : index
    %11 = vector.load %arg6[%c0_9, %c0_10] : memref<1x512xf32, #tpu.memory_space<vmem>>, vector<1x512xf32>
    %12 = vector.broadcast %11 : vector<1x512xf32> to vector<12x512xf32>
    %13 = arith.addf %10, %12 : vector<12x512xf32>
    %c0_11 = arith.constant 0 : index
    %c0_12 = arith.constant 0 : index
    %14 = vector.load %arg7[%c0_11, %c0_12] : memref<12x512xf32, #tpu.memory_space<vmem>>, vector<12x512xf32>
    tpu.vector_store %arg7[%c0_11, %c0_12], %13 {strides = array<i32>} : memref<12x512xf32, #tpu.memory_space<vmem>>, vector<12x512xf32>,
    return
  }
  func.func @transform_0(%arg0: i32) -> (i32, i32) {
    %c0_i32 = arith.constant 0 : i32
    %c0_i32_0 = arith.constant 0 : i32
    return %arg0, %c0_i32 : i32, i32
  }
  func.func @transform_1(%arg0: i32) -> (i32, i32) {
    %c0_i32 = arith.constant 0 : i32
    %c0_i32_0 = arith.constant 0 : i32
    return %arg0, %c0_i32 : i32, i32
  }
  func.func @transform_2(%arg0: i32) -> (i32, i32) {
    %c0_i32 = arith.constant 0 : i32
    %c0_i32_0 = arith.constant 0 : i32
    %c0_i32_1 = arith.constant 0 : i32
    return %c0_i32, %c0_i32_0 : i32, i32
  }
  func.func @transform_3(%arg0: i32) -> (i32, i32) {
    %c0_i32 = arith.constant 0 : i32
    %c0_i32_0 = arith.constant 0 : i32
    %c0_i32_1 = arith.constant 0 : i32
    return %c0_i32, %c0_i32_0 : i32, i32
  }
  func.func @transform_4(%arg0: i32) -> (i32, i32) {
    %c0_i32 = arith.constant 0 : i32
    %c0_i32_0 = arith.constant 0 : i32
    %c0_i32_1 = arith.constant 0 : i32
    return %c0_i32, %c0_i32_0 : i32, i32
  }
  func.func @transform_5(%arg0: i32) -> (i32, i32) {
    %c0_i32 = arith.constant 0 : i32
    %c0_i32_0 = arith.constant 0 : i32
    %c0_i32_1 = arith.constant 0 : i32
    return %c0_i32, %c0_i32_0 : i32, i32
  }
  func.func @transform_6(%arg0: i32) -> (i32, i32) {
    %c0_i32 = arith.constant 0 : i32
    %c0_i32_0 = arith.constant 0 : i32
    return %arg0, %c0_i32 : i32, i32
  }
}

module attributes {stable_mosaic.version = 11 : i64} {
  func.func @_gated_skip_kernel(%arg0: i32, %arg1: memref<128x64xf32, #tpu.memory_space<vmem>>, %arg2: memref<64x64xf32, #tpu.memory_space<vmem>>, %arg3: memref<1x64xf32, #tpu.memory_space<vmem>>, %arg4: memref<32x64xf32, #tpu.memory_space<vmem>>, %arg5: memref<1x64xf32, #tpu.memory_space<vmem>>, %arg6: memref<128x32xf32, #tpu.memory_space<vmem>>, %arg7: memref<128x64xf32, #tpu.memory_space<vmem>>) attributes {dimension_semantics = [#tpu.dimension_semantics<parallel>], iteration_bounds = array<i64: 1>, scalar_prefetch = 0 : i64, scratch_operands = 0 : i64, tpu.core_type = #tpu.core_type<tc>, window_params = [{transform_indices = @transform_0, window_bounds = array<i64: 128, 64>}, {pipeline_mode = #tpu.pipeline_mode<synchronous>, transform_indices = @transform_1, window_bounds = array<i64: 64, 64>}, {pipeline_mode = #tpu.pipeline_mode<synchronous>, transform_indices = @transform_2, window_bounds = array<i64: 1, 64>}, {pipeline_mode = #tpu.pipeline_mode<synchronous>, transform_indices = @transform_3, window_bounds = array<i64: 32, 64>}, {pipeline_mode = #tpu.pipeline_mode<synchronous>, transform_indices = @transform_4, window_bounds = array<i64: 1, 64>}, {transform_indices = @transform_5, window_bounds = array<i64: 128, 32>}, {transform_indices = @transform_6, window_bounds = array<i64: 128, 64>}]} {
    %c0 = arith.constant 0 : index
    %c0_0 = arith.constant 0 : index
    %0 = vector.load %arg1[%c0, %c0_0] : memref<128x64xf32, #tpu.memory_space<vmem>>, vector<128x64xf32>
    %c0_1 = arith.constant 0 : index
    %c0_2 = arith.constant 0 : index
    %1 = vector.load %arg2[%c0_1, %c0_2] : memref<64x64xf32, #tpu.memory_space<vmem>>, vector<64x64xf32>
    %cst = arith.constant dense<0.000000e+00> : vector<128x64xf32>
    %2 = tpu.matmul %0, %1, %cst {dimension_numbers = #tpu.dot_dimension_numbers<[1], [0], [0], [1], [0, 0, 1, 1], [], []>} : vector<128x64xf32>, vector<64x64xf32>, vector<128x64xf32> -> vector<128x64xf32>
    %c0_3 = arith.constant 0 : index
    %c0_4 = arith.constant 0 : index
    %3 = vector.load %arg3[%c0_3, %c0_4] : memref<1x64xf32, #tpu.memory_space<vmem>>, vector<1x64xf32>
    %4 = vector.broadcast %3 : vector<1x64xf32> to vector<128x64xf32>
    %5 = arith.addf %2, %4 : vector<128x64xf32>
    %6 = vector.extract_strided_slice %5 {offsets = [0, 0], sizes = [128, 32], strides = [1, 1]} : vector<128x64xf32> to vector<128x32xf32>
    %7 = math.tanh %6 : vector<128x32xf32>
    %8 = vector.extract_strided_slice %5 {offsets = [0, 32], sizes = [128, 32], strides = [1, 1]} : vector<128x64xf32> to vector<128x32xf32>
    %9 = arith.negf %8 : vector<128x32xf32>
    %10 = math.exp %9 : vector<128x32xf32>
    %cst_5 = arith.constant 1.000000e+00 : f32
    %11 = vector.broadcast %cst_5 : f32 to vector<128x32xf32>
    %12 = arith.addf %11, %10 : vector<128x32xf32>
    %13 = arith.divf %11, %12 : vector<128x32xf32>
    %14 = arith.mulf %7, %13 : vector<128x32xf32>
    %c0_6 = arith.constant 0 : index
    %c0_7 = arith.constant 0 : index
    %15 = vector.load %arg6[%c0_6, %c0_7] : memref<128x32xf32, #tpu.memory_space<vmem>>, vector<128x32xf32>
    tpu.vector_store %arg6[%c0_6, %c0_7], %14 {strides = array<i32>} : memref<128x32xf32, #tpu.memory_space<vmem>>, vector<128x32xf32>,
    %c0_8 = arith.constant 0 : index
    %c0_9 = arith.constant 0 : index
    %16 = vector.load %arg4[%c0_8, %c0_9] : memref<32x64xf32, #tpu.memory_space<vmem>>, vector<32x64xf32>
    %cst_10 = arith.constant dense<0.000000e+00> : vector<128x64xf32>
    %17 = tpu.matmul %14, %16, %cst_10 {dimension_numbers = #tpu.dot_dimension_numbers<[1], [0], [0], [1], [0, 0, 1, 1], [], []>} : vector<128x32xf32>, vector<32x64xf32>, vector<128x64xf32> -> vector<128x64xf32>
    %c0_11 = arith.constant 0 : index
    %c0_12 = arith.constant 0 : index
    %18 = vector.load %arg5[%c0_11, %c0_12] : memref<1x64xf32, #tpu.memory_space<vmem>>, vector<1x64xf32>
    %19 = vector.broadcast %18 : vector<1x64xf32> to vector<128x64xf32>
    %20 = arith.addf %17, %19 : vector<128x64xf32>
    %c0_13 = arith.constant 0 : index
    %c0_14 = arith.constant 0 : index
    %21 = vector.load %arg7[%c0_13, %c0_14] : memref<128x64xf32, #tpu.memory_space<vmem>>, vector<128x64xf32>
    tpu.vector_store %arg7[%c0_13, %c0_14], %20 {strides = array<i32>} : memref<128x64xf32, #tpu.memory_space<vmem>>, vector<128x64xf32>,
    return
  }
  func.func @transform_0(%arg0: i32) -> (i32, i32) {
    %c0_i32 = arith.constant 0 : i32
    %c0_i32_0 = arith.constant 0 : i32
    return %arg0, %c0_i32 : i32, i32
  }
  func.func @transform_1(%arg0: i32) -> (i32, i32) {
    %c0_i32 = arith.constant 0 : i32
    %c0_i32_0 = arith.constant 0 : i32
    %c0_i32_1 = arith.constant 0 : i32
    return %c0_i32, %c0_i32_0 : i32, i32
  }
  func.func @transform_2(%arg0: i32) -> (i32, i32) {
    %c0_i32 = arith.constant 0 : i32
    %c0_i32_0 = arith.constant 0 : i32
    %c0_i32_1 = arith.constant 0 : i32
    return %c0_i32, %c0_i32_0 : i32, i32
  }
  func.func @transform_3(%arg0: i32) -> (i32, i32) {
    %c0_i32 = arith.constant 0 : i32
    %c0_i32_0 = arith.constant 0 : i32
    %c0_i32_1 = arith.constant 0 : i32
    return %c0_i32, %c0_i32_0 : i32, i32
  }
  func.func @transform_4(%arg0: i32) -> (i32, i32) {
    %c0_i32 = arith.constant 0 : i32
    %c0_i32_0 = arith.constant 0 : i32
    %c0_i32_1 = arith.constant 0 : i32
    return %c0_i32, %c0_i32_0 : i32, i32
  }
  func.func @transform_5(%arg0: i32) -> (i32, i32) {
    %c0_i32 = arith.constant 0 : i32
    %c0_i32_0 = arith.constant 0 : i32
    return %arg0, %c0_i32 : i32, i32
  }
  func.func @transform_6(%arg0: i32) -> (i32, i32) {
    %c0_i32 = arith.constant 0 : i32
    %c0_i32_0 = arith.constant 0 : i32
    return %arg0, %c0_i32 : i32, i32
  }
}

module attributes {stable_mosaic.version = 11 : i64} {
  func.func @_graph_res_bn_kernel(%arg0: i32, %arg1: memref<8x512xf32, #tpu.memory_space<vmem>>, %arg2: memref<8x512xf32, #tpu.memory_space<vmem>>, %arg3: memref<512x512xf32, #tpu.memory_space<vmem>>, %arg4: memref<1x512xf32, #tpu.memory_space<vmem>>, %arg5: memref<1x512xf32, #tpu.memory_space<vmem>>, %arg6: memref<1x512xf32, #tpu.memory_space<vmem>>, %arg7: memref<8x512xf32, #tpu.memory_space<vmem>>) attributes {dimension_semantics = [#tpu.dimension_semantics<parallel>], iteration_bounds = array<i64: 1>, scalar_prefetch = 0 : i64, scratch_operands = 0 : i64, tpu.core_type = #tpu.core_type<tc>, window_params = [{transform_indices = @transform_0, window_bounds = array<i64: 8, 512>}, {transform_indices = @transform_1, window_bounds = array<i64: 8, 512>}, {pipeline_mode = #tpu.pipeline_mode<synchronous>, transform_indices = @transform_2, window_bounds = array<i64: 512, 512>}, {pipeline_mode = #tpu.pipeline_mode<synchronous>, transform_indices = @transform_3, window_bounds = array<i64: 1, 512>}, {pipeline_mode = #tpu.pipeline_mode<synchronous>, transform_indices = @transform_4, window_bounds = array<i64: 1, 512>}, {pipeline_mode = #tpu.pipeline_mode<synchronous>, transform_indices = @transform_5, window_bounds = array<i64: 1, 512>}, {transform_indices = @transform_6, window_bounds = array<i64: 8, 512>}]} {
    %c0 = arith.constant 0 : index
    %c0_0 = arith.constant 0 : index
    %0 = vector.load %arg1[%c0, %c0_0] : memref<8x512xf32, #tpu.memory_space<vmem>>, vector<8x512xf32>
    %c0_1 = arith.constant 0 : index
    %c0_2 = arith.constant 0 : index
    %1 = vector.load %arg3[%c0_1, %c0_2] : memref<512x512xf32, #tpu.memory_space<vmem>>, vector<512x512xf32>
    %cst = arith.constant dense<0.000000e+00> : vector<8x512xf32>
    %2 = tpu.matmul %0, %1, %cst {dimension_numbers = #tpu.dot_dimension_numbers<[1], [0], [0], [1], [0, 0, 1, 1], [], []>} : vector<8x512xf32>, vector<512x512xf32>, vector<8x512xf32> -> vector<8x512xf32>
    %c0_3 = arith.constant 0 : index
    %c0_4 = arith.constant 0 : index
    %3 = vector.load %arg4[%c0_3, %c0_4] : memref<1x512xf32, #tpu.memory_space<vmem>>, vector<1x512xf32>
    %4 = vector.broadcast %3 : vector<1x512xf32> to vector<8x512xf32>
    %5 = arith.addf %2, %4 : vector<8x512xf32>
    %c0_5 = arith.constant 0 : index
    %c0_6 = arith.constant 0 : index
    %6 = vector.load %arg2[%c0_5, %c0_6] : memref<8x512xf32, #tpu.memory_space<vmem>>, vector<8x512xf32>
    %7 = arith.addf %5, %6 : vector<8x512xf32>
    %c0_7 = arith.constant 0 : index
    %c0_8 = arith.constant 0 : index
    %8 = vector.load %arg5[%c0_7, %c0_8] : memref<1x512xf32, #tpu.memory_space<vmem>>, vector<1x512xf32>
    %9 = vector.broadcast %8 : vector<1x512xf32> to vector<8x512xf32>
    %10 = arith.mulf %7, %9 : vector<8x512xf32>
    %c0_9 = arith.constant 0 : index
    %c0_10 = arith.constant 0 : index
    %11 = vector.load %arg6[%c0_9, %c0_10] : memref<1x512xf32, #tpu.memory_space<vmem>>, vector<1x512xf32>
    %12 = vector.broadcast %11 : vector<1x512xf32> to vector<8x512xf32>
    %13 = arith.addf %10, %12 : vector<8x512xf32>
    %c0_11 = arith.constant 0 : index
    %c0_12 = arith.constant 0 : index
    %14 = vector.load %arg7[%c0_11, %c0_12] : memref<8x512xf32, #tpu.memory_space<vmem>>, vector<8x512xf32>
    tpu.vector_store %arg7[%c0_11, %c0_12], %13 {strides = array<i32>} : memref<8x512xf32, #tpu.memory_space<vmem>>, vector<8x512xf32>,
    return
  }
  func.func @transform_0(%arg0: i32) -> (i32, i32) {
    %c0_i32 = arith.constant 0 : i32
    %c0_i32_0 = arith.constant 0 : i32
    return %arg0, %c0_i32 : i32, i32
  }
  func.func @transform_1(%arg0: i32) -> (i32, i32) {
    %c0_i32 = arith.constant 0 : i32
    %c0_i32_0 = arith.constant 0 : i32
    return %arg0, %c0_i32 : i32, i32
  }
  func.func @transform_2(%arg0: i32) -> (i32, i32) {
    %c0_i32 = arith.constant 0 : i32
    %c0_i32_0 = arith.constant 0 : i32
    %c0_i32_1 = arith.constant 0 : i32
    return %c0_i32, %c0_i32_0 : i32, i32
  }
  func.func @transform_3(%arg0: i32) -> (i32, i32) {
    %c0_i32 = arith.constant 0 : i32
    %c0_i32_0 = arith.constant 0 : i32
    %c0_i32_1 = arith.constant 0 : i32
    return %c0_i32, %c0_i32_0 : i32, i32
  }
  func.func @transform_4(%arg0: i32) -> (i32, i32) {
    %c0_i32 = arith.constant 0 : i32
    %c0_i32_0 = arith.constant 0 : i32
    %c0_i32_1 = arith.constant 0 : i32
    return %c0_i32, %c0_i32_0 : i32, i32
  }
  func.func @transform_5(%arg0: i32) -> (i32, i32) {
    %c0_i32 = arith.constant 0 : i32
    %c0_i32_0 = arith.constant 0 : i32
    %c0_i32_1 = arith.constant 0 : i32
    return %c0_i32, %c0_i32_0 : i32, i32
  }
  func.func @transform_6(%arg0: i32) -> (i32, i32) {
    %c0_i32 = arith.constant 0 : i32
    %c0_i32_0 = arith.constant 0 : i32
    return %arg0, %c0_i32 : i32, i32
  }
}

module attributes {stable_mosaic.version = 11 : i64} {
  func.func @_gated_skip_kernel(%arg0: i32, %arg1: memref<96x64xf32, #tpu.memory_space<vmem>>, %arg2: memref<64x64xf32, #tpu.memory_space<vmem>>, %arg3: memref<1x64xf32, #tpu.memory_space<vmem>>, %arg4: memref<32x64xf32, #tpu.memory_space<vmem>>, %arg5: memref<1x64xf32, #tpu.memory_space<vmem>>, %arg6: memref<96x32xf32, #tpu.memory_space<vmem>>, %arg7: memref<96x64xf32, #tpu.memory_space<vmem>>) attributes {dimension_semantics = [#tpu.dimension_semantics<parallel>], iteration_bounds = array<i64: 1>, scalar_prefetch = 0 : i64, scratch_operands = 0 : i64, tpu.core_type = #tpu.core_type<tc>, window_params = [{transform_indices = @transform_0, window_bounds = array<i64: 96, 64>}, {pipeline_mode = #tpu.pipeline_mode<synchronous>, transform_indices = @transform_1, window_bounds = array<i64: 64, 64>}, {pipeline_mode = #tpu.pipeline_mode<synchronous>, transform_indices = @transform_2, window_bounds = array<i64: 1, 64>}, {pipeline_mode = #tpu.pipeline_mode<synchronous>, transform_indices = @transform_3, window_bounds = array<i64: 32, 64>}, {pipeline_mode = #tpu.pipeline_mode<synchronous>, transform_indices = @transform_4, window_bounds = array<i64: 1, 64>}, {transform_indices = @transform_5, window_bounds = array<i64: 96, 32>}, {transform_indices = @transform_6, window_bounds = array<i64: 96, 64>}]} {
    %c0 = arith.constant 0 : index
    %c0_0 = arith.constant 0 : index
    %0 = vector.load %arg1[%c0, %c0_0] : memref<96x64xf32, #tpu.memory_space<vmem>>, vector<96x64xf32>
    %c0_1 = arith.constant 0 : index
    %c0_2 = arith.constant 0 : index
    %1 = vector.load %arg2[%c0_1, %c0_2] : memref<64x64xf32, #tpu.memory_space<vmem>>, vector<64x64xf32>
    %cst = arith.constant dense<0.000000e+00> : vector<96x64xf32>
    %2 = tpu.matmul %0, %1, %cst {dimension_numbers = #tpu.dot_dimension_numbers<[1], [0], [0], [1], [0, 0, 1, 1], [], []>} : vector<96x64xf32>, vector<64x64xf32>, vector<96x64xf32> -> vector<96x64xf32>
    %c0_3 = arith.constant 0 : index
    %c0_4 = arith.constant 0 : index
    %3 = vector.load %arg3[%c0_3, %c0_4] : memref<1x64xf32, #tpu.memory_space<vmem>>, vector<1x64xf32>
    %4 = vector.broadcast %3 : vector<1x64xf32> to vector<96x64xf32>
    %5 = arith.addf %2, %4 : vector<96x64xf32>
    %6 = vector.extract_strided_slice %5 {offsets = [0, 0], sizes = [96, 32], strides = [1, 1]} : vector<96x64xf32> to vector<96x32xf32>
    %7 = math.tanh %6 : vector<96x32xf32>
    %8 = vector.extract_strided_slice %5 {offsets = [0, 32], sizes = [96, 32], strides = [1, 1]} : vector<96x64xf32> to vector<96x32xf32>
    %9 = arith.negf %8 : vector<96x32xf32>
    %10 = math.exp %9 : vector<96x32xf32>
    %cst_5 = arith.constant 1.000000e+00 : f32
    %11 = vector.broadcast %cst_5 : f32 to vector<96x32xf32>
    %12 = arith.addf %11, %10 : vector<96x32xf32>
    %13 = arith.divf %11, %12 : vector<96x32xf32>
    %14 = arith.mulf %7, %13 : vector<96x32xf32>
    %c0_6 = arith.constant 0 : index
    %c0_7 = arith.constant 0 : index
    %15 = vector.load %arg6[%c0_6, %c0_7] : memref<96x32xf32, #tpu.memory_space<vmem>>, vector<96x32xf32>
    tpu.vector_store %arg6[%c0_6, %c0_7], %14 {strides = array<i32>} : memref<96x32xf32, #tpu.memory_space<vmem>>, vector<96x32xf32>,
    %c0_8 = arith.constant 0 : index
    %c0_9 = arith.constant 0 : index
    %16 = vector.load %arg4[%c0_8, %c0_9] : memref<32x64xf32, #tpu.memory_space<vmem>>, vector<32x64xf32>
    %cst_10 = arith.constant dense<0.000000e+00> : vector<96x64xf32>
    %17 = tpu.matmul %14, %16, %cst_10 {dimension_numbers = #tpu.dot_dimension_numbers<[1], [0], [0], [1], [0, 0, 1, 1], [], []>} : vector<96x32xf32>, vector<32x64xf32>, vector<96x64xf32> -> vector<96x64xf32>
    %c0_11 = arith.constant 0 : index
    %c0_12 = arith.constant 0 : index
    %18 = vector.load %arg5[%c0_11, %c0_12] : memref<1x64xf32, #tpu.memory_space<vmem>>, vector<1x64xf32>
    %19 = vector.broadcast %18 : vector<1x64xf32> to vector<96x64xf32>
    %20 = arith.addf %17, %19 : vector<96x64xf32>
    %c0_13 = arith.constant 0 : index
    %c0_14 = arith.constant 0 : index
    %21 = vector.load %arg7[%c0_13, %c0_14] : memref<96x64xf32, #tpu.memory_space<vmem>>, vector<96x64xf32>
    tpu.vector_store %arg7[%c0_13, %c0_14], %20 {strides = array<i32>} : memref<96x64xf32, #tpu.memory_space<vmem>>, vector<96x64xf32>,
    return
  }
  func.func @transform_0(%arg0: i32) -> (i32, i32) {
    %c0_i32 = arith.constant 0 : i32
    %c0_i32_0 = arith.constant 0 : i32
    return %arg0, %c0_i32 : i32, i32
  }
  func.func @transform_1(%arg0: i32) -> (i32, i32) {
    %c0_i32 = arith.constant 0 : i32
    %c0_i32_0 = arith.constant 0 : i32
    %c0_i32_1 = arith.constant 0 : i32
    return %c0_i32, %c0_i32_0 : i32, i32
  }
  func.func @transform_2(%arg0: i32) -> (i32, i32) {
    %c0_i32 = arith.constant 0 : i32
    %c0_i32_0 = arith.constant 0 : i32
    %c0_i32_1 = arith.constant 0 : i32
    return %c0_i32, %c0_i32_0 : i32, i32
  }
  func.func @transform_3(%arg0: i32) -> (i32, i32) {
    %c0_i32 = arith.constant 0 : i32
    %c0_i32_0 = arith.constant 0 : i32
    %c0_i32_1 = arith.constant 0 : i32
    return %c0_i32, %c0_i32_0 : i32, i32
  }
  func.func @transform_4(%arg0: i32) -> (i32, i32) {
    %c0_i32 = arith.constant 0 : i32
    %c0_i32_0 = arith.constant 0 : i32
    %c0_i32_1 = arith.constant 0 : i32
    return %c0_i32, %c0_i32_0 : i32, i32
  }
  func.func @transform_5(%arg0: i32) -> (i32, i32) {
    %c0_i32 = arith.constant 0 : i32
    %c0_i32_0 = arith.constant 0 : i32
    return %arg0, %c0_i32 : i32, i32
  }
  func.func @transform_6(%arg0: i32) -> (i32, i32) {
    %c0_i32 = arith.constant 0 : i32
    %c0_i32_0 = arith.constant 0 : i32
    return %arg0, %c0_i32 : i32, i32
  }
}

module attributes {stable_mosaic.version = 11 : i64} {
  func.func @_graph_res_bn_kernel(%arg0: i32, %arg1: memref<6x512xf32, #tpu.memory_space<vmem>>, %arg2: memref<6x512xf32, #tpu.memory_space<vmem>>, %arg3: memref<512x512xf32, #tpu.memory_space<vmem>>, %arg4: memref<1x512xf32, #tpu.memory_space<vmem>>, %arg5: memref<1x512xf32, #tpu.memory_space<vmem>>, %arg6: memref<1x512xf32, #tpu.memory_space<vmem>>, %arg7: memref<6x512xf32, #tpu.memory_space<vmem>>) attributes {dimension_semantics = [#tpu.dimension_semantics<parallel>], iteration_bounds = array<i64: 1>, scalar_prefetch = 0 : i64, scratch_operands = 0 : i64, tpu.core_type = #tpu.core_type<tc>, window_params = [{transform_indices = @transform_0, window_bounds = array<i64: 6, 512>}, {transform_indices = @transform_1, window_bounds = array<i64: 6, 512>}, {pipeline_mode = #tpu.pipeline_mode<synchronous>, transform_indices = @transform_2, window_bounds = array<i64: 512, 512>}, {pipeline_mode = #tpu.pipeline_mode<synchronous>, transform_indices = @transform_3, window_bounds = array<i64: 1, 512>}, {pipeline_mode = #tpu.pipeline_mode<synchronous>, transform_indices = @transform_4, window_bounds = array<i64: 1, 512>}, {pipeline_mode = #tpu.pipeline_mode<synchronous>, transform_indices = @transform_5, window_bounds = array<i64: 1, 512>}, {transform_indices = @transform_6, window_bounds = array<i64: 6, 512>}]} {
    %c0 = arith.constant 0 : index
    %c0_0 = arith.constant 0 : index
    %0 = vector.load %arg1[%c0, %c0_0] : memref<6x512xf32, #tpu.memory_space<vmem>>, vector<6x512xf32>
    %c0_1 = arith.constant 0 : index
    %c0_2 = arith.constant 0 : index
    %1 = vector.load %arg3[%c0_1, %c0_2] : memref<512x512xf32, #tpu.memory_space<vmem>>, vector<512x512xf32>
    %cst = arith.constant dense<0.000000e+00> : vector<6x512xf32>
    %2 = tpu.matmul %0, %1, %cst {dimension_numbers = #tpu.dot_dimension_numbers<[1], [0], [0], [1], [0, 0, 1, 1], [], []>} : vector<6x512xf32>, vector<512x512xf32>, vector<6x512xf32> -> vector<6x512xf32>
    %c0_3 = arith.constant 0 : index
    %c0_4 = arith.constant 0 : index
    %3 = vector.load %arg4[%c0_3, %c0_4] : memref<1x512xf32, #tpu.memory_space<vmem>>, vector<1x512xf32>
    %4 = vector.broadcast %3 : vector<1x512xf32> to vector<6x512xf32>
    %5 = arith.addf %2, %4 : vector<6x512xf32>
    %c0_5 = arith.constant 0 : index
    %c0_6 = arith.constant 0 : index
    %6 = vector.load %arg2[%c0_5, %c0_6] : memref<6x512xf32, #tpu.memory_space<vmem>>, vector<6x512xf32>
    %7 = arith.addf %5, %6 : vector<6x512xf32>
    %c0_7 = arith.constant 0 : index
    %c0_8 = arith.constant 0 : index
    %8 = vector.load %arg5[%c0_7, %c0_8] : memref<1x512xf32, #tpu.memory_space<vmem>>, vector<1x512xf32>
    %9 = vector.broadcast %8 : vector<1x512xf32> to vector<6x512xf32>
    %10 = arith.mulf %7, %9 : vector<6x512xf32>
    %c0_9 = arith.constant 0 : index
    %c0_10 = arith.constant 0 : index
    %11 = vector.load %arg6[%c0_9, %c0_10] : memref<1x512xf32, #tpu.memory_space<vmem>>, vector<1x512xf32>
    %12 = vector.broadcast %11 : vector<1x512xf32> to vector<6x512xf32>
    %13 = arith.addf %10, %12 : vector<6x512xf32>
    %c0_11 = arith.constant 0 : index
    %c0_12 = arith.constant 0 : index
    %14 = vector.load %arg7[%c0_11, %c0_12] : memref<6x512xf32, #tpu.memory_space<vmem>>, vector<6x512xf32>
    tpu.vector_store %arg7[%c0_11, %c0_12], %13 {strides = array<i32>} : memref<6x512xf32, #tpu.memory_space<vmem>>, vector<6x512xf32>,
    return
  }
  func.func @transform_0(%arg0: i32) -> (i32, i32) {
    %c0_i32 = arith.constant 0 : i32
    %c0_i32_0 = arith.constant 0 : i32
    return %arg0, %c0_i32 : i32, i32
  }
  func.func @transform_1(%arg0: i32) -> (i32, i32) {
    %c0_i32 = arith.constant 0 : i32
    %c0_i32_0 = arith.constant 0 : i32
    return %arg0, %c0_i32 : i32, i32
  }
  func.func @transform_2(%arg0: i32) -> (i32, i32) {
    %c0_i32 = arith.constant 0 : i32
    %c0_i32_0 = arith.constant 0 : i32
    %c0_i32_1 = arith.constant 0 : i32
    return %c0_i32, %c0_i32_0 : i32, i32
  }
  func.func @transform_3(%arg0: i32) -> (i32, i32) {
    %c0_i32 = arith.constant 0 : i32
    %c0_i32_0 = arith.constant 0 : i32
    %c0_i32_1 = arith.constant 0 : i32
    return %c0_i32, %c0_i32_0 : i32, i32
  }
  func.func @transform_4(%arg0: i32) -> (i32, i32) {
    %c0_i32 = arith.constant 0 : i32
    %c0_i32_0 = arith.constant 0 : i32
    %c0_i32_1 = arith.constant 0 : i32
    return %c0_i32, %c0_i32_0 : i32, i32
  }
  func.func @transform_5(%arg0: i32) -> (i32, i32) {
    %c0_i32 = arith.constant 0 : i32
    %c0_i32_0 = arith.constant 0 : i32
    %c0_i32_1 = arith.constant 0 : i32
    return %c0_i32, %c0_i32_0 : i32, i32
  }
  func.func @transform_6(%arg0: i32) -> (i32, i32) {
    %c0_i32 = arith.constant 0 : i32
    %c0_i32_0 = arith.constant 0 : i32
    return %arg0, %c0_i32 : i32, i32
  }
}

module attributes {stable_mosaic.version = 11 : i64} {
  func.func @_gated_skip_kernel(%arg0: i32, %arg1: memref<32x64xf32, #tpu.memory_space<vmem>>, %arg2: memref<64x64xf32, #tpu.memory_space<vmem>>, %arg3: memref<1x64xf32, #tpu.memory_space<vmem>>, %arg4: memref<32x64xf32, #tpu.memory_space<vmem>>, %arg5: memref<1x64xf32, #tpu.memory_space<vmem>>, %arg6: memref<32x32xf32, #tpu.memory_space<vmem>>, %arg7: memref<32x64xf32, #tpu.memory_space<vmem>>) attributes {dimension_semantics = [#tpu.dimension_semantics<parallel>], iteration_bounds = array<i64: 1>, scalar_prefetch = 0 : i64, scratch_operands = 0 : i64, tpu.core_type = #tpu.core_type<tc>, window_params = [{transform_indices = @transform_0, window_bounds = array<i64: 32, 64>}, {pipeline_mode = #tpu.pipeline_mode<synchronous>, transform_indices = @transform_1, window_bounds = array<i64: 64, 64>}, {pipeline_mode = #tpu.pipeline_mode<synchronous>, transform_indices = @transform_2, window_bounds = array<i64: 1, 64>}, {pipeline_mode = #tpu.pipeline_mode<synchronous>, transform_indices = @transform_3, window_bounds = array<i64: 32, 64>}, {pipeline_mode = #tpu.pipeline_mode<synchronous>, transform_indices = @transform_4, window_bounds = array<i64: 1, 64>}, {transform_indices = @transform_5, window_bounds = array<i64: 32, 32>}, {transform_indices = @transform_6, window_bounds = array<i64: 32, 64>}]} {
    %c0 = arith.constant 0 : index
    %c0_0 = arith.constant 0 : index
    %0 = vector.load %arg1[%c0, %c0_0] : memref<32x64xf32, #tpu.memory_space<vmem>>, vector<32x64xf32>
    %c0_1 = arith.constant 0 : index
    %c0_2 = arith.constant 0 : index
    %1 = vector.load %arg2[%c0_1, %c0_2] : memref<64x64xf32, #tpu.memory_space<vmem>>, vector<64x64xf32>
    %cst = arith.constant dense<0.000000e+00> : vector<32x64xf32>
    %2 = tpu.matmul %0, %1, %cst {dimension_numbers = #tpu.dot_dimension_numbers<[1], [0], [0], [1], [0, 0, 1, 1], [], []>} : vector<32x64xf32>, vector<64x64xf32>, vector<32x64xf32> -> vector<32x64xf32>
    %c0_3 = arith.constant 0 : index
    %c0_4 = arith.constant 0 : index
    %3 = vector.load %arg3[%c0_3, %c0_4] : memref<1x64xf32, #tpu.memory_space<vmem>>, vector<1x64xf32>
    %4 = vector.broadcast %3 : vector<1x64xf32> to vector<32x64xf32>
    %5 = arith.addf %2, %4 : vector<32x64xf32>
    %6 = vector.extract_strided_slice %5 {offsets = [0, 0], sizes = [32, 32], strides = [1, 1]} : vector<32x64xf32> to vector<32x32xf32>
    %7 = math.tanh %6 : vector<32x32xf32>
    %8 = vector.extract_strided_slice %5 {offsets = [0, 32], sizes = [32, 32], strides = [1, 1]} : vector<32x64xf32> to vector<32x32xf32>
    %9 = arith.negf %8 : vector<32x32xf32>
    %10 = math.exp %9 : vector<32x32xf32>
    %cst_5 = arith.constant 1.000000e+00 : f32
    %11 = vector.broadcast %cst_5 : f32 to vector<32x32xf32>
    %12 = arith.addf %11, %10 : vector<32x32xf32>
    %13 = arith.divf %11, %12 : vector<32x32xf32>
    %14 = arith.mulf %7, %13 : vector<32x32xf32>
    %c0_6 = arith.constant 0 : index
    %c0_7 = arith.constant 0 : index
    %15 = vector.load %arg6[%c0_6, %c0_7] : memref<32x32xf32, #tpu.memory_space<vmem>>, vector<32x32xf32>
    tpu.vector_store %arg6[%c0_6, %c0_7], %14 {strides = array<i32>} : memref<32x32xf32, #tpu.memory_space<vmem>>, vector<32x32xf32>,
    %c0_8 = arith.constant 0 : index
    %c0_9 = arith.constant 0 : index
    %16 = vector.load %arg4[%c0_8, %c0_9] : memref<32x64xf32, #tpu.memory_space<vmem>>, vector<32x64xf32>
    %cst_10 = arith.constant dense<0.000000e+00> : vector<32x64xf32>
    %17 = tpu.matmul %14, %16, %cst_10 {dimension_numbers = #tpu.dot_dimension_numbers<[1], [0], [0], [1], [0, 0, 1, 1], [], []>} : vector<32x32xf32>, vector<32x64xf32>, vector<32x64xf32> -> vector<32x64xf32>
    %c0_11 = arith.constant 0 : index
    %c0_12 = arith.constant 0 : index
    %18 = vector.load %arg5[%c0_11, %c0_12] : memref<1x64xf32, #tpu.memory_space<vmem>>, vector<1x64xf32>
    %19 = vector.broadcast %18 : vector<1x64xf32> to vector<32x64xf32>
    %20 = arith.addf %17, %19 : vector<32x64xf32>
    %c0_13 = arith.constant 0 : index
    %c0_14 = arith.constant 0 : index
    %21 = vector.load %arg7[%c0_13, %c0_14] : memref<32x64xf32, #tpu.memory_space<vmem>>, vector<32x64xf32>
    tpu.vector_store %arg7[%c0_13, %c0_14], %20 {strides = array<i32>} : memref<32x64xf32, #tpu.memory_space<vmem>>, vector<32x64xf32>,
    return
  }
  func.func @transform_0(%arg0: i32) -> (i32, i32) {
    %c0_i32 = arith.constant 0 : i32
    %c0_i32_0 = arith.constant 0 : i32
    return %arg0, %c0_i32 : i32, i32
  }
  func.func @transform_1(%arg0: i32) -> (i32, i32) {
    %c0_i32 = arith.constant 0 : i32
    %c0_i32_0 = arith.constant 0 : i32
    %c0_i32_1 = arith.constant 0 : i32
    return %c0_i32, %c0_i32_0 : i32, i32
  }
  func.func @transform_2(%arg0: i32) -> (i32, i32) {
    %c0_i32 = arith.constant 0 : i32
    %c0_i32_0 = arith.constant 0 : i32
    %c0_i32_1 = arith.constant 0 : i32
    return %c0_i32, %c0_i32_0 : i32, i32
  }
  func.func @transform_3(%arg0: i32) -> (i32, i32) {
    %c0_i32 = arith.constant 0 : i32
    %c0_i32_0 = arith.constant 0 : i32
    %c0_i32_1 = arith.constant 0 : i32
    return %c0_i32, %c0_i32_0 : i32, i32
  }
  func.func @transform_4(%arg0: i32) -> (i32, i32) {
    %c0_i32 = arith.constant 0 : i32
    %c0_i32_0 = arith.constant 0 : i32
    %c0_i32_1 = arith.constant 0 : i32
    return %c0_i32, %c0_i32_0 : i32, i32
  }
  func.func @transform_5(%arg0: i32) -> (i32, i32) {
    %c0_i32 = arith.constant 0 : i32
    %c0_i32_0 = arith.constant 0 : i32
    return %arg0, %c0_i32 : i32, i32
  }
  func.func @transform_6(%arg0: i32) -> (i32, i32) {
    %c0_i32 = arith.constant 0 : i32
    %c0_i32_0 = arith.constant 0 : i32
    return %arg0, %c0_i32 : i32, i32
  }
}

module attributes {stable_mosaic.version = 11 : i64} {
  func.func @_end_kernel(%arg0: i32, %arg1: memref<32x64xf32, #tpu.memory_space<vmem>>, %arg2: memref<64x128xf32, #tpu.memory_space<vmem>>, %arg3: memref<1x128xf32, #tpu.memory_space<vmem>>, %arg4: memref<128x12xf32, #tpu.memory_space<vmem>>, %arg5: memref<1x12xf32, #tpu.memory_space<vmem>>, %arg6: memref<32x12xf32, #tpu.memory_space<vmem>>) attributes {dimension_semantics = [#tpu.dimension_semantics<parallel>], iteration_bounds = array<i64: 1>, scalar_prefetch = 0 : i64, scratch_operands = 0 : i64, tpu.core_type = #tpu.core_type<tc>, window_params = [{transform_indices = @transform_0, window_bounds = array<i64: 32, 64>}, {pipeline_mode = #tpu.pipeline_mode<synchronous>, transform_indices = @transform_1, window_bounds = array<i64: 64, 128>}, {pipeline_mode = #tpu.pipeline_mode<synchronous>, transform_indices = @transform_2, window_bounds = array<i64: 1, 128>}, {pipeline_mode = #tpu.pipeline_mode<synchronous>, transform_indices = @transform_3, window_bounds = array<i64: 128, 12>}, {pipeline_mode = #tpu.pipeline_mode<synchronous>, transform_indices = @transform_4, window_bounds = array<i64: 1, 12>}, {transform_indices = @transform_5, window_bounds = array<i64: 32, 12>}]} {
    %c0 = arith.constant 0 : index
    %c0_0 = arith.constant 0 : index
    %0 = vector.load %arg1[%c0, %c0_0] : memref<32x64xf32, #tpu.memory_space<vmem>>, vector<32x64xf32>
    %cst = arith.constant 0.000000e+00 : f32
    %1 = vector.broadcast %cst : f32 to vector<32x64xf32>
    %2 = arith.maximumf %0, %1 : vector<32x64xf32>
    %c0_1 = arith.constant 0 : index
    %c0_2 = arith.constant 0 : index
    %3 = vector.load %arg2[%c0_1, %c0_2] : memref<64x128xf32, #tpu.memory_space<vmem>>, vector<64x128xf32>
    %cst_3 = arith.constant dense<0.000000e+00> : vector<32x128xf32>
    %4 = tpu.matmul %2, %3, %cst_3 {dimension_numbers = #tpu.dot_dimension_numbers<[1], [0], [0], [1], [0, 0, 1, 1], [], []>} : vector<32x64xf32>, vector<64x128xf32>, vector<32x128xf32> -> vector<32x128xf32>
    %c0_4 = arith.constant 0 : index
    %c0_5 = arith.constant 0 : index
    %5 = vector.load %arg3[%c0_4, %c0_5] : memref<1x128xf32, #tpu.memory_space<vmem>>, vector<1x128xf32>
    %6 = vector.broadcast %5 : vector<1x128xf32> to vector<32x128xf32>
    %7 = arith.addf %4, %6 : vector<32x128xf32>
    %cst_6 = arith.constant 0.000000e+00 : f32
    %8 = vector.broadcast %cst_6 : f32 to vector<32x128xf32>
    %9 = arith.maximumf %7, %8 : vector<32x128xf32>
    %c0_7 = arith.constant 0 : index
    %c0_8 = arith.constant 0 : index
    %10 = vector.load %arg4[%c0_7, %c0_8] : memref<128x12xf32, #tpu.memory_space<vmem>>, vector<128x12xf32>
    %cst_9 = arith.constant dense<0.000000e+00> : vector<32x12xf32>
    %11 = tpu.matmul %9, %10, %cst_9 {dimension_numbers = #tpu.dot_dimension_numbers<[1], [0], [0], [1], [0, 0, 1, 1], [], []>} : vector<32x128xf32>, vector<128x12xf32>, vector<32x12xf32> -> vector<32x12xf32>
    %c0_10 = arith.constant 0 : index
    %c0_11 = arith.constant 0 : index
    %12 = vector.load %arg5[%c0_10, %c0_11] : memref<1x12xf32, #tpu.memory_space<vmem>>, vector<1x12xf32>
    %13 = vector.broadcast %12 : vector<1x12xf32> to vector<32x12xf32>
    %14 = arith.addf %11, %13 : vector<32x12xf32>
    %c0_12 = arith.constant 0 : index
    %c0_13 = arith.constant 0 : index
    %15 = vector.load %arg6[%c0_12, %c0_13] : memref<32x12xf32, #tpu.memory_space<vmem>>, vector<32x12xf32>
    tpu.vector_store %arg6[%c0_12, %c0_13], %14 {strides = array<i32>} : memref<32x12xf32, #tpu.memory_space<vmem>>, vector<32x12xf32>,
    return
  }
  func.func @transform_0(%arg0: i32) -> (i32, i32) {
    %c0_i32 = arith.constant 0 : i32
    %c0_i32_0 = arith.constant 0 : i32
    return %arg0, %c0_i32 : i32, i32
  }
  func.func @transform_1(%arg0: i32) -> (i32, i32) {
    %c0_i32 = arith.constant 0 : i32
    %c0_i32_0 = arith.constant 0 : i32
    %c0_i32_1 = arith.constant 0 : i32
    return %c0_i32, %c0_i32_0 : i32, i32
  }
  func.func @transform_2(%arg0: i32) -> (i32, i32) {
    %c0_i32 = arith.constant 0 : i32
    %c0_i32_0 = arith.constant 0 : i32
    %c0_i32_1 = arith.constant 0 : i32
    return %c0_i32, %c0_i32_0 : i32, i32
  }
  func.func @transform_3(%arg0: i32) -> (i32, i32) {
    %c0_i32 = arith.constant 0 : i32
    %c0_i32_0 = arith.constant 0 : i32
    %c0_i32_1 = arith.constant 0 : i32
    return %c0_i32, %c0_i32_0 : i32, i32
  }
  func.func @transform_4(%arg0: i32) -> (i32, i32) {
    %c0_i32 = arith.constant 0 : i32
    %c0_i32_0 = arith.constant 0 : i32
    %c0_i32_1 = arith.constant 0 : i32
    return %c0_i32, %c0_i32_0 : i32, i32
  }
  func.func @transform_5(%arg0: i32) -> (i32, i32) {
    %c0_i32 = arith.constant 0 : i32
    %c0_i32_0 = arith.constant 0 : i32
    return %arg0, %c0_i32 : i32, i32
  }
}

</mosaic_0001>

<bundles_post_ra>
// kernel: gwnet_forward.9
= control target key start
LH: loop header
LB: loop body
LE: loop exit
PB: predicated region body
PF: predicated region fallthrough
CT: control target
= control target key end

     0   :  { %vm132_vm0 = vcmask 1041408   ;;  %vm47_vm1 = vcmask 15360   ;;  %vm237_vm2 = vcmask 261120   ;;  %s583_s1 = inlined_call_operand.vmem [shape: f32[2,32], index: 1, kind: input, shape index: {}]   ;;  %s584_s0 = inlined_call_operand.vmem [shape: f32[224,2], index: 0, kind: input, shape index: {}]   ;;  %s585_s2 = inlined_call_operand.vmem [shape: f32[1,32], index: 2, kind: input, shape index: {}]   ;;  %s586_s3 = inlined_call_operand.vmem [shape: f32[224,32], index: 3, kind: output, shape index: {}]  }
   0x1   :  { %v42_v0 = vld [vmem:[%s583_s1] sm:$0x3]  ;;  %v28_v1 = vld [vmem:[%s584_s0 + $0x70] sm:$0xff]  ;;  %v35_v2 = vld [vmem:[%s584_s0 + $0xa8] sm:$0xff] }
   0x2   :  { %300 = vmatpush.msk.msra.mxu2 %vm132_vm0, %v42_v0  ;;  %301 = vmatpush.msk.msra.mxu3 %vm132_vm0, %v42_v0  ;;  %v14_v3 = vld [vmem:[%s584_s0] sm:$0xff]  ;;  %v21_v4 = vld [vmem:[%s584_s0 + $0x38] sm:$0xff]  ;;  %v36_v6 = vld [vmem:[%s584_s0 + $0xb0] sm:$0xff] }
   0x3   :  { %285 = vmatmul.msk.f32.vlgmr.msra.gmra.mxu2 %vm47_vm1, %v28_v1  ;;  %292 = vmatmul.msk.f32.vlgmr.msra.gmra.mxu3 %vm47_vm1, %v35_v2  ;;  %v29_v5 = vld [vmem:[%s584_s0 + $0x78] sm:$0xff]  ;;  %v15_v7 = vld [vmem:[%s584_s0 + $0x8] sm:$0xff]  ;;  %v22_v8 = vld [vmem:[%s584_s0 + $0x40] sm:$0xff] }
   0x4   :  { %270 = vmatpush.msk.msra.mxu0 %vm132_vm0, %v42_v0  ;;  %299 = vmatpush.msk.msra.mxu1 %vm132_vm0, %v42_v0  ;;  %v30_v9 = vld [vmem:[%s584_s0 + $0x80] sm:$0xff]  ;;  %v37_v10 = vld [vmem:[%s584_s0 + $0xb8] sm:$0xff]  ;;  %v16_v11 = vld [vmem:[%s584_s0 + $0x10] sm:$0xff] }
   0x5   :  { %271 = vmatmul.msk.f32.vlgmr.msra.gmra.mxu0 %vm47_vm1, %v14_v3  ;;  %278 = vmatmul.msk.f32.vlgmr.msra.gmra.mxu1 %vm47_vm1, %v21_v4  ;;  %v23_v12 = vld [vmem:[%s584_s0 + $0x48] sm:$0xff]  ;;  %v38_v14 = vld [vmem:[%s584_s0 + $0xc0] sm:$0xff]  ;;  %v17_v15 = vld [vmem:[%s584_s0 + $0x18] sm:$0xff] }
   0x6   :  { %v31_v13 = vld [vmem:[%s584_s0 + $0x88] sm:$0xff]  ;;  %v24_v16 = vld [vmem:[%s584_s0 + $0x50] sm:$0xff]  ;;  %v18_v19 = vld [vmem:[%s584_s0 + $0x20] sm:$0xff] }
   0x7   :  { %v32_v17 = vld [vmem:[%s584_s0 + $0x90] sm:$0xff]  ;;  %v39_v18 = vld [vmem:[%s584_s0 + $0xc8] sm:$0xff]  ;;  %v25_v20 = vld [vmem:[%s584_s0 + $0x58] sm:$0xff] }
   0x8   :  { %v33_v21 = vld [vmem:[%s584_s0 + $0x98] sm:$0xff]  ;;  %v40_v22 = vld [vmem:[%s584_s0 + $0xd0] sm:$0xff]  ;;  %v19_v23 = vld [vmem:[%s584_s0 + $0x28] sm:$0xff] }
   0x9   :  { %v26_v24 = vld [vmem:[%s584_s0 + $0x60] sm:$0xff]  ;;  %v41_v26 = vld [vmem:[%s584_s0 + $0xd8] sm:$0xff]  ;;  %v20_v27 = vld [vmem:[%s584_s0 + $0x30] sm:$0xff] }
   0xa   :  { %v34_v25 = vld [vmem:[%s584_s0 + $0xa0] sm:$0xff]  ;;  %v27_v28 = vld [vmem:[%s584_s0 + $0x68] sm:$0xff] }
   0xb   :  { %286 = vmatmul.msk.f32.gmra.mxu2 %vm47_vm1, %v29_v5  ;;  %293 = vmatmul.msk.f32.gmra.mxu3 %vm47_vm1, %v36_v6  ;;  %v441_v29 = vld [vmem:[%s585_s2] ss:$0 sm:$0xff] }
   0xd   :  { %272 = vmatmul.msk.f32.gmra.mxu0 %vm47_vm1, %v15_v7  ;;  %279 = vmatmul.msk.f32.gmra.mxu1 %vm47_vm1, %v22_v8 }
  0x13   :  { %287 = vmatmul.msk.f32.gmra.mxu2 %vm47_vm1, %v30_v9  ;;  %294 = vmatmul.msk.f32.gmra.mxu3 %vm47_vm1, %v37_v10 }
  0x15   :  { %273 = vmatmul.msk.f32.gmra.mxu0 %vm47_vm1, %v16_v11  ;;  %280 = vmatmul.msk.f32.gmra.mxu1 %vm47_vm1, %v23_v12 }
  0x1b   :  { %288 = vmatmul.msk.f32.gmra.mxu2 %vm47_vm1, %v31_v13  ;;  %295 = vmatmul.msk.f32.gmra.mxu3 %vm47_vm1, %v38_v14 }
  0x1d   :  { %274 = vmatmul.msk.f32.gmra.mxu0 %vm47_vm1, %v17_v15  ;;  %281 = vmatmul.msk.f32.gmra.mxu1 %vm47_vm1, %v24_v16 }
  0x23   :  { %289 = vmatmul.msk.f32.gmra.mxu2 %vm47_vm1, %v32_v17  ;;  %296 = vmatmul.msk.f32.gmra.mxu3 %vm47_vm1, %v39_v18 }
  0x25   :  { %275 = vmatmul.msk.f32.gmra.mxu0 %vm47_vm1, %v18_v19  ;;  %282 = vmatmul.msk.f32.gmra.mxu1 %vm47_vm1, %v25_v20 }
  0x2b   :  { %290 = vmatmul.msk.f32.gmra.mxu2 %vm47_vm1, %v33_v21  ;;  %297 = vmatmul.msk.f32.gmra.mxu3 %vm47_vm1, %v40_v22 }
  0x2d   :  { %276 = vmatmul.msk.f32.gmra.mxu0 %vm47_vm1, %v19_v23  ;;  %283 = vmatmul.msk.f32.gmra.mxu1 %vm47_vm1, %v26_v24 }
  0x33   :  { %291 = vmatmul.msk.f32.gmra.mxu2 %vm47_vm1, %v34_v25  ;;  %298 = vmatmul.msk.f32.gmra.mxu3 %vm47_vm1, %v41_v26 }
  0x35   :  { %277 = vmatmul.msk.f32.gmra.mxu0 %vm47_vm1, %v20_v27  ;;  %284 = vmatmul.msk.f32.gmra.mxu1 %vm47_vm1, %v27_v28 }
  0x82   :  { %v153_v30 = vpop.f32.mrf.mxu0  ;;  %v174_v31 = vpop.f32.mrf.mxu1 }
  0x83   :  { %v154_v32 = vadd.f32 %v441_v29, %v153_v30  ;;  %v175_v33 = vadd.f32 %v441_v29, %v174_v31 }
  0x85   :  { %238 = vst.msk [vmem:[%s586_s3] sm:$0xff] %vm237_vm2, %v154_v32 }
  0x86   :  { %245 = vst.msk [vmem:[%s586_s3 + $0x38] sm:$0xff] %vm237_vm2, %v175_v33  ;;  %v195_v34 = vpop.f32.mrf.mxu2  ;;  %v216_v35 = vpop.f32.mrf.mxu3 }
  0x87   :  { %v196_v36 = vadd.f32 %v441_v29, %v195_v34  ;;  %v217_v37 = vadd.f32 %v441_v29, %v216_v35 }
  0x89   :  { %252 = vst.msk [vmem:[%s586_s3 + $0x70] sm:$0xff] %vm237_vm2, %v196_v36 }
  0x8a   :  { %259 = vst.msk [vmem:[%s586_s3 + $0xa8] sm:$0xff] %vm237_vm2, %v217_v37  ;;  %v156_v38 = vpop.f32.mrf.mxu0  ;;  %v177_v39 = vpop.f32.mrf.mxu1 }
  0x8b   :  { %v157_v40 = vadd.f32 %v441_v29, %v156_v38  ;;  %v178_v41 = vadd.f32 %v441_v29, %v177_v39 }
  0x8d   :  { %239 = vst.msk [vmem:[%s586_s3 + $0x8] sm:$0xff] %vm237_vm2, %v157_v40 }
  0x8e   :  { %246 = vst.msk [vmem:[%s586_s3 + $0x40] sm:$0xff] %vm237_vm2, %v178_v41  ;;  %v198_v42 = vpop.f32.mrf.mxu2  ;;  %v219_v43 = vpop.f32.mrf.mxu3 }
  0x8f   :  { %v199_v44 = vadd.f32 %v441_v29, %v198_v42  ;;  %v220_v45 = vadd.f32 %v441_v29, %v219_v43 }
  0x91   :  { %253 = vst.msk [vmem:[%s586_s3 + $0x78] sm:$0xff] %vm237_vm2, %v199_v44 }
  0x92   :  { %260 = vst.msk [vmem:[%s586_s3 + $0xb0] sm:$0xff] %vm237_vm2, %v220_v45  ;;  %v159_v46 = vpop.f32.mrf.mxu0  ;;  %v180_v47 = vpop.f32.mrf.mxu1 }
  0x93   :  { %v160_v48 = vadd.f32 %v441_v29, %v159_v46  ;;  %v181_v49 = vadd.f32 %v441_v29, %v180_v47 }
  0x95   :  { %240 = vst.msk [vmem:[%s586_s3 + $0x10] sm:$0xff] %vm237_vm2, %v160_v48 }
  0x96   :  { %247 = vst.msk [vmem:[%s586_s3 + $0x48] sm:$0xff] %vm237_vm2, %v181_v49  ;;  %v201_v50 = vpop.f32.mrf.mxu2  ;;  %v222_v51 = vpop.f32.mrf.mxu3 }
  0x97   :  { %v202_v52 = vadd.f32 %v441_v29, %v201_v50  ;;  %v223_v53 = vadd.f32 %v441_v29, %v222_v51 }
  0x99   :  { %254 = vst.msk [vmem:[%s586_s3 + $0x80] sm:$0xff] %vm237_vm2, %v202_v52 }
  0x9a   :  { %261 = vst.msk [vmem:[%s586_s3 + $0xb8] sm:$0xff] %vm237_vm2, %v223_v53  ;;  %v162_v54 = vpop.f32.mrf.mxu0  ;;  %v183_v55 = vpop.f32.mrf.mxu1 }
  0x9b   :  { %v163_v56 = vadd.f32 %v441_v29, %v162_v54  ;;  %v184_v57 = vadd.f32 %v441_v29, %v183_v55 }
  0x9d   :  { %241 = vst.msk [vmem:[%s586_s3 + $0x18] sm:$0xff] %vm237_vm2, %v163_v56 }
  0x9e   :  { %248 = vst.msk [vmem:[%s586_s3 + $0x50] sm:$0xff] %vm237_vm2, %v184_v57  ;;  %v204_v58 = vpop.f32.mrf.mxu2  ;;  %v225_v59 = vpop.f32.mrf.mxu3 }
  0x9f   :  { %v205_v60 = vadd.f32 %v441_v29, %v204_v58  ;;  %v226_v61 = vadd.f32 %v441_v29, %v225_v59 }
  0xa1   :  { %255 = vst.msk [vmem:[%s586_s3 + $0x88] sm:$0xff] %vm237_vm2, %v205_v60 }
  0xa2   :  { %262 = vst.msk [vmem:[%s586_s3 + $0xc0] sm:$0xff] %vm237_vm2, %v226_v61  ;;  %v165_v62 = vpop.f32.mrf.mxu0  ;;  %v186_v63 = vpop.f32.mrf.mxu1 }
  0xa3   :  { %v166_v0 = vadd.f32 %v441_v29, %v165_v62  ;;  %v187_v1 = vadd.f32 %v441_v29, %v186_v63 }
  0xa5   :  { %242 = vst.msk [vmem:[%s586_s3 + $0x20] sm:$0xff] %vm237_vm2, %v166_v0 }
  0xa6   :  { %249 = vst.msk [vmem:[%s586_s3 + $0x58] sm:$0xff] %vm237_vm2, %v187_v1  ;;  %v207_v2 = vpop.f32.mrf.mxu2  ;;  %v228_v3 = vpop.f32.mrf.mxu3 }
  0xa7   :  { %v208_v4 = vadd.f32 %v441_v29, %v207_v2  ;;  %v229_v5 = vadd.f32 %v441_v29, %v228_v3 }
  0xa9   :  { %256 = vst.msk [vmem:[%s586_s3 + $0x90] sm:$0xff] %vm237_vm2, %v208_v4 }
  0xaa   :  { %263 = vst.msk [vmem:[%s586_s3 + $0xc8] sm:$0xff] %vm237_vm2, %v229_v5  ;;  %v168_v6 = vpop.f32.mrf.mxu0  ;;  %v189_v7 = vpop.f32.mrf.mxu1 }
  0xab   :  { %v169_v8 = vadd.f32 %v441_v29, %v168_v6  ;;  %v190_v9 = vadd.f32 %v441_v29, %v189_v7 }
  0xad   :  { %243 = vst.msk [vmem:[%s586_s3 + $0x28] sm:$0xff] %vm237_vm2, %v169_v8 }
  0xae   :  { %250 = vst.msk [vmem:[%s586_s3 + $0x60] sm:$0xff] %vm237_vm2, %v190_v9  ;;  %v210_v10 = vpop.f32.mrf.mxu2  ;;  %v231_v11 = vpop.f32.mrf.mxu3 }
  0xaf   :  { %v211_v12 = vadd.f32 %v441_v29, %v210_v10  ;;  %v232_v13 = vadd.f32 %v441_v29, %v231_v11 }
  0xb1   :  { %257 = vst.msk [vmem:[%s586_s3 + $0x98] sm:$0xff] %vm237_vm2, %v211_v12 }
  0xb2   :  { %264 = vst.msk [vmem:[%s586_s3 + $0xd0] sm:$0xff] %vm237_vm2, %v232_v13  ;;  %v171_v14 = vpop.f32.mrf.mxu0  ;;  %v192_v15 = vpop.f32.mrf.mxu1 }
  0xb3   :  { %v172_v16 = vadd.f32 %v441_v29, %v171_v14  ;;  %v193_v17 = vadd.f32 %v441_v29, %v192_v15 }
  0xb5   :  { %244 = vst.msk [vmem:[%s586_s3 + $0x30] sm:$0xff] %vm237_vm2, %v172_v16 }
  0xb6   :  { %251 = vst.msk [vmem:[%s586_s3 + $0x68] sm:$0xff] %vm237_vm2, %v193_v17  ;;  %v213_v18 = vpop.f32.mrf.mxu2  ;;  %v234_v19 = vpop.f32.mrf.mxu3 }
  0xb7   :  { %v214_v20 = vadd.f32 %v441_v29, %v213_v18  ;;  %v235_v21 = vadd.f32 %v441_v29, %v234_v19 }
  0xb9   :  { %258 = vst.msk [vmem:[%s586_s3 + $0xa0] sm:$0xff] %vm237_vm2, %v214_v20 }
  0xba   :  { %265 = vst.msk [vmem:[%s586_s3 + $0xd8] sm:$0xff] %vm237_vm2, %v235_v21 }

// kernel: gwnet_forward.10
= control target key start
LH: loop header
LB: loop body
LE: loop exit
PB: predicated region body
PF: predicated region fallthrough
CT: control target
= control target key end

     0   :  { %vm58_vm0 = vcmask 523264   ;;  %s2233_s1 = inlined_call_operand.vmem [shape: f32[64,64], index: 1, kind: input, shape index: {}]   ;;  %s2234_s2 = inlined_call_operand.vmem [shape: f32[1,64], index: 2, kind: input, shape index: {}]   ;;  %s2235_s0 = inlined_call_operand.vmem [shape: f32[192,64], index: 0, kind: input, shape index: {}]   ;;  %s2236_s3 = inlined_call_operand.vmem [shape: f32[32,64], index: 3, kind: input, shape index: {}]   ;;  %s2237_s4 = inlined_call_operand.vmem [shape: f32[1,64], index: 4, kind: input, shape index: {}]   ;;  %s2238_s5 = inlined_call_operand.vmem [shape: f32[192,32], index: 5, kind: output, shape index: {0}]   ;;  %s2239_s6 = inlined_call_operand.vmem [shape: f32[192,64], index: 6, kind: output, shape index: {1}]  }
   0x1   :  { %v53_v0 = vld [vmem:[%s2233_s1 + $0x38] sm:$0xff]  ;;  %v52_v1 = vld [vmem:[%s2233_s1 + $0x30] sm:$0xff]  ;;  %v51_v2 = vld [vmem:[%s2233_s1 + $0x28] sm:$0xff] }
   0x2   :  { %139 = vmatpush.msra.mxu0 %v53_v0  ;;  %1118 = vmatpush.msra.mxu2 %v53_v0  ;;  %v50_v3 = vld [vmem:[%s2233_s1 + $0x20] sm:$0xff]  ;;  %v49_v4 = vld [vmem:[%s2233_s1 + $0x18] sm:$0xff]  ;;  %v48_v5 = vld [vmem:[%s2233_s1 + $0x10] sm:$0xff] }
   0x3   :  { %v47_v6 = vld [vmem:[%s2233_s1 + $0x8] sm:$0xff]  ;;  %v46_v7 = vld [vmem:[%s2233_s1] sm:$0xff]  ;;  %v24_v12 = vld [vmem:[%s2235_s0 + $0x10] sm:$0xff] }
   0x4   :  { %140 = vmatpush.msra.mxu0 %v52_v1  ;;  %1119 = vmatpush.msra.mxu2 %v52_v1  ;;  %v22_v8 = vld [vmem:[%s2235_s0] sm:$0xff]  ;;  %v23_v10 = vld [vmem:[%s2235_s0 + $0x8] sm:$0xff]  ;;  %v36_v13 = vld [vmem:[%s2235_s0 + $0x70] sm:$0xff] }
   0x5   :  { %v34_v9 = vld [vmem:[%s2235_s0 + $0x60] sm:$0xff]  ;;  %v35_v11 = vld [vmem:[%s2235_s0 + $0x68] sm:$0xff]  ;;  %v25_v14 = vld [vmem:[%s2235_s0 + $0x18] sm:$0xff] }
   0x6   :  { %141 = vmatpush.msra.mxu0 %v51_v2  ;;  %1120 = vmatpush.msra.mxu2 %v51_v2  ;;  %v37_v15 = vld [vmem:[%s2235_s0 + $0x78] sm:$0xff]  ;;  %v26_v16 = vld [vmem:[%s2235_s0 + $0x20] sm:$0xff]  ;;  %v27_v18 = vld [vmem:[%s2235_s0 + $0x28] sm:$0xff] }
   0x7   :  { %v38_v17 = vld [vmem:[%s2235_s0 + $0x80] sm:$0xff]  ;;  %v39_v19 = vld [vmem:[%s2235_s0 + $0x88] sm:$0xff]  ;;  %v28_v20 = vld [vmem:[%s2235_s0 + $0x30] sm:$0xff] }
   0x8   :  { %142 = vmatpush.msra.mxu0 %v50_v3  ;;  %1121 = vmatpush.msra.mxu2 %v50_v3  ;;  %v40_v21 = vld [vmem:[%s2235_s0 + $0x90] sm:$0xff]  ;;  %v29_v22 = vld [vmem:[%s2235_s0 + $0x38] sm:$0xff]  ;;  %v30_v24 = vld [vmem:[%s2235_s0 + $0x40] sm:$0xff] }
   0x9   :  { %v41_v23 = vld [vmem:[%s2235_s0 + $0x98] sm:$0xff]  ;;  %v42_v25 = vld [vmem:[%s2235_s0 + $0xa0] sm:$0xff]  ;;  %v31_v26 = vld [vmem:[%s2235_s0 + $0x48] sm:$0xff] }
   0xa   :  { %143 = vmatpush.msra.mxu0 %v49_v4  ;;  %1122 = vmatpush.msra.mxu2 %v49_v4  ;;  %v43_v27 = vld [vmem:[%s2235_s0 + $0xa8] sm:$0xff]  ;;  %v32_v28 = vld [vmem:[%s2235_s0 + $0x50] sm:$0xff]  ;;  %v33_v30 = vld [vmem:[%s2235_s0 + $0x58] sm:$0xff] }
   0xb   :  { %v44_v29 = vld [vmem:[%s2235_s0 + $0xb0] sm:$0xff]  ;;  %v45_v31 = vld [vmem:[%s2235_s0 + $0xb8] sm:$0xff]  ;;  %v1436_v32 = vld [vmem:[%s2234_s2] ss:$0 sm:$0xff]  ;;  %s1277_s0 = smov 96  }
   0xc   :  { %144 = vmatpush.msra.mxu0 %v48_v5  ;;  %1123 = vmatpush.msra.mxu2 %v48_v5 }
   0xe   :  { %145 = vmatpush.msra.mxu0 %v47_v6  ;;  %1124 = vmatpush.msra.mxu2 %v47_v6 }
  0x10   :  { %146 = vmatpush.msra.mxu0 %v46_v7  ;;  %1125 = vmatpush.msra.mxu2 %v46_v7 }
  0x11   :  { %1046 = vmatmul.msk.f32.vlgmr.msra.gmra.mxu0 %vm58_vm0, %v22_v8  ;;  %1058 = vmatmul.msk.f32.vlgmr.msra.gmra.mxu2 %vm58_vm0, %v34_v9 }
  0x19   :  { %1047 = vmatmul.msk.f32.gmra.mxu0 %vm58_vm0, %v23_v10  ;;  %1059 = vmatmul.msk.f32.gmra.mxu2 %vm58_vm0, %v35_v11 }
  0x21   :  { %1048 = vmatmul.msk.f32.gmra.mxu0 %vm58_vm0, %v24_v12  ;;  %1060 = vmatmul.msk.f32.gmra.mxu2 %vm58_vm0, %v36_v13 }
  0x29   :  { %1049 = vmatmul.msk.f32.gmra.mxu0 %vm58_vm0, %v25_v14  ;;  %1061 = vmatmul.msk.f32.gmra.mxu2 %vm58_vm0, %v37_v15 }
  0x31   :  { %1050 = vmatmul.msk.f32.gmra.mxu0 %vm58_vm0, %v26_v16  ;;  %1062 = vmatmul.msk.f32.gmra.mxu2 %vm58_vm0, %v38_v17 }
  0x39   :  { %1051 = vmatmul.msk.f32.gmra.mxu0 %vm58_vm0, %v27_v18  ;;  %1063 = vmatmul.msk.f32.gmra.mxu2 %vm58_vm0, %v39_v19 }
  0x41   :  { %1052 = vmatmul.msk.f32.gmra.mxu0 %vm58_vm0, %v28_v20  ;;  %1064 = vmatmul.msk.f32.gmra.mxu2 %vm58_vm0, %v40_v21 }
  0x49   :  { %1053 = vmatmul.msk.f32.gmra.mxu0 %vm58_vm0, %v29_v22  ;;  %1065 = vmatmul.msk.f32.gmra.mxu2 %vm58_vm0, %v41_v23 }
  0x51   :  { %1054 = vmatmul.msk.f32.gmra.mxu0 %vm58_vm0, %v30_v24  ;;  %1066 = vmatmul.msk.f32.gmra.mxu2 %vm58_vm0, %v42_v25 }
  0x59   :  { %1055 = vmatmul.msk.f32.gmra.mxu0 %vm58_vm0, %v31_v26  ;;  %1067 = vmatmul.msk.f32.gmra.mxu2 %vm58_vm0, %v43_v27 }
  0x61   :  { %1056 = vmatmul.msk.f32.gmra.mxu0 %vm58_vm0, %v32_v28  ;;  %1068 = vmatmul.msk.f32.gmra.mxu2 %vm58_vm0, %v44_v29 }
  0x69   :  { %1057 = vmatmul.msk.f32.gmra.mxu0 %vm58_vm0, %v33_v30  ;;  %1069 = vmatmul.msk.f32.gmra.mxu2 %vm58_vm0, %v45_v31 }
  0x8e   :  { %v148_v33 = vpop.f32.mrf.mxu0 }
  0x8f   :  { %v1439_v34 = vadd.f32 %v1436_v32, %v148_v33 }
  0x91   :  { %v1070_v35 = vmul.f32 -1.442695, %v1439_v34 }
  0x93   :  { %1133 = vpow2.f32 %v1070_v35 }
  0x94   :  { %v184_v36 = vpop.f32.mrf.mxu2 }
  0x95   :  { %v1458_v55 = vadd.f32 %v1436_v32, %v184_v36 }
  0x96   :  { %v151_v37 = vpop.f32.mrf.mxu0 }
  0x97   :  { %v1443_v38 = vadd.f32 %v1436_v32, %v151_v37  ;;  %v1082_v3 = vmul.f32 -1.442695, %v1458_v55 }
  0x99   :  { %v1134_v39 = vpop.eup %1133  ;;  %v1071_v40 = vmul.f32 -1.442695, %v1443_v38 }
  0x9a   :  { %v316_v41 = vadd.f32 1.0, %v1134_v39 }
  0x9b   :  { %1135 = vpow2.f32 %v1071_v40 }
  0x9c   :  { %1137 = vrcp.f32 %v316_v41  ;;  %v187_v42 = vpop.f32.mrf.mxu2  ;;  %vm345_vm1 = vweird.f32 %v316_v41  ;;  %v349_v57 = vand.u32 2147483647, %v316_v41  ;;  %v351_v58 = vand.u32 2147483648, %v316_v41 }
  0x9d   :  { %v1447_v43 = vadd.f32 %v1436_v32, %v187_v42 }
  0x9e   :  { %v154_v44 = vpop.f32.mrf.mxu0  ;;  %v352_v4 = vor.u32 1.1754944e-38, %v351_v58  ;;  %vm350_vm4 = vcmp.eq.f32.partialorder %v349_v57, 8.507059e+37 }
  0x9f   :  { %v1083_v45 = vmul.f32 -1.442695, %v1447_v43  ;;  %v1451_v46 = vadd.f32 %v1436_v32, %v154_v44 }
  0xa1   :  { %v1136_v47 = vpop.eup %1135  ;;  %1139 = vpow2.f32 %v1083_v45  ;;  %v1072_v48 = vmul.f32 -1.442695, %v1451_v46 }
  0xa2   :  { %v1138_v49 = vpop.eup %1137  ;;  %v317_v50 = vadd.f32 1.0, %v1136_v47 }
  0xa3   :  { %v341_v51 = vmul.f32 %v1138_v49, %v316_v41  ;;  %vm346_vm2 = vweird.f32 %v1138_v49 }
  0xa4   :  { %1141 = vrcp.f32 %v317_v50  ;;  %v190_v52 = vpop.f32.mrf.mxu2  ;;  %vm347_vm3 = vmor %vm345_vm1, %vm346_vm2  ;;  %v364_v8 = vand.u32 2147483647, %v317_v50  ;;  %v366_v12 = vand.u32 2147483648, %v317_v50  ;;  %vm360_vm5 = vweird.f32 %v317_v50 }
  0xa5   :  { %1143 = vpow2.f32 %v1072_v48  ;;  %v1455_v53 = vadd.f32 %v1436_v32, %v190_v52  ;;  %v342_v54 = vsub.f32 1.0, %v341_v51 }
  0xa6   :  { %v157_v56 = vpop.f32.mrf.mxu0  ;;  %vm1483_vm7 = vcmp.eq.f32.partialorder %v364_v8, 8.507059e+37  ;;  %v367_v23 = vor.u32 1.1754944e-38, %v366_v12 }
  0xa7   :  { %v1140_v59 = vpop.eup %1139  ;;  %v1084_v60 = vmul.f32 -1.442695, %v1455_v53  ;;  %v1462_v61 = vadd.f32 %v1436_v32, %v157_v56  ;;  %v343_v62 = vmul.f32 %v1138_v49, %v342_v54 }
  0xa8   :  { %v1464_v63 = vadd.f32 1.0, %v1140_v59 }
  0xa9   :  { %1145 = vpow2.f32 %v1084_v60  ;;  %v1073_v0 = vmul.f32 -1.442695, %v1462_v61  ;;  %v344_v1 = vadd.f32 %v1138_v49, %v343_v62 }
  0xaa   :  { %v1142_v2 = vpop.eup %1141  ;;  %1147 = vrcp.f32 %v1464_v63  ;;  %vm540_vm9 = vweird.f32 %v1464_v63  ;;  %v544_v28 = vand.u32 2147483647, %v1464_v63  ;;  %v546_v29 = vand.u32 2147483648, %v1464_v63 }
  0xab   :  { %v1144_v5 = vpop.eup %1143  ;;  %v348_v6 = vsel %vm347_vm3, %v1138_v49, %v344_v1  ;;  %v356_v7 = vmul.f32 %v1142_v2, %v317_v50  ;;  %1149 = vpow2.f32 %v1073_v0  ;;  %vm361_vm6 = vweird.f32 %v1142_v2 }
  0xac   :  { %v1470_v9 = vadd.f32 1.0, %v1144_v5  ;;  %v193_v10 = vpop.f32.mrf.mxu2  ;;  %v353_v11 = vsel %vm350_vm4, %v352_v4, %v348_v6  ;;  %vm362_vm8 = vmor %vm360_vm5, %vm361_vm6  ;;  %vm1511_vm11 = vcmp.eq.f32.partialorder %v544_v28, 8.507059e+37  ;;  %v547_v49 = vor.u32 1.1754944e-38, %v546_v29 }
  0xad   :  { %v1473_v13 = vadd.f32 %v1436_v32, %v193_v10  ;;  %724 = vrot.lane.b32.xlu0 %v353_v11, %s1277_s0  ;;  %v357_v14 = vsub.f32 1.0, %v356_v7 }
  0xae   :  { %1151 = vrcp.f32 %v1470_v9  ;;  %v160_v15 = vpop.f32.mrf.mxu0  ;;  %v381_v35 = vand.u32 2147483648, %v1470_v9  ;;  %v379_v40 = vand.u32 2147483647, %v1470_v9  ;;  %vm375_vm12 = vweird.f32 %v1470_v9 }
  0xaf   :  { %v1146_v16 = vpop.eup %1145  ;;  %v1085_v17 = vmul.f32 -1.442695, %v1473_v13  ;;  %v1479_v18 = vadd.f32 %v1436_v32, %v160_v15  ;;  %v358_v19 = vmul.f32 %v1142_v2, %v357_v14  ;;  %1153 = vpow2.f32 %v1082_v3 }
  0xb0   :  { %v1148_v20 = vpop.eup %1147  ;;  %v1481_v21 = vadd.f32 1.0, %v1146_v16  ;;  %v382_v57 = vor.u32 1.1754944e-38, %v381_v35  ;;  %vm1530_vm15 = vcmp.eq.f32.partialorder %v379_v40, 8.507059e+37 }
  0xb1   :  { %1155 = vpow2.f32 %v1085_v17  ;;  %v1074_v24 = vmul.f32 -1.442695, %v1479_v18  ;;  %v359_v25 = vadd.f32 %v1142_v2, %v358_v19  ;;  %v536_v26 = vmul.f32 %v1148_v20, %v1464_v63  ;;  %v1150_v27 = vpop.eup %1149 }
  0xb2   :  { %1157 = vrcp.f32 %v1481_v21  ;;  %v1494_v30 = vadd.f32 1.0, %v1150_v27  ;;  %vm541_vm10 = vweird.f32 %v1148_v20  ;;  %v559_v50 = vand.u32 2147483647, %v1481_v21 }
  0xb3   :  { %v363_v31 = vsel %vm362_vm8, %v1142_v2, %v359_v25  ;;  %v537_v33 = vsub.f32 1.0, %v536_v26  ;;  %1159 = vpow2.f32 %v1074_v24  ;;  %vm542_vm13 = vmor %vm540_vm9, %vm541_vm10  ;;  %vm555_vm14 = vweird.f32 %v1481_v21 }
  0xb4   :  { %v1497_v36 = vpop.eup %1151  ;;  %v196_v37 = vpop.f32.mrf.mxu2  ;;  %v368_v39 = vsel %vm1483_vm7, %v367_v23, %v363_v31  ;;  %1161 = vrcp.f32 %v1494_v30  ;;  %v561_v60 = vand.u32 2147483648, %v1481_v21  ;;  %vm1537_vm1 = vcmp.eq.f32.partialorder %v559_v50, 8.507059e+37 }
  0xb5   :  { %v1504_v41 = vadd.f32 %v1436_v32, %v196_v37  ;;  %726 = vrot.lane.b32.xlu0 %v368_v39, %s1277_s0  ;;  %v538_v42 = vmul.f32 %v1148_v20, %v537_v33  ;;  %v371_v44 = vmul.f32 %v1497_v36, %v1470_v9  ;;  %v1509_v45 = vpop.eup %1153  ;;  %vm376_vm2 = vweird.f32 %v1497_v36 }
  0xb6   :  { %v163_v47 = vpop.f32.mrf.mxu0  ;;  %v394_v11 = vand.u32 2147483647, %v1494_v30  ;;  %v562_v14 = vor.u32 1.1754944e-38, %v561_v60  ;;  %vm1558_vm4 = vmor %vm375_vm12, %vm376_vm2  ;;  %vm390_vm5 = vweird.f32 %v1494_v30  ;;  %v396_v24 = vand.u32 2147483648, %v1494_v30 }
  0xb7   :  { %v1156_v51 = vpop.eup %1155  ;;  %v1086_v52 = vmul.f32 -1.442695, %v1504_v41  ;;  %v1519_v54 = vadd.f32 %v1436_v32, %v163_v47  ;;  %v539_v56 = vadd.f32 %v1148_v20, %v538_v42  ;;  %v372_v62 = vsub.f32 1.0, %v371_v44 }
  0xb8   :  { %v1158_v58 = vpop.eup %1157  ;;  %v1521_v59 = vadd.f32 1.0, %v1156_v51  ;;  %vm1572_vm7 = vcmp.eq.f32.partialorder %v394_v11, 8.507059e+37  ;;  %v397_v51 = vor.u32 1.1754944e-38, %v396_v24 }
  0xb9   :  { %1163 = vpow2.f32 %v1086_v52  ;;  %v1075_v0 = vmul.f32 -1.442695, %v1519_v54  ;;  %v543_v1 = vsel %vm542_vm13, %v1148_v20, %v539_v56  ;;  %v551_v2 = vmul.f32 %v1158_v58, %v1481_v21  ;;  %v1160_v4 = vpop.eup %1159 }
  0xba   :  { %1165 = vrcp.f32 %v1521_v59  ;;  %v548_v63 = vsel %vm1511_vm11, %v547_v49, %v543_v1  ;;  %v373_v6 = vmul.f32 %v1497_v36, %v372_v62  ;;  %v1542_v7 = vpop.eup %1161  ;;  %v1544_v8 = vadd.f32 1.0, %v1160_v4 }
  0xbb   :  { %750 = vrot.lane.b32.xlu1 %v548_v63, %s1277_s0  ;;  %v552_v10 = vsub.f32 1.0, %v551_v2  ;;  %1167 = vpow2.f32 %v1075_v0  ;;  %v386_v16 = vmul.f32 %v1542_v7, %v1494_v30  ;;  %vm556_vm3 = vweird.f32 %v1158_v58 }
  0xbc   :  { %v199_v12 = vpop.f32.mrf.mxu2  ;;  %v374_v15 = vadd.f32 %v1497_v36, %v373_v6  ;;  %1169 = vrcp.f32 %v1544_v8  ;;  %vm391_vm6 = vweird.f32 %v1542_v7  ;;  %vm557_vm8 = vmor %vm555_vm14, %vm556_vm3  ;;  %v574_v37 = vand.u32 2147483647, %v1521_v59 }
  0xbd   :  { %v1554_v17 = vadd.f32 %v1436_v32, %v199_v12  ;;  %v553_v19 = vmul.f32 %v1158_v58, %v552_v10  ;;  %v387_v23 = vsub.f32 1.0, %v386_v16  ;;  %v576_v39 = vand.u32 2147483648, %v1521_v59  ;;  %vm1601_vm10 = vmor %vm390_vm5, %vm391_vm6 }
  0xbe   :  { %v166_v20 = vpop.f32.mrf.mxu0  ;;  %v378_v9 = vsel %vm1558_vm4, %v1497_v36, %v374_v15  ;;  %vm570_vm9 = vweird.f32 %v1521_v59  ;;  %vm1605_vm12 = vcmp.eq.f32.partialorder %v574_v37, 8.507059e+37  ;;  %vm405_vm13 = vweird.f32 %v1544_v8 }
  0xbf   :  { %v1164_v25 = vpop.eup %1163  ;;  %v1087_v26 = vmul.f32 -1.442695, %v1554_v17  ;;  %v1567_v27 = vadd.f32 %v1436_v32, %v166_v20  ;;  %v554_v28 = vadd.f32 %v1158_v58, %v553_v19  ;;  %v388_v35 = vmul.f32 %v1542_v7, %v387_v23 }
  0xc0   :  { %v1166_v31 = vpop.eup %1165  ;;  %v1576_v33 = vadd.f32 1.0, %v1164_v25  ;;  %v383_v21 = vsel %vm1530_vm15, %v382_v57, %v378_v9  ;;  %v577_v2 = vor.u32 1.1754944e-38, %v576_v39  ;;  %v409_v4 = vand.u32 2147483647, %v1544_v8 }
  0xc1   :  { %1171 = vpow2.f32 %v1087_v26  ;;  %v1076_v36 = vmul.f32 -1.442695, %v1567_v27  ;;  %v558_v40 = vsel %vm557_vm8, %v1158_v58, %v554_v28  ;;  %v566_v42 = vmul.f32 %v1166_v31, %v1521_v59  ;;  %v1168_v44 = vpop.eup %1167 }
  0xc2   :  { %1173 = vrcp.f32 %v1576_v33  ;;  %v563_v47 = vsel %vm1537_vm1, %v562_v14, %v558_v40  ;;  %v389_v48 = vadd.f32 %v1542_v7, %v388_v35  ;;  %v1170_v49 = vpop.eup %1169  ;;  %v1592_v50 = vadd.f32 1.0, %v1168_v44 }
  0xc3   :  { %752 = vrot.lane.b32.xlu2 %v563_v47, %s1277_s0  ;;  %728 = vrot.lane.b32.xlu1 %v383_v21, %s1277_s0  ;;  %v567_v52 = vsub.f32 1.0, %v566_v42  ;;  %1175 = vpow2.f32 %v1076_v36  ;;  %vm571_vm11 = vweird.f32 %v1166_v31  ;;  %v401_v60 = vmul.f32 %v1170_v49, %v1544_v8 }
  0xc4   :  { %v202_v56 = vpop.f32.mrf.mxu2  ;;  %1177 = vrcp.f32 %v1592_v50  ;;  %v393_v30 = vsel %vm1601_vm10, %v1542_v7, %v389_v48  ;;  %v411_v11 = vand.u32 2147483648, %v1544_v8  ;;  %vm572_vm14 = vmor %vm570_vm9, %vm571_vm11  ;;  %vm406_vm15 = vweird.f32 %v1170_v49 }
  0xc5   :  { %v1612_v62 = vadd.f32 %v1436_v32, %v202_v56  ;;  %v568_v0 = vmul.f32 %v1166_v31, %v567_v52  ;;  %v402_v3 = vsub.f32 1.0, %v401_v60  ;;  %v398_v7 = vsel %vm1572_vm7, %v397_v51, %v393_v30  ;;  %vm407_vm2 = vmor %vm405_vm13, %vm406_vm15 }
  0xc6   :  { %v169_v1 = vpop.f32.mrf.mxu0  ;;  %vm1636_vm1 = vcmp.eq.f32.partialorder %v409_v4, 8.507059e+37  ;;  %v412_v28 = vor.u32 1.1754944e-38, %v411_v11  ;;  %v589_v35 = vand.u32 2147483647, %v1576_v33  ;;  %v591_v37 = vand.u32 2147483648, %v1576_v33 }
  0xc7   :  { %v1172_v63 = vpop.eup %1171  ;;  %v1088_v5 = vmul.f32 -1.442695, %v1612_v62  ;;  %v1621_v6 = vadd.f32 %v1436_v32, %v169_v1  ;;  %v569_v10 = vadd.f32 %v1166_v31, %v568_v0  ;;  %v403_v15 = vmul.f32 %v1170_v49, %v402_v3 }
  0xc8   :  { %v1174_v12 = vpop.eup %1173  ;;  %v1624_v14 = vadd.f32 1.0, %v1172_v63  ;;  %v1657_v40 = vadd.f32 1.0, %v1509_v45  ;;  %vm585_vm4 = vweird.f32 %v1576_v33  ;;  %vm1661_vm5 = vcmp.eq.f32.partialorder %v589_v35, 8.507059e+37 }
  0xc9   :  { %1179 = vpow2.f32 %v1088_v5  ;;  %v1077_v16 = vmul.f32 -1.442695, %v1621_v6  ;;  %v573_v19 = vsel %vm572_vm14, %v1166_v31, %v569_v10  ;;  %v581_v20 = vmul.f32 %v1174_v12, %v1576_v33  ;;  %v1176_v22 = vpop.eup %1175 }
  0xca   :  { %1181 = vrcp.f32 %v1624_v14  ;;  %v578_v23 = vsel %vm1605_vm12, %v577_v2, %v573_v19  ;;  %v404_v24 = vadd.f32 %v1170_v49, %v403_v15  ;;  %v1640_v59 = vpop.eup %1177  ;;  %v1642_v26 = vadd.f32 1.0, %v1176_v22 }
  0xcb   :  { %730 = vrot.lane.b32.xlu2 %v398_v7, %s1277_s0  ;;  %754 = vrot.lane.b32.xlu0 %v578_v23, %s1277_s0  ;;  %v582_v9 = vsub.f32 1.0, %v581_v20  ;;  %vm586_vm3 = vweird.f32 %v1174_v12  ;;  %1183 = vpow2.f32 %v1077_v16  ;;  %v416_v47 = vmul.f32 %v1640_v59, %v1592_v50 }
  0xcc   :  { %v205_v29 = vpop.f32.mrf.mxu2  ;;  %v408_v31 = vsel %vm407_vm2, %v1170_v49, %v404_v24  ;;  %1185 = vrcp.f32 %v1642_v26  ;;  %v592_v51 = vor.u32 1.1754944e-38, %v591_v37  ;;  %vm587_vm6 = vmor %vm585_vm4, %vm586_vm3  ;;  %vm420_vm7 = vweird.f32 %v1592_v50 }
  0xcd   :  { %v1652_v39 = vadd.f32 %v1436_v32, %v205_v29  ;;  %v413_v36 = vsel %vm1636_vm1, %v412_v28, %v408_v31  ;;  %v583_v8 = vmul.f32 %v1174_v12, %v582_v9  ;;  %v417_v33 = vsub.f32 1.0, %v416_v47 }
  0xce   :  { %732 = vrot.lane.b32.xlu1 %v413_v36, %s1277_s0  ;;  %v172_v42 = vpop.f32.mrf.mxu0  ;;  %v424_v57 = vand.u32 2147483647, %v1592_v50  ;;  %v426_v30 = vand.u32 2147483648, %v1592_v50  ;;  %vm421_vm8 = vweird.f32 %v1640_v59  ;;  %vm600_vm11 = vweird.f32 %v1624_v14 }
  0xcf   :  { %v1180_v21 = vpop.eup %1179  ;;  %v1089_v48 = vmul.f32 -1.442695, %v1652_v39  ;;  %v1669_v49 = vadd.f32 %v1436_v32, %v172_v42  ;;  %v584_v45 = vadd.f32 %v1174_v12, %v583_v8  ;;  %v418_v2 = vmul.f32 %v1640_v59, %v417_v33  ;;  %vm422_vm9 = vmor %vm420_vm7, %vm421_vm8 }
  0xd0   :  { %v1671_v52 = vpop.eup %1181  ;;  %v1673_v56 = vadd.f32 1.0, %v1180_v21  ;;  %vm425_vm10 = vcmp.eq.f32.partialorder %v424_v57, 8.507059e+37  ;;  %v606_v19 = vand.u32 2147483648, %v1624_v14  ;;  %v604_v28 = vand.u32 2147483647, %v1624_v14 }
  0xd1   :  { %1187 = vpow2.f32 %v1089_v48  ;;  %v1078_v58 = vmul.f32 -1.442695, %v1669_v49  ;;  %v588_v60 = vsel %vm587_vm6, %v1174_v12, %v584_v45  ;;  %v1184_v0 = vpop.eup %1183  ;;  %v596_v4 = vmul.f32 %v1671_v52, %v1624_v14 }
  0xd2   :  { %1189 = vrcp.f32 %v1673_v56  ;;  %v593_v1 = vsel %vm1661_vm5, %v592_v51, %v588_v60  ;;  %v1685_v3 = vpop.eup %1185  ;;  %v1691_v63 = vadd.f32 1.0, %v1184_v0  ;;  %v419_v10 = vadd.f32 %v1640_v59, %v418_v2 }
  0xd3   :  { %1191 = vrcp.f32 %v1657_v40  ;;  %756 = vrot.lane.b32.xlu2 %v593_v1, %s1277_s0  ;;  %v427_v12 = vor.u32 1.1754944e-38, %v426_v30  ;;  %v597_v7 = vsub.f32 1.0, %v596_v4  ;;  %v431_v20 = vmul.f32 %v1685_v3, %v1642_v26 }
  0xd4   :  { %1193 = vpow2.f32 %v1078_v58  ;;  %v208_v5 = vpop.f32.mrf.mxu2  ;;  %v423_v15 = vsel %vm422_vm9, %v1640_v59, %v419_v10  ;;  %vm601_vm12 = vweird.f32 %v1671_v52  ;;  %vm435_vm13 = vweird.f32 %v1642_v26 }
  0xd5   :  { %v1695_v11 = vadd.f32 %v1436_v32, %v208_v5  ;;  %v428_v24 = vsel %vm425_vm10, %v427_v12, %v423_v15  ;;  %1195 = vrcp.f32 %v1691_v63  ;;  %v598_v59 = vmul.f32 %v1671_v52, %v597_v7  ;;  %vm602_vm14 = vmor %vm600_vm11, %vm601_vm12 }
  0xd6   :  { %v175_v16 = vpop.f32.mrf.mxu0  ;;  %734 = vrot.lane.b32.xlu0 %v428_v24, %s1277_s0  ;;  %v432_v35 = vsub.f32 1.0, %v431_v20  ;;  %v607_v8 = vor.u32 1.1754944e-38, %v606_v19  ;;  %v439_v42 = vand.u32 2147483647, %v1642_v26  ;;  %v441_v44 = vand.u32 2147483648, %v1642_v26 }
  0xd7   :  { %v1188_v22 = vpop.eup %1187  ;;  %v1090_v23 = vmul.f32 -1.442695, %v1695_v11  ;;  %v1706_v50 = vadd.f32 %v1436_v32, %v175_v16  ;;  %v599_v36 = vadd.f32 %v1671_v52, %v598_v59  ;;  %vm436_vm15 = vweird.f32 %v1685_v3 }
  0xd8   :  { %v1709_v25 = vpop.eup %1189  ;;  %v1718_v29 = vadd.f32 1.0, %v1188_v22  ;;  %v433_v21 = vmul.f32 %v1685_v3, %v432_v35  ;;  %vm605_vm1 = vcmp.eq.f32.partialorder %v604_v28, 8.507059e+37  ;;  %vm437_vm2 = vmor %vm435_vm13, %vm436_vm15  ;;  %vm440_vm3 = vcmp.eq.f32.partialorder %v439_v42, 8.507059e+37 }
  0xd9   :  { %v1716_v9 = vpop.eup %1191  ;;  %1197 = vpow2.f32 %v1090_v23  ;;  %v1079_v31 = vmul.f32 -1.442695, %v1706_v50  ;;  %v611_v48 = vmul.f32 %v1709_v25, %v1673_v56  ;;  %v603_v45 = vsel %vm602_vm14, %v1671_v52, %v599_v36 }
  0xda   :  { %v1194_v37 = vpop.eup %1193  ;;  %v608_v33 = vsel %vm605_vm1, %v607_v8, %v603_v45  ;;  %v434_v14 = vadd.f32 %v1685_v3, %v433_v21  ;;  %v442_v60 = vor.u32 1.1754944e-38, %v441_v44  ;;  %v619_v0 = vand.u32 2147483647, %v1673_v56 }
  0xdb   :  { %v1724_v47 = vadd.f32 1.0, %v1194_v37  ;;  %1199 = vpow2.f32 %v1079_v31  ;;  %v1740_v58 = vpop.eup %1195  ;;  %758 = vrot.lane.b32.xlu1 %v608_v33, %s1277_s0  ;;  %v612_v30 = vsub.f32 1.0, %v611_v48  ;;  %vm616_vm4 = vweird.f32 %v1709_v25 }
  0xdc   :  { %v211_v51 = vpop.f32.mrf.mxu2  ;;  %1201 = vrcp.f32 %v1718_v29  ;;  %v438_v4 = vsel %vm437_vm2, %v1685_v3, %v434_v14  ;;  %v621_v15 = vand.u32 2147483648, %v1673_v56  ;;  %v446_v3 = vmul.f32 %v1740_v58, %v1691_v63 }
  0xdd   :  { %v1737_v57 = vadd.f32 %v1436_v32, %v211_v51  ;;  %1203 = vrcp.f32 %v1724_v47  ;;  %v443_v26 = vsel %vm440_vm3, %v442_v60, %v438_v4  ;;  %v613_v12 = vmul.f32 %v1709_v25, %v612_v30 }
  0xde   :  { %v178_v52 = vpop.f32.mrf.mxu0  ;;  %736 = vrot.lane.b32.xlu2 %v443_v26, %s1277_s0  ;;  %vm615_vm5 = vweird.f32 %v1673_v56  ;;  %vm620_vm6 = vcmp.eq.f32.partialorder %v619_v0, 8.507059e+37  ;;  %v622_v23 = vor.u32 1.1754944e-38, %v621_v15  ;;  %v447_v24 = vsub.f32 1.0, %v446_v3 }
  0xdf   :  { %v1198_v1 = vpop.eup %1197  ;;  %v1091_v2 = vmul.f32 -1.442695, %v1737_v57  ;;  %v1750_v5 = vadd.f32 %v1436_v32, %v178_v52  ;;  %v614_v19 = vadd.f32 %v1709_v25, %v613_v12  ;;  %vm617_vm7 = vmor %vm615_vm5, %vm616_vm4  ;;  %vm450_vm8 = vweird.f32 %v1691_v63 }
  0xe0   :  { %v1752_v10 = vadd.f32 1.0, %v1198_v1  ;;  %v454_v31 = vand.u32 2147483647, %v1691_v63  ;;  %v456_v35 = vand.u32 2147483648, %v1691_v63  ;;  %v448_v8 = vmul.f32 %v1740_v58, %v447_v24 }
  0xe1   :  { %1205 = vpow2.f32 %v1091_v2  ;;  %v1080_v7 = vmul.f32 -1.442695, %v1750_v5  ;;  %v1200_v16 = vpop.eup %1199  ;;  %v618_v59 = vsel %vm617_vm7, %v1709_v25, %v614_v19  ;;  %vm451_vm9 = vweird.f32 %v1740_v58 }
  0xe2   :  { %1207 = vrcp.f32 %v1752_v10  ;;  %v1764_v20 = vpop.eup %1201  ;;  %v1766_v22 = vadd.f32 1.0, %v1200_v16  ;;  %v623_v56 = vsel %vm620_vm6, %v622_v23, %v618_v59  ;;  %v449_v48 = vadd.f32 %v1740_v58, %v448_v8  ;;  %vm452_vm11 = vmor %vm450_vm8, %vm451_vm9 }
  0xe3   :  { %1209 = vpow2.f32 %v1080_v7  ;;  %v1772_v37 = vpop.eup %1203  ;;  %760 = vrot.lane.b32.xlu0 %v623_v56, %s1277_s0  ;;  %v626_v42 = vmul.f32 %v1764_v20, %v1718_v29  ;;  %vm455_vm10 = vcmp.eq.f32.partialorder %v454_v31, 8.507059e+37  ;;  %v457_v14 = vor.u32 1.1754944e-38, %v456_v35  ;;  %v848_v35 = vld [vmem:[%s2236_s3 + $0x18] sm:$0xff] }
  0xe4   :  { %v214_v28 = vpop.f32.mrf.mxu2  ;;  %1211 = vrcp.f32 %v1766_v22  ;;  %v634_v52 = vand.u32 2147483647, %v1718_v29  ;;  %v453_v30 = vsel %vm452_vm11, %v1740_v58, %v449_v48  ;;  %v636_v1 = vand.u32 2147483648, %v1718_v29  ;;  %937 = vmatpush.msra.mxu1 %v848_v35  ;;  %1126 = vmatpush.msra.mxu3 %v848_v35 }
  0xe5   :  { %v1775_v36 = vadd.f32 %v1436_v32, %v214_v28  ;;  %v627_v60 = vsub.f32 1.0, %v626_v42  ;;  %v458_v4 = vsel %vm455_vm10, %v457_v14, %v453_v30  ;;  %vm631_vm12 = vweird.f32 %v1764_v20 }
  0xe6   :  { %v181_v25 = vpop.f32.mrf.mxu0  ;;  %v1802_v63 = vmul.f32 %v1716_v9, %v1657_v40  ;;  %738 = vrot.lane.b32.xlu1 %v458_v4, %s1277_s0  ;;  %vm630_vm13 = vweird.f32 %v1718_v29  ;;  %v461_v58 = vmul.f32 %v1772_v37, %v1724_v47  ;;  %vm1814_vm14 = vcmp.eq.f32.partialorder %v634_v52, 8.507059e+37 }
  0xe7   :  { %v1206_v44 = vpop.eup %1205  ;;  %v1092_v21 = vmul.f32 -1.442695, %v1775_v36  ;;  %v1786_v45 = vadd.f32 %v1436_v32, %v181_v25  ;;  %v628_v26 = vmul.f32 %v1764_v20, %v627_v60  ;;  %v637_v16 = vor.u32 1.1754944e-38, %v636_v1  ;;  %vm632_vm15 = vmor %vm630_vm13, %vm631_vm12 }
  0xe8   :  { %v1788_v51 = vpop.eup %1207  ;;  %v1790_v33 = vadd.f32 1.0, %v1206_v44  ;;  %v462_v24 = vsub.f32 1.0, %v461_v58  ;;  %vm465_vm1 = vweird.f32 %v1724_v47  ;;  %v469_v29 = vand.u32 2147483647, %v1724_v47 }
  0xe9   :  { %1213 = vpow2.f32 %v1092_v21  ;;  %v1081_v0 = vmul.f32 -1.442695, %v1786_v45  ;;  %v1210_v2 = vpop.eup %1209  ;;  %v629_v15 = vadd.f32 %v1764_v20, %v628_v26  ;;  %vm466_vm2 = vweird.f32 %v1772_v37 }
  0xea   :  { %1215 = vrcp.f32 %v1790_v33  ;;  %v1805_v12 = vadd.f32 1.0, %v1210_v2  ;;  %v1811_v7 = vpop.eup %1211  ;;  %v471_v28 = vand.u32 2147483648, %v1724_v47  ;;  %v641_v31 = vmul.f32 %v1788_v51, %v1752_v10  ;;  %vm467_vm5 = vmor %vm465_vm1, %vm466_vm2 }
  0xeb   :  { %1217 = vpow2.f32 %v1081_v0  ;;  %v633_v59 = vsel %vm632_vm15, %v1764_v20, %v629_v15  ;;  %v463_v25 = vmul.f32 %v1772_v37, %v462_v24  ;;  %vm1842_vm3 = vcmp.eq.f32.partialorder %v469_v29, 8.507059e+37 }
  0xec   :  { %v217_v19 = vpop.f32.mrf.mxu2  ;;  %1219 = vrcp.f32 %v1805_v12  ;;  %v638_v20 = vsel %vm1814_vm14, %v637_v16, %v633_v59  ;;  %v642_v21 = vsub.f32 1.0, %v641_v31  ;;  %vm645_vm4 = vweird.f32 %v1752_v10 }
  0xed   :  { %v1819_v23 = vadd.f32 %v1436_v32, %v217_v19  ;;  %v847_v32 = vld [vmem:[%s2236_s3 + $0x10] sm:$0xff]  ;;  %762 = vrot.lane.b32.xlu2 %v638_v20, %s1277_s0  ;;  %v464_v14 = vadd.f32 %v1772_v37, %v463_v25  ;;  %v472_v60 = vor.u32 1.1754944e-38, %v471_v28  ;;  %v649_v52 = vand.u32 2147483647, %v1752_v10 }
  0xee   :  { %938 = vmatpush.msra.mxu1 %v847_v32  ;;  %1127 = vmatpush.msra.mxu3 %v847_v32  ;;  %v643_v0 = vmul.f32 %v1788_v51, %v642_v21  ;;  %vm646_vm6 = vweird.f32 %v1788_v51  ;;  %v651_v1 = vand.u32 2147483648, %v1752_v10  ;;  %v476_v2 = vmul.f32 %v1811_v7, %v1766_v22 }
  0xef   :  { %v1214_v56 = vpop.eup %1213  ;;  %v1093_v8 = vmul.f32 -1.442695, %v1819_v23  ;;  %v468_v26 = vsel %vm467_vm5, %v1772_v37, %v464_v14  ;;  %vm1864_vm7 = vcmp.eq.f32.partialorder %v649_v52, 8.507059e+37  ;;  %vm480_vm8 = vweird.f32 %v1766_v22  ;;  %vm647_vm9 = vmor %vm645_vm4, %vm646_vm6 }
  0xf0   :  { %v1839_v42 = vadd.f32 1.0, %v1214_v56  ;;  %v1847_v48 = vpop.eup %1215  ;;  %v473_v47 = vsel %vm1842_vm3, %v472_v60, %v468_v26  ;;  %v644_v15 = vadd.f32 %v1788_v51, %v643_v0  ;;  %v477_v3 = vsub.f32 1.0, %v476_v2 }
  0xf1   :  { %1221 = vpow2.f32 %v1093_v8  ;;  %v1218_v30 = vpop.eup %1217  ;;  %740 = vrot.lane.b32.xlu0 %v473_v47, %s1277_s0  ;;  %v652_v37 = vor.u32 1.1754944e-38, %v651_v1  ;;  %v484_v19 = vand.u32 2147483647, %v1766_v22  ;;  %v486_v24 = vand.u32 2147483648, %v1766_v22 }
  0xf2   :  { %1223 = vrcp.f32 %v1839_v42  ;;  %v1861_v4 = vadd.f32 1.0, %v1218_v30  ;;  %v1872_v16 = vpop.eup %1219  ;;  %v648_v29 = vsel %vm647_vm9, %v1788_v51, %v644_v15  ;;  %v478_v59 = vmul.f32 %v1811_v7, %v477_v3 }
  0xf3   :  { %vm481_vm10 = vweird.f32 %v1811_v7  ;;  %v656_v28 = vmul.f32 %v1847_v48, %v1790_v33  ;;  %v653_v35 = vsel %vm1864_vm7, %v652_v37, %v648_v29  ;;  %v522_v51 = vsub.f32 1.0, %v1802_v63 }
  0xf4   :  { %1225 = vrcp.f32 %v1861_v4  ;;  %764 = vrot.lane.b32.xlu1 %v653_v35, %s1277_s0  ;;  %v479_v32 = vadd.f32 %v1811_v7, %v478_v59  ;;  %vm482_vm11 = vmor %vm480_vm8, %vm481_vm10  ;;  %vm485_vm12 = vcmp.eq.f32.partialorder %v484_v19, 8.507059e+37  ;;  %v487_v8 = vor.u32 1.1754944e-38, %v486_v24  ;;  %v846_v59 = vld [vmem:[%s2236_s3 + $0x8] sm:$0xff] }
  0xf5   :  { %v657_v56 = vsub.f32 1.0, %v656_v28  ;;  %v666_v25 = vand.u32 2147483648, %v1790_v33  ;;  %v491_v44 = vmul.f32 %v1872_v16, %v1805_v12  ;;  %vm661_vm13 = vweird.f32 %v1847_v48  ;;  %939 = vmatpush.msra.mxu1 %v846_v59  ;;  %1128 = vmatpush.msra.mxu3 %v846_v59 }
  0xf6   :  { %v483_v21 = vsel %vm482_vm11, %v1811_v7, %v479_v32  ;;  %v664_v63 = vand.u32 2147483647, %v1790_v33  ;;  %vm660_vm14 = vweird.f32 %v1790_v33  ;;  %vm495_vm15 = vweird.f32 %v1805_v12 }
  0xf7   :  { %v1222_v31 = vpop.eup %1221  ;;  %v658_v14 = vmul.f32 %v1847_v48, %v657_v56  ;;  %v488_v22 = vsel %vm485_vm12, %v487_v8, %v483_v21  ;;  %v492_v52 = vsub.f32 1.0, %v491_v44  ;;  %v501_v7 = vand.u32 2147483648, %v1805_v12  ;;  %vm662_vm1 = vmor %vm660_vm14, %vm661_vm13  ;;  %v845_v8 = vld [vmem:[%s2236_s3] sm:$0xff] }
  0xf8   :  { %v1887_v10 = vadd.f32 1.0, %v1222_v31  ;;  %v1892_v20 = vpop.eup %1223  ;;  %742 = vrot.lane.b32.xlu2 %v488_v22, %s1277_s0  ;;  %v667_v1 = vor.u32 1.1754944e-38, %v666_v25  ;;  %vm496_vm2 = vweird.f32 %v1872_v16  ;;  %v499_v33 = vand.u32 2147483647, %v1805_v12  ;;  %940 = vmatpush.msra.mxu1 %v845_v8 }
  0xf9   :  { %v659_v30 = vadd.f32 %v1847_v48, %v658_v14  ;;  %v671_v0 = vmul.f32 %v1892_v20, %v1839_v42  ;;  %v493_v2 = vmul.f32 %v1872_v16, %v492_v52  ;;  %vm665_vm3 = vcmp.eq.f32.partialorder %v664_v63, 8.507059e+37  ;;  %vm497_vm4 = vmor %vm495_vm15, %vm496_vm2  ;;  %1129 = vmatpush.msra.mxu3 %v845_v8 }
  0xfa   :  { %v1903_v60 = vpop.eup %1225  ;;  %1227 = vrcp.f32 %v1887_v10  ;;  %v523_v47 = vmul.f32 %v1716_v9, %v522_v51  ;;  %v681_v37 = vand.u32 2147483648, %v1839_v42  ;;  %v502_v24 = vor.u32 1.1754944e-38, %v501_v7 }
  0xfb   :  { %v663_v26 = vsel %vm662_vm1, %v1847_v48, %v659_v30  ;;  %v672_v58 = vsub.f32 1.0, %v671_v0  ;;  %v494_v3 = vadd.f32 %v1872_v16, %v493_v2  ;;  %v506_v19 = vmul.f32 %v1903_v60, %v1861_v4 }
  0xfc   :  { %v668_v15 = vsel %vm665_vm3, %v667_v1, %v663_v26  ;;  %vm676_vm5 = vweird.f32 %v1892_v20  ;;  %v679_v29 = vand.u32 2147483647, %v1839_v42  ;;  %vm500_vm6 = vcmp.eq.f32.partialorder %v499_v33, 8.507059e+37 }
  0xfd   :  { %766 = vrot.lane.b32.xlu0 %v668_v15, %s1277_s0  ;;  %v673_v48 = vmul.f32 %v1892_v20, %v672_v58  ;;  %v498_v31 = vsel %vm497_vm4, %v1872_v16, %v494_v3  ;;  %vm675_vm7 = vweird.f32 %v1839_v42  ;;  %v507_v35 = vsub.f32 1.0, %v506_v19 }
  0xfe   :  { %v503_v12 = vsel %vm500_vm6, %v502_v24, %v498_v31  ;;  %v514_v56 = vand.u32 2147483647, %v1861_v4  ;;  %v516_v51 = vand.u32 2147483648, %v1861_v4  ;;  %vm677_vm8 = vmor %vm675_vm7, %vm676_vm5  ;;  %v682_v42 = vor.u32 1.1754944e-38, %v681_v37 }
  0xff   :  { %v674_v32 = vadd.f32 %v1892_v20, %v673_v48  ;;  %744 = vrot.lane.b32.xlu1 %v503_v12, %s1277_s0  ;;  %v508_v16 = vmul.f32 %v1903_v60, %v507_v35  ;;  %vm510_vm9 = vweird.f32 %v1861_v4  ;;  %vm511_vm10 = vweird.f32 %v1903_v60 }
 0x100   :  { %v1228_v28 = vpop.eup %1227  ;;  %vm680_vm11 = vcmp.eq.f32.partialorder %v679_v29, 8.507059e+37  ;;  %v524_v63 = vadd.f32 %v1716_v9, %v523_v47  ;;  %vm525_vm12 = vweird.f32 %v1657_v40  ;;  %vm512_vm13 = vmor %vm510_vm9, %vm511_vm10  ;;  %vm515_vm14 = vcmp.eq.f32.partialorder %v514_v56, 8.507059e+37 }
 0x101   :  { %v678_v25 = vsel %vm677_vm8, %v1892_v20, %v674_v32  ;;  %v686_v44 = vmul.f32 %v1228_v28, %v1887_v10  ;;  %v509_v14 = vadd.f32 %v1903_v60, %v508_v16  ;;  %v517_v4 = vor.u32 1.1754944e-38, %v516_v51 }
 0x102   :  { %v683_v21 = vsel %vm680_vm11, %v682_v42, %v678_v25  ;;  %vm526_vm15 = vweird.f32 %v1716_v9  ;;  %v529_v52 = vand.u32 2147483647, %v1657_v40  ;;  %v531_v30 = vand.u32 2147483648, %v1657_v40 }
 0x103   :  { %768 = vrot.lane.b32.xlu2 %v683_v21, %s1277_s0  ;;  %v687_v22 = vsub.f32 1.0, %v686_v44  ;;  %v513_v20 = vsel %vm512_vm13, %v1903_v60, %v509_v14  ;;  %v696_v7 = vand.u32 2147483648, %v1887_v10  ;;  %vm691_vm1 = vweird.f32 %v1228_v28  ;;  %vm527_vm2 = vmor %vm525_vm12, %vm526_vm15 }
 0x104   :  { %v518_v0 = vsel %vm515_vm14, %v517_v4, %v513_v20  ;;  %v694_v2 = vand.u32 2147483647, %v1887_v10  ;;  %v528_v33 = vsel %vm527_vm2, %v1716_v9, %v524_v63  ;;  %vm690_vm3 = vweird.f32 %v1887_v10 }
 0x105   :  { %v688_v1 = vmul.f32 %v1228_v28, %v687_v22  ;;  %746 = vrot.lane.b32.xlu0 %v518_v0, %s1277_s0  ;;  %v532_v60 = vor.u32 1.1754944e-38, %v531_v30  ;;  %vm692_vm4 = vmor %vm690_vm3, %vm691_vm1  ;;  %v697_v58 = vor.u32 1.1754944e-38, %v696_v7  ;;  %vm530_vm5 = vcmp.eq.f32.partialorder %v529_v52, 8.507059e+37 }
 0x106   :  { %vm695_vm6 = vcmp.eq.f32.partialorder %v694_v2, 8.507059e+37  ;;  %1229 = vtanh.f32 %v1455_v53  ;;  %vm820_vm7 = vcmask 261120  }
 0x107   :  { %v689_v26 = vadd.f32 %v1228_v28, %v688_v1  ;;  %v533_v15 = vsel %vm530_vm5, %v532_v60, %v528_v33  ;;  %1231 = vtanh.f32 %v1439_v34 }
 0x108   :  { %1233 = vtanh.f32 %v1462_v61 }
 0x109   :  { %v693_v47 = vsel %vm692_vm4, %v1228_v28, %v689_v26  ;;  %1235 = vtanh.f32 %v1443_v38 }
 0x10a   :  { %v698_v3 = vsel %vm695_vm6, %v697_v58, %v693_v47  ;;  %1237 = vtanh.f32 %v1447_v43 }
 0x10b   :  { %748 = vrot.lane.b32.xlu2 %v533_v15, %s1277_s0  ;;  %770 = vrot.lane.b32.xlu1 %v698_v3, %s1277_s0  ;;  %1239 = vtanh.f32 %v1504_v41 }
 0x10c   :  { %v1230_v40 = vpop.eup %1229  ;;  %1241 = vtanh.f32 %v1451_v46 }
 0x10d   :  { %v1232_v37 = vpop.eup %1231  ;;  %1243 = vtanh.f32 %v1567_v27 }
 0x10e   :  { %v1234_v34 = vpop.eup %1233  ;;  %1245 = vtanh.f32 %v1473_v13 }
 0x10f   :  { %v1236_v48 = vpop.eup %1235  ;;  %1247 = vtanh.f32 %v1479_v18 }
 0x110   :  { %v1238_v59 = vpop.eup %1237  ;;  %1249 = vtanh.f32 %v1519_v54 }
 0x111   :  { %v1240_v43 = vpop.eup %1239  ;;  %1251 = vtanh.f32 %v1652_v39 }
 0x112   :  { %v1242_v12 = vpop.eup %1241  ;;  %1253 = vtanh.f32 %v1554_v17 }
 0x113   :  { %v1244_v46 = vpop.eup %1243  ;;  %1255 = vtanh.f32 %v1706_v50 }
 0x114   :  { %v1246_v42 = vpop.eup %1245  ;;  %1257 = vtanh.f32 %v1612_v62 }
 0x115   :  { %v1248_v16 = vpop.eup %1247  ;;  %1259 = vtanh.f32 %v1621_v6 }
 0x116   :  { %v1250_v44 = vpop.eup %1249  ;;  %1261 = vtanh.f32 %v1775_v36 }
 0x117   :  { %v1252_v21 = vpop.eup %1251  ;;  %1263 = vtanh.f32 %v1669_v49 }
 0x118   :  { %v1254_v54 = vpop.eup %1253  ;;  %1265 = vtanh.f32 %v1458_v55 }
 0x119   :  { %v1256_v20 = vpop.eup %1255  ;;  %1267 = vtanh.f32 %v1695_v11 }
 0x11a   :  { %v1258_v7 = vpop.eup %1257  ;;  %1269 = vtanh.f32 %v1737_v57 }
 0x11b   :  { %v1260_v6 = vpop.eup %1259  ;;  %1271 = vtanh.f32 %v1750_v5 }
 0x11c   :  { %v1262_v2 = vpop.eup %1261  ;;  %1273 = vtanh.f32 %v1786_v45 }
 0x11d   :  { %v753_v9 = vpop.permute.xlu2 %752  ;;  %v1264_v26 = vpop.eup %1263  ;;  %1275 = vtanh.f32 %v1819_v23  ;;  %v2111_v23 = vld [vmem:[%s2237_s4] ss:$0 sm:$0xff] }
 0x11e   :  { %v810_v10 = vmul.f32 %v1230_v40, %v753_v9  ;;  %v1266_v58 = vpop.eup %1265 }
 0x11f   :  { %v725_v19 = vpop.permute.xlu0 %724  ;;  %v1268_v40 = vpop.eup %1267 }
 0x120   :  { %835 = vst.msk [vmem:[%s2238_s5 + $0x70] sm:$0xff] %vm820_vm7, %v810_v10  ;;  %v796_v24 = vmul.f32 %v1232_v37, %v725_v19  ;;  %v1270_v11 = vpop.eup %1269 }
 0x121   :  { %v1272_v37 = vpop.eup %1271 }
 0x122   :  { %821 = vst.msk [vmem:[%s2238_s5] sm:$0xff] %vm820_vm7, %v796_v24  ;;  %1094 = vmatmul.msk.f32.vlgmr.msra.gmra.mxu1 %vm820_vm7, %v796_v24  ;;  %v1274_v5 = vpop.eup %1273 }
 0x125   :  { %v731_v53 = vpop.permute.xlu2 %730 }
 0x126   :  { %v799_v61 = vmul.f32 %v1234_v34, %v731_v53  ;;  %v1276_v34 = vpop.eup %1275 }
 0x127   :  { %v727_v29 = vpop.permute.xlu0 %726 }
 0x128   :  { %824 = vst.msk [vmem:[%s2238_s5 + $0x18] sm:$0xff] %vm820_vm7, %v799_v61  ;;  %v797_v38 = vmul.f32 %v1236_v48, %v727_v29 }
 0x12a   :  { %822 = vst.msk [vmem:[%s2238_s5 + $0x8] sm:$0xff] %vm820_vm7, %v797_v38  ;;  %1095 = vmatmul.msk.f32.gmra.mxu1 %vm820_vm7, %v797_v38 }
 0x12d   :  { %v751_v28 = vpop.permute.xlu1 %750  ;;  %v757_v31 = vpop.permute.xlu2 %756 }
 0x12e   :  { %v809_v35 = vmul.f32 %v1238_v59, %v751_v28  ;;  %v812_v41 = vmul.f32 %v1240_v43, %v757_v31 }
 0x130   :  { %834 = vst.msk [vmem:[%s2238_s5 + $0x68] sm:$0xff] %vm820_vm7, %v809_v35  ;;  %1107 = vmatmul.msk.f32.vlgmr.msra.gmra.mxu3 %vm820_vm7, %v809_v35 }
 0x131   :  { %837 = vst.msk [vmem:[%s2238_s5 + $0x80] sm:$0xff] %vm820_vm7, %v812_v41 }
 0x135   :  { %v729_v32 = vpop.permute.xlu1 %728 }
 0x136   :  { %v798_v56 = vmul.f32 %v1242_v12, %v729_v32 }
 0x138   :  { %823 = vst.msk [vmem:[%s2238_s5 + $0x10] sm:$0xff] %vm820_vm7, %v798_v56  ;;  %1096 = vmatmul.msk.f32.gmra.mxu1 %vm820_vm7, %v798_v56  ;;  %1108 = vmatmul.msk.f32.gmra.mxu3 %vm820_vm7, %v810_v10  ;;  %v737_v51 = vpop.permute.xlu2 %736 }
 0x139   :  { %v802_v8 = vmul.f32 %v1244_v46, %v737_v51 }
 0x13b   :  { %827 = vst.msk [vmem:[%s2238_s5 + $0x30] sm:$0xff] %vm820_vm7, %v802_v8 }
 0x13d   :  { %v755_v27 = vpop.permute.xlu0 %754 }
 0x13e   :  { %v811_v13 = vmul.f32 %v1246_v42, %v755_v27 }
 0x140   :  { %836 = vst.msk [vmem:[%s2238_s5 + $0x78] sm:$0xff] %vm820_vm7, %v811_v13  ;;  %v733_v25 = vpop.permute.xlu1 %732  ;;  %1097 = vmatmul.msk.f32.gmra.mxu1 %vm820_vm7, %v799_v61  ;;  %1109 = vmatmul.msk.f32.gmra.mxu3 %vm820_vm7, %v811_v13 }
 0x141   :  { %v800_v18 = vmul.f32 %v1248_v16, %v733_v25 }
 0x143   :  { %825 = vst.msk [vmem:[%s2238_s5 + $0x20] sm:$0xff] %vm820_vm7, %v800_v18 }
 0x147   :  { %v763_v14 = vpop.permute.xlu2 %762 }
 0x148   :  { %1098 = vmatmul.msk.f32.gmra.mxu1 %vm820_vm7, %v800_v18  ;;  %1110 = vmatmul.msk.f32.gmra.mxu3 %vm820_vm7, %v812_v41  ;;  %v735_v63 = vpop.permute.xlu0 %734  ;;  %v815_v4 = vmul.f32 %v1252_v21, %v763_v14 }
 0x149   :  { %v801_v22 = vmul.f32 %v1250_v44, %v735_v63 }
 0x14a   :  { %840 = vst.msk [vmem:[%s2238_s5 + $0x98] sm:$0xff] %vm820_vm7, %v815_v4 }
 0x14b   :  { %826 = vst.msk [vmem:[%s2238_s5 + $0x28] sm:$0xff] %vm820_vm7, %v801_v22 }
 0x14d   :  { %v759_v39 = vpop.permute.xlu1 %758 }
 0x14e   :  { %v813_v17 = vmul.f32 %v1254_v54, %v759_v39 }
 0x150   :  { %1099 = vmatmul.msk.f32.gmra.mxu1 %vm820_vm7, %v801_v22  ;;  %838 = vst.msk [vmem:[%s2238_s5 + $0x88] sm:$0xff] %vm820_vm7, %v813_v17  ;;  %1111 = vmatmul.msk.f32.gmra.mxu3 %vm820_vm7, %v813_v17 }
 0x152   :  { %v743_v52 = vpop.permute.xlu2 %742 }
 0x153   :  { %v805_v30 = vmul.f32 %v1256_v20, %v743_v52 }
 0x155   :  { %v761_v50 = vpop.permute.xlu0 %760  ;;  %830 = vst.msk [vmem:[%s2238_s5 + $0x48] sm:$0xff] %vm820_vm7, %v805_v30 }
 0x156   :  { %v814_v62 = vmul.f32 %v1258_v7, %v761_v50 }
 0x158   :  { %1100 = vmatmul.msk.f32.gmra.mxu1 %vm820_vm7, %v802_v8  ;;  %839 = vst.msk [vmem:[%s2238_s5 + $0x90] sm:$0xff] %vm820_vm7, %v814_v62  ;;  %1112 = vmatmul.msk.f32.gmra.mxu3 %vm820_vm7, %v814_v62  ;;  %v739_v0 = vpop.permute.xlu1 %738 }
 0x159   :  { %v803_v1 = vmul.f32 %v1260_v6, %v739_v0 }
 0x15b   :  { %828 = vst.msk [vmem:[%s2238_s5 + $0x38] sm:$0xff] %vm820_vm7, %v803_v1 }
 0x15d   :  { %v769_v33 = vpop.permute.xlu2 %768 }
 0x15e   :  { %v818_v36 = vmul.f32 %v1262_v2, %v769_v33 }
 0x160   :  { %1101 = vmatmul.msk.f32.gmra.mxu1 %vm820_vm7, %v803_v1  ;;  %843 = vst.msk [vmem:[%s2238_s5 + $0xb0] sm:$0xff] %vm820_vm7, %v818_v36  ;;  %1113 = vmatmul.msk.f32.gmra.mxu3 %vm820_vm7, %v815_v4 }
 0x163   :  { %v741_v60 = vpop.permute.xlu0 %740 }
 0x164   :  { %v804_v47 = vmul.f32 %v1264_v26, %v741_v60 }
 0x165   :  { %v749_v15 = vpop.permute.xlu2 %748 }
 0x166   :  { %v808_v3 = vmul.f32 %v1266_v58, %v749_v15  ;;  %829 = vst.msk [vmem:[%s2238_s5 + $0x40] sm:$0xff] %vm820_vm7, %v804_v47  ;;  %v765_v55 = vpop.permute.xlu1 %764 }
 0x167   :  { %v816_v49 = vmul.f32 %v1268_v40, %v765_v55 }
 0x168   :  { %1102 = vmatmul.msk.f32.gmra.mxu1 %vm820_vm7, %v804_v47  ;;  %833 = vst.msk [vmem:[%s2238_s5 + $0x60] sm:$0xff] %vm820_vm7, %v808_v3 }
 0x169   :  { %841 = vst.msk [vmem:[%s2238_s5 + $0xa0] sm:$0xff] %vm820_vm7, %v816_v49  ;;  %1114 = vmatmul.msk.f32.gmra.mxu3 %vm820_vm7, %v816_v49 }
 0x16f   :  { %v767_v9 = vpop.permute.xlu0 %766 }
 0x170   :  { %1103 = vmatmul.msk.f32.gmra.mxu1 %vm820_vm7, %v805_v30  ;;  %v817_v10 = vmul.f32 %v1270_v11, %v767_v9 }
 0x171   :  { %v745_v57 = vpop.permute.xlu1 %744 }
 0x172   :  { %842 = vst.msk [vmem:[%s2238_s5 + $0xa8] sm:$0xff] %vm820_vm7, %v817_v10  ;;  %1115 = vmatmul.msk.f32.gmra.mxu3 %vm820_vm7, %v817_v10  ;;  %v806_v19 = vmul.f32 %v1272_v37, %v745_v57 }
 0x174   :  { %831 = vst.msk [vmem:[%s2238_s5 + $0x50] sm:$0xff] %vm820_vm7, %v806_v19 }
 0x177   :  { %v747_v45 = vpop.permute.xlu0 %746 }
 0x178   :  { %1104 = vmatmul.msk.f32.gmra.mxu1 %vm820_vm7, %v806_v19  ;;  %v807_v24 = vmul.f32 %v1274_v5, %v747_v45 }
 0x17a   :  { %1116 = vmatmul.msk.f32.gmra.mxu3 %vm820_vm7, %v818_v36  ;;  %832 = vst.msk [vmem:[%s2238_s5 + $0x58] sm:$0xff] %vm820_vm7, %v807_v24 }
 0x17d   :  { %v771_v53 = vpop.permute.xlu1 %770 }
 0x17e   :  { %v819_v61 = vmul.f32 %v1276_v34, %v771_v53 }
 0x180   :  { %1105 = vmatmul.msk.f32.gmra.mxu1 %vm820_vm7, %v807_v24  ;;  %844 = vst.msk [vmem:[%s2238_s5 + $0xb8] sm:$0xff] %vm820_vm7, %v819_v61 }
 0x182   :  { %1117 = vmatmul.msk.f32.gmra.mxu3 %vm820_vm7, %v819_v61 }
 0x188   :  { %1106 = vmatmul.msk.f32.gmra.mxu1 %vm820_vm7, %v808_v3 }
 0x19f   :  { %v942_v48 = vpop.f32.mrf.mxu1 }
 0x1a0   :  { %v943_v29 = vadd.f32 %v2111_v23, %v942_v48 }
 0x1a2   :  { %1014 = vst.msk [vmem:[%s2239_s6] sm:$0xff] %vm58_vm0, %v943_v29 }
 0x1a7   :  { %v945_v38 = vpop.f32.mrf.mxu1 }
 0x1a8   :  { %v946_v59 = vadd.f32 %v2111_v23, %v945_v38 }
 0x1aa   :  { %1015 = vst.msk [vmem:[%s2239_s6 + $0x8] sm:$0xff] %vm58_vm0, %v946_v59 }
 0x1b3   :  { %v981_v43 = vpop.f32.mrf.mxu3 }
 0x1b4   :  { %v982_v28 = vadd.f32 %v2111_v23, %v981_v43 }
 0x1b5   :  { %v948_v31 = vpop.f32.mrf.mxu1 }
 0x1b6   :  { %1027 = vst.msk [vmem:[%s2239_s6 + $0x68] sm:$0xff] %vm58_vm0, %v982_v28  ;;  %v949_v35 = vadd.f32 %v2111_v23, %v948_v31 }
 0x1b8   :  { %1016 = vst.msk [vmem:[%s2239_s6 + $0x10] sm:$0xff] %vm58_vm0, %v949_v35 }
 0x1bb   :  { %v984_v41 = vpop.f32.mrf.mxu3 }
 0x1bc   :  { %v985_v12 = vadd.f32 %v2111_v23, %v984_v41 }
 0x1bd   :  { %v951_v32 = vpop.f32.mrf.mxu1 }
 0x1be   :  { %1028 = vst.msk [vmem:[%s2239_s6 + $0x70] sm:$0xff] %vm58_vm0, %v985_v12  ;;  %v952_v56 = vadd.f32 %v2111_v23, %v951_v32 }
 0x1c0   :  { %1017 = vst.msk [vmem:[%s2239_s6 + $0x18] sm:$0xff] %vm58_vm0, %v952_v56 }
 0x1c3   :  { %v987_v46 = vpop.f32.mrf.mxu3 }
 0x1c4   :  { %v988_v51 = vadd.f32 %v2111_v23, %v987_v46 }
 0x1c5   :  { %v954_v8 = vpop.f32.mrf.mxu1 }
 0x1c6   :  { %1029 = vst.msk [vmem:[%s2239_s6 + $0x78] sm:$0xff] %vm58_vm0, %v988_v51  ;;  %v955_v42 = vadd.f32 %v2111_v23, %v954_v8 }
 0x1c8   :  { %1018 = vst.msk [vmem:[%s2239_s6 + $0x20] sm:$0xff] %vm58_vm0, %v955_v42 }
 0x1cb   :  { %v990_v27 = vpop.f32.mrf.mxu3 }
 0x1cc   :  { %v991_v13 = vadd.f32 %v2111_v23, %v990_v27 }
 0x1cd   :  { %v957_v16 = vpop.f32.mrf.mxu1 }
 0x1ce   :  { %1030 = vst.msk [vmem:[%s2239_s6 + $0x80] sm:$0xff] %vm58_vm0, %v991_v13  ;;  %v958_v25 = vadd.f32 %v2111_v23, %v957_v16 }
 0x1d0   :  { %1019 = vst.msk [vmem:[%s2239_s6 + $0x28] sm:$0xff] %vm58_vm0, %v958_v25 }
 0x1d3   :  { %v993_v44 = vpop.f32.mrf.mxu3 }
 0x1d4   :  { %v994_v14 = vadd.f32 %v2111_v23, %v993_v44 }
 0x1d5   :  { %v960_v18 = vpop.f32.mrf.mxu1 }
 0x1d6   :  { %v961_v21 = vadd.f32 %v2111_v23, %v960_v18  ;;  %1031 = vst.msk [vmem:[%s2239_s6 + $0x88] sm:$0xff] %vm58_vm0, %v994_v14 }
 0x1d8   :  { %1020 = vst.msk [vmem:[%s2239_s6 + $0x30] sm:$0xff] %vm58_vm0, %v961_v21 }
 0x1db   :  { %v996_v4 = vpop.f32.mrf.mxu3 }
 0x1dc   :  { %v997_v54 = vadd.f32 %v2111_v23, %v996_v4 }
 0x1dd   :  { %v963_v63 = vpop.f32.mrf.mxu1 }
 0x1de   :  { %v964_v22 = vadd.f32 %v2111_v23, %v963_v63  ;;  %1032 = vst.msk [vmem:[%s2239_s6 + $0x90] sm:$0xff] %vm58_vm0, %v997_v54 }
 0x1e0   :  { %1021 = vst.msk [vmem:[%s2239_s6 + $0x38] sm:$0xff] %vm58_vm0, %v964_v22 }
 0x1e3   :  { %v999_v39 = vpop.f32.mrf.mxu3 }
 0x1e4   :  { %v1000_v17 = vadd.f32 %v2111_v23, %v999_v39 }
 0x1e5   :  { %v966_v20 = vpop.f32.mrf.mxu1 }
 0x1e6   :  { %v967_v52 = vadd.f32 %v2111_v23, %v966_v20  ;;  %1033 = vst.msk [vmem:[%s2239_s6 + $0x98] sm:$0xff] %vm58_vm0, %v1000_v17 }
 0x1e8   :  { %1022 = vst.msk [vmem:[%s2239_s6 + $0x40] sm:$0xff] %vm58_vm0, %v967_v52 }
 0x1ec   :  { %v1002_v7 = vpop.f32.mrf.mxu3 }
 0x1ed   :  { %v969_v30 = vpop.f32.mrf.mxu1  ;;  %v1003_v62 = vadd.f32 %v2111_v23, %v1002_v7 }
 0x1ee   :  { %v970_v50 = vadd.f32 %v2111_v23, %v969_v30 }
 0x1ef   :  { %1034 = vst.msk [vmem:[%s2239_s6 + $0xa0] sm:$0xff] %vm58_vm0, %v1003_v62 }
 0x1f0   :  { %1023 = vst.msk [vmem:[%s2239_s6 + $0x48] sm:$0xff] %vm58_vm0, %v970_v50 }
 0x1f5   :  { %v972_v6 = vpop.f32.mrf.mxu1  ;;  %v1005_v0 = vpop.f32.mrf.mxu3 }
 0x1f6   :  { %v973_v1 = vadd.f32 %v2111_v23, %v972_v6  ;;  %v1006_v2 = vadd.f32 %v2111_v23, %v1005_v0 }
 0x1f8   :  { %1024 = vst.msk [vmem:[%s2239_s6 + $0x50] sm:$0xff] %vm58_vm0, %v973_v1 }
 0x1f9   :  { %1035 = vst.msk [vmem:[%s2239_s6 + $0xa8] sm:$0xff] %vm58_vm0, %v1006_v2 }
 0x1fd   :  { %v975_v33 = vpop.f32.mrf.mxu1  ;;  %v1008_v36 = vpop.f32.mrf.mxu3 }
 0x1fe   :  { %v976_v26 = vadd.f32 %v2111_v23, %v975_v33  ;;  %v1009_v60 = vadd.f32 %v2111_v23, %v1008_v36 }
 0x200   :  { %1025 = vst.msk [vmem:[%s2239_s6 + $0x58] sm:$0xff] %vm58_vm0, %v976_v26 }
 0x201   :  { %1036 = vst.msk [vmem:[%s2239_s6 + $0xb0] sm:$0xff] %vm58_vm0, %v1009_v60 }
 0x205   :  { %v978_v58 = vpop.f32.mrf.mxu1  ;;  %v1011_v47 = vpop.f32.mrf.mxu3 }
 0x206   :  { %v979_v15 = vadd.f32 %v2111_v23, %v978_v58  ;;  %v1012_v3 = vadd.f32 %v2111_v23, %v1011_v47 }
 0x208   :  { %1026 = vst.msk [vmem:[%s2239_s6 + $0x60] sm:$0xff] %vm58_vm0, %v979_v15 }
 0x209   :  { %1037 = vst.msk [vmem:[%s2239_s6 + $0xb8] sm:$0xff] %vm58_vm0, %v1012_v3 }

// kernel: tile.48
= control target key start
LH: loop header
LB: loop body
LE: loop exit
PB: predicated region body
PF: predicated region fallthrough
CT: control target
= control target key end

     0   :  { %s28_s0 = inlined_call_operand.vmem [shape: f32[32], index: 0, kind: input, shape index: {}]   ;;  %s29_s1 = inlined_call_operand.vmem [shape: f32[16,32], index: 1, kind: output, shape index: {}]  }
   0x1   :  { %v4_v0 = vld [vmem:[%s28_s0] ss:$0 sm:$0xff] }
   0x2   :  { %5 = vst [vmem:[%s29_s1] sm:$0xff] %v4_v0 }
   0x3   :  { %8 = vst [vmem:[%s29_s1 + $0x8] sm:$0xff] %v4_v0 }

// kernel: tile.49
= control target key start
LH: loop header
LB: loop body
LE: loop exit
PB: predicated region body
PF: predicated region fallthrough
CT: control target
= control target key end

     0   :  { %s56_s8 = smov 96   ;;  %s57_s11 = smov 32   ;;  %vm3_vm0 = vcmask 261120   ;;  %vm9_vm1 = vcmask 1048320   ;;  %vm15_vm2 = vcmask 785920   ;;  %vm21_vm3 = vcmask 523520   ;;  %s93_s0 = inlined_call_operand.vmem [shape: f32[16,32], index: 0, kind: input, shape index: {}]   ;;  %s94_s1 = inlined_call_operand.vmem [shape: f32[1,512], index: 1, kind: output, shape index: {}]  }
   0x1   :  { %v47_v0 = vld [vmem:[%s93_s0 + $0x3] ss:$4 sm:$0xf]   ;;  %v49_v1 = vld [vmem:[%s93_s0 + $0x1] ss:$4 sm:$0xf]  }
   0x2   :  { %7 = vrot.lane.b32.xlu0 %v47_v0, %s56_s8  ;;  %19 = vrot.lane.b32.xlu1 %v49_v1, %s57_s11  ;;  %v48_v2 = vld [vmem:[%s93_s0 + $0x2] ss:$4 sm:$0xf]   ;;  %s58_s14 = smov 64  }
   0x3   :  { %v2_v3 = vld [vmem:[%s93_s0] ss:$4 sm:$0xf]  }
   0x4   :  { %4 = vst.msk [vmem:[#allocation0] ss:$8 sm:$0xf] %vm3_vm0, %v2_v3  }
   0xa   :  { %13 = vrot.lane.b32.xlu0 %v48_v2, %s58_s14 }
  0x74   :  { %v8_v4 = vpop.permute.xlu0 %7   ;;  %v20_v5 = vpop.permute.xlu1 %19  }
  0x75   :  { %10 = vst.msk [vmem:[#allocation0] ss:$8 sm:$0xf] %vm9_vm1, %v8_v4  }
  0x7c   :  { %v14_v6 = vpop.permute.xlu0 %13  }
  0x7d   :  { %16 = vst.msk [vmem:[#allocation0] ss:$8 sm:$0xf] %vm15_vm2, %v14_v6  }
  0x7e   :  { %22 = vst.msk [vmem:[#allocation0] ss:$8 sm:$0xf] %vm21_vm3, %v20_v5  }
  0x85   :  { %v25_v7 = vld [vmem:[#allocation0] sm:$0x1]  ;;  %v30_v8 = vld [vmem:[#allocation0 + $0x8] sm:$0x1]  ;;  %v36_v9 = vld [vmem:[#allocation0 + $0x10] sm:$0x1] }
  0x86   :  { %28 = vst [vmem:[%s94_s1] sm:$0x1] %v25_v7  ;;  %v42_v10 = vld [vmem:[#allocation0 + $0x18] sm:$0x1] }
  0x87   :  { %50 = vst [vmem:[%s94_s1 + $0x1] sm:$0x1] %v30_v8 }
  0x88   :  { %51 = vst [vmem:[%s94_s1 + $0x2] sm:$0x1] %v36_v9 }
  0x89   :  { %52 = vst [vmem:[%s94_s1 + $0x3] sm:$0x1] %v42_v10 }

// kernel: gwnet_forward.12
= control target key start
LH: loop header
LB: loop body
LE: loop exit
PB: predicated region body
PF: predicated region fallthrough
CT: control target
= control target key end

     0   :  { %vm50_vm0 = vcmask 523264   ;;  %s1497_s1 = inlined_call_operand.vmem [shape: f32[64,64], index: 1, kind: input, shape index: {}]   ;;  %s1498_s2 = inlined_call_operand.vmem [shape: f32[1,64], index: 2, kind: input, shape index: {}]   ;;  %s1499_s0 = inlined_call_operand.vmem [shape: f32[128,64], index: 0, kind: input, shape index: {}]   ;;  %s1500_s3 = inlined_call_operand.vmem [shape: f32[32,64], index: 3, kind: input, shape index: {}]   ;;  %s1501_s4 = inlined_call_operand.vmem [shape: f32[1,64], index: 4, kind: input, shape index: {}]   ;;  %s1502_s5 = inlined_call_operand.vmem [shape: f32[128,32], index: 5, kind: output, shape index: {0}]   ;;  %s1503_s6 = inlined_call_operand.vmem [shape: f32[128,64], index: 6, kind: output, shape index: {1}]  }
   0x1   :  { %v45_v0 = vld [vmem:[%s1497_s1 + $0x38] sm:$0xff]  ;;  %v44_v1 = vld [vmem:[%s1497_s1 + $0x30] sm:$0xff]  ;;  %v43_v2 = vld [vmem:[%s1497_s1 + $0x28] sm:$0xff] }
   0x2   :  { %107 = vmatpush.msra.mxu0 %v45_v0  ;;  %774 = vmatpush.msra.mxu2 %v45_v0  ;;  %v42_v3 = vld [vmem:[%s1497_s1 + $0x20] sm:$0xff]  ;;  %v41_v4 = vld [vmem:[%s1497_s1 + $0x18] sm:$0xff]  ;;  %v40_v5 = vld [vmem:[%s1497_s1 + $0x10] sm:$0xff] }
   0x3   :  { %v39_v6 = vld [vmem:[%s1497_s1 + $0x8] sm:$0xff]  ;;  %v38_v7 = vld [vmem:[%s1497_s1] sm:$0xff]  ;;  %v24_v12 = vld [vmem:[%s1499_s0 + $0x10] sm:$0xff] }
   0x4   :  { %108 = vmatpush.msra.mxu0 %v44_v1  ;;  %775 = vmatpush.msra.mxu2 %v44_v1  ;;  %v22_v8 = vld [vmem:[%s1499_s0] sm:$0xff]  ;;  %v23_v10 = vld [vmem:[%s1499_s0 + $0x8] sm:$0xff]  ;;  %v32_v13 = vld [vmem:[%s1499_s0 + $0x50] sm:$0xff] }
   0x5   :  { %v30_v9 = vld [vmem:[%s1499_s0 + $0x40] sm:$0xff]  ;;  %v31_v11 = vld [vmem:[%s1499_s0 + $0x48] sm:$0xff]  ;;  %v25_v14 = vld [vmem:[%s1499_s0 + $0x18] sm:$0xff] }
   0x6   :  { %109 = vmatpush.msra.mxu0 %v43_v2  ;;  %776 = vmatpush.msra.mxu2 %v43_v2  ;;  %v33_v15 = vld [vmem:[%s1499_s0 + $0x58] sm:$0xff]  ;;  %v26_v16 = vld [vmem:[%s1499_s0 + $0x20] sm:$0xff]  ;;  %v27_v18 = vld [vmem:[%s1499_s0 + $0x28] sm:$0xff] }
   0x7   :  { %v34_v17 = vld [vmem:[%s1499_s0 + $0x60] sm:$0xff]  ;;  %v35_v19 = vld [vmem:[%s1499_s0 + $0x68] sm:$0xff]  ;;  %v28_v20 = vld [vmem:[%s1499_s0 + $0x30] sm:$0xff] }
   0x8   :  { %110 = vmatpush.msra.mxu0 %v42_v3  ;;  %777 = vmatpush.msra.mxu2 %v42_v3  ;;  %v36_v21 = vld [vmem:[%s1499_s0 + $0x70] sm:$0xff]  ;;  %v29_v22 = vld [vmem:[%s1499_s0 + $0x38] sm:$0xff]  ;;  %v1012_v24 = vld [vmem:[%s1498_s2] ss:$0 sm:$0xff] }
   0x9   :  { %v37_v23 = vld [vmem:[%s1499_s0 + $0x78] sm:$0xff]  ;;  %s885_s0 = smov 96  }
   0xa   :  { %111 = vmatpush.msra.mxu0 %v41_v4  ;;  %778 = vmatpush.msra.mxu2 %v41_v4 }
   0xc   :  { %112 = vmatpush.msra.mxu0 %v40_v5  ;;  %779 = vmatpush.msra.mxu2 %v40_v5 }
   0xe   :  { %113 = vmatpush.msra.mxu0 %v39_v6  ;;  %780 = vmatpush.msra.mxu2 %v39_v6 }
  0x10   :  { %114 = vmatpush.msra.mxu0 %v38_v7  ;;  %781 = vmatpush.msra.mxu2 %v38_v7 }
  0x11   :  { %726 = vmatmul.msk.f32.vlgmr.msra.gmra.mxu0 %vm50_vm0, %v22_v8  ;;  %734 = vmatmul.msk.f32.vlgmr.msra.gmra.mxu2 %vm50_vm0, %v30_v9 }
  0x19   :  { %727 = vmatmul.msk.f32.gmra.mxu0 %vm50_vm0, %v23_v10  ;;  %735 = vmatmul.msk.f32.gmra.mxu2 %vm50_vm0, %v31_v11 }
  0x21   :  { %728 = vmatmul.msk.f32.gmra.mxu0 %vm50_vm0, %v24_v12  ;;  %736 = vmatmul.msk.f32.gmra.mxu2 %vm50_vm0, %v32_v13 }
  0x29   :  { %729 = vmatmul.msk.f32.gmra.mxu0 %vm50_vm0, %v25_v14  ;;  %737 = vmatmul.msk.f32.gmra.mxu2 %vm50_vm0, %v33_v15 }
  0x31   :  { %730 = vmatmul.msk.f32.gmra.mxu0 %vm50_vm0, %v26_v16  ;;  %738 = vmatmul.msk.f32.gmra.mxu2 %vm50_vm0, %v34_v17 }
  0x39   :  { %731 = vmatmul.msk.f32.gmra.mxu0 %vm50_vm0, %v27_v18  ;;  %739 = vmatmul.msk.f32.gmra.mxu2 %vm50_vm0, %v35_v19 }
  0x41   :  { %732 = vmatmul.msk.f32.gmra.mxu0 %vm50_vm0, %v28_v20  ;;  %740 = vmatmul.msk.f32.gmra.mxu2 %vm50_vm0, %v36_v21 }
  0x49   :  { %733 = vmatmul.msk.f32.gmra.mxu0 %vm50_vm0, %v29_v22  ;;  %741 = vmatmul.msk.f32.gmra.mxu2 %vm50_vm0, %v37_v23 }
  0x8e   :  { %v116_v25 = vpop.f32.mrf.mxu0 }
  0x8f   :  { %v1015_v26 = vadd.f32 %v1012_v24, %v116_v25 }
  0x91   :  { %v742_v27 = vmul.f32 -1.442695, %v1015_v26 }
  0x93   :  { %789 = vpow2.f32 %v742_v27 }
  0x94   :  { %v140_v28 = vpop.f32.mrf.mxu2 }
  0x95   :  { %v1023_v34 = vadd.f32 %v1012_v24, %v140_v28 }
  0x96   :  { %v119_v29 = vpop.f32.mrf.mxu0 }
  0x97   :  { %v1019_v30 = vadd.f32 %v1012_v24, %v119_v29  ;;  %v750_v37 = vmul.f32 -1.442695, %v1023_v34 }
  0x99   :  { %v790_v31 = vpop.eup %789  ;;  %v743_v32 = vmul.f32 -1.442695, %v1019_v30 }
  0x9a   :  { %v228_v33 = vadd.f32 1.0, %v790_v31 }
  0x9b   :  { %791 = vpow2.f32 %v743_v32 }
  0x9c   :  { %793 = vrcp.f32 %v228_v33  ;;  %v143_v35 = vpop.f32.mrf.mxu2  ;;  %vm249_vm1 = vweird.f32 %v228_v33  ;;  %v253_v50 = vand.u32 2147483647, %v228_v33  ;;  %v255_v51 = vand.u32 2147483648, %v228_v33 }
  0x9d   :  { %v1026_v36 = vadd.f32 %v1012_v24, %v143_v35 }
  0x9e   :  { %v122_v38 = vpop.f32.mrf.mxu0  ;;  %vm254_vm4 = vcmp.eq.f32.partialorder %v253_v50, 8.507059e+37  ;;  %v256_v61 = vor.u32 1.1754944e-38, %v255_v51 }
  0x9f   :  { %v751_v39 = vmul.f32 -1.442695, %v1026_v36  ;;  %v1031_v40 = vadd.f32 %v1012_v24, %v122_v38 }
  0xa1   :  { %v792_v41 = vpop.eup %791  ;;  %795 = vpow2.f32 %v751_v39  ;;  %v744_v42 = vmul.f32 -1.442695, %v1031_v40 }
  0xa2   :  { %v794_v43 = vpop.eup %793  ;;  %797 = vpow2.f32 %v750_v37  ;;  %v229_v44 = vadd.f32 1.0, %v792_v41 }
  0xa3   :  { %v245_v45 = vmul.f32 %v794_v43, %v228_v33  ;;  %vm250_vm2 = vweird.f32 %v794_v43 }
  0xa4   :  { %799 = vrcp.f32 %v229_v44  ;;  %v146_v46 = vpop.f32.mrf.mxu2  ;;  %vm251_vm3 = vmor %vm249_vm1, %vm250_vm2  ;;  %v268_v2 = vand.u32 2147483647, %v229_v44  ;;  %v270_v6 = vand.u32 2147483648, %v229_v44  ;;  %vm264_vm5 = vweird.f32 %v229_v44 }
  0xa5   :  { %801 = vpow2.f32 %v744_v42  ;;  %v1035_v47 = vadd.f32 %v1012_v24, %v146_v46  ;;  %v246_v48 = vsub.f32 1.0, %v245_v45 }
  0xa6   :  { %v125_v49 = vpop.f32.mrf.mxu0  ;;  %vm1062_vm7 = vcmp.eq.f32.partialorder %v268_v2, 8.507059e+37  ;;  %v271_v17 = vor.u32 1.1754944e-38, %v270_v6 }
  0xa7   :  { %v796_v52 = vpop.eup %795  ;;  %v752_v53 = vmul.f32 -1.442695, %v1035_v47  ;;  %v1039_v54 = vadd.f32 %v1012_v24, %v125_v49  ;;  %v247_v55 = vmul.f32 %v794_v43, %v246_v48 }
  0xa8   :  { %v798_v56 = vpop.eup %797  ;;  %v1041_v57 = vadd.f32 1.0, %v796_v52 }
  0xa9   :  { %803 = vpow2.f32 %v752_v53  ;;  %v745_v58 = vmul.f32 -1.442695, %v1039_v54  ;;  %v248_v59 = vadd.f32 %v794_v43, %v247_v55  ;;  %v1046_v63 = vadd.f32 1.0, %v798_v56 }
  0xaa   :  { %v800_v60 = vpop.eup %799  ;;  %805 = vrcp.f32 %v1041_v57  ;;  %vm384_vm9 = vweird.f32 %v1041_v57  ;;  %v388_v22 = vand.u32 2147483647, %v1041_v57  ;;  %v390_v23 = vand.u32 2147483648, %v1041_v57 }
  0xab   :  { %v802_v62 = vpop.eup %801  ;;  %v252_v0 = vsel %vm251_vm3, %v794_v43, %v248_v59  ;;  %v260_v1 = vmul.f32 %v800_v60, %v229_v44  ;;  %807 = vpow2.f32 %v745_v58  ;;  %vm265_vm6 = vweird.f32 %v800_v60 }
  0xac   :  { %v1048_v3 = vadd.f32 1.0, %v802_v62  ;;  %v149_v4 = vpop.f32.mrf.mxu2  ;;  %v257_v5 = vsel %vm254_vm4, %v256_v61, %v252_v0  ;;  %vm266_vm8 = vmor %vm264_vm5, %vm265_vm6  ;;  %vm1090_vm11 = vcmp.eq.f32.partialorder %v388_v22, 8.507059e+37  ;;  %v391_v44 = vor.u32 1.1754944e-38, %v390_v23 }
  0xad   :  { %v1051_v7 = vadd.f32 %v1012_v24, %v149_v4  ;;  %500 = vrot.lane.b32.xlu0 %v257_v5, %s885_s0  ;;  %v261_v8 = vsub.f32 1.0, %v260_v1 }
  0xae   :  { %809 = vrcp.f32 %v1048_v3  ;;  %v128_v9 = vpop.f32.mrf.mxu0  ;;  %v285_v29 = vand.u32 2147483648, %v1048_v3  ;;  %v283_v35 = vand.u32 2147483647, %v1048_v3  ;;  %vm279_vm12 = vweird.f32 %v1048_v3 }
  0xaf   :  { %v804_v10 = vpop.eup %803  ;;  %v753_v11 = vmul.f32 -1.442695, %v1051_v7  ;;  %v1057_v12 = vadd.f32 %v1012_v24, %v128_v9  ;;  %v262_v13 = vmul.f32 %v800_v60, %v261_v8  ;;  %811 = vrcp.f32 %v1046_v63 }
  0xb0   :  { %v806_v14 = vpop.eup %805  ;;  %v1060_v15 = vadd.f32 1.0, %v804_v10  ;;  %v286_v51 = vor.u32 1.1754944e-38, %v285_v29  ;;  %vm1109_vm15 = vcmp.eq.f32.partialorder %v283_v35, 8.507059e+37 }
  0xb1   :  { %813 = vpow2.f32 %v753_v11  ;;  %v746_v18 = vmul.f32 -1.442695, %v1057_v12  ;;  %v263_v19 = vadd.f32 %v800_v60, %v262_v13  ;;  %v380_v20 = vmul.f32 %v806_v14, %v1041_v57  ;;  %v808_v21 = vpop.eup %807 }
  0xb2   :  { %815 = vrcp.f32 %v1060_v15  ;;  %v1073_v25 = vadd.f32 1.0, %v808_v21  ;;  %vm385_vm10 = vweird.f32 %v806_v14  ;;  %v403_v45 = vand.u32 2147483647, %v1060_v15 }
  0xb3   :  { %v267_v27 = vsel %vm266_vm8, %v800_v60, %v263_v19  ;;  %v381_v28 = vsub.f32 1.0, %v380_v20  ;;  %817 = vpow2.f32 %v746_v18  ;;  %vm386_vm13 = vmor %vm384_vm9, %vm385_vm10  ;;  %vm399_vm14 = vweird.f32 %v1060_v15 }
  0xb4   :  { %v1076_v31 = vpop.eup %809  ;;  %v152_v32 = vpop.f32.mrf.mxu2  ;;  %v272_v33 = vsel %vm1062_vm7, %v271_v17, %v267_v27  ;;  %819 = vrcp.f32 %v1073_v25  ;;  %v405_v55 = vand.u32 2147483648, %v1060_v15  ;;  %vm1116_vm1 = vcmp.eq.f32.partialorder %v403_v45, 8.507059e+37 }
  0xb5   :  { %v1083_v37 = vadd.f32 %v1012_v24, %v152_v32  ;;  %502 = vrot.lane.b32.xlu0 %v272_v33, %s885_s0  ;;  %v382_v38 = vmul.f32 %v806_v14, %v381_v28  ;;  %v275_v39 = vmul.f32 %v1076_v31, %v1048_v3  ;;  %v1088_v41 = vpop.eup %811  ;;  %vm280_vm2 = vweird.f32 %v1076_v31 }
  0xb6   :  { %v131_v42 = vpop.f32.mrf.mxu0  ;;  %v298_v6 = vand.u32 2147483647, %v1073_v25  ;;  %v406_v9 = vor.u32 1.1754944e-38, %v405_v55  ;;  %vm1137_vm4 = vmor %vm279_vm12, %vm280_vm2  ;;  %vm294_vm5 = vweird.f32 %v1073_v25  ;;  %v300_v19 = vand.u32 2147483648, %v1073_v25 }
  0xb7   :  { %v814_v46 = vpop.eup %813  ;;  %v754_v48 = vmul.f32 -1.442695, %v1083_v37  ;;  %v1098_v49 = vadd.f32 %v1012_v24, %v131_v42  ;;  %v383_v50 = vadd.f32 %v806_v14, %v382_v38  ;;  %v276_v56 = vsub.f32 1.0, %v275_v39 }
  0xb8   :  { %v816_v52 = vpop.eup %815  ;;  %v1100_v53 = vadd.f32 1.0, %v814_v46  ;;  %vm1151_vm7 = vcmp.eq.f32.partialorder %v298_v6, 8.507059e+37 }
  0xb9   :  { %821 = vpow2.f32 %v754_v48  ;;  %v747_v58 = vmul.f32 -1.442695, %v1098_v49  ;;  %v387_v59 = vsel %vm386_vm13, %v806_v14, %v383_v50  ;;  %v395_v60 = vmul.f32 %v816_v52, %v1060_v15  ;;  %v818_v62 = vpop.eup %817 }
  0xba   :  { %823 = vrcp.f32 %v1100_v53  ;;  %v392_v57 = vsel %vm1090_vm11, %v391_v44, %v387_v59  ;;  %v277_v1 = vmul.f32 %v1076_v31, %v276_v56  ;;  %v1121_v2 = vpop.eup %819  ;;  %v1123_v4 = vadd.f32 1.0, %v818_v62 }
  0xbb   :  { %518 = vrot.lane.b32.xlu1 %v392_v57, %s885_s0  ;;  %v396_v5 = vsub.f32 1.0, %v395_v60  ;;  %825 = vpow2.f32 %v747_v58  ;;  %v290_v11 = vmul.f32 %v1121_v2, %v1073_v25  ;;  %vm400_vm3 = vweird.f32 %v816_v52 }
  0xbc   :  { %v155_v8 = vpop.f32.mrf.mxu2  ;;  %v278_v10 = vadd.f32 %v1076_v31, %v277_v1  ;;  %827 = vrcp.f32 %v1123_v4  ;;  %vm295_vm6 = vweird.f32 %v1121_v2  ;;  %vm401_vm8 = vmor %vm399_vm14, %vm400_vm3  ;;  %v418_v33 = vand.u32 2147483647, %v1100_v53 }
  0xbd   :  { %v1133_v13 = vadd.f32 %v1012_v24, %v155_v8  ;;  %v397_v14 = vmul.f32 %v816_v52, %v396_v5  ;;  %v291_v18 = vsub.f32 1.0, %v290_v11  ;;  %v420_v35 = vand.u32 2147483648, %v1100_v53  ;;  %vm1182_vm10 = vmor %vm294_vm5, %vm295_vm6 }
  0xbe   :  { %v134_v16 = vpop.f32.mrf.mxu0  ;;  %v282_v3 = vsel %vm1137_vm4, %v1076_v31, %v278_v10  ;;  %v301_v48 = vor.u32 1.1754944e-38, %v300_v19  ;;  %vm414_vm9 = vweird.f32 %v1100_v53  ;;  %vm1186_vm12 = vcmp.eq.f32.partialorder %v418_v33, 8.507059e+37  ;;  %v583_v33 = vld [vmem:[%s1500_s3 + $0x10] sm:$0xff] }
  0xbf   :  { %v822_v20 = vpop.eup %821  ;;  %v755_v21 = vmul.f32 -1.442695, %v1133_v13  ;;  %v1146_v22 = vadd.f32 %v1012_v24, %v134_v16  ;;  %v398_v23 = vadd.f32 %v816_v52, %v397_v14  ;;  %v292_v32 = vmul.f32 %v1121_v2, %v291_v18 }
  0xc0   :  { %v824_v28 = vpop.eup %823  ;;  %v1155_v29 = vadd.f32 1.0, %v822_v20  ;;  %v287_v15 = vsel %vm1109_vm15, %v286_v51, %v282_v3  ;;  %v421_v61 = vor.u32 1.1754944e-38, %v420_v35  ;;  %vm309_vm13 = vweird.f32 %v1123_v4 }
  0xc1   :  { %829 = vpow2.f32 %v755_v21  ;;  %v748_v31 = vmul.f32 -1.442695, %v1146_v22  ;;  %v402_v38 = vsel %vm401_vm8, %v816_v52, %v398_v23  ;;  %v410_v39 = vmul.f32 %v824_v28, %v1100_v53  ;;  %v826_v42 = vpop.eup %825 }
  0xc2   :  { %831 = vrcp.f32 %v1155_v29  ;;  %v407_v43 = vsel %vm1116_vm1, %v406_v9, %v402_v38  ;;  %v293_v44 = vadd.f32 %v1121_v2, %v292_v32  ;;  %v1171_v45 = vpop.eup %827  ;;  %v1173_v46 = vadd.f32 1.0, %v826_v42  ;;  %v584_v32 = vld [vmem:[%s1500_s3 + $0x18] sm:$0xff] }
  0xc3   :  { %520 = vrot.lane.b32.xlu2 %v407_v43, %s885_s0  ;;  %504 = vrot.lane.b32.xlu1 %v287_v15, %s885_s0  ;;  %v411_v50 = vsub.f32 1.0, %v410_v39  ;;  %833 = vpow2.f32 %v748_v31  ;;  %vm415_vm11 = vweird.f32 %v824_v28  ;;  %v305_v56 = vmul.f32 %v1171_v45, %v1123_v4 }
  0xc4   :  { %v158_v52 = vpop.f32.mrf.mxu2  ;;  %835 = vrcp.f32 %v1173_v46  ;;  %v297_v25 = vsel %vm1182_vm10, %v1121_v2, %v293_v44  ;;  %v313_v57 = vand.u32 2147483647, %v1123_v4  ;;  %v315_v8 = vand.u32 2147483648, %v1123_v4  ;;  %vm416_vm14 = vmor %vm414_vm9, %vm415_vm11  ;;  %649 = vmatpush.msra.mxu1 %v584_v32  ;;  %782 = vmatpush.msra.mxu3 %v584_v32 }
  0xc5   :  { %v1194_v58 = vadd.f32 %v1012_v24, %v158_v52  ;;  %v412_v59 = vmul.f32 %v824_v28, %v411_v50  ;;  %v306_v62 = vsub.f32 1.0, %v305_v56  ;;  %v302_v2 = vsel %vm1151_vm7, %v301_v48, %v297_v25 }
  0xc6   :  { %v137_v60 = vpop.f32.mrf.mxu0  ;;  %vm310_vm15 = vweird.f32 %v1171_v45  ;;  %vm1221_vm1 = vcmp.eq.f32.partialorder %v313_v57, 8.507059e+37  ;;  %v316_v27 = vor.u32 1.1754944e-38, %v315_v8  ;;  %v433_v31 = vand.u32 2147483647, %v1155_v29  ;;  %650 = vmatpush.msra.mxu1 %v583_v33  ;;  %783 = vmatpush.msra.mxu3 %v583_v33 }
  0xc7   :  { %v830_v0 = vpop.eup %829  ;;  %v756_v1 = vmul.f32 -1.442695, %v1194_v58  ;;  %v1203_v5 = vadd.f32 %v1012_v24, %v137_v60  ;;  %v413_v6 = vadd.f32 %v824_v28, %v412_v59  ;;  %v307_v11 = vmul.f32 %v1171_v45, %v306_v62  ;;  %vm1235_vm2 = vmor %vm309_vm13, %vm310_vm15 }
  0xc8   :  { %v832_v9 = vpop.eup %831  ;;  %v1206_v10 = vadd.f32 1.0, %v830_v0  ;;  %v435_v38 = vand.u32 2147483648, %v1155_v29  ;;  %vm429_vm4 = vweird.f32 %v1155_v29  ;;  %vm434_vm5 = vcmp.eq.f32.partialorder %v433_v31, 8.507059e+37 }
  0xc9   :  { %837 = vpow2.f32 %v756_v1  ;;  %v749_v14 = vmul.f32 -1.442695, %v1203_v5  ;;  %v417_v16 = vsel %vm416_vm14, %v824_v28, %v413_v6  ;;  %v425_v17 = vmul.f32 %v832_v9, %v1155_v29  ;;  %v834_v18 = vpop.eup %833 }
  0xca   :  { %839 = vrcp.f32 %v1206_v10  ;;  %v422_v19 = vsel %vm1186_vm12, %v421_v61, %v417_v16  ;;  %v308_v20 = vadd.f32 %v1171_v45, %v307_v11  ;;  %v1225_v21 = vpop.eup %835  ;;  %v1227_v23 = vadd.f32 1.0, %v834_v18 }
  0xcb   :  { %506 = vrot.lane.b32.xlu2 %v302_v2, %s885_s0  ;;  %522 = vrot.lane.b32.xlu0 %v422_v19, %s885_s0  ;;  %v426_v28 = vsub.f32 1.0, %v425_v17  ;;  %vm430_vm3 = vweird.f32 %v832_v9  ;;  %841 = vpow2.f32 %v749_v14  ;;  %v320_v15 = vmul.f32 %v1225_v21, %v1173_v46 }
  0xcc   :  { %v161_v35 = vpop.f32.mrf.mxu2  ;;  %v312_v4 = vsel %vm1235_vm2, %v1171_v45, %v308_v20  ;;  %843 = vrcp.f32 %v1227_v23  ;;  %v436_v50 = vor.u32 1.1754944e-38, %v435_v38  ;;  %vm431_vm6 = vmor %vm429_vm4, %vm430_vm3  ;;  %vm324_vm7 = vweird.f32 %v1173_v46 }
  0xcd   :  { %v1252_v39 = vadd.f32 %v1012_v24, %v161_v35  ;;  %v317_v42 = vsel %vm1221_vm1, %v316_v27, %v312_v4  ;;  %v427_v43 = vmul.f32 %v832_v9, %v426_v28  ;;  %v321_v51 = vsub.f32 1.0, %v320_v15 }
  0xce   :  { %508 = vrot.lane.b32.xlu1 %v317_v42, %s885_s0  ;;  %v330_v29 = vand.u32 2147483648, %v1173_v46  ;;  %vm325_vm8 = vweird.f32 %v1225_v21  ;;  %v328_v61 = vand.u32 2147483647, %v1173_v46  ;;  %vm444_vm9 = vweird.f32 %v1206_v10 }
  0xcf   :  { %v838_v44 = vpop.eup %837  ;;  %v757_v45 = vmul.f32 -1.442695, %v1252_v39  ;;  %v428_v48 = vadd.f32 %v832_v9, %v427_v43  ;;  %v322_v60 = vmul.f32 %v1225_v21, %v321_v51  ;;  %v365_v1 = vmul.f32 %v1088_v41, %v1046_v63  ;;  %vm326_vm10 = vmor %vm324_vm7, %vm325_vm8 }
  0xd0   :  { %v840_v24 = vpop.eup %839  ;;  %v1261_v52 = vadd.f32 1.0, %v838_v44  ;;  %v331_v8 = vor.u32 1.1754944e-38, %v330_v29  ;;  %v448_v14 = vand.u32 2147483647, %v1206_v10  ;;  %vm329_vm12 = vcmp.eq.f32.partialorder %v328_v61, 8.507059e+37 }
  0xd1   :  { %845 = vpow2.f32 %v757_v45  ;;  %v432_v55 = vsel %vm431_vm6, %v832_v9, %v428_v48  ;;  %v440_v56 = vmul.f32 %v840_v24, %v1206_v10  ;;  %v842_v25 = vpop.eup %841  ;;  %v323_v6 = vadd.f32 %v1225_v21, %v322_v60 }
  0xd2   :  { %847 = vrcp.f32 %v1261_v52  ;;  %v437_v59 = vsel %vm434_vm5, %v436_v50, %v432_v55  ;;  %v844_v62 = vpop.eup %843  ;;  %v1271_v57 = vadd.f32 1.0, %v842_v25  ;;  %v450_v9 = vand.u32 2147483648, %v1206_v10 }
  0xd3   :  { %524 = vrot.lane.b32.xlu2 %v437_v59, %s885_s0  ;;  %v441_v0 = vsub.f32 1.0, %v440_v56  ;;  %v335_v2 = vmul.f32 %v844_v62, %v1227_v23  ;;  %vm445_vm11 = vweird.f32 %v840_v24  ;;  %v327_v16 = vsel %vm326_vm10, %v1225_v21, %v323_v6 }
  0xd4   :  { %849 = vrcp.f32 %v1271_v57  ;;  %vm339_vm13 = vweird.f32 %v1227_v23  ;;  %v332_v19 = vsel %vm329_vm12, %v331_v8, %v327_v16  ;;  %vm340_vm14 = vweird.f32 %v844_v62  ;;  %vm446_vm15 = vmor %vm444_vm9, %vm445_vm11 }
  0xd5   :  { %v442_v11 = vmul.f32 %v840_v24, %v441_v0  ;;  %v336_v17 = vsub.f32 1.0, %v335_v2  ;;  %v345_v53 = vand.u32 2147483648, %v1227_v23  ;;  %510 = vrot.lane.b32.xlu0 %v332_v19, %s885_s0  ;;  %v451_v46 = vor.u32 1.1754944e-38, %v450_v9  ;;  %vm341_vm2 = vmor %vm339_vm13, %vm340_vm14 }
  0xd6   :  { %v343_v28 = vand.u32 2147483647, %v1227_v23  ;;  %vm449_vm1 = vcmp.eq.f32.partialorder %v448_v14, 8.507059e+37  ;;  %v366_v31 = vsub.f32 1.0, %v365_v1  ;;  %v463_v43 = vand.u32 2147483647, %v1261_v52 }
  0xd7   :  { %v846_v18 = vpop.eup %845  ;;  %v443_v20 = vadd.f32 %v840_v24, %v442_v11  ;;  %v337_v21 = vmul.f32 %v844_v62, %v336_v17  ;;  %v346_v10 = vor.u32 1.1754944e-38, %v345_v53  ;;  %v465_v44 = vand.u32 2147483648, %v1261_v52 }
  0xd8   :  { %v848_v3 = vpop.eup %847  ;;  %v1289_v27 = vadd.f32 1.0, %v846_v18  ;;  %vm344_vm3 = vcmp.eq.f32.partialorder %v343_v28, 8.507059e+37  ;;  %vm459_vm5 = vweird.f32 %v1261_v52  ;;  %v367_v23 = vmul.f32 %v1088_v41, %v366_v31 }
  0xd9   :  { %v447_v32 = vsel %vm446_vm15, %v840_v24, %v443_v20  ;;  %v455_v33 = vmul.f32 %v848_v3, %v1261_v52  ;;  %v338_v4 = vadd.f32 %v844_v62, %v337_v21  ;;  %vm460_vm4 = vweird.f32 %v848_v3 }
  0xda   :  { %851 = vrcp.f32 %v1289_v27  ;;  %v452_v35 = vsel %vm449_vm1, %v451_v46, %v447_v32  ;;  %v850_v38 = vpop.eup %849  ;;  %vm464_vm6 = vcmp.eq.f32.partialorder %v463_v43, 8.507059e+37  ;;  %vm354_vm7 = vweird.f32 %v1271_v57  ;;  %vm461_vm8 = vmor %vm459_vm5, %vm460_vm4 }
  0xdb   :  { %526 = vrot.lane.b32.xlu1 %v452_v35, %s885_s0  ;;  %v456_v42 = vsub.f32 1.0, %v455_v33  ;;  %v342_v15 = vsel %vm341_vm2, %v844_v62, %v338_v4  ;;  %v350_v45 = vmul.f32 %v850_v38, %v1271_v57  ;;  %v360_v29 = vand.u32 2147483648, %v1271_v57 }
  0xdc   :  { %v347_v48 = vsel %vm344_vm3, %v346_v10, %v342_v15  ;;  %v466_v56 = vor.u32 1.1754944e-38, %v465_v44  ;;  %vm355_vm9 = vweird.f32 %v850_v38  ;;  %v358_v59 = vand.u32 2147483647, %v1271_v57 }
  0xdd   :  { %v457_v50 = vmul.f32 %v848_v3, %v456_v42  ;;  %512 = vrot.lane.b32.xlu2 %v347_v48, %s885_s0  ;;  %v351_v24 = vsub.f32 1.0, %v350_v45  ;;  %vm474_vm10 = vweird.f32 %v1289_v27  ;;  %v478_v52 = vand.u32 2147483647, %v1289_v27  ;;  %vm356_vm12 = vmor %vm354_vm7, %vm355_vm9 }
  0xde   :  { %v480_v1 = vand.u32 2147483648, %v1289_v27  ;;  %vm370_vm11 = vweird.f32 %v1088_v41  ;;  %v361_v6 = vor.u32 1.1754944e-38, %v360_v29  ;;  %v368_v9 = vadd.f32 %v1088_v41, %v367_v23 }
  0xdf   :  { %v458_v51 = vadd.f32 %v848_v3, %v457_v50  ;;  %v352_v25 = vmul.f32 %v850_v38, %v351_v24  ;;  %vm359_vm14 = vcmp.eq.f32.partialorder %v358_v59, 8.507059e+37  ;;  %vm369_vm15 = vweird.f32 %v1046_v63 }
  0xe0   :  { %v852_v55 = vpop.eup %851  ;;  %v375_v11 = vand.u32 2147483648, %v1046_v63  ;;  %vm371_vm1 = vmor %vm369_vm15, %vm370_vm11  ;;  %v373_v17 = vand.u32 2147483647, %v1046_v63  ;;  %v481_v57 = vor.u32 1.1754944e-38, %v480_v1  ;;  %vm479_vm3 = vcmp.eq.f32.partialorder %v478_v52, 8.507059e+37  ;;  %v582_v63 = vld [vmem:[%s1500_s3 + $0x8] sm:$0xff] }
  0xe1   :  { %v462_v60 = vsel %vm461_vm8, %v848_v3, %v458_v51  ;;  %v470_v61 = vmul.f32 %v852_v55, %v1289_v27  ;;  %v353_v0 = vadd.f32 %v850_v38, %v352_v25  ;;  %vm475_vm13 = vweird.f32 %v852_v55  ;;  %651 = vmatpush.msra.mxu1 %v582_v63  ;;  %784 = vmatpush.msra.mxu3 %v582_v63  ;;  %v581_v27 = vld [vmem:[%s1500_s3] sm:$0xff] }
  0xe2   :  { %v467_v62 = vsel %vm464_vm6, %v466_v56, %v462_v60  ;;  %vm476_vm2 = vmor %vm474_vm10, %vm475_vm13  ;;  %v372_v19 = vsel %vm371_vm1, %v1088_v41, %v368_v9  ;;  %v376_v20 = vor.u32 1.1754944e-38, %v375_v11  ;;  %vm374_vm4 = vcmp.eq.f32.partialorder %v373_v17, 8.507059e+37 }
  0xe3   :  { %528 = vrot.lane.b32.xlu0 %v467_v62, %s885_s0  ;;  %v471_v8 = vsub.f32 1.0, %v470_v61  ;;  %v357_v2 = vsel %vm356_vm12, %v850_v38, %v353_v0  ;;  %652 = vmatpush.msra.mxu1 %v581_v27  ;;  %853 = vtanh.f32 %v1035_v47  ;;  %vm564_vm5 = vcmask 261120  }
  0xe4   :  { %v362_v14 = vsel %vm359_vm14, %v361_v6, %v357_v2  ;;  %v377_v46 = vsel %vm374_vm4, %v376_v20, %v372_v19  ;;  %785 = vmatpush.msra.mxu3 %v581_v27  ;;  %855 = vtanh.f32 %v1015_v26 }
  0xe5   :  { %v472_v16 = vmul.f32 %v852_v55, %v471_v8  ;;  %514 = vrot.lane.b32.xlu1 %v362_v14, %s885_s0  ;;  %857 = vtanh.f32 %v1039_v54  ;;  %v788_v8 = vld [vmem:[%s1501_s4] ss:$0 sm:$0xff] }
  0xe6   :  { %859 = vtanh.f32 %v1019_v30 }
  0xe7   :  { %v473_v18 = vadd.f32 %v852_v55, %v472_v16  ;;  %861 = vtanh.f32 %v1026_v36 }
  0xe8   :  { %863 = vtanh.f32 %v1083_v37 }
  0xe9   :  { %v477_v53 = vsel %vm476_vm2, %v852_v55, %v473_v18  ;;  %v854_v41 = vpop.eup %853  ;;  %865 = vtanh.f32 %v1031_v40 }
  0xea   :  { %v482_v3 = vsel %vm479_vm3, %v481_v57, %v477_v53  ;;  %v856_v32 = vpop.eup %855  ;;  %867 = vtanh.f32 %v1146_v22 }
  0xeb   :  { %530 = vrot.lane.b32.xlu2 %v482_v3, %s885_s0  ;;  %516 = vrot.lane.b32.xlu0 %v377_v46, %s885_s0  ;;  %v858_v26 = vpop.eup %857  ;;  %869 = vtanh.f32 %v1051_v7 }
  0xec   :  { %v860_v4 = vpop.eup %859  ;;  %871 = vtanh.f32 %v1057_v12 }
  0xed   :  { %v862_v38 = vpop.eup %861  ;;  %873 = vtanh.f32 %v1252_v39 }
  0xee   :  { %v864_v36 = vpop.eup %863  ;;  %875 = vtanh.f32 %v1098_v49 }
  0xef   :  { %v866_v15 = vpop.eup %865  ;;  %877 = vtanh.f32 %v1133_v13 }
  0xf0   :  { %v868_v40 = vpop.eup %867  ;;  %879 = vtanh.f32 %v1194_v58 }
  0xf1   :  { %v870_v7 = vpop.eup %869  ;;  %881 = vtanh.f32 %v1203_v5 }
  0xf2   :  { %v872_v23 = vpop.eup %871  ;;  %883 = vtanh.f32 %v1023_v34 }
  0xf3   :  { %v874_v39 = vpop.eup %873 }
  0xf4   :  { %v876_v56 = vpop.eup %875 }
  0xf5   :  { %v878_v60 = vpop.eup %877 }
  0xf6   :  { %v880_v61 = vpop.eup %879 }
  0xf7   :  { %v882_v0 = vpop.eup %881 }
  0xf8   :  { %v884_v5 = vpop.eup %883 }
 0x11d   :  { %v521_v21 = vpop.permute.xlu2 %520 }
 0x11e   :  { %v558_v28 = vmul.f32 %v854_v41, %v521_v21 }
 0x11f   :  { %v501_v33 = vpop.permute.xlu0 %500 }
 0x120   :  { %575 = vst.msk [vmem:[%s1502_s5 + $0x50] sm:$0xff] %vm564_vm5, %v558_v28  ;;  %v548_v35 = vmul.f32 %v856_v32, %v501_v33 }
 0x122   :  { %565 = vst.msk [vmem:[%s1502_s5] sm:$0xff] %vm564_vm5, %v548_v35  ;;  %758 = vmatmul.msk.f32.vlgmr.msra.gmra.mxu1 %vm564_vm5, %v548_v35 }
 0x125   :  { %v507_v47 = vpop.permute.xlu2 %506 }
 0x126   :  { %v551_v54 = vmul.f32 %v858_v26, %v507_v47 }
 0x127   :  { %v503_v31 = vpop.permute.xlu0 %502 }
 0x128   :  { %568 = vst.msk [vmem:[%s1502_s5 + $0x18] sm:$0xff] %vm564_vm5, %v551_v54  ;;  %v549_v30 = vmul.f32 %v860_v4, %v503_v31 }
 0x12a   :  { %566 = vst.msk [vmem:[%s1502_s5 + $0x8] sm:$0xff] %vm564_vm5, %v549_v30  ;;  %759 = vmatmul.msk.f32.gmra.mxu1 %vm564_vm5, %v549_v30 }
 0x12d   :  { %v519_v10 = vpop.permute.xlu1 %518  ;;  %v525_v42 = vpop.permute.xlu2 %524 }
 0x12e   :  { %v557_v43 = vmul.f32 %v862_v38, %v519_v10  ;;  %v560_v37 = vmul.f32 %v864_v36, %v525_v42 }
 0x130   :  { %574 = vst.msk [vmem:[%s1502_s5 + $0x48] sm:$0xff] %vm564_vm5, %v557_v43  ;;  %767 = vmatmul.msk.f32.vlgmr.msra.gmra.mxu3 %vm564_vm5, %v557_v43 }
 0x131   :  { %577 = vst.msk [vmem:[%s1502_s5 + $0x60] sm:$0xff] %vm564_vm5, %v560_v37 }
 0x135   :  { %v505_v44 = vpop.permute.xlu1 %504 }
 0x136   :  { %v550_v45 = vmul.f32 %v866_v15, %v505_v44 }
 0x137   :  { %v513_v48 = vpop.permute.xlu2 %512 }
 0x138   :  { %567 = vst.msk [vmem:[%s1502_s5 + $0x10] sm:$0xff] %vm564_vm5, %v550_v45  ;;  %760 = vmatmul.msk.f32.gmra.mxu1 %vm564_vm5, %v550_v45  ;;  %768 = vmatmul.msk.f32.gmra.mxu3 %vm564_vm5, %v558_v28  ;;  %v554_v50 = vmul.f32 %v868_v40, %v513_v48 }
 0x13a   :  { %571 = vst.msk [vmem:[%s1502_s5 + $0x30] sm:$0xff] %vm564_vm5, %v554_v50 }
 0x13d   :  { %v523_v22 = vpop.permute.xlu0 %522 }
 0x13e   :  { %v559_v24 = vmul.f32 %v870_v7, %v523_v22 }
 0x140   :  { %576 = vst.msk [vmem:[%s1502_s5 + $0x58] sm:$0xff] %vm564_vm5, %v559_v24  ;;  %v509_v51 = vpop.permute.xlu1 %508  ;;  %761 = vmatmul.msk.f32.gmra.mxu1 %vm564_vm5, %v551_v54  ;;  %769 = vmatmul.msk.f32.gmra.mxu3 %vm564_vm5, %v559_v24 }
 0x141   :  { %v552_v12 = vmul.f32 %v872_v23, %v509_v51 }
 0x143   :  { %569 = vst.msk [vmem:[%s1502_s5 + $0x20] sm:$0xff] %vm564_vm5, %v552_v12 }
 0x145   :  { %v531_v29 = vpop.permute.xlu2 %530 }
 0x146   :  { %v563_v55 = vmul.f32 %v874_v39, %v531_v29 }
 0x147   :  { %v511_v25 = vpop.permute.xlu0 %510 }
 0x148   :  { %580 = vst.msk [vmem:[%s1502_s5 + $0x78] sm:$0xff] %vm564_vm5, %v563_v55  ;;  %762 = vmatmul.msk.f32.gmra.mxu1 %vm564_vm5, %v552_v12  ;;  %770 = vmatmul.msk.f32.gmra.mxu3 %vm564_vm5, %v560_v37  ;;  %v553_v59 = vmul.f32 %v876_v56, %v511_v25 }
 0x14a   :  { %570 = vst.msk [vmem:[%s1502_s5 + $0x28] sm:$0xff] %vm564_vm5, %v553_v59 }
 0x14d   :  { %v527_v49 = vpop.permute.xlu1 %526 }
 0x14e   :  { %v561_v13 = vmul.f32 %v878_v60, %v527_v49 }
 0x150   :  { %578 = vst.msk [vmem:[%s1502_s5 + $0x68] sm:$0xff] %vm564_vm5, %v561_v13  ;;  %763 = vmatmul.msk.f32.gmra.mxu1 %vm564_vm5, %v553_v59  ;;  %771 = vmatmul.msk.f32.gmra.mxu3 %vm564_vm5, %v561_v13 }
 0x155   :  { %v529_v52 = vpop.permute.xlu0 %528 }
 0x156   :  { %v562_v62 = vmul.f32 %v880_v61, %v529_v52 }
 0x157   :  { %v515_v58 = vpop.permute.xlu1 %514 }
 0x158   :  { %579 = vst.msk [vmem:[%s1502_s5 + $0x70] sm:$0xff] %vm564_vm5, %v562_v62  ;;  %764 = vmatmul.msk.f32.gmra.mxu1 %vm564_vm5, %v554_v50  ;;  %772 = vmatmul.msk.f32.gmra.mxu3 %vm564_vm5, %v562_v62  ;;  %v555_v1 = vmul.f32 %v882_v0, %v515_v58 }
 0x15a   :  { %572 = vst.msk [vmem:[%s1502_s5 + $0x38] sm:$0xff] %vm564_vm5, %v555_v1 }
 0x15d   :  { %v517_v6 = vpop.permute.xlu0 %516 }
 0x15e   :  { %v556_v34 = vmul.f32 %v884_v5, %v517_v6 }
 0x160   :  { %573 = vst.msk [vmem:[%s1502_s5 + $0x40] sm:$0xff] %vm564_vm5, %v556_v34  ;;  %765 = vmatmul.msk.f32.gmra.mxu1 %vm564_vm5, %v555_v1  ;;  %773 = vmatmul.msk.f32.gmra.mxu3 %vm564_vm5, %v563_v55 }
 0x168   :  { %766 = vmatmul.msk.f32.gmra.mxu1 %vm564_vm5, %v556_v34 }
 0x19f   :  { %v654_v9 = vpop.f32.mrf.mxu1 }
 0x1a0   :  { %v655_v2 = vadd.f32 %v788_v8, %v654_v9 }
 0x1a2   :  { %702 = vst.msk [vmem:[%s1503_s6] sm:$0xff] %vm50_vm0, %v655_v2 }
 0x1a7   :  { %v657_v11 = vpop.f32.mrf.mxu1 }
 0x1a8   :  { %v658_v14 = vadd.f32 %v788_v8, %v657_v11 }
 0x1aa   :  { %703 = vst.msk [vmem:[%s1503_s6 + $0x8] sm:$0xff] %vm50_vm0, %v658_v14 }
 0x1b3   :  { %v681_v16 = vpop.f32.mrf.mxu3 }
 0x1b4   :  { %v682_v17 = vadd.f32 %v788_v8, %v681_v16 }
 0x1b5   :  { %v660_v57 = vpop.f32.mrf.mxu1 }
 0x1b6   :  { %711 = vst.msk [vmem:[%s1503_s6 + $0x48] sm:$0xff] %vm50_vm0, %v682_v17  ;;  %v661_v18 = vadd.f32 %v788_v8, %v660_v57 }
 0x1b8   :  { %704 = vst.msk [vmem:[%s1503_s6 + $0x10] sm:$0xff] %vm50_vm0, %v661_v18 }
 0x1bb   :  { %v684_v19 = vpop.f32.mrf.mxu3 }
 0x1bc   :  { %v685_v20 = vadd.f32 %v788_v8, %v684_v19 }
 0x1bd   :  { %v663_v53 = vpop.f32.mrf.mxu1 }
 0x1be   :  { %712 = vst.msk [vmem:[%s1503_s6 + $0x50] sm:$0xff] %vm50_vm0, %v685_v20  ;;  %v664_v3 = vadd.f32 %v788_v8, %v663_v53 }
 0x1c0   :  { %705 = vst.msk [vmem:[%s1503_s6 + $0x18] sm:$0xff] %vm50_vm0, %v664_v3 }
 0x1c3   :  { %v687_v46 = vpop.f32.mrf.mxu3 }
 0x1c4   :  { %v688_v63 = vadd.f32 %v788_v8, %v687_v46 }
 0x1c5   :  { %v666_v27 = vpop.f32.mrf.mxu1 }
 0x1c6   :  { %713 = vst.msk [vmem:[%s1503_s6 + $0x58] sm:$0xff] %vm50_vm0, %v688_v63  ;;  %v667_v41 = vadd.f32 %v788_v8, %v666_v27 }
 0x1c8   :  { %706 = vst.msk [vmem:[%s1503_s6 + $0x20] sm:$0xff] %vm50_vm0, %v667_v41 }
 0x1cb   :  { %v690_v21 = vpop.f32.mrf.mxu3 }
 0x1cc   :  { %v691_v28 = vadd.f32 %v788_v8, %v690_v21 }
 0x1cd   :  { %v669_v32 = vpop.f32.mrf.mxu1 }
 0x1ce   :  { %714 = vst.msk [vmem:[%s1503_s6 + $0x60] sm:$0xff] %vm50_vm0, %v691_v28  ;;  %v670_v33 = vadd.f32 %v788_v8, %v669_v32 }
 0x1d0   :  { %707 = vst.msk [vmem:[%s1503_s6 + $0x28] sm:$0xff] %vm50_vm0, %v670_v33 }
 0x1d3   :  { %v693_v35 = vpop.f32.mrf.mxu3 }
 0x1d4   :  { %v694_v26 = vadd.f32 %v788_v8, %v693_v35 }
 0x1d5   :  { %v672_v47 = vpop.f32.mrf.mxu1 }
 0x1d6   :  { %715 = vst.msk [vmem:[%s1503_s6 + $0x68] sm:$0xff] %vm50_vm0, %v694_v26  ;;  %v673_v54 = vadd.f32 %v788_v8, %v672_v47 }
 0x1d8   :  { %708 = vst.msk [vmem:[%s1503_s6 + $0x30] sm:$0xff] %vm50_vm0, %v673_v54 }
 0x1db   :  { %v696_v4 = vpop.f32.mrf.mxu3 }
 0x1dc   :  { %v697_v31 = vadd.f32 %v788_v8, %v696_v4 }
 0x1dd   :  { %v675_v30 = vpop.f32.mrf.mxu1 }
 0x1de   :  { %716 = vst.msk [vmem:[%s1503_s6 + $0x70] sm:$0xff] %vm50_vm0, %v697_v31  ;;  %v676_v38 = vadd.f32 %v788_v8, %v675_v30 }
 0x1e0   :  { %709 = vst.msk [vmem:[%s1503_s6 + $0x38] sm:$0xff] %vm50_vm0, %v676_v38 }
 0x1e3   :  { %v699_v36 = vpop.f32.mrf.mxu3 }
 0x1e4   :  { %v700_v10 = vadd.f32 %v788_v8, %v699_v36 }
 0x1e5   :  { %v678_v42 = vpop.f32.mrf.mxu1 }
 0x1e6   :  { %717 = vst.msk [vmem:[%s1503_s6 + $0x78] sm:$0xff] %vm50_vm0, %v700_v10  ;;  %v679_v43 = vadd.f32 %v788_v8, %v678_v42 }
 0x1e8   :  { %710 = vst.msk [vmem:[%s1503_s6 + $0x40] sm:$0xff] %vm50_vm0, %v679_v43 }

// kernel: gwnet_forward.11
= control target key start
LH: loop header
LB: loop body
LE: loop exit
PB: predicated region body
PF: predicated region fallthrough
CT: control target
= control target key end

     0   :  { %s1679_s2 = inlined_call_operand.vmem [shape: f32[512,512], index: 2, kind: input, shape index: {}]   ;;  %s1680_s0 = inlined_call_operand.vmem [shape: f32[12,512], index: 0, kind: input, shape index: {}]   ;;  %s1681_s3 = inlined_call_operand.vmem [shape: f32[1,512], index: 3, kind: input, shape index: {}]   ;;  %s1682_s4 = inlined_call_operand.vmem [shape: f32[1,512], index: 4, kind: input, shape index: {}]   ;;  %s1683_s1 = inlined_call_operand.vmem [shape: f32[12,512], index: 1, kind: input, shape index: {}]   ;;  %s1684_s5 = inlined_call_operand.vmem [shape: f32[1,512], index: 5, kind: input, shape index: {}]   ;;  %s1685_s6 = inlined_call_operand.vmem [shape: f32[12,512], index: 6, kind: output, shape index: {}]  }
   0x1   :  { %v219_v0 = vld [vmem:[%s1679_s2 + $0x5e0] sm:$0xff]  ;;  %v220_v62 = vld [vmem:[%s1679_s2 + $0x5e8] sm:$0xff] }
   0x2   :  { %v91_v1 = vld [vmem:[%s1679_s2 + $0x1e0] sm:$0xff]  ;;  %343 = vmatpush.msra.mxu2 %v219_v0  ;;  %v92_v0 = vld [vmem:[%s1679_s2 + $0x1e8] sm:$0xff] }
   0x3   :  { %v215_v2 = vld [vmem:[%s1679_s2 + $0x5c0] sm:$0xff]  ;;  %297 = vmatpush.msra.mxu0 %v91_v1  ;;  %v284_v1 = vld [vmem:[%s1679_s2 + $0x7e8] sm:$0xff] }
   0x4   :  { %v283_v3 = vld [vmem:[%s1679_s2 + $0x7e0] sm:$0xff]  ;;  %344 = vmatpush.msra.mxu2 %v215_v2  ;;  %v216_v2 = vld [vmem:[%s1679_s2 + $0x5c8] sm:$0xff] }
   0x5   :  { %v87_v4 = vld [vmem:[%s1679_s2 + $0x1c0] sm:$0xff]  ;;  %366 = vmatpush.msra.mxu3 %v283_v3 }
   0x6   :  { %v155_v5 = vld [vmem:[%s1679_s2 + $0x3e0] sm:$0xff]  ;;  %298 = vmatpush.msra.mxu0 %v87_v4  ;;  %v88_v4 = vld [vmem:[%s1679_s2 + $0x1c8] sm:$0xff] }
   0x7   :  { %320 = vmatpush.msra.mxu1 %v155_v5  ;;  %v211_v6 = vld [vmem:[%s1679_s2 + $0x5a0] sm:$0xff]  ;;  %v156_v5 = vld [vmem:[%s1679_s2 + $0x3e8] sm:$0xff] }
   0x8   :  { %v279_v7 = vld [vmem:[%s1679_s2 + $0x7c0] sm:$0xff]  ;;  %345 = vmatpush.msra.mxu2 %v211_v6  ;;  %v212_v6 = vld [vmem:[%s1679_s2 + $0x5a8] sm:$0xff] }
   0x9   :  { %v83_v8 = vld [vmem:[%s1679_s2 + $0x1a0] sm:$0xff]  ;;  %367 = vmatpush.msra.mxu3 %v279_v7  ;;  %v280_v7 = vld [vmem:[%s1679_s2 + $0x7c8] sm:$0xff] }
   0xa   :  { %v151_v9 = vld [vmem:[%s1679_s2 + $0x3c0] sm:$0xff]  ;;  %299 = vmatpush.msra.mxu0 %v83_v8  ;;  %v84_v8 = vld [vmem:[%s1679_s2 + $0x1a8] sm:$0xff] }
   0xb   :  { %v275_v10 = vld [vmem:[%s1679_s2 + $0x7a0] sm:$0xff]  ;;  %321 = vmatpush.msra.mxu1 %v151_v9  ;;  %v152_v9 = vld [vmem:[%s1679_s2 + $0x3c8] sm:$0xff] }
   0xc   :  { %v207_v11 = vld [vmem:[%s1679_s2 + $0x580] sm:$0xff]  ;;  %368 = vmatpush.msra.mxu3 %v275_v10  ;;  %v208_v10 = vld [vmem:[%s1679_s2 + $0x588] sm:$0xff] }
   0xd   :  { %v79_v12 = vld [vmem:[%s1679_s2 + $0x180] sm:$0xff]  ;;  %346 = vmatpush.msra.mxu2 %v207_v11  ;;  %v276_v11 = vld [vmem:[%s1679_s2 + $0x7a8] sm:$0xff] }
   0xe   :  { %v147_v13 = vld [vmem:[%s1679_s2 + $0x3a0] sm:$0xff]  ;;  %300 = vmatpush.msra.mxu0 %v79_v12  ;;  %v80_v12 = vld [vmem:[%s1679_s2 + $0x188] sm:$0xff] }
   0xf   :  { %v271_v14 = vld [vmem:[%s1679_s2 + $0x780] sm:$0xff]  ;;  %322 = vmatpush.msra.mxu1 %v147_v13  ;;  %v148_v13 = vld [vmem:[%s1679_s2 + $0x3a8] sm:$0xff] }
  0x10   :  { %v143_v15 = vld [vmem:[%s1679_s2 + $0x380] sm:$0xff]  ;;  %369 = vmatpush.msra.mxu3 %v271_v14  ;;  %v204_v14 = vld [vmem:[%s1679_s2 + $0x568] sm:$0xff] }
  0x11   :  { %v203_v16 = vld [vmem:[%s1679_s2 + $0x560] sm:$0xff]  ;;  %323 = vmatpush.msra.mxu1 %v143_v15  ;;  %v272_v15 = vld [vmem:[%s1679_s2 + $0x788] sm:$0xff] }
  0x12   :  { %v75_v17 = vld [vmem:[%s1679_s2 + $0x160] sm:$0xff]  ;;  %347 = vmatpush.msra.mxu2 %v203_v16  ;;  %v76_v16 = vld [vmem:[%s1679_s2 + $0x168] sm:$0xff] }
  0x13   :  { %v267_v18 = vld [vmem:[%s1679_s2 + $0x760] sm:$0xff]  ;;  %301 = vmatpush.msra.mxu0 %v75_v17  ;;  %v144_v17 = vld [vmem:[%s1679_s2 + $0x388] sm:$0xff] }
  0x14   :  { %v139_v19 = vld [vmem:[%s1679_s2 + $0x360] sm:$0xff]  ;;  %370 = vmatpush.msra.mxu3 %v267_v18  ;;  %v200_v18 = vld [vmem:[%s1679_s2 + $0x548] sm:$0xff] }
  0x15   :  { %v199_v20 = vld [vmem:[%s1679_s2 + $0x540] sm:$0xff]  ;;  %324 = vmatpush.msra.mxu1 %v139_v19  ;;  %v268_v19 = vld [vmem:[%s1679_s2 + $0x768] sm:$0xff] }
  0x16   :  { %v71_v21 = vld [vmem:[%s1679_s2 + $0x140] sm:$0xff]  ;;  %348 = vmatpush.msra.mxu2 %v199_v20  ;;  %v72_v20 = vld [vmem:[%s1679_s2 + $0x148] sm:$0xff] }
  0x17   :  { %v263_v22 = vld [vmem:[%s1679_s2 + $0x740] sm:$0xff]  ;;  %302 = vmatpush.msra.mxu0 %v71_v21  ;;  %v140_v21 = vld [vmem:[%s1679_s2 + $0x368] sm:$0xff] }
  0x18   :  { %v135_v23 = vld [vmem:[%s1679_s2 + $0x340] sm:$0xff]  ;;  %371 = vmatpush.msra.mxu3 %v263_v22  ;;  %v196_v22 = vld [vmem:[%s1679_s2 + $0x528] sm:$0xff] }
  0x19   :  { %v195_v24 = vld [vmem:[%s1679_s2 + $0x520] sm:$0xff]  ;;  %325 = vmatpush.msra.mxu1 %v135_v23  ;;  %v264_v23 = vld [vmem:[%s1679_s2 + $0x748] sm:$0xff] }
  0x1a   :  { %v67_v25 = vld [vmem:[%s1679_s2 + $0x120] sm:$0xff]  ;;  %349 = vmatpush.msra.mxu2 %v195_v24  ;;  %v68_v24 = vld [vmem:[%s1679_s2 + $0x128] sm:$0xff] }
  0x1b   :  { %v259_v26 = vld [vmem:[%s1679_s2 + $0x720] sm:$0xff]  ;;  %303 = vmatpush.msra.mxu0 %v67_v25  ;;  %v136_v25 = vld [vmem:[%s1679_s2 + $0x348] sm:$0xff] }
  0x1c   :  { %v131_v27 = vld [vmem:[%s1679_s2 + $0x320] sm:$0xff]  ;;  %372 = vmatpush.msra.mxu3 %v259_v26  ;;  %v192_v26 = vld [vmem:[%s1679_s2 + $0x508] sm:$0xff] }
  0x1d   :  { %v191_v28 = vld [vmem:[%s1679_s2 + $0x500] sm:$0xff]  ;;  %326 = vmatpush.msra.mxu1 %v131_v27  ;;  %v260_v27 = vld [vmem:[%s1679_s2 + $0x728] sm:$0xff] }
  0x1e   :  { %v63_v29 = vld [vmem:[%s1679_s2 + $0x100] sm:$0xff]  ;;  %350 = vmatpush.msra.mxu2 %v191_v28  ;;  %v64_v28 = vld [vmem:[%s1679_s2 + $0x108] sm:$0xff] }
  0x1f   :  { %v255_v30 = vld [vmem:[%s1679_s2 + $0x700] sm:$0xff]  ;;  %304 = vmatpush.msra.mxu0 %v63_v29  ;;  %v132_v29 = vld [vmem:[%s1679_s2 + $0x328] sm:$0xff] }
  0x20   :  { %v127_v31 = vld [vmem:[%s1679_s2 + $0x300] sm:$0xff]  ;;  %373 = vmatpush.msra.mxu3 %v255_v30  ;;  %v188_v30 = vld [vmem:[%s1679_s2 + $0x4e8] sm:$0xff] }
  0x21   :  { %v187_v32 = vld [vmem:[%s1679_s2 + $0x4e0] sm:$0xff]  ;;  %327 = vmatpush.msra.mxu1 %v127_v31  ;;  %v256_v31 = vld [vmem:[%s1679_s2 + $0x708] sm:$0xff] }
  0x22   :  { %v59_v33 = vld [vmem:[%s1679_s2 + $0xe0] sm:$0xff]  ;;  %351 = vmatpush.msra.mxu2 %v187_v32  ;;  %v60_v32 = vld [vmem:[%s1679_s2 + $0xe8] sm:$0xff] }
  0x23   :  { %v251_v34 = vld [vmem:[%s1679_s2 + $0x6e0] sm:$0xff]  ;;  %305 = vmatpush.msra.mxu0 %v59_v33  ;;  %v128_v33 = vld [vmem:[%s1679_s2 + $0x308] sm:$0xff] }
  0x24   :  { %v123_v35 = vld [vmem:[%s1679_s2 + $0x2e0] sm:$0xff]  ;;  %374 = vmatpush.msra.mxu3 %v251_v34  ;;  %v184_v34 = vld [vmem:[%s1679_s2 + $0x4c8] sm:$0xff] }
  0x25   :  { %v183_v36 = vld [vmem:[%s1679_s2 + $0x4c0] sm:$0xff]  ;;  %328 = vmatpush.msra.mxu1 %v123_v35  ;;  %v252_v35 = vld [vmem:[%s1679_s2 + $0x6e8] sm:$0xff] }
  0x26   :  { %v55_v37 = vld [vmem:[%s1679_s2 + $0xc0] sm:$0xff]  ;;  %352 = vmatpush.msra.mxu2 %v183_v36  ;;  %v56_v36 = vld [vmem:[%s1679_s2 + $0xc8] sm:$0xff] }
  0x27   :  { %v247_v38 = vld [vmem:[%s1679_s2 + $0x6c0] sm:$0xff]  ;;  %306 = vmatpush.msra.mxu0 %v55_v37  ;;  %v124_v37 = vld [vmem:[%s1679_s2 + $0x2e8] sm:$0xff] }
  0x28   :  { %v119_v39 = vld [vmem:[%s1679_s2 + $0x2c0] sm:$0xff]  ;;  %375 = vmatpush.msra.mxu3 %v247_v38  ;;  %v180_v38 = vld [vmem:[%s1679_s2 + $0x4a8] sm:$0xff] }
  0x29   :  { %v179_v40 = vld [vmem:[%s1679_s2 + $0x4a0] sm:$0xff]  ;;  %329 = vmatpush.msra.mxu1 %v119_v39  ;;  %v248_v39 = vld [vmem:[%s1679_s2 + $0x6c8] sm:$0xff] }
  0x2a   :  { %v51_v41 = vld [vmem:[%s1679_s2 + $0xa0] sm:$0xff]  ;;  %353 = vmatpush.msra.mxu2 %v179_v40  ;;  %v52_v40 = vld [vmem:[%s1679_s2 + $0xa8] sm:$0xff] }
  0x2b   :  { %v243_v42 = vld [vmem:[%s1679_s2 + $0x6a0] sm:$0xff]  ;;  %307 = vmatpush.msra.mxu0 %v51_v41  ;;  %v120_v41 = vld [vmem:[%s1679_s2 + $0x2c8] sm:$0xff] }
  0x2c   :  { %v115_v43 = vld [vmem:[%s1679_s2 + $0x2a0] sm:$0xff]  ;;  %376 = vmatpush.msra.mxu3 %v243_v42  ;;  %v176_v42 = vld [vmem:[%s1679_s2 + $0x488] sm:$0xff] }
  0x2d   :  { %v175_v44 = vld [vmem:[%s1679_s2 + $0x480] sm:$0xff]  ;;  %330 = vmatpush.msra.mxu1 %v115_v43  ;;  %v244_v43 = vld [vmem:[%s1679_s2 + $0x6a8] sm:$0xff] }
  0x2e   :  { %v47_v45 = vld [vmem:[%s1679_s2 + $0x80] sm:$0xff]  ;;  %354 = vmatpush.msra.mxu2 %v175_v44  ;;  %v48_v44 = vld [vmem:[%s1679_s2 + $0x88] sm:$0xff] }
  0x2f   :  { %v239_v46 = vld [vmem:[%s1679_s2 + $0x680] sm:$0xff]  ;;  %308 = vmatpush.msra.mxu0 %v47_v45  ;;  %v116_v45 = vld [vmem:[%s1679_s2 + $0x2a8] sm:$0xff] }
  0x30   :  { %v111_v47 = vld [vmem:[%s1679_s2 + $0x280] sm:$0xff]  ;;  %377 = vmatpush.msra.mxu3 %v239_v46  ;;  %v172_v46 = vld [vmem:[%s1679_s2 + $0x468] sm:$0xff] }
  0x31   :  { %v171_v48 = vld [vmem:[%s1679_s2 + $0x460] sm:$0xff]  ;;  %331 = vmatpush.msra.mxu1 %v111_v47  ;;  %v240_v47 = vld [vmem:[%s1679_s2 + $0x688] sm:$0xff] }
  0x32   :  { %v43_v49 = vld [vmem:[%s1679_s2 + $0x60] sm:$0xff]  ;;  %355 = vmatpush.msra.mxu2 %v171_v48  ;;  %v44_v48 = vld [vmem:[%s1679_s2 + $0x68] sm:$0xff] }
  0x33   :  { %v235_v50 = vld [vmem:[%s1679_s2 + $0x660] sm:$0xff]  ;;  %309 = vmatpush.msra.mxu0 %v43_v49  ;;  %v112_v49 = vld [vmem:[%s1679_s2 + $0x288] sm:$0xff] }
  0x34   :  { %v107_v51 = vld [vmem:[%s1679_s2 + $0x260] sm:$0xff]  ;;  %378 = vmatpush.msra.mxu3 %v235_v50  ;;  %v168_v50 = vld [vmem:[%s1679_s2 + $0x448] sm:$0xff] }
  0x35   :  { %v167_v52 = vld [vmem:[%s1679_s2 + $0x440] sm:$0xff]  ;;  %332 = vmatpush.msra.mxu1 %v107_v51  ;;  %v236_v51 = vld [vmem:[%s1679_s2 + $0x668] sm:$0xff] }
  0x36   :  { %v39_v53 = vld [vmem:[%s1679_s2 + $0x40] sm:$0xff]  ;;  %356 = vmatpush.msra.mxu2 %v167_v52  ;;  %v40_v52 = vld [vmem:[%s1679_s2 + $0x48] sm:$0xff] }
  0x37   :  { %v231_v54 = vld [vmem:[%s1679_s2 + $0x640] sm:$0xff]  ;;  %310 = vmatpush.msra.mxu0 %v39_v53  ;;  %v108_v53 = vld [vmem:[%s1679_s2 + $0x268] sm:$0xff] }
  0x38   :  { %v103_v55 = vld [vmem:[%s1679_s2 + $0x240] sm:$0xff]  ;;  %379 = vmatpush.msra.mxu3 %v231_v54  ;;  %v164_v54 = vld [vmem:[%s1679_s2 + $0x428] sm:$0xff] }
  0x39   :  { %v163_v56 = vld [vmem:[%s1679_s2 + $0x420] sm:$0xff]  ;;  %333 = vmatpush.msra.mxu1 %v103_v55  ;;  %v232_v55 = vld [vmem:[%s1679_s2 + $0x648] sm:$0xff] }
  0x3a   :  { %v35_v57 = vld [vmem:[%s1679_s2 + $0x20] sm:$0xff]  ;;  %357 = vmatpush.msra.mxu2 %v163_v56  ;;  %v36_v56 = vld [vmem:[%s1679_s2 + $0x28] sm:$0xff] }
  0x3b   :  { %v227_v58 = vld [vmem:[%s1679_s2 + $0x620] sm:$0xff]  ;;  %311 = vmatpush.msra.mxu0 %v35_v57  ;;  %v104_v57 = vld [vmem:[%s1679_s2 + $0x248] sm:$0xff] }
  0x3c   :  { %v99_v59 = vld [vmem:[%s1679_s2 + $0x220] sm:$0xff]  ;;  %380 = vmatpush.msra.mxu3 %v227_v58  ;;  %v160_v58 = vld [vmem:[%s1679_s2 + $0x408] sm:$0xff] }
  0x3d   :  { %v159_v60 = vld [vmem:[%s1679_s2 + $0x400] sm:$0xff]  ;;  %334 = vmatpush.msra.mxu1 %v99_v59  ;;  %v228_v59 = vld [vmem:[%s1679_s2 + $0x628] sm:$0xff] }
  0x3e   :  { %v31_v61 = vld [vmem:[%s1679_s2] sm:$0xff]  ;;  %358 = vmatpush.msra.mxu2 %v159_v60  ;;  %v1139_v60 = vld [vmem:[%s1680_s0 + $0x10] sm:$0xff] }
  0x3f   :  { %v223_v63 = vld [vmem:[%s1679_s2 + $0x600] sm:$0xff]  ;;  %312 = vmatpush.msra.mxu0 %v31_v61  ;;  %v32_v61 = vld [vmem:[%s1679_s2 + $0x8] sm:$0xff]  ;;  %359 = vmatmul.f32.vlgmr.msra.gmra.mxu2 %v1139_v60 }
  0x40   :  { %v95_v3 = vld [vmem:[%s1679_s2 + $0x200] sm:$0xff]  ;;  %435 = vmatpush.msrb.mxu2 %v220_v62  ;;  %381 = vmatpush.msra.mxu3 %v223_v63  ;;  %v221_v62 = vld [vmem:[%s1679_s2 + $0x5f0] sm:$0xff]  ;;  %v100_v63 = vld [vmem:[%s1679_s2 + $0x228] sm:$0xff] }
  0x41   :  { %389 = vmatpush.msrb.mxu0 %v92_v0  ;;  %335 = vmatpush.msra.mxu1 %v95_v3  ;;  %v224_v0 = vld [vmem:[%s1679_s2 + $0x608] sm:$0xff]  ;;  %v93_v3 = vld [vmem:[%s1679_s2 + $0x1f0] sm:$0xff] }
  0x42   :  { %458 = vmatpush.msrb.mxu3 %v284_v1  ;;  %436 = vmatpush.msrb.mxu2 %v216_v2  ;;  %v1156_v1 = vld [vmem:[%s1680_s0] sm:$0xff]  ;;  %v1162_v2 = vld [vmem:[%s1680_s0 + $0x18] sm:$0xff] }
  0x43   :  { %390 = vmatpush.msrb.mxu0 %v88_v4  ;;  %412 = vmatpush.msrb.mxu1 %v156_v5  ;;  %v217_v4 = vld [vmem:[%s1679_s2 + $0x5d0] sm:$0xff] }
  0x44   :  { %437 = vmatpush.msrb.mxu2 %v212_v6  ;;  %459 = vmatpush.msrb.mxu3 %v280_v7  ;;  %v285_v5 = vld [vmem:[%s1679_s2 + $0x7f0] sm:$0xff]  ;;  %v96_v6 = vld [vmem:[%s1679_s2 + $0x208] sm:$0xff] }
  0x45   :  { %391 = vmatpush.msrb.mxu0 %v84_v8  ;;  %413 = vmatpush.msrb.mxu1 %v152_v9  ;;  %v89_v7 = vld [vmem:[%s1679_s2 + $0x1d0] sm:$0xff]  ;;  %v1184_v8 = vld [vmem:[%s1680_s0 + $0x8] sm:$0xff] }
  0x46   :  { %438 = vmatpush.msrb.mxu2 %v208_v10  ;;  %460 = vmatpush.msrb.mxu3 %v276_v11  ;;  %v213_v9 = vld [vmem:[%s1679_s2 + $0x5b0] sm:$0xff] }
  0x47   :  { %392 = vmatpush.msrb.mxu0 %v80_v12  ;;  %414 = vmatpush.msrb.mxu1 %v148_v13  ;;  %v157_v10 = vld [vmem:[%s1679_s2 + $0x3f0] sm:$0xff] }
  0x48   :  { %439 = vmatpush.msrb.mxu2 %v204_v14  ;;  %461 = vmatpush.msrb.mxu3 %v272_v15  ;;  %v281_v11 = vld [vmem:[%s1679_s2 + $0x7d0] sm:$0xff] }
  0x49   :  { %393 = vmatpush.msrb.mxu0 %v76_v16  ;;  %415 = vmatpush.msrb.mxu1 %v144_v17  ;;  %v85_v12 = vld [vmem:[%s1679_s2 + $0x1b0] sm:$0xff] }
  0x4a   :  { %440 = vmatpush.msrb.mxu2 %v200_v18  ;;  %462 = vmatpush.msrb.mxu3 %v268_v19  ;;  %v209_v13 = vld [vmem:[%s1679_s2 + $0x590] sm:$0xff] }
  0x4b   :  { %394 = vmatpush.msrb.mxu0 %v72_v20  ;;  %416 = vmatpush.msrb.mxu1 %v140_v21  ;;  %v153_v14 = vld [vmem:[%s1679_s2 + $0x3d0] sm:$0xff] }
  0x4c   :  { %441 = vmatpush.msrb.mxu2 %v196_v22  ;;  %463 = vmatpush.msrb.mxu3 %v264_v23  ;;  %v277_v15 = vld [vmem:[%s1679_s2 + $0x7b0] sm:$0xff] }
  0x4d   :  { %395 = vmatpush.msrb.mxu0 %v68_v24  ;;  %417 = vmatpush.msrb.mxu1 %v136_v25  ;;  %v81_v16 = vld [vmem:[%s1679_s2 + $0x190] sm:$0xff] }
  0x4e   :  { %442 = vmatpush.msrb.mxu2 %v192_v26  ;;  %464 = vmatpush.msrb.mxu3 %v260_v27  ;;  %v205_v17 = vld [vmem:[%s1679_s2 + $0x570] sm:$0xff] }
  0x4f   :  { %396 = vmatpush.msrb.mxu0 %v64_v28  ;;  %418 = vmatpush.msrb.mxu1 %v132_v29  ;;  %v149_v18 = vld [vmem:[%s1679_s2 + $0x3b0] sm:$0xff] }
  0x50   :  { %443 = vmatpush.msrb.mxu2 %v188_v30  ;;  %465 = vmatpush.msrb.mxu3 %v256_v31  ;;  %v273_v19 = vld [vmem:[%s1679_s2 + $0x790] sm:$0xff] }
  0x51   :  { %397 = vmatpush.msrb.mxu0 %v60_v32  ;;  %419 = vmatpush.msrb.mxu1 %v128_v33  ;;  %v77_v20 = vld [vmem:[%s1679_s2 + $0x170] sm:$0xff] }
  0x52   :  { %444 = vmatpush.msrb.mxu2 %v184_v34  ;;  %466 = vmatpush.msrb.mxu3 %v252_v35  ;;  %v201_v21 = vld [vmem:[%s1679_s2 + $0x550] sm:$0xff] }
  0x53   :  { %398 = vmatpush.msrb.mxu0 %v56_v36  ;;  %420 = vmatpush.msrb.mxu1 %v124_v37  ;;  %v145_v22 = vld [vmem:[%s1679_s2 + $0x390] sm:$0xff] }
  0x54   :  { %445 = vmatpush.msrb.mxu2 %v180_v38  ;;  %467 = vmatpush.msrb.mxu3 %v248_v39  ;;  %v269_v23 = vld [vmem:[%s1679_s2 + $0x770] sm:$0xff] }
  0x55   :  { %399 = vmatpush.msrb.mxu0 %v52_v40  ;;  %421 = vmatpush.msrb.mxu1 %v120_v41  ;;  %v73_v24 = vld [vmem:[%s1679_s2 + $0x150] sm:$0xff] }
  0x56   :  { %446 = vmatpush.msrb.mxu2 %v176_v42  ;;  %468 = vmatpush.msrb.mxu3 %v244_v43  ;;  %v197_v25 = vld [vmem:[%s1679_s2 + $0x530] sm:$0xff] }
  0x57   :  { %400 = vmatpush.msrb.mxu0 %v48_v44  ;;  %422 = vmatpush.msrb.mxu1 %v116_v45  ;;  %v141_v26 = vld [vmem:[%s1679_s2 + $0x370] sm:$0xff] }
  0x58   :  { %447 = vmatpush.msrb.mxu2 %v172_v46  ;;  %469 = vmatpush.msrb.mxu3 %v240_v47  ;;  %v265_v27 = vld [vmem:[%s1679_s2 + $0x750] sm:$0xff] }
  0x59   :  { %401 = vmatpush.msrb.mxu0 %v44_v48  ;;  %423 = vmatpush.msrb.mxu1 %v112_v49  ;;  %v69_v28 = vld [vmem:[%s1679_s2 + $0x130] sm:$0xff]  ;;  %v1312_v49 = vld [vmem:[%s1680_s0 + $0x20] sm:$0xf] }
  0x5a   :  { %448 = vmatpush.msrb.mxu2 %v168_v50  ;;  %470 = vmatpush.msrb.mxu3 %v236_v51  ;;  %v193_v29 = vld [vmem:[%s1679_s2 + $0x510] sm:$0xff]  ;;  %v1318_v50 = vld [vmem:[%s1680_s0 + $0x38] sm:$0xf] }
  0x5b   :  { %402 = vmatpush.msrb.mxu0 %v40_v52  ;;  %424 = vmatpush.msrb.mxu1 %v108_v53  ;;  %v137_v30 = vld [vmem:[%s1679_s2 + $0x350] sm:$0xff] }
  0x5c   :  { %449 = vmatpush.msrb.mxu2 %v164_v54  ;;  %471 = vmatpush.msrb.mxu3 %v232_v55  ;;  %v261_v31 = vld [vmem:[%s1679_s2 + $0x730] sm:$0xff]  ;;  %v1336_v55 = vld [vmem:[%s1680_s0 + $0x28] sm:$0xf] }
  0x5d   :  { %403 = vmatpush.msrb.mxu0 %v36_v56  ;;  %425 = vmatpush.msrb.mxu1 %v104_v57  ;;  %v65_v32 = vld [vmem:[%s1679_s2 + $0x110] sm:$0xff] }
  0x5e   :  { %450 = vmatpush.msrb.mxu2 %v160_v58  ;;  %472 = vmatpush.msrb.mxu3 %v228_v59  ;;  %v189_v33 = vld [vmem:[%s1679_s2 + $0x4f0] sm:$0xff] }
  0x5f   :  { %404 = vmatpush.msrb.mxu0 %v32_v61  ;;  %426 = vmatpush.msrb.mxu1 %v100_v63  ;;  %v133_v34 = vld [vmem:[%s1679_s2 + $0x330] sm:$0xff] }
  0x60   :  { %527 = vmatpush.msra.mxu2 %v221_v62  ;;  %473 = vmatpush.msrb.mxu3 %v224_v0  ;;  %v257_v35 = vld [vmem:[%s1679_s2 + $0x710] sm:$0xff] }
  0x61   :  { %313 = vmatmul.f32.vlgmr.msra.gmra.mxu0 %v1156_v1  ;;  %382 = vmatmul.f32.vlgmr.msra.gmra.mxu3 %v1162_v2  ;;  %v61_v36 = vld [vmem:[%s1679_s2 + $0xf0] sm:$0xff] }
  0x62   :  { %481 = vmatpush.msra.mxu0 %v93_v3  ;;  %528 = vmatpush.msra.mxu2 %v217_v4  ;;  %v185_v37 = vld [vmem:[%s1679_s2 + $0x4d0] sm:$0xff] }
  0x63   :  { %550 = vmatpush.msra.mxu3 %v285_v5  ;;  %427 = vmatpush.msrb.mxu1 %v96_v6  ;;  %v129_v38 = vld [vmem:[%s1679_s2 + $0x310] sm:$0xff] }
  0x64   :  { %482 = vmatpush.msra.mxu0 %v89_v7  ;;  %336 = vmatmul.f32.vlgmr.msra.gmra.mxu1 %v1184_v8  ;;  %v253_v39 = vld [vmem:[%s1679_s2 + $0x6f0] sm:$0xff]  ;;  %v222_v7 = vld [vmem:[%s1679_s2 + $0x5f8] sm:$0xff] }
  0x65   :  { %529 = vmatpush.msra.mxu2 %v213_v9  ;;  %504 = vmatpush.msra.mxu1 %v157_v10  ;;  %v57_v40 = vld [vmem:[%s1679_s2 + $0xd0] sm:$0xff] }
  0x66   :  { %551 = vmatpush.msra.mxu3 %v281_v11  ;;  %483 = vmatpush.msra.mxu0 %v85_v12  ;;  %v181_v41 = vld [vmem:[%s1679_s2 + $0x4b0] sm:$0xff]  ;;  %v94_v12 = vld [vmem:[%s1679_s2 + $0x1f8] sm:$0xff] }
  0x67   :  { %530 = vmatpush.msra.mxu2 %v209_v13  ;;  %505 = vmatpush.msra.mxu1 %v153_v14  ;;  %v125_v42 = vld [vmem:[%s1679_s2 + $0x2f0] sm:$0xff]  ;;  %v218_v13 = vld [vmem:[%s1679_s2 + $0x5d8] sm:$0xff] }
  0x68   :  { %552 = vmatpush.msra.mxu3 %v277_v15  ;;  %484 = vmatpush.msra.mxu0 %v81_v16  ;;  %v249_v43 = vld [vmem:[%s1679_s2 + $0x6d0] sm:$0xff]  ;;  %v286_v14 = vld [vmem:[%s1679_s2 + $0x7f8] sm:$0xff] }
  0x69   :  { %531 = vmatpush.msra.mxu2 %v205_v17  ;;  %506 = vmatpush.msra.mxu1 %v149_v18  ;;  %v1295_v44 = vld [vmem:[%s1680_s0 + $0x30] sm:$0xf]  ;;  %v90_v15 = vld [vmem:[%s1679_s2 + $0x1d8] sm:$0xff] }
  0x6a   :  { %553 = vmatpush.msra.mxu3 %v273_v19  ;;  %485 = vmatpush.msra.mxu0 %v77_v20  ;;  %v53_v45 = vld [vmem:[%s1679_s2 + $0xb0] sm:$0xff]  ;;  %v214_v17 = vld [vmem:[%s1679_s2 + $0x5b8] sm:$0xff] }
  0x6b   :  { %532 = vmatpush.msra.mxu2 %v201_v21  ;;  %507 = vmatpush.msra.mxu1 %v145_v22  ;;  %v121_v46 = vld [vmem:[%s1679_s2 + $0x2d0] sm:$0xff]  ;;  %v158_v18 = vld [vmem:[%s1679_s2 + $0x3f8] sm:$0xff] }
  0x6c   :  { %554 = vmatpush.msra.mxu3 %v269_v23  ;;  %486 = vmatpush.msra.mxu0 %v73_v24  ;;  %v177_v47 = vld [vmem:[%s1679_s2 + $0x490] sm:$0xff]  ;;  %v282_v19 = vld [vmem:[%s1679_s2 + $0x7d8] sm:$0xff] }
  0x6d   :  { %533 = vmatpush.msra.mxu2 %v197_v25  ;;  %508 = vmatpush.msra.mxu1 %v141_v26  ;;  %v245_v48 = vld [vmem:[%s1679_s2 + $0x6b0] sm:$0xff]  ;;  %v86_v20 = vld [vmem:[%s1679_s2 + $0x1b8] sm:$0xff] }
  0x6e   :  { %555 = vmatpush.msra.mxu3 %v265_v27  ;;  %487 = vmatpush.msra.mxu0 %v69_v28  ;;  %v49_v51 = vld [vmem:[%s1679_s2 + $0x90] sm:$0xff]  ;;  %v210_v21 = vld [vmem:[%s1679_s2 + $0x598] sm:$0xff] }
  0x6f   :  { %534 = vmatpush.msra.mxu2 %v193_v29  ;;  %509 = vmatpush.msra.mxu1 %v137_v30  ;;  %v117_v52 = vld [vmem:[%s1679_s2 + $0x2b0] sm:$0xff]  ;;  %v154_v22 = vld [vmem:[%s1679_s2 + $0x3d8] sm:$0xff] }
  0x70   :  { %556 = vmatpush.msra.mxu3 %v261_v31  ;;  %488 = vmatpush.msra.mxu0 %v65_v32  ;;  %v173_v53 = vld [vmem:[%s1679_s2 + $0x470] sm:$0xff]  ;;  %v278_v23 = vld [vmem:[%s1679_s2 + $0x7b8] sm:$0xff] }
  0x71   :  { %535 = vmatpush.msra.mxu2 %v189_v33  ;;  %510 = vmatpush.msra.mxu1 %v133_v34  ;;  %v241_v54 = vld [vmem:[%s1679_s2 + $0x690] sm:$0xff]  ;;  %v82_v24 = vld [vmem:[%s1679_s2 + $0x198] sm:$0xff] }
  0x72   :  { %557 = vmatpush.msra.mxu3 %v257_v35  ;;  %489 = vmatpush.msra.mxu0 %v61_v36  ;;  %v45_v56 = vld [vmem:[%s1679_s2 + $0x70] sm:$0xff]  ;;  %v150_v25 = vld [vmem:[%s1679_s2 + $0x3b8] sm:$0xff] }
  0x73   :  { %536 = vmatpush.msra.mxu2 %v185_v37  ;;  %511 = vmatpush.msra.mxu1 %v129_v38  ;;  %v113_v57 = vld [vmem:[%s1679_s2 + $0x290] sm:$0xff]  ;;  %v206_v26 = vld [vmem:[%s1679_s2 + $0x578] sm:$0xff] }
  0x74   :  { %558 = vmatpush.msra.mxu3 %v253_v39  ;;  %490 = vmatpush.msra.mxu0 %v57_v40  ;;  %v169_v58 = vld [vmem:[%s1679_s2 + $0x450] sm:$0xff]  ;;  %v274_v27 = vld [vmem:[%s1679_s2 + $0x798] sm:$0xff] }
  0x75   :  { %537 = vmatpush.msra.mxu2 %v181_v41  ;;  %512 = vmatpush.msra.mxu1 %v125_v42  ;;  %v237_v59 = vld [vmem:[%s1679_s2 + $0x670] sm:$0xff]  ;;  %v78_v28 = vld [vmem:[%s1679_s2 + $0x178] sm:$0xff] }
  0x76   :  { %559 = vmatpush.msra.mxu3 %v249_v43  ;;  %362 = vmatmul.f32.gmra.mxu2 %v1295_v44  ;;  %v41_v61 = vld [vmem:[%s1679_s2 + $0x50] sm:$0xff]  ;;  %v146_v29 = vld [vmem:[%s1679_s2 + $0x398] sm:$0xff] }
  0x77   :  { %491 = vmatpush.msra.mxu0 %v53_v45  ;;  %513 = vmatpush.msra.mxu1 %v121_v46  ;;  %v109_v62 = vld [vmem:[%s1679_s2 + $0x270] sm:$0xff]  ;;  %v202_v30 = vld [vmem:[%s1679_s2 + $0x558] sm:$0xff] }
  0x78   :  { %538 = vmatpush.msra.mxu2 %v177_v47  ;;  %560 = vmatpush.msra.mxu3 %v245_v48  ;;  %v165_v63 = vld [vmem:[%s1679_s2 + $0x430] sm:$0xff]  ;;  %v270_v31 = vld [vmem:[%s1679_s2 + $0x778] sm:$0xff] }
  0x79   :  { %316 = vmatmul.f32.gmra.mxu0 %v1312_v49  ;;  %385 = vmatmul.f32.gmra.mxu3 %v1318_v50  ;;  %v233_v0 = vld [vmem:[%s1679_s2 + $0x650] sm:$0xff]  ;;  %v74_v32 = vld [vmem:[%s1679_s2 + $0x158] sm:$0xff] }
  0x7a   :  { %492 = vmatpush.msra.mxu0 %v49_v51  ;;  %514 = vmatpush.msra.mxu1 %v117_v52  ;;  %v37_v3 = vld [vmem:[%s1679_s2 + $0x30] sm:$0xff]  ;;  %v142_v33 = vld [vmem:[%s1679_s2 + $0x378] sm:$0xff] }
  0x7b   :  { %539 = vmatpush.msra.mxu2 %v173_v53  ;;  %561 = vmatpush.msra.mxu3 %v241_v54  ;;  %v105_v4 = vld [vmem:[%s1679_s2 + $0x250] sm:$0xff]  ;;  %v198_v34 = vld [vmem:[%s1679_s2 + $0x538] sm:$0xff] }
  0x7c   :  { %339 = vmatmul.f32.gmra.mxu1 %v1336_v55  ;;  %493 = vmatpush.msra.mxu0 %v45_v56  ;;  %v161_v5 = vld [vmem:[%s1679_s2 + $0x410] sm:$0xff]  ;;  %v266_v35 = vld [vmem:[%s1679_s2 + $0x758] sm:$0xff] }
  0x7d   :  { %515 = vmatpush.msra.mxu1 %v113_v57  ;;  %540 = vmatpush.msra.mxu2 %v169_v58  ;;  %v229_v6 = vld [vmem:[%s1679_s2 + $0x630] sm:$0xff]  ;;  %v70_v36 = vld [vmem:[%s1679_s2 + $0x138] sm:$0xff] }
  0x7e   :  { %562 = vmatpush.msra.mxu3 %v237_v59  ;;  %494 = vmatpush.msra.mxu0 %v41_v61  ;;  %v33_v9 = vld [vmem:[%s1679_s2 + $0x10] sm:$0xff]  ;;  %v138_v37 = vld [vmem:[%s1679_s2 + $0x358] sm:$0xff] }
  0x7f   :  { %516 = vmatpush.msra.mxu1 %v109_v62  ;;  %541 = vmatpush.msra.mxu2 %v165_v63  ;;  %v101_v10 = vld [vmem:[%s1679_s2 + $0x230] sm:$0xff]  ;;  %v194_v38 = vld [vmem:[%s1679_s2 + $0x518] sm:$0xff] }
  0x80   :  { %563 = vmatpush.msra.mxu3 %v233_v0  ;;  %451 = vmatmul.f32.vlgmr.msrb.gmra.mxu2 %v1139_v60  ;;  %v225_v11 = vld [vmem:[%s1679_s2 + $0x610] sm:$0xff]  ;;  %v262_v39 = vld [vmem:[%s1679_s2 + $0x738] sm:$0xff] }
  0x81   :  { %495 = vmatpush.msra.mxu0 %v37_v3  ;;  %517 = vmatpush.msra.mxu1 %v105_v4  ;;  %v97_v16 = vld [vmem:[%s1679_s2 + $0x210] sm:$0xff]  ;;  %v66_v40 = vld [vmem:[%s1679_s2 + $0x118] sm:$0xff] }
  0x82   :  { %542 = vmatpush.msra.mxu2 %v161_v5  ;;  %564 = vmatpush.msra.mxu3 %v229_v6  ;;  %v134_v41 = vld [vmem:[%s1679_s2 + $0x338] sm:$0xff] }
  0x83   :  { %405 = vmatmul.f32.vlgmr.msrb.gmra.mxu0 %v1156_v1  ;;  %474 = vmatmul.f32.vlgmr.msrb.gmra.mxu3 %v1162_v2  ;;  %v190_v42 = vld [vmem:[%s1679_s2 + $0x4f8] sm:$0xff] }
  0x84   :  { %619 = vmatpush.msrb.mxu2 %v222_v7  ;;  %496 = vmatpush.msra.mxu0 %v33_v9  ;;  %v258_v43 = vld [vmem:[%s1679_s2 + $0x718] sm:$0xff] }
  0x85   :  { %518 = vmatpush.msra.mxu1 %v101_v10  ;;  %565 = vmatpush.msra.mxu3 %v225_v11  ;;  %v62_v45 = vld [vmem:[%s1679_s2 + $0xf8] sm:$0xff] }
  0x86   :  { %573 = vmatpush.msrb.mxu0 %v94_v12  ;;  %620 = vmatpush.msrb.mxu2 %v218_v13  ;;  %v130_v46 = vld [vmem:[%s1679_s2 + $0x318] sm:$0xff] }
  0x87   :  { %642 = vmatpush.msrb.mxu3 %v286_v14  ;;  %428 = vmatmul.f32.vlgmr.msrb.gmra.mxu1 %v1184_v8  ;;  %v186_v47 = vld [vmem:[%s1679_s2 + $0x4d8] sm:$0xff] }
  0x88   :  { %574 = vmatpush.msrb.mxu0 %v90_v15  ;;  %519 = vmatpush.msra.mxu1 %v97_v16  ;;  %v254_v48 = vld [vmem:[%s1679_s2 + $0x6f8] sm:$0xff] }
  0x89   :  { %621 = vmatpush.msrb.mxu2 %v214_v17  ;;  %643 = vmatpush.msrb.mxu3 %v282_v19  ;;  %v58_v51 = vld [vmem:[%s1679_s2 + $0xd8] sm:$0xff] }
  0x8a   :  { %596 = vmatpush.msrb.mxu1 %v158_v18  ;;  %575 = vmatpush.msrb.mxu0 %v86_v20  ;;  %v126_v52 = vld [vmem:[%s1679_s2 + $0x2f8] sm:$0xff] }
  0x8b   :  { %622 = vmatpush.msrb.mxu2 %v210_v21  ;;  %644 = vmatpush.msrb.mxu3 %v278_v23  ;;  %v182_v53 = vld [vmem:[%s1679_s2 + $0x4b8] sm:$0xff]  ;;  %v1621_v23 = vld [vmem:[%s1684_s5] sm:$0xf] }
  0x8c   :  { %597 = vmatpush.msrb.mxu1 %v154_v22  ;;  %454 = vmatmul.f32.gmra.mxu2 %v1295_v44  ;;  %v250_v54 = vld [vmem:[%s1679_s2 + $0x6d8] sm:$0xff] }
  0x8d   :  { %576 = vmatpush.msrb.mxu0 %v82_v24  ;;  %623 = vmatpush.msrb.mxu2 %v206_v26  ;;  %v54_v56 = vld [vmem:[%s1679_s2 + $0xb8] sm:$0xff] }
  0x8e   :  { %598 = vmatpush.msrb.mxu1 %v150_v25  ;;  %645 = vmatpush.msrb.mxu3 %v274_v27  ;;  %v122_v57 = vld [vmem:[%s1679_s2 + $0x2d8] sm:$0xff]  ;;  %v701_v27 = vperm.slane %v1621_v23, 0 }
  0x8f   :  { %408 = vmatmul.f32.gmra.mxu0 %v1312_v49  ;;  %477 = vmatmul.f32.gmra.mxu3 %v1318_v50  ;;  %v178_v58 = vld [vmem:[%s1679_s2 + $0x498] sm:$0xff] }
  0x90   :  { %577 = vmatpush.msrb.mxu0 %v78_v28  ;;  %599 = vmatpush.msrb.mxu1 %v146_v29  ;;  %v246_v59 = vld [vmem:[%s1679_s2 + $0x6b8] sm:$0xff] }
  0x91   :  { %624 = vmatpush.msrb.mxu2 %v202_v30  ;;  %646 = vmatpush.msrb.mxu3 %v270_v31  ;;  %v50_v61 = vld [vmem:[%s1679_s2 + $0x98] sm:$0xff] }
  0x92   :  { %431 = vmatmul.f32.gmra.mxu1 %v1336_v55  ;;  %578 = vmatpush.msrb.mxu0 %v74_v32  ;;  %v118_v62 = vld [vmem:[%s1679_s2 + $0x2b8] sm:$0xff] }
  0x93   :  { %600 = vmatpush.msrb.mxu1 %v142_v33  ;;  %625 = vmatpush.msrb.mxu2 %v198_v34  ;;  %v174_v63 = vld [vmem:[%s1679_s2 + $0x478] sm:$0xff] }
  0x94   :  { %647 = vmatpush.msrb.mxu3 %v266_v35  ;;  %579 = vmatpush.msrb.mxu0 %v70_v36  ;;  %v242_v0 = vld [vmem:[%s1679_s2 + $0x698] sm:$0xff] }
  0x95   :  { %601 = vmatpush.msrb.mxu1 %v138_v37  ;;  %626 = vmatpush.msrb.mxu2 %v194_v38  ;;  %v46_v3 = vld [vmem:[%s1679_s2 + $0x78] sm:$0xff]  ;;  %v669_v37 = vld [vmem:[%s1683_s1 + $0x20] sm:$0xf] }
  0x96   :  { %648 = vmatpush.msrb.mxu3 %v262_v39  ;;  %543 = vmatmul.f32.vlgmr.msra.gmra.mxu2 %v1139_v60  ;;  %v114_v4 = vld [vmem:[%s1679_s2 + $0x298] sm:$0xff] }
  0x97   :  { %580 = vmatpush.msrb.mxu0 %v66_v40  ;;  %602 = vmatpush.msrb.mxu1 %v134_v41  ;;  %v170_v5 = vld [vmem:[%s1679_s2 + $0x458] sm:$0xff] }
  0x98   :  { %627 = vmatpush.msrb.mxu2 %v190_v42  ;;  %649 = vmatpush.msrb.mxu3 %v258_v43  ;;  %v238_v6 = vld [vmem:[%s1679_s2 + $0x678] sm:$0xff] }
  0x99   :  { %497 = vmatmul.f32.vlgmr.msra.gmra.mxu0 %v1156_v1  ;;  %566 = vmatmul.f32.vlgmr.msra.gmra.mxu3 %v1162_v2  ;;  %v42_v7 = vld [vmem:[%s1679_s2 + $0x58] sm:$0xff] }
  0x9a   :  { %581 = vmatpush.msrb.mxu0 %v62_v45  ;;  %603 = vmatpush.msrb.mxu1 %v130_v46  ;;  %v110_v9 = vld [vmem:[%s1679_s2 + $0x278] sm:$0xff] }
  0x9b   :  { %628 = vmatpush.msrb.mxu2 %v186_v47  ;;  %650 = vmatpush.msrb.mxu3 %v254_v48  ;;  %v166_v10 = vld [vmem:[%s1679_s2 + $0x438] sm:$0xff] }
  0x9c   :  { %520 = vmatmul.f32.vlgmr.msra.gmra.mxu1 %v1184_v8  ;;  %582 = vmatpush.msrb.mxu0 %v58_v51  ;;  %v234_v11 = vld [vmem:[%s1679_s2 + $0x658] sm:$0xff] }
  0x9d   :  { %604 = vmatpush.msrb.mxu1 %v126_v52  ;;  %629 = vmatpush.msrb.mxu2 %v182_v53  ;;  %v38_v12 = vld [vmem:[%s1679_s2 + $0x38] sm:$0xff]  ;;  %v666_v53 = vld [vmem:[%s1683_s1 + $0x8] sm:$0xff] }
  0x9e   :  { %651 = vmatpush.msrb.mxu3 %v250_v54  ;;  %583 = vmatpush.msrb.mxu0 %v54_v56  ;;  %v106_v13 = vld [vmem:[%s1679_s2 + $0x258] sm:$0xff] }
  0x9f   :  { %605 = vmatpush.msrb.mxu1 %v122_v57  ;;  %630 = vmatpush.msrb.mxu2 %v178_v58  ;;  %v162_v14 = vld [vmem:[%s1679_s2 + $0x418] sm:$0xff]  ;;  %v702_v58 = vperm.slane %v1621_v23, 1 }
  0xa0   :  { %652 = vmatpush.msrb.mxu3 %v246_v59  ;;  %546 = vmatmul.f32.gmra.mxu2 %v1295_v44  ;;  %v230_v15 = vld [vmem:[%s1679_s2 + $0x638] sm:$0xff] }
  0xa1   :  { %584 = vmatpush.msrb.mxu0 %v50_v61  ;;  %606 = vmatpush.msrb.mxu1 %v118_v62  ;;  %v34_v16 = vld [vmem:[%s1679_s2 + $0x18] sm:$0xff] }
  0xa2   :  { %631 = vmatpush.msrb.mxu2 %v174_v63  ;;  %653 = vmatpush.msrb.mxu3 %v242_v0  ;;  %v102_v17 = vld [vmem:[%s1679_s2 + $0x238] sm:$0xff] }
  0xa3   :  { %500 = vmatmul.f32.gmra.mxu0 %v1312_v49  ;;  %569 = vmatmul.f32.gmra.mxu3 %v1318_v50  ;;  %v226_v18 = vld [vmem:[%s1679_s2 + $0x618] sm:$0xff] }
  0xa4   :  { %585 = vmatpush.msrb.mxu0 %v46_v3  ;;  %607 = vmatpush.msrb.mxu1 %v114_v4  ;;  %v98_v19 = vld [vmem:[%s1679_s2 + $0x218] sm:$0xff] }
  0xa5   :  { %632 = vmatpush.msrb.mxu2 %v170_v5  ;;  %654 = vmatpush.msrb.mxu3 %v238_v6 }
  0xa6   :  { %523 = vmatmul.f32.gmra.mxu1 %v1336_v55  ;;  %586 = vmatpush.msrb.mxu0 %v42_v7  ;;  %v670_v7 = vld [vmem:[%s1683_s1 + $0x28] sm:$0xf] }
  0xa7   :  { %608 = vmatpush.msrb.mxu1 %v110_v9  ;;  %633 = vmatpush.msrb.mxu2 %v166_v10 }
  0xa8   :  { %655 = vmatpush.msrb.mxu3 %v234_v11  ;;  %587 = vmatpush.msrb.mxu0 %v38_v12 }
  0xa9   :  { %609 = vmatpush.msrb.mxu1 %v106_v13  ;;  %634 = vmatpush.msrb.mxu2 %v162_v14 }
  0xaa   :  { %656 = vmatpush.msrb.mxu3 %v230_v15  ;;  %635 = vmatmul.f32.vlgmr.msrb.gmra.mxu2 %v1139_v60  ;;  %v1607_v60 = vld [vmem:[%s1681_s3] sm:$0xf] }
  0xab   :  { %588 = vmatpush.msrb.mxu0 %v34_v16  ;;  %610 = vmatpush.msrb.mxu1 %v102_v17  ;;  %v290_v39 = vperm.slane %v1607_v60, 1  ;;  %v291_v9 = vperm.slane %v1607_v60, 2 }
  0xac   :  { %657 = vmatpush.msrb.mxu3 %v226_v18  ;;  %589 = vmatmul.f32.vlgmr.msrb.gmra.mxu0 %v1156_v1  ;;  %v289_v1 = vperm.slane %v1607_v60, 0 }
  0xad   :  { %658 = vmatmul.f32.vlgmr.msrb.gmra.mxu3 %v1162_v2  ;;  %611 = vmatpush.msrb.mxu1 %v98_v19 }
  0xae   :  { %612 = vmatmul.f32.vlgmr.msrb.gmra.mxu1 %v1184_v8 }
  0xb2   :  { %638 = vmatmul.f32.gmra.mxu2 %v1295_v44  ;;  %v1613_v44 = vld [vmem:[%s1682_s4] sm:$0xf] }
  0xb3   :  { %v683_v25 = vperm.slane %v1613_v44, 0  ;;  %v684_v56 = vperm.slane %v1613_v44, 1 }
  0xb4   :  { %592 = vmatmul.f32.gmra.mxu0 %v1312_v49 }
  0xb5   :  { %661 = vmatmul.f32.gmra.mxu3 %v1318_v50 }
  0xb6   :  { %615 = vmatmul.f32.gmra.mxu1 %v1336_v55  ;;  %v665_v55 = vld [vmem:[%s1683_s1] sm:$0xff] }
  0xc2   :  { %v360_v22 = vpop.f32.mrf.mxu2 }
  0xde   :  { %v314_v20 = vpop.f32.mrf.mxu0 }
  0xdf   :  { %v315_v2 = vadd.f32 %v314_v20, %v289_v1  ;;  %v667_v20 = vld [vmem:[%s1683_s1 + $0x10] sm:$0xff] }
  0xe1   :  { %v337_v21 = vpop.f32.mrf.mxu1 }
  0xe2   :  { %v338_v8 = vadd.f32 %v337_v21, %v315_v2  ;;  %v685_v21 = vperm.slane %v1613_v44, 2 }
  0xe4   :  { %v361_v49 = vadd.f32 %v360_v22, %v338_v8  ;;  %v383_v50 = vpop.f32.mrf.mxu3  ;;  %v703_v8 = vperm.slane %v1621_v23, 2 }
  0xe6   :  { %v384_v24 = vadd.f32 %v383_v50, %v361_v49 }
  0xe8   :  { %v673_v26 = vadd.f32 %v665_v55, %v384_v24 }
  0xea   :  { %v691_v28 = vmul.f32 %v683_v25, %v673_v26 }
  0xec   :  { %v709_v29 = vadd.f32 %v701_v27, %v691_v28 }
  0xee   :  { %717 = vst [vmem:[%s1685_s6] sm:$0xff] %v709_v29 }
  0xf6   :  { %v317_v30 = vpop.f32.mrf.mxu0 }
  0xf7   :  { %v318_v31 = vadd.f32 %v317_v30, %v289_v1  ;;  %v671_v30 = vld [vmem:[%s1683_s1 + $0x30] sm:$0xf] }
  0xf9   :  { %v340_v32 = vpop.f32.mrf.mxu1  ;;  %v363_v34 = vpop.f32.mrf.mxu2 }
  0xfa   :  { %v341_v33 = vadd.f32 %v340_v32, %v318_v31  ;;  %v292_v31 = vperm.slane %v1607_v60, 3 }
  0xfc   :  { %v364_v35 = vadd.f32 %v363_v34, %v341_v33  ;;  %v386_v36 = vpop.f32.mrf.mxu3 }
  0xfe   :  { %v387_v38 = vadd.f32 %v386_v36, %v364_v35 }
 0x100   :  { %v677_v40 = vadd.f32 %v669_v37, %v387_v38  ;;  %v406_v41 = vpop.f32.mrf.mxu0 }
 0x101   :  { %v407_v43 = vadd.f32 %v406_v41, %v290_v39 }
 0x102   :  { %v695_v42 = vmul.f32 %v683_v25, %v677_v40 }
 0x103   :  { %v452_v47 = vpop.f32.mrf.mxu2 }
 0x104   :  { %v713_v45 = vadd.f32 %v701_v27, %v695_v42  ;;  %v429_v46 = vpop.f32.mrf.mxu1 }
 0x105   :  { %v430_v48 = vadd.f32 %v429_v46, %v407_v43  ;;  %v668_v43 = vld [vmem:[%s1683_s1 + $0x18] sm:$0xff] }
 0x106   :  { %721 = vst [vmem:[%s1685_s6 + $0x20] sm:$0xf] %v713_v45  ;;  %v475_v51 = vpop.f32.mrf.mxu3  ;;  %v686_v45 = vperm.slane %v1613_v44, 3 }
 0x107   :  { %v453_v52 = vadd.f32 %v452_v47, %v430_v48  ;;  %v704_v48 = vperm.slane %v1621_v23, 3 }
 0x109   :  { %v476_v54 = vadd.f32 %v475_v51, %v453_v52 }
 0x10b   :  { %v674_v57 = vadd.f32 %v666_v53, %v476_v54 }
 0x10c   :  { %v409_v59 = vpop.f32.mrf.mxu0 }
 0x10d   :  { %v410_v61 = vadd.f32 %v409_v59, %v290_v39  ;;  %v692_v62 = vmul.f32 %v684_v56, %v674_v57 }
 0x10f   :  { %v432_v63 = vpop.f32.mrf.mxu1  ;;  %v710_v0 = vadd.f32 %v702_v58, %v692_v62  ;;  %v455_v4 = vpop.f32.mrf.mxu2 }
 0x110   :  { %v433_v3 = vadd.f32 %v432_v63, %v410_v61  ;;  %v672_v61 = vld [vmem:[%s1683_s1 + $0x38] sm:$0xf] }
 0x111   :  { %718 = vst [vmem:[%s1685_s6 + $0x8] sm:$0xff] %v710_v0 }
 0x112   :  { %v456_v5 = vadd.f32 %v455_v4, %v433_v3  ;;  %v478_v6 = vpop.f32.mrf.mxu3 }
 0x114   :  { %v479_v10 = vadd.f32 %v478_v6, %v456_v5 }
 0x116   :  { %v678_v11 = vadd.f32 %v670_v7, %v479_v10  ;;  %v498_v12 = vpop.f32.mrf.mxu0 }
 0x117   :  { %v499_v13 = vadd.f32 %v498_v12, %v291_v9 }
 0x118   :  { %v696_v14 = vmul.f32 %v684_v56, %v678_v11 }
 0x119   :  { %v521_v15 = vpop.f32.mrf.mxu1  ;;  %v544_v18 = vpop.f32.mrf.mxu2 }
 0x11a   :  { %v714_v16 = vadd.f32 %v702_v58, %v696_v14  ;;  %v522_v17 = vadd.f32 %v521_v15, %v499_v13 }
 0x11c   :  { %722 = vst [vmem:[%s1685_s6 + $0x28] sm:$0xf] %v714_v16  ;;  %v545_v19 = vadd.f32 %v544_v18, %v522_v17  ;;  %v567_v1 = vpop.f32.mrf.mxu3 }
 0x11e   :  { %v568_v2 = vadd.f32 %v567_v1, %v545_v19 }
 0x120   :  { %v675_v22 = vadd.f32 %v667_v20, %v568_v2  ;;  %v501_v49 = vpop.f32.mrf.mxu0 }
 0x121   :  { %v502_v50 = vadd.f32 %v501_v49, %v291_v9 }
 0x122   :  { %v693_v55 = vmul.f32 %v685_v21, %v675_v22 }
 0x123   :  { %v524_v24 = vpop.f32.mrf.mxu1  ;;  %v547_v27 = vpop.f32.mrf.mxu2 }
 0x124   :  { %v711_v25 = vadd.f32 %v703_v8, %v693_v55  ;;  %v525_v26 = vadd.f32 %v524_v24, %v502_v50 }
 0x126   :  { %719 = vst [vmem:[%s1685_s6 + $0x10] sm:$0xff] %v711_v25  ;;  %v548_v28 = vadd.f32 %v547_v27, %v525_v26  ;;  %v570_v29 = vpop.f32.mrf.mxu3 }
 0x128   :  { %v571_v32 = vadd.f32 %v570_v29, %v548_v28 }
 0x129   :  { %v590_v34 = vpop.f32.mrf.mxu0 }
 0x12a   :  { %v679_v33 = vadd.f32 %v671_v30, %v571_v32  ;;  %v591_v35 = vadd.f32 %v590_v34, %v292_v31 }
 0x12b   :  { %v613_v37 = vpop.f32.mrf.mxu1 }
 0x12c   :  { %v697_v36 = vmul.f32 %v685_v21, %v679_v33  ;;  %v614_v38 = vadd.f32 %v613_v37, %v591_v35 }
 0x12d   :  { %v636_v40 = vpop.f32.mrf.mxu2 }
 0x12e   :  { %v715_v39 = vadd.f32 %v703_v8, %v697_v36  ;;  %v637_v41 = vadd.f32 %v636_v40, %v614_v38 }
 0x130   :  { %723 = vst [vmem:[%s1685_s6 + $0x30] sm:$0xf] %v715_v39  ;;  %v659_v42 = vpop.f32.mrf.mxu3 }
 0x131   :  { %v660_v60 = vadd.f32 %v659_v42, %v637_v41  ;;  %v593_v46 = vpop.f32.mrf.mxu0 }
 0x132   :  { %v594_v51 = vadd.f32 %v593_v46, %v292_v31 }
 0x133   :  { %v676_v47 = vadd.f32 %v668_v43, %v660_v60  ;;  %v616_v52 = vpop.f32.mrf.mxu1 }
 0x134   :  { %v617_v54 = vadd.f32 %v616_v52, %v594_v51 }
 0x135   :  { %v694_v53 = vmul.f32 %v686_v45, %v676_v47  ;;  %v639_v56 = vpop.f32.mrf.mxu2 }
 0x136   :  { %v640_v58 = vadd.f32 %v639_v56, %v617_v54 }
 0x137   :  { %v712_v57 = vadd.f32 %v704_v48, %v694_v53 }
 0x138   :  { %v662_v59 = vpop.f32.mrf.mxu3 }
 0x139   :  { %720 = vst [vmem:[%s1685_s6 + $0x18] sm:$0xff] %v712_v57  ;;  %v663_v44 = vadd.f32 %v662_v59, %v640_v58 }
 0x13b   :  { %v680_v62 = vadd.f32 %v672_v61, %v663_v44 }
 0x13d   :  { %v698_v63 = vmul.f32 %v686_v45, %v680_v62 }
 0x13f   :  { %v716_v23 = vadd.f32 %v704_v48, %v698_v63 }
 0x141   :  { %724 = vst [vmem:[%s1685_s6 + $0x38] sm:$0xf] %v716_v23 }

// kernel: gwnet_forward.13
= control target key start
LH: loop header
LB: loop body
LE: loop exit
PB: predicated region body
PF: predicated region fallthrough
CT: control target
= control target key end

     0   :  { %s1529_s2 = inlined_call_operand.vmem [shape: f32[512,512], index: 2, kind: input, shape index: {}]   ;;  %s1530_s0 = inlined_call_operand.vmem [shape: f32[8,512], index: 0, kind: input, shape index: {}]   ;;  %s1531_s3 = inlined_call_operand.vmem [shape: f32[1,512], index: 3, kind: input, shape index: {}]   ;;  %s1532_s4 = inlined_call_operand.vmem [shape: f32[1,512], index: 4, kind: input, shape index: {}]   ;;  %s1533_s1 = inlined_call_operand.vmem [shape: f32[8,512], index: 1, kind: input, shape index: {}]   ;;  %s1534_s5 = inlined_call_operand.vmem [shape: f32[1,512], index: 5, kind: input, shape index: {}]   ;;  %s1535_s6 = inlined_call_operand.vmem [shape: f32[8,512], index: 6, kind: output, shape index: {}]  }
   0x1   :  { %v215_v0 = vld [vmem:[%s1529_s2 + $0x5e0] sm:$0xff]  ;;  %v216_v62 = vld [vmem:[%s1529_s2 + $0x5e8] sm:$0xff] }
   0x2   :  { %v87_v1 = vld [vmem:[%s1529_s2 + $0x1e0] sm:$0xff]  ;;  %333 = vmatpush.msra.mxu2 %v215_v0  ;;  %v88_v0 = vld [vmem:[%s1529_s2 + $0x1e8] sm:$0xff] }
   0x3   :  { %v211_v2 = vld [vmem:[%s1529_s2 + $0x5c0] sm:$0xff]  ;;  %293 = vmatpush.msra.mxu0 %v87_v1  ;;  %v280_v1 = vld [vmem:[%s1529_s2 + $0x7e8] sm:$0xff] }
   0x4   :  { %v279_v3 = vld [vmem:[%s1529_s2 + $0x7e0] sm:$0xff]  ;;  %334 = vmatpush.msra.mxu2 %v211_v2  ;;  %v212_v2 = vld [vmem:[%s1529_s2 + $0x5c8] sm:$0xff] }
   0x5   :  { %v83_v4 = vld [vmem:[%s1529_s2 + $0x1c0] sm:$0xff]  ;;  %353 = vmatpush.msra.mxu3 %v279_v3 }
   0x6   :  { %v151_v5 = vld [vmem:[%s1529_s2 + $0x3e0] sm:$0xff]  ;;  %294 = vmatpush.msra.mxu0 %v83_v4  ;;  %v84_v4 = vld [vmem:[%s1529_s2 + $0x1c8] sm:$0xff] }
   0x7   :  { %313 = vmatpush.msra.mxu1 %v151_v5  ;;  %v207_v6 = vld [vmem:[%s1529_s2 + $0x5a0] sm:$0xff]  ;;  %v152_v5 = vld [vmem:[%s1529_s2 + $0x3e8] sm:$0xff] }
   0x8   :  { %v275_v7 = vld [vmem:[%s1529_s2 + $0x7c0] sm:$0xff]  ;;  %335 = vmatpush.msra.mxu2 %v207_v6  ;;  %v208_v6 = vld [vmem:[%s1529_s2 + $0x5a8] sm:$0xff] }
   0x9   :  { %v79_v8 = vld [vmem:[%s1529_s2 + $0x1a0] sm:$0xff]  ;;  %354 = vmatpush.msra.mxu3 %v275_v7  ;;  %v276_v7 = vld [vmem:[%s1529_s2 + $0x7c8] sm:$0xff] }
   0xa   :  { %v147_v9 = vld [vmem:[%s1529_s2 + $0x3c0] sm:$0xff]  ;;  %295 = vmatpush.msra.mxu0 %v79_v8  ;;  %v80_v8 = vld [vmem:[%s1529_s2 + $0x1a8] sm:$0xff] }
   0xb   :  { %v271_v10 = vld [vmem:[%s1529_s2 + $0x7a0] sm:$0xff]  ;;  %314 = vmatpush.msra.mxu1 %v147_v9  ;;  %v148_v9 = vld [vmem:[%s1529_s2 + $0x3c8] sm:$0xff] }
   0xc   :  { %v203_v11 = vld [vmem:[%s1529_s2 + $0x580] sm:$0xff]  ;;  %355 = vmatpush.msra.mxu3 %v271_v10  ;;  %v204_v10 = vld [vmem:[%s1529_s2 + $0x588] sm:$0xff] }
   0xd   :  { %v75_v12 = vld [vmem:[%s1529_s2 + $0x180] sm:$0xff]  ;;  %336 = vmatpush.msra.mxu2 %v203_v11  ;;  %v272_v11 = vld [vmem:[%s1529_s2 + $0x7a8] sm:$0xff] }
   0xe   :  { %v143_v13 = vld [vmem:[%s1529_s2 + $0x3a0] sm:$0xff]  ;;  %296 = vmatpush.msra.mxu0 %v75_v12  ;;  %v76_v12 = vld [vmem:[%s1529_s2 + $0x188] sm:$0xff] }
   0xf   :  { %v267_v14 = vld [vmem:[%s1529_s2 + $0x780] sm:$0xff]  ;;  %315 = vmatpush.msra.mxu1 %v143_v13  ;;  %v144_v13 = vld [vmem:[%s1529_s2 + $0x3a8] sm:$0xff] }
  0x10   :  { %v139_v15 = vld [vmem:[%s1529_s2 + $0x380] sm:$0xff]  ;;  %356 = vmatpush.msra.mxu3 %v267_v14  ;;  %v200_v14 = vld [vmem:[%s1529_s2 + $0x568] sm:$0xff] }
  0x11   :  { %v199_v16 = vld [vmem:[%s1529_s2 + $0x560] sm:$0xff]  ;;  %316 = vmatpush.msra.mxu1 %v139_v15  ;;  %v268_v15 = vld [vmem:[%s1529_s2 + $0x788] sm:$0xff] }
  0x12   :  { %v71_v17 = vld [vmem:[%s1529_s2 + $0x160] sm:$0xff]  ;;  %337 = vmatpush.msra.mxu2 %v199_v16  ;;  %v72_v16 = vld [vmem:[%s1529_s2 + $0x168] sm:$0xff] }
  0x13   :  { %v263_v18 = vld [vmem:[%s1529_s2 + $0x760] sm:$0xff]  ;;  %297 = vmatpush.msra.mxu0 %v71_v17  ;;  %v140_v17 = vld [vmem:[%s1529_s2 + $0x388] sm:$0xff] }
  0x14   :  { %v135_v19 = vld [vmem:[%s1529_s2 + $0x360] sm:$0xff]  ;;  %357 = vmatpush.msra.mxu3 %v263_v18  ;;  %v196_v18 = vld [vmem:[%s1529_s2 + $0x548] sm:$0xff] }
  0x15   :  { %v195_v20 = vld [vmem:[%s1529_s2 + $0x540] sm:$0xff]  ;;  %317 = vmatpush.msra.mxu1 %v135_v19  ;;  %v264_v19 = vld [vmem:[%s1529_s2 + $0x768] sm:$0xff] }
  0x16   :  { %v67_v21 = vld [vmem:[%s1529_s2 + $0x140] sm:$0xff]  ;;  %338 = vmatpush.msra.mxu2 %v195_v20  ;;  %v68_v20 = vld [vmem:[%s1529_s2 + $0x148] sm:$0xff] }
  0x17   :  { %v259_v22 = vld [vmem:[%s1529_s2 + $0x740] sm:$0xff]  ;;  %298 = vmatpush.msra.mxu0 %v67_v21  ;;  %v136_v21 = vld [vmem:[%s1529_s2 + $0x368] sm:$0xff] }
  0x18   :  { %v131_v23 = vld [vmem:[%s1529_s2 + $0x340] sm:$0xff]  ;;  %358 = vmatpush.msra.mxu3 %v259_v22  ;;  %v192_v22 = vld [vmem:[%s1529_s2 + $0x528] sm:$0xff] }
  0x19   :  { %v191_v24 = vld [vmem:[%s1529_s2 + $0x520] sm:$0xff]  ;;  %318 = vmatpush.msra.mxu1 %v131_v23  ;;  %v260_v23 = vld [vmem:[%s1529_s2 + $0x748] sm:$0xff] }
  0x1a   :  { %v63_v25 = vld [vmem:[%s1529_s2 + $0x120] sm:$0xff]  ;;  %339 = vmatpush.msra.mxu2 %v191_v24  ;;  %v64_v24 = vld [vmem:[%s1529_s2 + $0x128] sm:$0xff] }
  0x1b   :  { %v255_v26 = vld [vmem:[%s1529_s2 + $0x720] sm:$0xff]  ;;  %299 = vmatpush.msra.mxu0 %v63_v25  ;;  %v132_v25 = vld [vmem:[%s1529_s2 + $0x348] sm:$0xff] }
  0x1c   :  { %v127_v27 = vld [vmem:[%s1529_s2 + $0x320] sm:$0xff]  ;;  %359 = vmatpush.msra.mxu3 %v255_v26  ;;  %v188_v26 = vld [vmem:[%s1529_s2 + $0x508] sm:$0xff] }
  0x1d   :  { %v187_v28 = vld [vmem:[%s1529_s2 + $0x500] sm:$0xff]  ;;  %319 = vmatpush.msra.mxu1 %v127_v27  ;;  %v256_v27 = vld [vmem:[%s1529_s2 + $0x728] sm:$0xff] }
  0x1e   :  { %v59_v29 = vld [vmem:[%s1529_s2 + $0x100] sm:$0xff]  ;;  %340 = vmatpush.msra.mxu2 %v187_v28  ;;  %v60_v28 = vld [vmem:[%s1529_s2 + $0x108] sm:$0xff] }
  0x1f   :  { %v251_v30 = vld [vmem:[%s1529_s2 + $0x700] sm:$0xff]  ;;  %300 = vmatpush.msra.mxu0 %v59_v29  ;;  %v128_v29 = vld [vmem:[%s1529_s2 + $0x328] sm:$0xff] }
  0x20   :  { %v123_v31 = vld [vmem:[%s1529_s2 + $0x300] sm:$0xff]  ;;  %360 = vmatpush.msra.mxu3 %v251_v30  ;;  %v184_v30 = vld [vmem:[%s1529_s2 + $0x4e8] sm:$0xff] }
  0x21   :  { %v183_v32 = vld [vmem:[%s1529_s2 + $0x4e0] sm:$0xff]  ;;  %320 = vmatpush.msra.mxu1 %v123_v31  ;;  %v252_v31 = vld [vmem:[%s1529_s2 + $0x708] sm:$0xff] }
  0x22   :  { %v55_v33 = vld [vmem:[%s1529_s2 + $0xe0] sm:$0xff]  ;;  %341 = vmatpush.msra.mxu2 %v183_v32  ;;  %v56_v32 = vld [vmem:[%s1529_s2 + $0xe8] sm:$0xff] }
  0x23   :  { %v247_v34 = vld [vmem:[%s1529_s2 + $0x6e0] sm:$0xff]  ;;  %301 = vmatpush.msra.mxu0 %v55_v33  ;;  %v124_v33 = vld [vmem:[%s1529_s2 + $0x308] sm:$0xff] }
  0x24   :  { %v119_v35 = vld [vmem:[%s1529_s2 + $0x2e0] sm:$0xff]  ;;  %361 = vmatpush.msra.mxu3 %v247_v34  ;;  %v180_v34 = vld [vmem:[%s1529_s2 + $0x4c8] sm:$0xff] }
  0x25   :  { %v179_v36 = vld [vmem:[%s1529_s2 + $0x4c0] sm:$0xff]  ;;  %321 = vmatpush.msra.mxu1 %v119_v35  ;;  %v248_v35 = vld [vmem:[%s1529_s2 + $0x6e8] sm:$0xff] }
  0x26   :  { %v51_v37 = vld [vmem:[%s1529_s2 + $0xc0] sm:$0xff]  ;;  %342 = vmatpush.msra.mxu2 %v179_v36  ;;  %v52_v36 = vld [vmem:[%s1529_s2 + $0xc8] sm:$0xff] }
  0x27   :  { %v243_v38 = vld [vmem:[%s1529_s2 + $0x6c0] sm:$0xff]  ;;  %302 = vmatpush.msra.mxu0 %v51_v37  ;;  %v120_v37 = vld [vmem:[%s1529_s2 + $0x2e8] sm:$0xff] }
  0x28   :  { %v115_v39 = vld [vmem:[%s1529_s2 + $0x2c0] sm:$0xff]  ;;  %362 = vmatpush.msra.mxu3 %v243_v38  ;;  %v176_v38 = vld [vmem:[%s1529_s2 + $0x4a8] sm:$0xff] }
  0x29   :  { %v175_v40 = vld [vmem:[%s1529_s2 + $0x4a0] sm:$0xff]  ;;  %322 = vmatpush.msra.mxu1 %v115_v39  ;;  %v244_v39 = vld [vmem:[%s1529_s2 + $0x6c8] sm:$0xff] }
  0x2a   :  { %v47_v41 = vld [vmem:[%s1529_s2 + $0xa0] sm:$0xff]  ;;  %343 = vmatpush.msra.mxu2 %v175_v40  ;;  %v48_v40 = vld [vmem:[%s1529_s2 + $0xa8] sm:$0xff] }
  0x2b   :  { %v239_v42 = vld [vmem:[%s1529_s2 + $0x6a0] sm:$0xff]  ;;  %303 = vmatpush.msra.mxu0 %v47_v41  ;;  %v116_v41 = vld [vmem:[%s1529_s2 + $0x2c8] sm:$0xff] }
  0x2c   :  { %v111_v43 = vld [vmem:[%s1529_s2 + $0x2a0] sm:$0xff]  ;;  %363 = vmatpush.msra.mxu3 %v239_v42  ;;  %v172_v42 = vld [vmem:[%s1529_s2 + $0x488] sm:$0xff] }
  0x2d   :  { %v171_v44 = vld [vmem:[%s1529_s2 + $0x480] sm:$0xff]  ;;  %323 = vmatpush.msra.mxu1 %v111_v43  ;;  %v240_v43 = vld [vmem:[%s1529_s2 + $0x6a8] sm:$0xff] }
  0x2e   :  { %v43_v45 = vld [vmem:[%s1529_s2 + $0x80] sm:$0xff]  ;;  %344 = vmatpush.msra.mxu2 %v171_v44  ;;  %v44_v44 = vld [vmem:[%s1529_s2 + $0x88] sm:$0xff] }
  0x2f   :  { %v235_v46 = vld [vmem:[%s1529_s2 + $0x680] sm:$0xff]  ;;  %304 = vmatpush.msra.mxu0 %v43_v45  ;;  %v112_v45 = vld [vmem:[%s1529_s2 + $0x2a8] sm:$0xff] }
  0x30   :  { %v107_v47 = vld [vmem:[%s1529_s2 + $0x280] sm:$0xff]  ;;  %364 = vmatpush.msra.mxu3 %v235_v46  ;;  %v168_v46 = vld [vmem:[%s1529_s2 + $0x468] sm:$0xff] }
  0x31   :  { %v167_v48 = vld [vmem:[%s1529_s2 + $0x460] sm:$0xff]  ;;  %324 = vmatpush.msra.mxu1 %v107_v47  ;;  %v236_v47 = vld [vmem:[%s1529_s2 + $0x688] sm:$0xff] }
  0x32   :  { %v39_v49 = vld [vmem:[%s1529_s2 + $0x60] sm:$0xff]  ;;  %345 = vmatpush.msra.mxu2 %v167_v48  ;;  %v40_v48 = vld [vmem:[%s1529_s2 + $0x68] sm:$0xff] }
  0x33   :  { %v231_v50 = vld [vmem:[%s1529_s2 + $0x660] sm:$0xff]  ;;  %305 = vmatpush.msra.mxu0 %v39_v49  ;;  %v108_v49 = vld [vmem:[%s1529_s2 + $0x288] sm:$0xff] }
  0x34   :  { %v103_v51 = vld [vmem:[%s1529_s2 + $0x260] sm:$0xff]  ;;  %365 = vmatpush.msra.mxu3 %v231_v50  ;;  %v164_v50 = vld [vmem:[%s1529_s2 + $0x448] sm:$0xff] }
  0x35   :  { %v163_v52 = vld [vmem:[%s1529_s2 + $0x440] sm:$0xff]  ;;  %325 = vmatpush.msra.mxu1 %v103_v51  ;;  %v232_v51 = vld [vmem:[%s1529_s2 + $0x668] sm:$0xff] }
  0x36   :  { %v35_v53 = vld [vmem:[%s1529_s2 + $0x40] sm:$0xff]  ;;  %346 = vmatpush.msra.mxu2 %v163_v52  ;;  %v36_v52 = vld [vmem:[%s1529_s2 + $0x48] sm:$0xff] }
  0x37   :  { %v227_v54 = vld [vmem:[%s1529_s2 + $0x640] sm:$0xff]  ;;  %306 = vmatpush.msra.mxu0 %v35_v53  ;;  %v104_v53 = vld [vmem:[%s1529_s2 + $0x268] sm:$0xff] }
  0x38   :  { %v99_v55 = vld [vmem:[%s1529_s2 + $0x240] sm:$0xff]  ;;  %366 = vmatpush.msra.mxu3 %v227_v54  ;;  %v160_v54 = vld [vmem:[%s1529_s2 + $0x428] sm:$0xff] }
  0x39   :  { %v159_v56 = vld [vmem:[%s1529_s2 + $0x420] sm:$0xff]  ;;  %326 = vmatpush.msra.mxu1 %v99_v55  ;;  %v228_v55 = vld [vmem:[%s1529_s2 + $0x648] sm:$0xff] }
  0x3a   :  { %v31_v57 = vld [vmem:[%s1529_s2 + $0x20] sm:$0xff]  ;;  %347 = vmatpush.msra.mxu2 %v159_v56  ;;  %v32_v56 = vld [vmem:[%s1529_s2 + $0x28] sm:$0xff] }
  0x3b   :  { %v223_v58 = vld [vmem:[%s1529_s2 + $0x620] sm:$0xff]  ;;  %307 = vmatpush.msra.mxu0 %v31_v57  ;;  %v100_v57 = vld [vmem:[%s1529_s2 + $0x248] sm:$0xff] }
  0x3c   :  { %v95_v59 = vld [vmem:[%s1529_s2 + $0x220] sm:$0xff]  ;;  %367 = vmatpush.msra.mxu3 %v223_v58  ;;  %v156_v58 = vld [vmem:[%s1529_s2 + $0x408] sm:$0xff] }
  0x3d   :  { %v155_v60 = vld [vmem:[%s1529_s2 + $0x400] sm:$0xff]  ;;  %327 = vmatpush.msra.mxu1 %v95_v59  ;;  %v224_v59 = vld [vmem:[%s1529_s2 + $0x628] sm:$0xff] }
  0x3e   :  { %v27_v61 = vld [vmem:[%s1529_s2] sm:$0xff]  ;;  %348 = vmatpush.msra.mxu2 %v155_v60  ;;  %v1067_v60 = vld [vmem:[%s1530_s0 + $0x10] sm:$0xff] }
  0x3f   :  { %v219_v63 = vld [vmem:[%s1529_s2 + $0x600] sm:$0xff]  ;;  %308 = vmatpush.msra.mxu0 %v27_v61  ;;  %v28_v61 = vld [vmem:[%s1529_s2 + $0x8] sm:$0xff]  ;;  %349 = vmatmul.f32.vlgmr.msra.gmra.mxu2 %v1067_v60 }
  0x40   :  { %v91_v3 = vld [vmem:[%s1529_s2 + $0x200] sm:$0xff]  ;;  %413 = vmatpush.msrb.mxu2 %v216_v62  ;;  %368 = vmatpush.msra.mxu3 %v219_v63  ;;  %v217_v62 = vld [vmem:[%s1529_s2 + $0x5f0] sm:$0xff]  ;;  %v96_v63 = vld [vmem:[%s1529_s2 + $0x228] sm:$0xff] }
  0x41   :  { %373 = vmatpush.msrb.mxu0 %v88_v0  ;;  %328 = vmatpush.msra.mxu1 %v91_v3  ;;  %v220_v0 = vld [vmem:[%s1529_s2 + $0x608] sm:$0xff]  ;;  %v89_v3 = vld [vmem:[%s1529_s2 + $0x1f0] sm:$0xff] }
  0x42   :  { %433 = vmatpush.msrb.mxu3 %v280_v1  ;;  %414 = vmatpush.msrb.mxu2 %v212_v2  ;;  %v1084_v1 = vld [vmem:[%s1530_s0] sm:$0xff]  ;;  %v1090_v2 = vld [vmem:[%s1530_s0 + $0x18] sm:$0xff] }
  0x43   :  { %374 = vmatpush.msrb.mxu0 %v84_v4  ;;  %393 = vmatpush.msrb.mxu1 %v152_v5  ;;  %v213_v4 = vld [vmem:[%s1529_s2 + $0x5d0] sm:$0xff] }
  0x44   :  { %415 = vmatpush.msrb.mxu2 %v208_v6  ;;  %434 = vmatpush.msrb.mxu3 %v276_v7  ;;  %v281_v5 = vld [vmem:[%s1529_s2 + $0x7f0] sm:$0xff]  ;;  %v92_v6 = vld [vmem:[%s1529_s2 + $0x208] sm:$0xff] }
  0x45   :  { %375 = vmatpush.msrb.mxu0 %v80_v8  ;;  %394 = vmatpush.msrb.mxu1 %v148_v9  ;;  %v85_v7 = vld [vmem:[%s1529_s2 + $0x1d0] sm:$0xff]  ;;  %v1112_v8 = vld [vmem:[%s1530_s0 + $0x8] sm:$0xff] }
  0x46   :  { %416 = vmatpush.msrb.mxu2 %v204_v10  ;;  %435 = vmatpush.msrb.mxu3 %v272_v11  ;;  %v209_v9 = vld [vmem:[%s1529_s2 + $0x5b0] sm:$0xff] }
  0x47   :  { %376 = vmatpush.msrb.mxu0 %v76_v12  ;;  %395 = vmatpush.msrb.mxu1 %v144_v13  ;;  %v153_v10 = vld [vmem:[%s1529_s2 + $0x3f0] sm:$0xff] }
  0x48   :  { %417 = vmatpush.msrb.mxu2 %v200_v14  ;;  %436 = vmatpush.msrb.mxu3 %v268_v15  ;;  %v277_v11 = vld [vmem:[%s1529_s2 + $0x7d0] sm:$0xff] }
  0x49   :  { %377 = vmatpush.msrb.mxu0 %v72_v16  ;;  %396 = vmatpush.msrb.mxu1 %v140_v17  ;;  %v81_v12 = vld [vmem:[%s1529_s2 + $0x1b0] sm:$0xff] }
  0x4a   :  { %418 = vmatpush.msrb.mxu2 %v196_v18  ;;  %437 = vmatpush.msrb.mxu3 %v264_v19  ;;  %v205_v13 = vld [vmem:[%s1529_s2 + $0x590] sm:$0xff] }
  0x4b   :  { %378 = vmatpush.msrb.mxu0 %v68_v20  ;;  %397 = vmatpush.msrb.mxu1 %v136_v21  ;;  %v149_v14 = vld [vmem:[%s1529_s2 + $0x3d0] sm:$0xff] }
  0x4c   :  { %419 = vmatpush.msrb.mxu2 %v192_v22  ;;  %438 = vmatpush.msrb.mxu3 %v260_v23  ;;  %v273_v15 = vld [vmem:[%s1529_s2 + $0x7b0] sm:$0xff] }
  0x4d   :  { %379 = vmatpush.msrb.mxu0 %v64_v24  ;;  %398 = vmatpush.msrb.mxu1 %v132_v25  ;;  %v77_v16 = vld [vmem:[%s1529_s2 + $0x190] sm:$0xff] }
  0x4e   :  { %420 = vmatpush.msrb.mxu2 %v188_v26  ;;  %439 = vmatpush.msrb.mxu3 %v256_v27  ;;  %v201_v17 = vld [vmem:[%s1529_s2 + $0x570] sm:$0xff] }
  0x4f   :  { %380 = vmatpush.msrb.mxu0 %v60_v28  ;;  %399 = vmatpush.msrb.mxu1 %v128_v29  ;;  %v145_v18 = vld [vmem:[%s1529_s2 + $0x3b0] sm:$0xff] }
  0x50   :  { %421 = vmatpush.msrb.mxu2 %v184_v30  ;;  %440 = vmatpush.msrb.mxu3 %v252_v31  ;;  %v269_v19 = vld [vmem:[%s1529_s2 + $0x790] sm:$0xff] }
  0x51   :  { %381 = vmatpush.msrb.mxu0 %v56_v32  ;;  %400 = vmatpush.msrb.mxu1 %v124_v33  ;;  %v73_v20 = vld [vmem:[%s1529_s2 + $0x170] sm:$0xff] }
  0x52   :  { %422 = vmatpush.msrb.mxu2 %v180_v34  ;;  %441 = vmatpush.msrb.mxu3 %v248_v35  ;;  %v197_v21 = vld [vmem:[%s1529_s2 + $0x550] sm:$0xff] }
  0x53   :  { %382 = vmatpush.msrb.mxu0 %v52_v36  ;;  %401 = vmatpush.msrb.mxu1 %v120_v37  ;;  %v141_v22 = vld [vmem:[%s1529_s2 + $0x390] sm:$0xff] }
  0x54   :  { %423 = vmatpush.msrb.mxu2 %v176_v38  ;;  %442 = vmatpush.msrb.mxu3 %v244_v39  ;;  %v265_v23 = vld [vmem:[%s1529_s2 + $0x770] sm:$0xff] }
  0x55   :  { %383 = vmatpush.msrb.mxu0 %v48_v40  ;;  %402 = vmatpush.msrb.mxu1 %v116_v41  ;;  %v69_v24 = vld [vmem:[%s1529_s2 + $0x150] sm:$0xff] }
  0x56   :  { %424 = vmatpush.msrb.mxu2 %v172_v42  ;;  %443 = vmatpush.msrb.mxu3 %v240_v43  ;;  %v193_v25 = vld [vmem:[%s1529_s2 + $0x530] sm:$0xff] }
  0x57   :  { %384 = vmatpush.msrb.mxu0 %v44_v44  ;;  %403 = vmatpush.msrb.mxu1 %v112_v45  ;;  %v137_v26 = vld [vmem:[%s1529_s2 + $0x370] sm:$0xff] }
  0x58   :  { %425 = vmatpush.msrb.mxu2 %v168_v46  ;;  %444 = vmatpush.msrb.mxu3 %v236_v47  ;;  %v261_v27 = vld [vmem:[%s1529_s2 + $0x750] sm:$0xff] }
  0x59   :  { %385 = vmatpush.msrb.mxu0 %v40_v48  ;;  %404 = vmatpush.msrb.mxu1 %v108_v49  ;;  %v65_v28 = vld [vmem:[%s1529_s2 + $0x130] sm:$0xff] }
  0x5a   :  { %426 = vmatpush.msrb.mxu2 %v164_v50  ;;  %445 = vmatpush.msrb.mxu3 %v232_v51  ;;  %v189_v29 = vld [vmem:[%s1529_s2 + $0x510] sm:$0xff] }
  0x5b   :  { %386 = vmatpush.msrb.mxu0 %v36_v52  ;;  %405 = vmatpush.msrb.mxu1 %v104_v53  ;;  %v133_v30 = vld [vmem:[%s1529_s2 + $0x350] sm:$0xff] }
  0x5c   :  { %427 = vmatpush.msrb.mxu2 %v160_v54  ;;  %446 = vmatpush.msrb.mxu3 %v228_v55  ;;  %v257_v31 = vld [vmem:[%s1529_s2 + $0x730] sm:$0xff] }
  0x5d   :  { %387 = vmatpush.msrb.mxu0 %v32_v56  ;;  %406 = vmatpush.msrb.mxu1 %v100_v57  ;;  %v61_v32 = vld [vmem:[%s1529_s2 + $0x110] sm:$0xff] }
  0x5e   :  { %428 = vmatpush.msrb.mxu2 %v156_v58  ;;  %447 = vmatpush.msrb.mxu3 %v224_v59  ;;  %v185_v33 = vld [vmem:[%s1529_s2 + $0x4f0] sm:$0xff] }
  0x5f   :  { %388 = vmatpush.msrb.mxu0 %v28_v61  ;;  %407 = vmatpush.msrb.mxu1 %v96_v63  ;;  %v129_v34 = vld [vmem:[%s1529_s2 + $0x330] sm:$0xff] }
  0x60   :  { %493 = vmatpush.msra.mxu2 %v217_v62  ;;  %448 = vmatpush.msrb.mxu3 %v220_v0  ;;  %v253_v35 = vld [vmem:[%s1529_s2 + $0x710] sm:$0xff] }
  0x61   :  { %309 = vmatmul.f32.vlgmr.msra.gmra.mxu0 %v1084_v1  ;;  %369 = vmatmul.f32.vlgmr.msra.gmra.mxu3 %v1090_v2  ;;  %v57_v36 = vld [vmem:[%s1529_s2 + $0xf0] sm:$0xff] }
  0x62   :  { %453 = vmatpush.msra.mxu0 %v89_v3  ;;  %494 = vmatpush.msra.mxu2 %v213_v4  ;;  %v181_v37 = vld [vmem:[%s1529_s2 + $0x4d0] sm:$0xff]  ;;  %v218_v4 = vld [vmem:[%s1529_s2 + $0x5f8] sm:$0xff] }
  0x63   :  { %513 = vmatpush.msra.mxu3 %v281_v5  ;;  %408 = vmatpush.msrb.mxu1 %v92_v6  ;;  %v125_v38 = vld [vmem:[%s1529_s2 + $0x310] sm:$0xff] }
  0x64   :  { %454 = vmatpush.msra.mxu0 %v85_v7  ;;  %329 = vmatmul.f32.vlgmr.msra.gmra.mxu1 %v1112_v8  ;;  %v249_v39 = vld [vmem:[%s1529_s2 + $0x6f0] sm:$0xff]  ;;  %v90_v7 = vld [vmem:[%s1529_s2 + $0x1f8] sm:$0xff] }
  0x65   :  { %495 = vmatpush.msra.mxu2 %v209_v9  ;;  %473 = vmatpush.msra.mxu1 %v153_v10  ;;  %v53_v40 = vld [vmem:[%s1529_s2 + $0xd0] sm:$0xff]  ;;  %v214_v9 = vld [vmem:[%s1529_s2 + $0x5d8] sm:$0xff] }
  0x66   :  { %514 = vmatpush.msra.mxu3 %v277_v11  ;;  %455 = vmatpush.msra.mxu0 %v81_v12  ;;  %v177_v41 = vld [vmem:[%s1529_s2 + $0x4b0] sm:$0xff]  ;;  %v282_v10 = vld [vmem:[%s1529_s2 + $0x7f8] sm:$0xff] }
  0x67   :  { %496 = vmatpush.msra.mxu2 %v205_v13  ;;  %474 = vmatpush.msra.mxu1 %v149_v14  ;;  %v121_v42 = vld [vmem:[%s1529_s2 + $0x2f0] sm:$0xff]  ;;  %v86_v12 = vld [vmem:[%s1529_s2 + $0x1d8] sm:$0xff] }
  0x68   :  { %515 = vmatpush.msra.mxu3 %v273_v15  ;;  %456 = vmatpush.msra.mxu0 %v77_v16  ;;  %v245_v43 = vld [vmem:[%s1529_s2 + $0x6d0] sm:$0xff]  ;;  %v210_v13 = vld [vmem:[%s1529_s2 + $0x5b8] sm:$0xff] }
  0x69   :  { %497 = vmatpush.msra.mxu2 %v201_v17  ;;  %475 = vmatpush.msra.mxu1 %v145_v18  ;;  %v49_v44 = vld [vmem:[%s1529_s2 + $0xb0] sm:$0xff]  ;;  %v154_v14 = vld [vmem:[%s1529_s2 + $0x3f8] sm:$0xff] }
  0x6a   :  { %516 = vmatpush.msra.mxu3 %v269_v19  ;;  %457 = vmatpush.msra.mxu0 %v73_v20  ;;  %v173_v45 = vld [vmem:[%s1529_s2 + $0x490] sm:$0xff]  ;;  %v278_v15 = vld [vmem:[%s1529_s2 + $0x7d8] sm:$0xff] }
  0x6b   :  { %498 = vmatpush.msra.mxu2 %v197_v21  ;;  %476 = vmatpush.msra.mxu1 %v141_v22  ;;  %v117_v46 = vld [vmem:[%s1529_s2 + $0x2d0] sm:$0xff]  ;;  %v82_v16 = vld [vmem:[%s1529_s2 + $0x1b8] sm:$0xff] }
  0x6c   :  { %517 = vmatpush.msra.mxu3 %v265_v23  ;;  %458 = vmatpush.msra.mxu0 %v69_v24  ;;  %v241_v47 = vld [vmem:[%s1529_s2 + $0x6b0] sm:$0xff]  ;;  %v206_v17 = vld [vmem:[%s1529_s2 + $0x598] sm:$0xff] }
  0x6d   :  { %499 = vmatpush.msra.mxu2 %v193_v25  ;;  %477 = vmatpush.msra.mxu1 %v137_v26  ;;  %v45_v48 = vld [vmem:[%s1529_s2 + $0x90] sm:$0xff]  ;;  %v150_v18 = vld [vmem:[%s1529_s2 + $0x3d8] sm:$0xff] }
  0x6e   :  { %518 = vmatpush.msra.mxu3 %v261_v27  ;;  %459 = vmatpush.msra.mxu0 %v65_v28  ;;  %v169_v49 = vld [vmem:[%s1529_s2 + $0x470] sm:$0xff]  ;;  %v274_v19 = vld [vmem:[%s1529_s2 + $0x7b8] sm:$0xff] }
  0x6f   :  { %500 = vmatpush.msra.mxu2 %v189_v29  ;;  %478 = vmatpush.msra.mxu1 %v133_v30  ;;  %v113_v50 = vld [vmem:[%s1529_s2 + $0x2b0] sm:$0xff]  ;;  %v78_v20 = vld [vmem:[%s1529_s2 + $0x198] sm:$0xff] }
  0x70   :  { %519 = vmatpush.msra.mxu3 %v257_v31  ;;  %460 = vmatpush.msra.mxu0 %v61_v32  ;;  %v237_v51 = vld [vmem:[%s1529_s2 + $0x690] sm:$0xff]  ;;  %v202_v21 = vld [vmem:[%s1529_s2 + $0x578] sm:$0xff] }
  0x71   :  { %501 = vmatpush.msra.mxu2 %v185_v33  ;;  %479 = vmatpush.msra.mxu1 %v129_v34  ;;  %v41_v52 = vld [vmem:[%s1529_s2 + $0x70] sm:$0xff]  ;;  %v146_v22 = vld [vmem:[%s1529_s2 + $0x3b8] sm:$0xff] }
  0x72   :  { %520 = vmatpush.msra.mxu3 %v253_v35  ;;  %461 = vmatpush.msra.mxu0 %v57_v36  ;;  %v165_v53 = vld [vmem:[%s1529_s2 + $0x450] sm:$0xff]  ;;  %v270_v23 = vld [vmem:[%s1529_s2 + $0x798] sm:$0xff] }
  0x73   :  { %502 = vmatpush.msra.mxu2 %v181_v37  ;;  %480 = vmatpush.msra.mxu1 %v125_v38  ;;  %v109_v54 = vld [vmem:[%s1529_s2 + $0x290] sm:$0xff]  ;;  %v74_v24 = vld [vmem:[%s1529_s2 + $0x178] sm:$0xff] }
  0x74   :  { %521 = vmatpush.msra.mxu3 %v249_v39  ;;  %462 = vmatpush.msra.mxu0 %v53_v40  ;;  %v233_v55 = vld [vmem:[%s1529_s2 + $0x670] sm:$0xff]  ;;  %v198_v25 = vld [vmem:[%s1529_s2 + $0x558] sm:$0xff] }
  0x75   :  { %503 = vmatpush.msra.mxu2 %v177_v41  ;;  %481 = vmatpush.msra.mxu1 %v121_v42  ;;  %v37_v56 = vld [vmem:[%s1529_s2 + $0x50] sm:$0xff]  ;;  %v142_v26 = vld [vmem:[%s1529_s2 + $0x398] sm:$0xff] }
  0x76   :  { %522 = vmatpush.msra.mxu3 %v245_v43  ;;  %463 = vmatpush.msra.mxu0 %v49_v44  ;;  %v161_v57 = vld [vmem:[%s1529_s2 + $0x430] sm:$0xff]  ;;  %v266_v27 = vld [vmem:[%s1529_s2 + $0x778] sm:$0xff] }
  0x77   :  { %504 = vmatpush.msra.mxu2 %v173_v45  ;;  %482 = vmatpush.msra.mxu1 %v117_v46  ;;  %v105_v58 = vld [vmem:[%s1529_s2 + $0x270] sm:$0xff]  ;;  %v70_v28 = vld [vmem:[%s1529_s2 + $0x158] sm:$0xff] }
  0x78   :  { %523 = vmatpush.msra.mxu3 %v241_v47  ;;  %464 = vmatpush.msra.mxu0 %v45_v48  ;;  %v229_v59 = vld [vmem:[%s1529_s2 + $0x650] sm:$0xff]  ;;  %v194_v29 = vld [vmem:[%s1529_s2 + $0x538] sm:$0xff] }
  0x79   :  { %505 = vmatpush.msra.mxu2 %v169_v49  ;;  %483 = vmatpush.msra.mxu1 %v113_v50  ;;  %v33_v61 = vld [vmem:[%s1529_s2 + $0x30] sm:$0xff]  ;;  %v138_v30 = vld [vmem:[%s1529_s2 + $0x378] sm:$0xff] }
  0x7a   :  { %524 = vmatpush.msra.mxu3 %v237_v51  ;;  %465 = vmatpush.msra.mxu0 %v41_v52  ;;  %v157_v62 = vld [vmem:[%s1529_s2 + $0x410] sm:$0xff]  ;;  %v262_v31 = vld [vmem:[%s1529_s2 + $0x758] sm:$0xff] }
  0x7b   :  { %506 = vmatpush.msra.mxu2 %v165_v53  ;;  %484 = vmatpush.msra.mxu1 %v109_v54  ;;  %v101_v63 = vld [vmem:[%s1529_s2 + $0x250] sm:$0xff]  ;;  %v66_v32 = vld [vmem:[%s1529_s2 + $0x138] sm:$0xff] }
  0x7c   :  { %525 = vmatpush.msra.mxu3 %v233_v55  ;;  %466 = vmatpush.msra.mxu0 %v37_v56  ;;  %v225_v0 = vld [vmem:[%s1529_s2 + $0x630] sm:$0xff]  ;;  %v190_v33 = vld [vmem:[%s1529_s2 + $0x518] sm:$0xff] }
  0x7d   :  { %507 = vmatpush.msra.mxu2 %v161_v57  ;;  %485 = vmatpush.msra.mxu1 %v105_v58  ;;  %v29_v3 = vld [vmem:[%s1529_s2 + $0x10] sm:$0xff]  ;;  %v134_v34 = vld [vmem:[%s1529_s2 + $0x358] sm:$0xff] }
  0x7e   :  { %526 = vmatpush.msra.mxu3 %v229_v59  ;;  %467 = vmatpush.msra.mxu0 %v33_v61  ;;  %v97_v5 = vld [vmem:[%s1529_s2 + $0x230] sm:$0xff]  ;;  %v258_v35 = vld [vmem:[%s1529_s2 + $0x738] sm:$0xff] }
  0x7f   :  { %508 = vmatpush.msra.mxu2 %v157_v62  ;;  %486 = vmatpush.msra.mxu1 %v101_v63  ;;  %v221_v6 = vld [vmem:[%s1529_s2 + $0x610] sm:$0xff]  ;;  %v62_v36 = vld [vmem:[%s1529_s2 + $0x118] sm:$0xff] }
  0x80   :  { %527 = vmatpush.msra.mxu3 %v225_v0  ;;  %429 = vmatmul.f32.vlgmr.msrb.gmra.mxu2 %v1067_v60  ;;  %v93_v11 = vld [vmem:[%s1529_s2 + $0x210] sm:$0xff]  ;;  %v186_v37 = vld [vmem:[%s1529_s2 + $0x4f8] sm:$0xff] }
  0x81   :  { %468 = vmatpush.msra.mxu0 %v29_v3  ;;  %573 = vmatpush.msrb.mxu2 %v218_v4  ;;  %v130_v38 = vld [vmem:[%s1529_s2 + $0x338] sm:$0xff] }
  0x82   :  { %487 = vmatpush.msra.mxu1 %v97_v5  ;;  %528 = vmatpush.msra.mxu3 %v221_v6  ;;  %v254_v39 = vld [vmem:[%s1529_s2 + $0x718] sm:$0xff] }
  0x83   :  { %389 = vmatmul.f32.vlgmr.msrb.gmra.mxu0 %v1084_v1  ;;  %449 = vmatmul.f32.vlgmr.msrb.gmra.mxu3 %v1090_v2  ;;  %v58_v40 = vld [vmem:[%s1529_s2 + $0xf8] sm:$0xff] }
  0x84   :  { %533 = vmatpush.msrb.mxu0 %v90_v7  ;;  %574 = vmatpush.msrb.mxu2 %v214_v9  ;;  %v182_v41 = vld [vmem:[%s1529_s2 + $0x4d8] sm:$0xff] }
  0x85   :  { %593 = vmatpush.msrb.mxu3 %v282_v10  ;;  %488 = vmatpush.msra.mxu1 %v93_v11  ;;  %v126_v42 = vld [vmem:[%s1529_s2 + $0x318] sm:$0xff] }
  0x86   :  { %534 = vmatpush.msrb.mxu0 %v86_v12  ;;  %409 = vmatmul.f32.vlgmr.msrb.gmra.mxu1 %v1112_v8  ;;  %v250_v43 = vld [vmem:[%s1529_s2 + $0x6f8] sm:$0xff]  ;;  %v283_v12 = vld [vmem:[%s1531_s3] sm:$0xf] }
  0x87   :  { %575 = vmatpush.msrb.mxu2 %v210_v13  ;;  %553 = vmatpush.msrb.mxu1 %v154_v14  ;;  %v54_v44 = vld [vmem:[%s1529_s2 + $0xd8] sm:$0xff]  ;;  %v285_v13 = vperm.slane %v283_v12, 0 }
  0x88   :  { %594 = vmatpush.msrb.mxu3 %v278_v15  ;;  %535 = vmatpush.msrb.mxu0 %v82_v16  ;;  %v178_v45 = vld [vmem:[%s1529_s2 + $0x4b8] sm:$0xff] }
  0x89   :  { %576 = vmatpush.msrb.mxu2 %v206_v17  ;;  %554 = vmatpush.msrb.mxu1 %v150_v18  ;;  %v122_v46 = vld [vmem:[%s1529_s2 + $0x2f8] sm:$0xff]  ;;  %v621_v18 = vld [vmem:[%s1532_s4] sm:$0xf] }
  0x8a   :  { %595 = vmatpush.msrb.mxu3 %v274_v19  ;;  %536 = vmatpush.msrb.mxu0 %v78_v20  ;;  %v246_v47 = vld [vmem:[%s1529_s2 + $0x6d8] sm:$0xff] }
  0x8b   :  { %577 = vmatpush.msrb.mxu2 %v202_v21  ;;  %555 = vmatpush.msrb.mxu1 %v146_v22  ;;  %v50_v48 = vld [vmem:[%s1529_s2 + $0xb8] sm:$0xff]  ;;  %v623_v21 = vperm.slane %v621_v18, 0 }
  0x8c   :  { %596 = vmatpush.msrb.mxu3 %v270_v23  ;;  %537 = vmatpush.msrb.mxu0 %v74_v24  ;;  %v174_v49 = vld [vmem:[%s1529_s2 + $0x498] sm:$0xff] }
  0x8d   :  { %578 = vmatpush.msrb.mxu2 %v198_v25  ;;  %556 = vmatpush.msrb.mxu1 %v142_v26  ;;  %v118_v50 = vld [vmem:[%s1529_s2 + $0x2d8] sm:$0xff]  ;;  %v286_v26 = vperm.slane %v283_v12, 1 }
  0x8e   :  { %597 = vmatpush.msrb.mxu3 %v266_v27  ;;  %538 = vmatpush.msrb.mxu0 %v70_v28  ;;  %v242_v51 = vld [vmem:[%s1529_s2 + $0x6b8] sm:$0xff] }
  0x8f   :  { %579 = vmatpush.msrb.mxu2 %v194_v29  ;;  %557 = vmatpush.msrb.mxu1 %v138_v30  ;;  %v46_v52 = vld [vmem:[%s1529_s2 + $0x98] sm:$0xff] }
  0x90   :  { %598 = vmatpush.msrb.mxu3 %v262_v31  ;;  %539 = vmatpush.msrb.mxu0 %v66_v32  ;;  %v114_v53 = vld [vmem:[%s1529_s2 + $0x2b8] sm:$0xff] }
  0x91   :  { %580 = vmatpush.msrb.mxu2 %v190_v33  ;;  %558 = vmatpush.msrb.mxu1 %v134_v34  ;;  %v170_v54 = vld [vmem:[%s1529_s2 + $0x478] sm:$0xff]  ;;  %v614_v34 = vld [vmem:[%s1533_s1 + $0x8] sm:$0xff] }
  0x92   :  { %599 = vmatpush.msrb.mxu3 %v258_v35  ;;  %540 = vmatpush.msrb.mxu0 %v62_v36  ;;  %v238_v55 = vld [vmem:[%s1529_s2 + $0x698] sm:$0xff]  ;;  %v624_v36 = vperm.slane %v621_v18, 1 }
  0x93   :  { %581 = vmatpush.msrb.mxu2 %v186_v37  ;;  %559 = vmatpush.msrb.mxu1 %v130_v38  ;;  %v42_v56 = vld [vmem:[%s1529_s2 + $0x78] sm:$0xff] }
  0x94   :  { %600 = vmatpush.msrb.mxu3 %v254_v39  ;;  %541 = vmatpush.msrb.mxu0 %v58_v40  ;;  %v110_v57 = vld [vmem:[%s1529_s2 + $0x298] sm:$0xff] }
  0x95   :  { %582 = vmatpush.msrb.mxu2 %v182_v41  ;;  %560 = vmatpush.msrb.mxu1 %v126_v42  ;;  %v166_v58 = vld [vmem:[%s1529_s2 + $0x458] sm:$0xff]  ;;  %v287_v41 = vperm.slane %v283_v12, 2 }
  0x96   :  { %601 = vmatpush.msrb.mxu3 %v250_v43  ;;  %542 = vmatpush.msrb.mxu0 %v54_v44  ;;  %v234_v59 = vld [vmem:[%s1529_s2 + $0x678] sm:$0xff] }
  0x97   :  { %583 = vmatpush.msrb.mxu2 %v178_v45  ;;  %561 = vmatpush.msrb.mxu1 %v122_v46  ;;  %v38_v61 = vld [vmem:[%s1529_s2 + $0x58] sm:$0xff] }
  0x98   :  { %602 = vmatpush.msrb.mxu3 %v246_v47  ;;  %543 = vmatpush.msrb.mxu0 %v50_v48  ;;  %v106_v62 = vld [vmem:[%s1529_s2 + $0x278] sm:$0xff] }
  0x99   :  { %584 = vmatpush.msrb.mxu2 %v174_v49  ;;  %562 = vmatpush.msrb.mxu1 %v118_v50  ;;  %v162_v63 = vld [vmem:[%s1529_s2 + $0x438] sm:$0xff]  ;;  %v615_v49 = vld [vmem:[%s1533_s1 + $0x10] sm:$0xff]  ;;  %v288_v50 = vperm.slane %v283_v12, 3 }
  0x9a   :  { %603 = vmatpush.msrb.mxu3 %v242_v51  ;;  %509 = vmatmul.f32.vlgmr.msra.gmra.mxu2 %v1067_v60  ;;  %v230_v0 = vld [vmem:[%s1529_s2 + $0x658] sm:$0xff] }
  0x9b   :  { %544 = vmatpush.msrb.mxu0 %v46_v52  ;;  %563 = vmatpush.msrb.mxu1 %v114_v53  ;;  %v34_v3 = vld [vmem:[%s1529_s2 + $0x38] sm:$0xff]  ;;  %v625_v52 = vperm.slane %v621_v18, 2 }
  0x9c   :  { %585 = vmatpush.msrb.mxu2 %v170_v54  ;;  %604 = vmatpush.msrb.mxu3 %v238_v55  ;;  %v102_v4 = vld [vmem:[%s1529_s2 + $0x258] sm:$0xff] }
  0x9d   :  { %469 = vmatmul.f32.vlgmr.msra.gmra.mxu0 %v1084_v1  ;;  %529 = vmatmul.f32.vlgmr.msra.gmra.mxu3 %v1090_v2  ;;  %v158_v5 = vld [vmem:[%s1529_s2 + $0x418] sm:$0xff] }
  0x9e   :  { %545 = vmatpush.msrb.mxu0 %v42_v56  ;;  %564 = vmatpush.msrb.mxu1 %v110_v57  ;;  %v226_v6 = vld [vmem:[%s1529_s2 + $0x638] sm:$0xff] }
  0x9f   :  { %586 = vmatpush.msrb.mxu2 %v166_v58  ;;  %605 = vmatpush.msrb.mxu3 %v234_v59  ;;  %v30_v7 = vld [vmem:[%s1529_s2 + $0x18] sm:$0xff] }
  0xa0   :  { %489 = vmatmul.f32.vlgmr.msra.gmra.mxu1 %v1112_v8  ;;  %546 = vmatpush.msrb.mxu0 %v38_v61  ;;  %v98_v9 = vld [vmem:[%s1529_s2 + $0x238] sm:$0xff] }
  0xa1   :  { %565 = vmatpush.msrb.mxu1 %v106_v62  ;;  %587 = vmatpush.msrb.mxu2 %v162_v63  ;;  %v222_v10 = vld [vmem:[%s1529_s2 + $0x618] sm:$0xff] }
  0xa2   :  { %606 = vmatpush.msrb.mxu3 %v230_v0  ;;  %547 = vmatpush.msrb.mxu0 %v34_v3  ;;  %v94_v11 = vld [vmem:[%s1529_s2 + $0x218] sm:$0xff] }
  0xa3   :  { %566 = vmatpush.msrb.mxu1 %v102_v4  ;;  %588 = vmatpush.msrb.mxu2 %v158_v5  ;;  %v616_v3 = vld [vmem:[%s1533_s1 + $0x18] sm:$0xff]  ;;  %v626_v5 = vperm.slane %v621_v18, 3 }
  0xa4   :  { %607 = vmatpush.msrb.mxu3 %v226_v6  ;;  %589 = vmatmul.f32.vlgmr.msrb.gmra.mxu2 %v1067_v60 }
  0xa5   :  { %548 = vmatpush.msrb.mxu0 %v30_v7  ;;  %567 = vmatpush.msrb.mxu1 %v98_v9 }
  0xa6   :  { %608 = vmatpush.msrb.mxu3 %v222_v10  ;;  %549 = vmatmul.f32.vlgmr.msrb.gmra.mxu0 %v1084_v1 }
  0xa7   :  { %609 = vmatmul.f32.vlgmr.msrb.gmra.mxu3 %v1090_v2  ;;  %568 = vmatpush.msrb.mxu1 %v94_v11  ;;  %v613_v2 = vld [vmem:[%s1533_s1] sm:$0xff] }
  0xa8   :  { %569 = vmatmul.f32.vlgmr.msrb.gmra.mxu1 %v1112_v8  ;;  %v635_v8 = vld [vmem:[%s1534_s5] sm:$0xf] }
  0xa9   :  { %v637_v23 = vperm.slane %v635_v8, 0  ;;  %v638_v38 = vperm.slane %v635_v8, 1  ;;  %v639_v54 = vperm.slane %v635_v8, 2  ;;  %v640_v7 = vperm.slane %v635_v8, 3 }
  0xc2   :  { %v350_v16 = vpop.f32.mrf.mxu2 }
  0xde   :  { %v310_v60 = vpop.f32.mrf.mxu0 }
  0xdf   :  { %v311_v14 = vadd.f32 %v310_v60, %v285_v13 }
  0xe1   :  { %v330_v15 = vpop.f32.mrf.mxu1 }
  0xe2   :  { %v331_v17 = vadd.f32 %v330_v15, %v311_v14 }
  0xe4   :  { %v351_v1 = vadd.f32 %v350_v16, %v331_v17  ;;  %v370_v19 = vpop.f32.mrf.mxu3 }
  0xe6   :  { %v371_v20 = vadd.f32 %v370_v19, %v351_v1 }
  0xe8   :  { %v617_v22 = vadd.f32 %v613_v2, %v371_v20 }
  0xea   :  { %v631_v24 = vmul.f32 %v623_v21, %v617_v22 }
  0xec   :  { %v645_v25 = vadd.f32 %v637_v23, %v631_v24 }
  0xee   :  { %649 = vst [vmem:[%s1535_s6] sm:$0xff] %v645_v25 }
 0x100   :  { %v390_v27 = vpop.f32.mrf.mxu0 }
 0x101   :  { %v391_v28 = vadd.f32 %v390_v27, %v286_v26 }
 0x103   :  { %v410_v29 = vpop.f32.mrf.mxu1  ;;  %v430_v30 = vpop.f32.mrf.mxu2 }
 0x104   :  { %v411_v31 = vadd.f32 %v410_v29, %v391_v28 }
 0x106   :  { %v431_v32 = vadd.f32 %v430_v30, %v411_v31  ;;  %v450_v33 = vpop.f32.mrf.mxu3 }
 0x108   :  { %v451_v35 = vadd.f32 %v450_v33, %v431_v32 }
 0x10a   :  { %v618_v37 = vadd.f32 %v614_v34, %v451_v35 }
 0x10c   :  { %v632_v39 = vmul.f32 %v624_v36, %v618_v37 }
 0x10e   :  { %v646_v40 = vadd.f32 %v638_v38, %v632_v39 }
 0x110   :  { %650 = vst [vmem:[%s1535_s6 + $0x8] sm:$0xff] %v646_v40 }
 0x11a   :  { %v470_v42 = vpop.f32.mrf.mxu0 }
 0x11b   :  { %v471_v43 = vadd.f32 %v470_v42, %v287_v41 }
 0x11d   :  { %v490_v44 = vpop.f32.mrf.mxu1  ;;  %v510_v46 = vpop.f32.mrf.mxu2 }
 0x11e   :  { %v491_v45 = vadd.f32 %v490_v44, %v471_v43 }
 0x120   :  { %v511_v47 = vadd.f32 %v510_v46, %v491_v45  ;;  %v530_v48 = vpop.f32.mrf.mxu3 }
 0x122   :  { %v531_v51 = vadd.f32 %v530_v48, %v511_v47 }
 0x123   :  { %v550_v55 = vpop.f32.mrf.mxu0 }
 0x124   :  { %v619_v53 = vadd.f32 %v615_v49, %v531_v51  ;;  %v551_v56 = vadd.f32 %v550_v55, %v288_v50 }
 0x125   :  { %v570_v58 = vpop.f32.mrf.mxu1 }
 0x126   :  { %v633_v57 = vmul.f32 %v625_v52, %v619_v53  ;;  %v571_v59 = vadd.f32 %v570_v58, %v551_v56 }
 0x127   :  { %v590_v62 = vpop.f32.mrf.mxu2 }
 0x128   :  { %v647_v61 = vadd.f32 %v639_v54, %v633_v57  ;;  %v591_v63 = vadd.f32 %v590_v62, %v571_v59 }
 0x12a   :  { %651 = vst [vmem:[%s1535_s6 + $0x10] sm:$0xff] %v647_v61  ;;  %v610_v0 = vpop.f32.mrf.mxu3 }
 0x12b   :  { %v611_v4 = vadd.f32 %v610_v0, %v591_v63 }
 0x12d   :  { %v620_v6 = vadd.f32 %v616_v3, %v611_v4 }
 0x12f   :  { %v634_v9 = vmul.f32 %v626_v5, %v620_v6 }
 0x131   :  { %v648_v10 = vadd.f32 %v640_v7, %v634_v9 }
 0x133   :  { %652 = vst [vmem:[%s1535_s6 + $0x18] sm:$0xff] %v648_v10 }

// kernel: gwnet_forward.14
= control target key start
LH: loop header
LB: loop body
LE: loop exit
PB: predicated region body
PF: predicated region fallthrough
CT: control target
= control target key end

     0   :  { %vm46_vm0 = vcmask 523264   ;;  %s1131_s1 = inlined_call_operand.vmem [shape: f32[64,64], index: 1, kind: input, shape index: {}]   ;;  %s1132_s2 = inlined_call_operand.vmem [shape: f32[1,64], index: 2, kind: input, shape index: {}]   ;;  %s1133_s0 = inlined_call_operand.vmem [shape: f32[96,64], index: 0, kind: input, shape index: {}]   ;;  %s1134_s3 = inlined_call_operand.vmem [shape: f32[32,64], index: 3, kind: input, shape index: {}]   ;;  %s1135_s4 = inlined_call_operand.vmem [shape: f32[1,64], index: 4, kind: input, shape index: {}]   ;;  %s1136_s5 = inlined_call_operand.vmem [shape: f32[96,32], index: 5, kind: output, shape index: {0}]   ;;  %s1137_s6 = inlined_call_operand.vmem [shape: f32[96,64], index: 6, kind: output, shape index: {1}]  }
   0x1   :  { %v41_v0 = vld [vmem:[%s1131_s1 + $0x38] sm:$0xff]  ;;  %v40_v1 = vld [vmem:[%s1131_s1 + $0x30] sm:$0xff]  ;;  %v39_v2 = vld [vmem:[%s1131_s1 + $0x28] sm:$0xff] }
   0x2   :  { %91 = vmatpush.msra.mxu0 %v41_v0  ;;  %602 = vmatpush.msra.mxu2 %v41_v0  ;;  %v38_v3 = vld [vmem:[%s1131_s1 + $0x20] sm:$0xff]  ;;  %v37_v4 = vld [vmem:[%s1131_s1 + $0x18] sm:$0xff]  ;;  %v36_v5 = vld [vmem:[%s1131_s1 + $0x10] sm:$0xff] }
   0x3   :  { %v35_v6 = vld [vmem:[%s1131_s1 + $0x8] sm:$0xff]  ;;  %v34_v7 = vld [vmem:[%s1131_s1] sm:$0xff]  ;;  %v28_v9 = vld [vmem:[%s1133_s0 + $0x30] sm:$0xff] }
   0x4   :  { %92 = vmatpush.msra.mxu0 %v40_v1  ;;  %603 = vmatpush.msra.mxu2 %v40_v1  ;;  %v22_v8 = vld [vmem:[%s1133_s0] sm:$0xff]  ;;  %v23_v10 = vld [vmem:[%s1133_s0 + $0x8] sm:$0xff]  ;;  %v29_v11 = vld [vmem:[%s1133_s0 + $0x38] sm:$0xff] }
   0x5   :  { %v24_v12 = vld [vmem:[%s1133_s0 + $0x10] sm:$0xff]  ;;  %v30_v13 = vld [vmem:[%s1133_s0 + $0x40] sm:$0xff]  ;;  %v25_v14 = vld [vmem:[%s1133_s0 + $0x18] sm:$0xff] }
   0x6   :  { %93 = vmatpush.msra.mxu0 %v39_v2  ;;  %604 = vmatpush.msra.mxu2 %v39_v2  ;;  %v31_v15 = vld [vmem:[%s1133_s0 + $0x48] sm:$0xff]  ;;  %v26_v16 = vld [vmem:[%s1133_s0 + $0x20] sm:$0xff]  ;;  %v32_v17 = vld [vmem:[%s1133_s0 + $0x50] sm:$0xff] }
   0x7   :  { %v27_v18 = vld [vmem:[%s1133_s0 + $0x28] sm:$0xff]  ;;  %v33_v19 = vld [vmem:[%s1133_s0 + $0x58] sm:$0xff]  ;;  %v800_v20 = vld [vmem:[%s1132_s2] ss:$0 sm:$0xff]  ;;  %s689_s0 = smov 96  }
   0x8   :  { %94 = vmatpush.msra.mxu0 %v38_v3  ;;  %605 = vmatpush.msra.mxu2 %v38_v3 }
   0xa   :  { %95 = vmatpush.msra.mxu0 %v37_v4  ;;  %606 = vmatpush.msra.mxu2 %v37_v4 }
   0xc   :  { %96 = vmatpush.msra.mxu0 %v36_v5  ;;  %607 = vmatpush.msra.mxu2 %v36_v5 }
   0xe   :  { %97 = vmatpush.msra.mxu0 %v35_v6  ;;  %608 = vmatpush.msra.mxu2 %v35_v6 }
  0x10   :  { %98 = vmatpush.msra.mxu0 %v34_v7  ;;  %609 = vmatpush.msra.mxu2 %v34_v7 }
  0x11   :  { %566 = vmatmul.msk.f32.vlgmr.msra.gmra.mxu0 %vm46_vm0, %v22_v8  ;;  %572 = vmatmul.msk.f32.vlgmr.msra.gmra.mxu2 %vm46_vm0, %v28_v9 }
  0x19   :  { %567 = vmatmul.msk.f32.gmra.mxu0 %vm46_vm0, %v23_v10  ;;  %573 = vmatmul.msk.f32.gmra.mxu2 %vm46_vm0, %v29_v11 }
  0x21   :  { %568 = vmatmul.msk.f32.gmra.mxu0 %vm46_vm0, %v24_v12  ;;  %574 = vmatmul.msk.f32.gmra.mxu2 %vm46_vm0, %v30_v13 }
  0x29   :  { %569 = vmatmul.msk.f32.gmra.mxu0 %vm46_vm0, %v25_v14  ;;  %575 = vmatmul.msk.f32.gmra.mxu2 %vm46_vm0, %v31_v15 }
  0x31   :  { %570 = vmatmul.msk.f32.gmra.mxu0 %vm46_vm0, %v26_v16  ;;  %576 = vmatmul.msk.f32.gmra.mxu2 %vm46_vm0, %v32_v17 }
  0x39   :  { %571 = vmatmul.msk.f32.gmra.mxu0 %vm46_vm0, %v27_v18  ;;  %577 = vmatmul.msk.f32.gmra.mxu2 %vm46_vm0, %v33_v19 }
  0x8e   :  { %v100_v21 = vpop.f32.mrf.mxu0 }
  0x8f   :  { %v803_v22 = vadd.f32 %v800_v20, %v100_v21 }
  0x91   :  { %v578_v23 = vmul.f32 -1.442695, %v803_v22 }
  0x93   :  { %617 = vpow2.f32 %v578_v23 }
  0x94   :  { %v118_v24 = vpop.f32.mrf.mxu2 }
  0x95   :  { %v810_v27 = vadd.f32 %v800_v20, %v118_v24 }
  0x96   :  { %v103_v25 = vpop.f32.mrf.mxu0 }
  0x97   :  { %v807_v26 = vadd.f32 %v800_v20, %v103_v25  ;;  %v584_v31 = vmul.f32 -1.442695, %v810_v27 }
  0x99   :  { %v618_v28 = vpop.eup %617  ;;  %v579_v29 = vmul.f32 -1.442695, %v807_v26 }
  0x9a   :  { %v184_v30 = vadd.f32 1.0, %v618_v28 }
  0x9b   :  { %619 = vpow2.f32 %v579_v29 }
  0x9c   :  { %621 = vrcp.f32 %v184_v30  ;;  %v121_v32 = vpop.f32.mrf.mxu2  ;;  %vm201_vm1 = vweird.f32 %v184_v30  ;;  %v205_v47 = vand.u32 2147483647, %v184_v30  ;;  %v207_v48 = vand.u32 2147483648, %v184_v30 }
  0x9d   :  { %v815_v33 = vadd.f32 %v800_v20, %v121_v32  ;;  %623 = vpow2.f32 %v584_v31 }
  0x9e   :  { %v106_v34 = vpop.f32.mrf.mxu0  ;;  %v208_v58 = vor.u32 1.1754944e-38, %v207_v48  ;;  %vm206_vm4 = vcmp.eq.f32.partialorder %v205_v47, 8.507059e+37 }
  0x9f   :  { %v585_v35 = vmul.f32 -1.442695, %v815_v33  ;;  %v819_v36 = vadd.f32 %v800_v20, %v106_v34 }
  0xa1   :  { %v620_v37 = vpop.eup %619  ;;  %625 = vpow2.f32 %v585_v35  ;;  %v580_v38 = vmul.f32 -1.442695, %v819_v36 }
  0xa2   :  { %v622_v39 = vpop.eup %621  ;;  %v185_v40 = vadd.f32 1.0, %v620_v37 }
  0xa3   :  { %v197_v41 = vmul.f32 %v622_v39, %v184_v30  ;;  %v624_v45 = vpop.eup %623  ;;  %vm202_vm2 = vweird.f32 %v622_v39 }
  0xa4   :  { %627 = vrcp.f32 %v185_v40  ;;  %v124_v42 = vpop.f32.mrf.mxu2  ;;  %v831_v54 = vadd.f32 1.0, %v624_v45  ;;  %vm203_vm3 = vmor %vm201_vm1, %vm202_vm2  ;;  %vm216_vm5 = vweird.f32 %v185_v40  ;;  %v220_v4 = vand.u32 2147483647, %v185_v40 }
  0xa5   :  { %629 = vpow2.f32 %v580_v38  ;;  %v823_v43 = vadd.f32 %v800_v20, %v124_v42  ;;  %v198_v44 = vsub.f32 1.0, %v197_v41  ;;  %v222_v5 = vand.u32 2147483648, %v185_v40 }
  0xa6   :  { %v109_v46 = vpop.f32.mrf.mxu0  ;;  %vm221_vm8 = vcmp.eq.f32.partialorder %v220_v4, 8.507059e+37 }
  0xa7   :  { %v626_v49 = vpop.eup %625  ;;  %v586_v50 = vmul.f32 -1.442695, %v823_v43  ;;  %v827_v51 = vadd.f32 %v800_v20, %v109_v46  ;;  %v199_v52 = vmul.f32 %v622_v39, %v198_v44  ;;  %v223_v16 = vor.u32 1.1754944e-38, %v222_v5 }
  0xa8   :  { %v829_v53 = vadd.f32 1.0, %v626_v49 }
  0xa9   :  { %631 = vpow2.f32 %v586_v50  ;;  %v581_v55 = vmul.f32 -1.442695, %v827_v51  ;;  %v200_v56 = vadd.f32 %v622_v39, %v199_v52 }
  0xaa   :  { %v628_v57 = vpop.eup %627  ;;  %633 = vrcp.f32 %v829_v53  ;;  %v310_v17 = vand.u32 2147483647, %v829_v53  ;;  %v312_v24 = vand.u32 2147483648, %v829_v53  ;;  %vm306_vm10 = vweird.f32 %v829_v53 }
  0xab   :  { %v630_v59 = vpop.eup %629  ;;  %v204_v60 = vsel %vm203_vm3, %v622_v39, %v200_v56  ;;  %v212_v61 = vmul.f32 %v628_v57, %v185_v40  ;;  %635 = vpow2.f32 %v581_v55  ;;  %vm217_vm6 = vweird.f32 %v628_v57 }
  0xac   :  { %v836_v62 = vadd.f32 1.0, %v630_v59  ;;  %v127_v63 = vpop.f32.mrf.mxu2  ;;  %v209_v0 = vsel %vm206_vm4, %v208_v58, %v204_v60  ;;  %637 = vrcp.f32 %v831_v54  ;;  %vm218_vm7 = vmor %vm216_vm5, %vm217_vm6  ;;  %vm870_vm11 = vcmp.eq.f32.partialorder %v310_v17, 8.507059e+37 }
  0xad   :  { %v840_v1 = vadd.f32 %v800_v20, %v127_v63  ;;  %388 = vrot.lane.b32.xlu0 %v209_v0, %s689_s0  ;;  %v213_v2 = vsub.f32 1.0, %v212_v61  ;;  %v313_v42 = vor.u32 1.1754944e-38, %v312_v24  ;;  %v452_v61 = vld [vmem:[%s1134_s3 + $0x18] sm:$0xff]  ;;  %v451_v63 = vld [vmem:[%s1134_s3 + $0x10] sm:$0xff] }
  0xae   :  { %639 = vrcp.f32 %v836_v62  ;;  %v112_v3 = vpop.f32.mrf.mxu0  ;;  %vm231_vm13 = vweird.f32 %v836_v62  ;;  %v235_v47 = vand.u32 2147483647, %v836_v62  ;;  %v237_v56 = vand.u32 2147483648, %v836_v62  ;;  %505 = vmatpush.msra.mxu1 %v452_v61  ;;  %610 = vmatpush.msra.mxu3 %v452_v61 }
  0xaf   :  { %v632_v6 = vpop.eup %631  ;;  %v587_v7 = vmul.f32 -1.442695, %v840_v1  ;;  %v846_v8 = vadd.f32 %v800_v20, %v112_v3  ;;  %v214_v9 = vmul.f32 %v628_v57, %v213_v2 }
  0xb0   :  { %v634_v10 = vpop.eup %633  ;;  %v848_v11 = vadd.f32 1.0, %v632_v6  ;;  %vm924_vm3 = vcmp.eq.f32.partialorder %v235_v47, 8.507059e+37  ;;  %506 = vmatpush.msra.mxu1 %v451_v63  ;;  %611 = vmatpush.msra.mxu3 %v451_v63 }
  0xb1   :  { %641 = vpow2.f32 %v587_v7  ;;  %v582_v12 = vmul.f32 -1.442695, %v846_v8  ;;  %v215_v13 = vadd.f32 %v628_v57, %v214_v9  ;;  %v302_v14 = vmul.f32 %v634_v10, %v829_v53  ;;  %v636_v15 = vpop.eup %635 }
  0xb2   :  { %643 = vrcp.f32 %v848_v11  ;;  %v855_v18 = vpop.eup %637  ;;  %v857_v19 = vadd.f32 1.0, %v636_v15  ;;  %vm307_vm9 = vweird.f32 %v634_v10  ;;  %v325_v60 = vand.u32 2147483647, %v848_v11 }
  0xb3   :  { %v219_v21 = vsel %vm218_vm7, %v628_v57, %v215_v13  ;;  %v303_v23 = vsub.f32 1.0, %v302_v14  ;;  %645 = vpow2.f32 %v582_v12  ;;  %v876_v37 = vmul.f32 %v855_v18, %v831_v54  ;;  %vm308_vm12 = vmor %vm306_vm10, %vm307_vm9 }
  0xb4   :  { %v860_v25 = vpop.eup %639  ;;  %v130_v28 = vpop.f32.mrf.mxu2  ;;  %v224_v29 = vsel %vm221_vm8, %v223_v16, %v219_v21  ;;  %647 = vrcp.f32 %v857_v19  ;;  %v327_v2 = vand.u32 2147483648, %v848_v11  ;;  %vm321_vm1 = vweird.f32 %v848_v11 }
  0xb5   :  { %v864_v30 = vadd.f32 %v800_v20, %v130_v28  ;;  %390 = vrot.lane.b32.xlu0 %v224_v29, %s689_s0  ;;  %v304_v31 = vmul.f32 %v634_v10, %v303_v23  ;;  %v227_v32 = vmul.f32 %v860_v25, %v836_v62  ;;  %vm232_vm14 = vweird.f32 %v860_v25 }
  0xb6   :  { %v115_v34 = vpop.f32.mrf.mxu0  ;;  %vm920_vm2 = vmor %vm231_vm13, %vm232_vm14  ;;  %vm326_vm4 = vcmp.eq.f32.partialorder %v325_v60, 8.507059e+37  ;;  %v328_v16 = vor.u32 1.1754944e-38, %v327_v2  ;;  %vm246_vm6 = vweird.f32 %v857_v19  ;;  %v252_v23 = vand.u32 2147483648, %v857_v19 }
  0xb7   :  { %v642_v38 = vpop.eup %641  ;;  %v588_v39 = vmul.f32 -1.442695, %v864_v30  ;;  %v880_v40 = vadd.f32 %v800_v20, %v115_v34  ;;  %v305_v41 = vadd.f32 %v634_v10, %v304_v31  ;;  %v228_v46 = vsub.f32 1.0, %v227_v32 }
  0xb8   :  { %v644_v44 = vpop.eup %643  ;;  %v882_v45 = vadd.f32 1.0, %v642_v38 }
  0xb9   :  { %649 = vpow2.f32 %v588_v39  ;;  %v583_v48 = vmul.f32 -1.442695, %v880_v40  ;;  %v309_v49 = vsel %vm308_vm12, %v634_v10, %v305_v41  ;;  %v317_v50 = vmul.f32 %v644_v44, %v848_v11  ;;  %v646_v52 = vpop.eup %645 }
  0xba   :  { %651 = vrcp.f32 %v882_v45  ;;  %v314_v53 = vsel %vm870_vm11, %v313_v42, %v309_v49  ;;  %v229_v55 = vmul.f32 %v860_v25, %v228_v46  ;;  %v894_v57 = vpop.eup %647  ;;  %v896_v58 = vadd.f32 1.0, %v646_v52 }
  0xbb   :  { %402 = vrot.lane.b32.xlu1 %v314_v53, %s689_s0  ;;  %v318_v59 = vsub.f32 1.0, %v317_v50  ;;  %653 = vpow2.f32 %v583_v48  ;;  %v242_v4 = vmul.f32 %v894_v57, %v857_v19  ;;  %vm322_vm15 = vweird.f32 %v644_v44 }
  0xbc   :  { %v133_v0 = vpop.f32.mrf.mxu2  ;;  %v230_v3 = vadd.f32 %v860_v25, %v229_v55  ;;  %655 = vrcp.f32 %v896_v58  ;;  %v238_v10 = vor.u32 1.1754944e-38, %v237_v56  ;;  %vm323_vm5 = vmor %vm321_vm1, %vm322_vm15  ;;  %v342_v31 = vand.u32 2147483648, %v882_v45 }
  0xbd   :  { %v913_v5 = vadd.f32 %v800_v20, %v133_v0  ;;  %v319_v6 = vmul.f32 %v644_v44, %v318_v59  ;;  %v243_v12 = vsub.f32 1.0, %v242_v4  ;;  %vm247_vm7 = vweird.f32 %v894_v57 }
  0xbe   :  { %v234_v62 = vsel %vm920_vm2, %v860_v25, %v230_v3  ;;  %v250_v39 = vand.u32 2147483647, %v857_v19  ;;  %v288_v42 = vsub.f32 1.0, %v876_v37  ;;  %v340_v46 = vand.u32 2147483647, %v882_v45  ;;  %vm956_vm9 = vmor %vm246_vm6, %vm247_vm7 }
  0xbf   :  { %v650_v20 = vpop.eup %649  ;;  %v589_v13 = vmul.f32 -1.442695, %v913_v5  ;;  %v320_v11 = vadd.f32 %v644_v44, %v319_v6  ;;  %v244_v17 = vmul.f32 %v894_v57, %v243_v12  ;;  %v239_v29 = vsel %vm924_vm3, %v238_v10, %v234_v62 }
  0xc0   :  { %v652_v14 = vpop.eup %651  ;;  %v932_v15 = vadd.f32 1.0, %v650_v20  ;;  %v253_v48 = vor.u32 1.1754944e-38, %v252_v23  ;;  %vm336_vm10 = vweird.f32 %v882_v45  ;;  %v343_v49 = vor.u32 1.1754944e-38, %v342_v31 }
  0xc1   :  { %657 = vpow2.f32 %v589_v13  ;;  %v324_v21 = vsel %vm323_vm5, %v644_v44, %v320_v11  ;;  %v332_v24 = vmul.f32 %v652_v14, %v882_v45  ;;  %v654_v28 = vpop.eup %653  ;;  %v245_v35 = vadd.f32 %v894_v57, %v244_v17 }
  0xc2   :  { %659 = vrcp.f32 %v932_v15  ;;  %v329_v25 = vsel %vm326_vm4, %v328_v16, %v324_v21  ;;  %v656_v32 = vpop.eup %655  ;;  %v943_v34 = vadd.f32 1.0, %v654_v28  ;;  %vm337_vm8 = vweird.f32 %v652_v14 }
  0xc3   :  { %404 = vrot.lane.b32.xlu2 %v329_v25, %s689_s0  ;;  %392 = vrot.lane.b32.xlu1 %v239_v29, %s689_s0  ;;  %v333_v38 = vsub.f32 1.0, %v332_v24  ;;  %v257_v41 = vmul.f32 %v656_v32, %v896_v58  ;;  %v249_v37 = vsel %vm956_vm9, %v894_v57, %v245_v35  ;;  %vm261_vm11 = vweird.f32 %v896_v58  ;;  %vm338_vm12 = vmor %vm336_vm10, %vm337_vm8 }
  0xc4   :  { %661 = vrcp.f32 %v943_v34  ;;  %v267_v55 = vand.u32 2147483648, %v896_v58  ;;  %vm262_vm13 = vweird.f32 %v656_v32  ;;  %v265_v45 = vand.u32 2147483647, %v896_v58 }
  0xc5   :  { %v334_v44 = vmul.f32 %v652_v14, %v333_v38  ;;  %v258_v50 = vsub.f32 1.0, %v257_v41  ;;  %vm251_vm14 = vcmp.eq.f32.partialorder %v250_v39, 8.507059e+37  ;;  %vm341_vm15 = vcmp.eq.f32.partialorder %v340_v46, 8.507059e+37  ;;  %vm263_vm1 = vmor %vm261_vm11, %vm262_vm13 }
  0xc6   :  { %v254_v57 = vsel %vm251_vm14, %v253_v48, %v249_v37  ;;  %v268_v3 = vor.u32 1.1754944e-38, %v267_v55  ;;  %vm266_vm2 = vcmp.eq.f32.partialorder %v265_v45, 8.507059e+37  ;;  %v357_v7 = vand.u32 2147483648, %v932_v15 }
  0xc7   :  { %v658_v52 = vpop.eup %657  ;;  %v335_v53 = vadd.f32 %v652_v14, %v334_v44  ;;  %v259_v59 = vmul.f32 %v656_v32, %v258_v50  ;;  %v355_v20 = vand.u32 2147483647, %v932_v15  ;;  %v289_v11 = vmul.f32 %v855_v18, %v288_v42 }
  0xc8   :  { %v660_v19 = vpop.eup %659  ;;  %v966_v56 = vadd.f32 1.0, %v658_v52  ;;  %vm351_vm4 = vweird.f32 %v932_v15  ;;  %vm276_vm5 = vweird.f32 %v943_v34  ;;  %v282_v62 = vand.u32 2147483648, %v943_v34 }
  0xc9   :  { %v339_v60 = vsel %vm338_vm12, %v652_v14, %v335_v53  ;;  %v347_v61 = vmul.f32 %v660_v19, %v932_v15  ;;  %v260_v0 = vadd.f32 %v656_v32, %v259_v59  ;;  %vm352_vm3 = vweird.f32 %v660_v19 }
  0xca   :  { %663 = vrcp.f32 %v966_v56  ;;  %v344_v63 = vsel %vm341_vm15, %v343_v49, %v339_v60  ;;  %v662_v2 = vpop.eup %661  ;;  %vm353_vm6 = vmor %vm351_vm4, %vm352_vm3  ;;  %v358_v16 = vor.u32 1.1754944e-38, %v357_v7  ;;  %v280_v21 = vand.u32 2147483647, %v943_v34 }
  0xcb   :  { %394 = vrot.lane.b32.xlu2 %v254_v57, %s689_s0  ;;  %406 = vrot.lane.b32.xlu0 %v344_v63, %s689_s0  ;;  %v348_v4 = vsub.f32 1.0, %v347_v61  ;;  %v264_v6 = vsel %vm263_vm1, %v656_v32, %v260_v0  ;;  %v272_v9 = vmul.f32 %v662_v2, %v943_v34  ;;  %vm277_vm7 = vweird.f32 %v662_v2 }
  0xcc   :  { %v269_v10 = vsel %vm266_vm2, %v268_v3, %v264_v6  ;;  %vm356_vm8 = vcmp.eq.f32.partialorder %v355_v20, 8.507059e+37  ;;  %vm291_vm9 = vweird.f32 %v831_v54  ;;  %v295_v15 = vand.u32 2147483647, %v831_v54  ;;  %vm278_vm10 = vmor %vm276_vm5, %vm277_vm7 }
  0xcd   :  { %v349_v12 = vmul.f32 %v660_v19, %v348_v4  ;;  %396 = vrot.lane.b32.xlu1 %v269_v10, %s689_s0  ;;  %v273_v13 = vsub.f32 1.0, %v272_v9  ;;  %v283_v29 = vor.u32 1.1754944e-38, %v282_v62  ;;  %v290_v31 = vadd.f32 %v855_v18, %v289_v11 }
  0xce   :  { %vm292_vm11 = vweird.f32 %v855_v18  ;;  %vm281_vm12 = vcmp.eq.f32.partialorder %v280_v21, 8.507059e+37  ;;  %v297_v38 = vand.u32 2147483648, %v831_v54  ;;  %v372_v39 = vand.u32 2147483648, %v966_v56  ;;  %v450_v54 = vld [vmem:[%s1134_s3 + $0x8] sm:$0xff] }
  0xcf   :  { %v350_v58 = vadd.f32 %v660_v19, %v349_v12  ;;  %v274_v17 = vmul.f32 %v662_v2, %v273_v13  ;;  %v370_v44 = vand.u32 2147483647, %v966_v56  ;;  %vm293_vm14 = vmor %vm291_vm9, %vm292_vm11  ;;  %vm366_vm15 = vweird.f32 %v966_v56  ;;  %507 = vmatpush.msra.mxu1 %v450_v54  ;;  %612 = vmatpush.msra.mxu3 %v450_v54 }
  0xd0   :  { %v664_v14 = vpop.eup %663  ;;  %v294_v34 = vsel %vm293_vm14, %v855_v18, %v290_v31  ;;  %v298_v47 = vor.u32 1.1754944e-38, %v297_v38  ;;  %v373_v48 = vor.u32 1.1754944e-38, %v372_v39  ;;  %vm296_vm2 = vcmp.eq.f32.partialorder %v295_v15, 8.507059e+37  ;;  %v449_v18 = vld [vmem:[%s1134_s3] sm:$0xff] }
  0xd1   :  { %v354_v23 = vsel %vm353_vm6, %v660_v19, %v350_v58  ;;  %v362_v24 = vmul.f32 %v664_v14, %v966_v56  ;;  %v275_v25 = vadd.f32 %v662_v2, %v274_v17  ;;  %vm367_vm13 = vweird.f32 %v664_v14  ;;  %508 = vmatpush.msra.mxu1 %v449_v18  ;;  %613 = vmatpush.msra.mxu3 %v449_v18 }
  0xd2   :  { %v359_v28 = vsel %vm356_vm8, %v358_v16, %v354_v23  ;;  %vm368_vm1 = vmor %vm366_vm15, %vm367_vm13  ;;  %vm371_vm3 = vcmp.eq.f32.partialorder %v370_v44, 8.507059e+37  ;;  %v299_v50 = vsel %vm296_vm2, %v298_v47, %v294_v34  ;;  %665 = vtanh.f32 %v823_v43 }
  0xd3   :  { %408 = vrot.lane.b32.xlu2 %v359_v28, %s689_s0  ;;  %v363_v32 = vsub.f32 1.0, %v362_v24  ;;  %v279_v35 = vsel %vm278_vm10, %v662_v2, %v275_v25  ;;  %667 = vtanh.f32 %v803_v22  ;;  %vm436_vm4 = vcmask 261120  }
  0xd4   :  { %v284_v41 = vsel %vm281_vm12, %v283_v29, %v279_v35  ;;  %669 = vtanh.f32 %v827_v51 }
  0xd5   :  { %v364_v42 = vmul.f32 %v664_v14, %v363_v32  ;;  %398 = vrot.lane.b32.xlu0 %v284_v41, %s689_s0  ;;  %671 = vtanh.f32 %v807_v26 }
  0xd6   :  { %673 = vtanh.f32 %v815_v33 }
  0xd7   :  { %v365_v46 = vadd.f32 %v664_v14, %v364_v42  ;;  %675 = vtanh.f32 %v864_v30 }
  0xd8   :  { %v666_v37 = vpop.eup %665  ;;  %677 = vtanh.f32 %v810_v27 }
  0xd9   :  { %v369_v49 = vsel %vm368_vm1, %v664_v14, %v365_v46  ;;  %v668_v19 = vpop.eup %667  ;;  %679 = vtanh.f32 %v819_v36 }
  0xda   :  { %v374_v52 = vsel %vm371_vm3, %v373_v48, %v369_v49  ;;  %v670_v22 = vpop.eup %669  ;;  %681 = vtanh.f32 %v840_v1 }
  0xdb   :  { %400 = vrot.lane.b32.xlu2 %v299_v50, %s689_s0  ;;  %410 = vrot.lane.b32.xlu1 %v374_v52, %s689_s0  ;;  %v672_v45 = vpop.eup %671  ;;  %683 = vtanh.f32 %v846_v8 }
  0xdc   :  { %v674_v61 = vpop.eup %673  ;;  %685 = vtanh.f32 %v880_v40 }
  0xdd   :  { %v676_v33 = vpop.eup %675  ;;  %687 = vtanh.f32 %v913_v5  ;;  %v616_v5 = vld [vmem:[%s1135_s4] ss:$0 sm:$0xff] }
  0xde   :  { %v678_v2 = vpop.eup %677 }
  0xdf   :  { %v680_v3 = vpop.eup %679 }
  0xe0   :  { %v682_v36 = vpop.eup %681 }
  0xe1   :  { %v684_v1 = vpop.eup %683 }
  0xe2   :  { %v686_v8 = vpop.eup %685 }
  0xe3   :  { %v688_v40 = vpop.eup %687 }
 0x11d   :  { %v405_v53 = vpop.permute.xlu2 %404 }
 0x11e   :  { %v432_v55 = vmul.f32 %v666_v37, %v405_v53 }
 0x11f   :  { %v389_v56 = vpop.permute.xlu0 %388 }
 0x120   :  { %445 = vst.msk [vmem:[%s1136_s5 + $0x40] sm:$0xff] %vm436_vm4, %v432_v55  ;;  %v424_v59 = vmul.f32 %v668_v19, %v389_v56 }
 0x122   :  { %437 = vst.msk [vmem:[%s1136_s5] sm:$0xff] %vm436_vm4, %v424_v59  ;;  %590 = vmatmul.msk.f32.vlgmr.msra.gmra.mxu1 %vm436_vm4, %v424_v59 }
 0x125   :  { %v395_v43 = vpop.permute.xlu2 %394 }
 0x126   :  { %v427_v51 = vmul.f32 %v670_v22, %v395_v43 }
 0x127   :  { %v391_v60 = vpop.permute.xlu0 %390 }
 0x128   :  { %440 = vst.msk [vmem:[%s1136_s5 + $0x18] sm:$0xff] %vm436_vm4, %v427_v51  ;;  %v425_v26 = vmul.f32 %v672_v45, %v391_v60 }
 0x12a   :  { %438 = vst.msk [vmem:[%s1136_s5 + $0x8] sm:$0xff] %vm436_vm4, %v425_v26  ;;  %591 = vmatmul.msk.f32.gmra.mxu1 %vm436_vm4, %v425_v26 }
 0x12d   :  { %v403_v57 = vpop.permute.xlu1 %402  ;;  %v409_v63 = vpop.permute.xlu2 %408 }
 0x12e   :  { %v431_v30 = vmul.f32 %v674_v61, %v403_v57  ;;  %v434_v0 = vmul.f32 %v676_v33, %v409_v63 }
 0x130   :  { %444 = vst.msk [vmem:[%s1136_s5 + $0x38] sm:$0xff] %vm436_vm4, %v431_v30  ;;  %597 = vmatmul.msk.f32.vlgmr.msra.gmra.mxu3 %vm436_vm4, %v431_v30 }
 0x131   :  { %447 = vst.msk [vmem:[%s1136_s5 + $0x50] sm:$0xff] %vm436_vm4, %v434_v0 }
 0x135   :  { %v401_v4 = vpop.permute.xlu2 %400  ;;  %v393_v27 = vpop.permute.xlu1 %392 }
 0x136   :  { %v430_v6 = vmul.f32 %v678_v2, %v401_v4  ;;  %v426_v7 = vmul.f32 %v680_v3, %v393_v27 }
 0x138   :  { %443 = vst.msk [vmem:[%s1136_s5 + $0x30] sm:$0xff] %vm436_vm4, %v430_v6  ;;  %592 = vmatmul.msk.f32.gmra.mxu1 %vm436_vm4, %v426_v7  ;;  %598 = vmatmul.msk.f32.gmra.mxu3 %vm436_vm4, %v432_v55 }
 0x139   :  { %439 = vst.msk [vmem:[%s1136_s5 + $0x10] sm:$0xff] %vm436_vm4, %v426_v7 }
 0x13d   :  { %v407_v9 = vpop.permute.xlu0 %406 }
 0x13e   :  { %v433_v10 = vmul.f32 %v682_v36, %v407_v9 }
 0x13f   :  { %v397_v12 = vpop.permute.xlu1 %396 }
 0x140   :  { %446 = vst.msk [vmem:[%s1136_s5 + $0x48] sm:$0xff] %vm436_vm4, %v433_v10  ;;  %593 = vmatmul.msk.f32.gmra.mxu1 %vm436_vm4, %v427_v51  ;;  %599 = vmatmul.msk.f32.gmra.mxu3 %vm436_vm4, %v433_v10  ;;  %v428_v20 = vmul.f32 %v684_v1, %v397_v12 }
 0x142   :  { %441 = vst.msk [vmem:[%s1136_s5 + $0x20] sm:$0xff] %vm436_vm4, %v428_v20 }
 0x147   :  { %v399_v13 = vpop.permute.xlu0 %398 }
 0x148   :  { %594 = vmatmul.msk.f32.gmra.mxu1 %vm436_vm4, %v428_v20  ;;  %600 = vmatmul.msk.f32.gmra.mxu3 %vm436_vm4, %v434_v0  ;;  %v429_v11 = vmul.f32 %v686_v8, %v399_v13 }
 0x14a   :  { %442 = vst.msk [vmem:[%s1136_s5 + $0x28] sm:$0xff] %vm436_vm4, %v429_v11 }
 0x14d   :  { %v411_v58 = vpop.permute.xlu1 %410 }
 0x14e   :  { %v435_v62 = vmul.f32 %v688_v40, %v411_v58 }
 0x150   :  { %448 = vst.msk [vmem:[%s1136_s5 + $0x58] sm:$0xff] %vm436_vm4, %v435_v62  ;;  %595 = vmatmul.msk.f32.gmra.mxu1 %vm436_vm4, %v429_v11  ;;  %601 = vmatmul.msk.f32.gmra.mxu3 %vm436_vm4, %v435_v62 }
 0x158   :  { %596 = vmatmul.msk.f32.gmra.mxu1 %vm436_vm4, %v430_v6 }
 0x19f   :  { %v510_v14 = vpop.f32.mrf.mxu1 }
 0x1a0   :  { %v511_v16 = vadd.f32 %v616_v5, %v510_v14 }
 0x1a2   :  { %546 = vst.msk [vmem:[%s1137_s6] sm:$0xff] %vm46_vm0, %v511_v16 }
 0x1a7   :  { %v513_v17 = vpop.f32.mrf.mxu1 }
 0x1a8   :  { %v514_v21 = vadd.f32 %v616_v5, %v513_v17 }
 0x1aa   :  { %547 = vst.msk [vmem:[%s1137_s6 + $0x8] sm:$0xff] %vm46_vm0, %v514_v21 }
 0x1b3   :  { %v531_v23 = vpop.f32.mrf.mxu3 }
 0x1b4   :  { %v532_v24 = vadd.f32 %v616_v5, %v531_v23 }
 0x1b5   :  { %v516_v28 = vpop.f32.mrf.mxu1 }
 0x1b6   :  { %553 = vst.msk [vmem:[%s1137_s6 + $0x38] sm:$0xff] %vm46_vm0, %v532_v24  ;;  %v517_v25 = vadd.f32 %v616_v5, %v516_v28 }
 0x1b8   :  { %548 = vst.msk [vmem:[%s1137_s6 + $0x10] sm:$0xff] %vm46_vm0, %v517_v25 }
 0x1bb   :  { %v534_v15 = vpop.f32.mrf.mxu3 }
 0x1bc   :  { %v535_v29 = vadd.f32 %v616_v5, %v534_v15 }
 0x1bd   :  { %v519_v31 = vpop.f32.mrf.mxu1 }
 0x1be   :  { %554 = vst.msk [vmem:[%s1137_s6 + $0x40] sm:$0xff] %vm46_vm0, %v535_v29  ;;  %v520_v32 = vadd.f32 %v616_v5, %v519_v31 }
 0x1c0   :  { %549 = vst.msk [vmem:[%s1137_s6 + $0x18] sm:$0xff] %vm46_vm0, %v520_v32 }
 0x1c3   :  { %v537_v35 = vpop.f32.mrf.mxu3 }
 0x1c4   :  { %v538_v38 = vadd.f32 %v616_v5, %v537_v35 }
 0x1c5   :  { %v522_v39 = vpop.f32.mrf.mxu1 }
 0x1c6   :  { %555 = vst.msk [vmem:[%s1137_s6 + $0x48] sm:$0xff] %vm46_vm0, %v538_v38  ;;  %v523_v41 = vadd.f32 %v616_v5, %v522_v39 }
 0x1c8   :  { %550 = vst.msk [vmem:[%s1137_s6 + $0x20] sm:$0xff] %vm46_vm0, %v523_v41 }
 0x1cb   :  { %v540_v42 = vpop.f32.mrf.mxu3 }
 0x1cc   :  { %v541_v44 = vadd.f32 %v616_v5, %v540_v42 }
 0x1cd   :  { %v525_v34 = vpop.f32.mrf.mxu1 }
 0x1ce   :  { %556 = vst.msk [vmem:[%s1137_s6 + $0x50] sm:$0xff] %vm46_vm0, %v541_v44  ;;  %v526_v46 = vadd.f32 %v616_v5, %v525_v34 }
 0x1d0   :  { %551 = vst.msk [vmem:[%s1137_s6 + $0x28] sm:$0xff] %vm46_vm0, %v526_v46 }
 0x1d3   :  { %v543_v47 = vpop.f32.mrf.mxu3 }
 0x1d4   :  { %v544_v48 = vadd.f32 %v616_v5, %v543_v47 }
 0x1d5   :  { %v528_v49 = vpop.f32.mrf.mxu1 }
 0x1d6   :  { %557 = vst.msk [vmem:[%s1137_s6 + $0x58] sm:$0xff] %vm46_vm0, %v544_v48  ;;  %v529_v50 = vadd.f32 %v616_v5, %v528_v49 }
 0x1d8   :  { %552 = vst.msk [vmem:[%s1137_s6 + $0x30] sm:$0xff] %vm46_vm0, %v529_v50 }

// kernel: gwnet_forward.15
= control target key start
LH: loop header
LB: loop body
LE: loop exit
PB: predicated region body
PF: predicated region fallthrough
CT: control target
= control target key end

     0   :  { %s1529_s2 = inlined_call_operand.vmem [shape: f32[512,512], index: 2, kind: input, shape index: {}]   ;;  %s1530_s0 = inlined_call_operand.vmem [shape: f32[6,512], index: 0, kind: input, shape index: {}]   ;;  %s1531_s3 = inlined_call_operand.vmem [shape: f32[1,512], index: 3, kind: input, shape index: {}]   ;;  %s1532_s4 = inlined_call_operand.vmem [shape: f32[1,512], index: 4, kind: input, shape index: {}]   ;;  %s1533_s1 = inlined_call_operand.vmem [shape: f32[6,512], index: 1, kind: input, shape index: {}]   ;;  %s1534_s5 = inlined_call_operand.vmem [shape: f32[1,512], index: 5, kind: input, shape index: {}]   ;;  %s1535_s6 = inlined_call_operand.vmem [shape: f32[6,512], index: 6, kind: output, shape index: {}]  }
   0x1   :  { %v215_v0 = vld [vmem:[%s1529_s2 + $0x5e0] sm:$0xff]  ;;  %v216_v62 = vld [vmem:[%s1529_s2 + $0x5e8] sm:$0xff] }
   0x2   :  { %v87_v1 = vld [vmem:[%s1529_s2 + $0x1e0] sm:$0xff]  ;;  %333 = vmatpush.msra.mxu2 %v215_v0  ;;  %v88_v0 = vld [vmem:[%s1529_s2 + $0x1e8] sm:$0xff] }
   0x3   :  { %v211_v2 = vld [vmem:[%s1529_s2 + $0x5c0] sm:$0xff]  ;;  %293 = vmatpush.msra.mxu0 %v87_v1  ;;  %v280_v1 = vld [vmem:[%s1529_s2 + $0x7e8] sm:$0xff] }
   0x4   :  { %v279_v3 = vld [vmem:[%s1529_s2 + $0x7e0] sm:$0xff]  ;;  %334 = vmatpush.msra.mxu2 %v211_v2  ;;  %v212_v2 = vld [vmem:[%s1529_s2 + $0x5c8] sm:$0xff] }
   0x5   :  { %v83_v4 = vld [vmem:[%s1529_s2 + $0x1c0] sm:$0xff]  ;;  %353 = vmatpush.msra.mxu3 %v279_v3 }
   0x6   :  { %v151_v5 = vld [vmem:[%s1529_s2 + $0x3e0] sm:$0xff]  ;;  %294 = vmatpush.msra.mxu0 %v83_v4  ;;  %v84_v4 = vld [vmem:[%s1529_s2 + $0x1c8] sm:$0xff] }
   0x7   :  { %313 = vmatpush.msra.mxu1 %v151_v5  ;;  %v207_v6 = vld [vmem:[%s1529_s2 + $0x5a0] sm:$0xff]  ;;  %v152_v5 = vld [vmem:[%s1529_s2 + $0x3e8] sm:$0xff] }
   0x8   :  { %v275_v7 = vld [vmem:[%s1529_s2 + $0x7c0] sm:$0xff]  ;;  %335 = vmatpush.msra.mxu2 %v207_v6  ;;  %v208_v6 = vld [vmem:[%s1529_s2 + $0x5a8] sm:$0xff] }
   0x9   :  { %v79_v8 = vld [vmem:[%s1529_s2 + $0x1a0] sm:$0xff]  ;;  %354 = vmatpush.msra.mxu3 %v275_v7  ;;  %v276_v7 = vld [vmem:[%s1529_s2 + $0x7c8] sm:$0xff] }
   0xa   :  { %v147_v9 = vld [vmem:[%s1529_s2 + $0x3c0] sm:$0xff]  ;;  %295 = vmatpush.msra.mxu0 %v79_v8  ;;  %v80_v8 = vld [vmem:[%s1529_s2 + $0x1a8] sm:$0xff] }
   0xb   :  { %v271_v10 = vld [vmem:[%s1529_s2 + $0x7a0] sm:$0xff]  ;;  %314 = vmatpush.msra.mxu1 %v147_v9  ;;  %v148_v9 = vld [vmem:[%s1529_s2 + $0x3c8] sm:$0xff] }
   0xc   :  { %v203_v11 = vld [vmem:[%s1529_s2 + $0x580] sm:$0xff]  ;;  %355 = vmatpush.msra.mxu3 %v271_v10  ;;  %v204_v10 = vld [vmem:[%s1529_s2 + $0x588] sm:$0xff] }
   0xd   :  { %v75_v12 = vld [vmem:[%s1529_s2 + $0x180] sm:$0xff]  ;;  %336 = vmatpush.msra.mxu2 %v203_v11  ;;  %v272_v11 = vld [vmem:[%s1529_s2 + $0x7a8] sm:$0xff] }
   0xe   :  { %v143_v13 = vld [vmem:[%s1529_s2 + $0x3a0] sm:$0xff]  ;;  %296 = vmatpush.msra.mxu0 %v75_v12  ;;  %v76_v12 = vld [vmem:[%s1529_s2 + $0x188] sm:$0xff] }
   0xf   :  { %v267_v14 = vld [vmem:[%s1529_s2 + $0x780] sm:$0xff]  ;;  %315 = vmatpush.msra.mxu1 %v143_v13  ;;  %v144_v13 = vld [vmem:[%s1529_s2 + $0x3a8] sm:$0xff] }
  0x10   :  { %v139_v15 = vld [vmem:[%s1529_s2 + $0x380] sm:$0xff]  ;;  %356 = vmatpush.msra.mxu3 %v267_v14  ;;  %v200_v14 = vld [vmem:[%s1529_s2 + $0x568] sm:$0xff] }
  0x11   :  { %v199_v16 = vld [vmem:[%s1529_s2 + $0x560] sm:$0xff]  ;;  %316 = vmatpush.msra.mxu1 %v139_v15  ;;  %v268_v15 = vld [vmem:[%s1529_s2 + $0x788] sm:$0xff] }
  0x12   :  { %v71_v17 = vld [vmem:[%s1529_s2 + $0x160] sm:$0xff]  ;;  %337 = vmatpush.msra.mxu2 %v199_v16  ;;  %v72_v16 = vld [vmem:[%s1529_s2 + $0x168] sm:$0xff] }
  0x13   :  { %v263_v18 = vld [vmem:[%s1529_s2 + $0x760] sm:$0xff]  ;;  %297 = vmatpush.msra.mxu0 %v71_v17  ;;  %v140_v17 = vld [vmem:[%s1529_s2 + $0x388] sm:$0xff] }
  0x14   :  { %v135_v19 = vld [vmem:[%s1529_s2 + $0x360] sm:$0xff]  ;;  %357 = vmatpush.msra.mxu3 %v263_v18  ;;  %v196_v18 = vld [vmem:[%s1529_s2 + $0x548] sm:$0xff] }
  0x15   :  { %v195_v20 = vld [vmem:[%s1529_s2 + $0x540] sm:$0xff]  ;;  %317 = vmatpush.msra.mxu1 %v135_v19  ;;  %v264_v19 = vld [vmem:[%s1529_s2 + $0x768] sm:$0xff] }
  0x16   :  { %v67_v21 = vld [vmem:[%s1529_s2 + $0x140] sm:$0xff]  ;;  %338 = vmatpush.msra.mxu2 %v195_v20  ;;  %v68_v20 = vld [vmem:[%s1529_s2 + $0x148] sm:$0xff] }
  0x17   :  { %v259_v22 = vld [vmem:[%s1529_s2 + $0x740] sm:$0xff]  ;;  %298 = vmatpush.msra.mxu0 %v67_v21  ;;  %v136_v21 = vld [vmem:[%s1529_s2 + $0x368] sm:$0xff] }
  0x18   :  { %v131_v23 = vld [vmem:[%s1529_s2 + $0x340] sm:$0xff]  ;;  %358 = vmatpush.msra.mxu3 %v259_v22  ;;  %v192_v22 = vld [vmem:[%s1529_s2 + $0x528] sm:$0xff] }
  0x19   :  { %v191_v24 = vld [vmem:[%s1529_s2 + $0x520] sm:$0xff]  ;;  %318 = vmatpush.msra.mxu1 %v131_v23  ;;  %v260_v23 = vld [vmem:[%s1529_s2 + $0x748] sm:$0xff] }
  0x1a   :  { %v63_v25 = vld [vmem:[%s1529_s2 + $0x120] sm:$0xff]  ;;  %339 = vmatpush.msra.mxu2 %v191_v24  ;;  %v64_v24 = vld [vmem:[%s1529_s2 + $0x128] sm:$0xff] }
  0x1b   :  { %v255_v26 = vld [vmem:[%s1529_s2 + $0x720] sm:$0xff]  ;;  %299 = vmatpush.msra.mxu0 %v63_v25  ;;  %v132_v25 = vld [vmem:[%s1529_s2 + $0x348] sm:$0xff] }
  0x1c   :  { %v127_v27 = vld [vmem:[%s1529_s2 + $0x320] sm:$0xff]  ;;  %359 = vmatpush.msra.mxu3 %v255_v26  ;;  %v188_v26 = vld [vmem:[%s1529_s2 + $0x508] sm:$0xff] }
  0x1d   :  { %v187_v28 = vld [vmem:[%s1529_s2 + $0x500] sm:$0xff]  ;;  %319 = vmatpush.msra.mxu1 %v127_v27  ;;  %v256_v27 = vld [vmem:[%s1529_s2 + $0x728] sm:$0xff] }
  0x1e   :  { %v59_v29 = vld [vmem:[%s1529_s2 + $0x100] sm:$0xff]  ;;  %340 = vmatpush.msra.mxu2 %v187_v28  ;;  %v60_v28 = vld [vmem:[%s1529_s2 + $0x108] sm:$0xff] }
  0x1f   :  { %v251_v30 = vld [vmem:[%s1529_s2 + $0x700] sm:$0xff]  ;;  %300 = vmatpush.msra.mxu0 %v59_v29  ;;  %v128_v29 = vld [vmem:[%s1529_s2 + $0x328] sm:$0xff] }
  0x20   :  { %v123_v31 = vld [vmem:[%s1529_s2 + $0x300] sm:$0xff]  ;;  %360 = vmatpush.msra.mxu3 %v251_v30  ;;  %v184_v30 = vld [vmem:[%s1529_s2 + $0x4e8] sm:$0xff] }
  0x21   :  { %v183_v32 = vld [vmem:[%s1529_s2 + $0x4e0] sm:$0xff]  ;;  %320 = vmatpush.msra.mxu1 %v123_v31  ;;  %v252_v31 = vld [vmem:[%s1529_s2 + $0x708] sm:$0xff] }
  0x22   :  { %v55_v33 = vld [vmem:[%s1529_s2 + $0xe0] sm:$0xff]  ;;  %341 = vmatpush.msra.mxu2 %v183_v32  ;;  %v56_v32 = vld [vmem:[%s1529_s2 + $0xe8] sm:$0xff] }
  0x23   :  { %v247_v34 = vld [vmem:[%s1529_s2 + $0x6e0] sm:$0xff]  ;;  %301 = vmatpush.msra.mxu0 %v55_v33  ;;  %v124_v33 = vld [vmem:[%s1529_s2 + $0x308] sm:$0xff] }
  0x24   :  { %v119_v35 = vld [vmem:[%s1529_s2 + $0x2e0] sm:$0xff]  ;;  %361 = vmatpush.msra.mxu3 %v247_v34  ;;  %v180_v34 = vld [vmem:[%s1529_s2 + $0x4c8] sm:$0xff] }
  0x25   :  { %v179_v36 = vld [vmem:[%s1529_s2 + $0x4c0] sm:$0xff]  ;;  %321 = vmatpush.msra.mxu1 %v119_v35  ;;  %v248_v35 = vld [vmem:[%s1529_s2 + $0x6e8] sm:$0xff] }
  0x26   :  { %v51_v37 = vld [vmem:[%s1529_s2 + $0xc0] sm:$0xff]  ;;  %342 = vmatpush.msra.mxu2 %v179_v36  ;;  %v52_v36 = vld [vmem:[%s1529_s2 + $0xc8] sm:$0xff] }
  0x27   :  { %v243_v38 = vld [vmem:[%s1529_s2 + $0x6c0] sm:$0xff]  ;;  %302 = vmatpush.msra.mxu0 %v51_v37  ;;  %v120_v37 = vld [vmem:[%s1529_s2 + $0x2e8] sm:$0xff] }
  0x28   :  { %v115_v39 = vld [vmem:[%s1529_s2 + $0x2c0] sm:$0xff]  ;;  %362 = vmatpush.msra.mxu3 %v243_v38  ;;  %v176_v38 = vld [vmem:[%s1529_s2 + $0x4a8] sm:$0xff] }
  0x29   :  { %v175_v40 = vld [vmem:[%s1529_s2 + $0x4a0] sm:$0xff]  ;;  %322 = vmatpush.msra.mxu1 %v115_v39  ;;  %v244_v39 = vld [vmem:[%s1529_s2 + $0x6c8] sm:$0xff] }
  0x2a   :  { %v47_v41 = vld [vmem:[%s1529_s2 + $0xa0] sm:$0xff]  ;;  %343 = vmatpush.msra.mxu2 %v175_v40  ;;  %v48_v40 = vld [vmem:[%s1529_s2 + $0xa8] sm:$0xff] }
  0x2b   :  { %v239_v42 = vld [vmem:[%s1529_s2 + $0x6a0] sm:$0xff]  ;;  %303 = vmatpush.msra.mxu0 %v47_v41  ;;  %v116_v41 = vld [vmem:[%s1529_s2 + $0x2c8] sm:$0xff] }
  0x2c   :  { %v111_v43 = vld [vmem:[%s1529_s2 + $0x2a0] sm:$0xff]  ;;  %363 = vmatpush.msra.mxu3 %v239_v42  ;;  %v172_v42 = vld [vmem:[%s1529_s2 + $0x488] sm:$0xff] }
  0x2d   :  { %v171_v44 = vld [vmem:[%s1529_s2 + $0x480] sm:$0xff]  ;;  %323 = vmatpush.msra.mxu1 %v111_v43  ;;  %v240_v43 = vld [vmem:[%s1529_s2 + $0x6a8] sm:$0xff] }
  0x2e   :  { %v43_v45 = vld [vmem:[%s1529_s2 + $0x80] sm:$0xff]  ;;  %344 = vmatpush.msra.mxu2 %v171_v44  ;;  %v44_v44 = vld [vmem:[%s1529_s2 + $0x88] sm:$0xff] }
  0x2f   :  { %v235_v46 = vld [vmem:[%s1529_s2 + $0x680] sm:$0xff]  ;;  %304 = vmatpush.msra.mxu0 %v43_v45  ;;  %v112_v45 = vld [vmem:[%s1529_s2 + $0x2a8] sm:$0xff] }
  0x30   :  { %v107_v47 = vld [vmem:[%s1529_s2 + $0x280] sm:$0xff]  ;;  %364 = vmatpush.msra.mxu3 %v235_v46  ;;  %v168_v46 = vld [vmem:[%s1529_s2 + $0x468] sm:$0xff] }
  0x31   :  { %v167_v48 = vld [vmem:[%s1529_s2 + $0x460] sm:$0xff]  ;;  %324 = vmatpush.msra.mxu1 %v107_v47  ;;  %v236_v47 = vld [vmem:[%s1529_s2 + $0x688] sm:$0xff] }
  0x32   :  { %v39_v49 = vld [vmem:[%s1529_s2 + $0x60] sm:$0xff]  ;;  %345 = vmatpush.msra.mxu2 %v167_v48  ;;  %v40_v48 = vld [vmem:[%s1529_s2 + $0x68] sm:$0xff] }
  0x33   :  { %v231_v50 = vld [vmem:[%s1529_s2 + $0x660] sm:$0xff]  ;;  %305 = vmatpush.msra.mxu0 %v39_v49  ;;  %v108_v49 = vld [vmem:[%s1529_s2 + $0x288] sm:$0xff] }
  0x34   :  { %v103_v51 = vld [vmem:[%s1529_s2 + $0x260] sm:$0xff]  ;;  %365 = vmatpush.msra.mxu3 %v231_v50  ;;  %v164_v50 = vld [vmem:[%s1529_s2 + $0x448] sm:$0xff] }
  0x35   :  { %v163_v52 = vld [vmem:[%s1529_s2 + $0x440] sm:$0xff]  ;;  %325 = vmatpush.msra.mxu1 %v103_v51  ;;  %v232_v51 = vld [vmem:[%s1529_s2 + $0x668] sm:$0xff] }
  0x36   :  { %v35_v53 = vld [vmem:[%s1529_s2 + $0x40] sm:$0xff]  ;;  %346 = vmatpush.msra.mxu2 %v163_v52  ;;  %v36_v52 = vld [vmem:[%s1529_s2 + $0x48] sm:$0xff] }
  0x37   :  { %v227_v54 = vld [vmem:[%s1529_s2 + $0x640] sm:$0xff]  ;;  %306 = vmatpush.msra.mxu0 %v35_v53  ;;  %v104_v53 = vld [vmem:[%s1529_s2 + $0x268] sm:$0xff] }
  0x38   :  { %v99_v55 = vld [vmem:[%s1529_s2 + $0x240] sm:$0xff]  ;;  %366 = vmatpush.msra.mxu3 %v227_v54  ;;  %v160_v54 = vld [vmem:[%s1529_s2 + $0x428] sm:$0xff] }
  0x39   :  { %v159_v56 = vld [vmem:[%s1529_s2 + $0x420] sm:$0xff]  ;;  %326 = vmatpush.msra.mxu1 %v99_v55  ;;  %v228_v55 = vld [vmem:[%s1529_s2 + $0x648] sm:$0xff] }
  0x3a   :  { %v31_v57 = vld [vmem:[%s1529_s2 + $0x20] sm:$0xff]  ;;  %347 = vmatpush.msra.mxu2 %v159_v56  ;;  %v32_v56 = vld [vmem:[%s1529_s2 + $0x28] sm:$0xff] }
  0x3b   :  { %v223_v58 = vld [vmem:[%s1529_s2 + $0x620] sm:$0xff]  ;;  %307 = vmatpush.msra.mxu0 %v31_v57  ;;  %v100_v57 = vld [vmem:[%s1529_s2 + $0x248] sm:$0xff] }
  0x3c   :  { %v95_v59 = vld [vmem:[%s1529_s2 + $0x220] sm:$0xff]  ;;  %367 = vmatpush.msra.mxu3 %v223_v58  ;;  %v156_v58 = vld [vmem:[%s1529_s2 + $0x408] sm:$0xff] }
  0x3d   :  { %v155_v60 = vld [vmem:[%s1529_s2 + $0x400] sm:$0xff]  ;;  %327 = vmatpush.msra.mxu1 %v95_v59  ;;  %v224_v59 = vld [vmem:[%s1529_s2 + $0x628] sm:$0xff] }
  0x3e   :  { %v27_v61 = vld [vmem:[%s1529_s2] sm:$0xff]  ;;  %348 = vmatpush.msra.mxu2 %v155_v60  ;;  %v1067_v60 = vld [vmem:[%s1530_s0 + $0x10] sm:$0x3f] }
  0x3f   :  { %v219_v63 = vld [vmem:[%s1529_s2 + $0x600] sm:$0xff]  ;;  %308 = vmatpush.msra.mxu0 %v27_v61  ;;  %v28_v61 = vld [vmem:[%s1529_s2 + $0x8] sm:$0xff]  ;;  %349 = vmatmul.f32.vlgmr.msra.gmra.mxu2 %v1067_v60 }
  0x40   :  { %v91_v3 = vld [vmem:[%s1529_s2 + $0x200] sm:$0xff]  ;;  %413 = vmatpush.msrb.mxu2 %v216_v62  ;;  %368 = vmatpush.msra.mxu3 %v219_v63  ;;  %v217_v62 = vld [vmem:[%s1529_s2 + $0x5f0] sm:$0xff]  ;;  %v96_v63 = vld [vmem:[%s1529_s2 + $0x228] sm:$0xff] }
  0x41   :  { %373 = vmatpush.msrb.mxu0 %v88_v0  ;;  %328 = vmatpush.msra.mxu1 %v91_v3  ;;  %v220_v0 = vld [vmem:[%s1529_s2 + $0x608] sm:$0xff]  ;;  %v89_v3 = vld [vmem:[%s1529_s2 + $0x1f0] sm:$0xff] }
  0x42   :  { %433 = vmatpush.msrb.mxu3 %v280_v1  ;;  %414 = vmatpush.msrb.mxu2 %v212_v2  ;;  %v1084_v1 = vld [vmem:[%s1530_s0] sm:$0x3f]  ;;  %v1090_v2 = vld [vmem:[%s1530_s0 + $0x18] sm:$0x3f] }
  0x43   :  { %374 = vmatpush.msrb.mxu0 %v84_v4  ;;  %393 = vmatpush.msrb.mxu1 %v152_v5  ;;  %v213_v4 = vld [vmem:[%s1529_s2 + $0x5d0] sm:$0xff] }
  0x44   :  { %415 = vmatpush.msrb.mxu2 %v208_v6  ;;  %434 = vmatpush.msrb.mxu3 %v276_v7  ;;  %v281_v5 = vld [vmem:[%s1529_s2 + $0x7f0] sm:$0xff]  ;;  %v92_v6 = vld [vmem:[%s1529_s2 + $0x208] sm:$0xff] }
  0x45   :  { %375 = vmatpush.msrb.mxu0 %v80_v8  ;;  %394 = vmatpush.msrb.mxu1 %v148_v9  ;;  %v85_v7 = vld [vmem:[%s1529_s2 + $0x1d0] sm:$0xff]  ;;  %v1112_v8 = vld [vmem:[%s1530_s0 + $0x8] sm:$0x3f] }
  0x46   :  { %416 = vmatpush.msrb.mxu2 %v204_v10  ;;  %435 = vmatpush.msrb.mxu3 %v272_v11  ;;  %v209_v9 = vld [vmem:[%s1529_s2 + $0x5b0] sm:$0xff] }
  0x47   :  { %376 = vmatpush.msrb.mxu0 %v76_v12  ;;  %395 = vmatpush.msrb.mxu1 %v144_v13  ;;  %v153_v10 = vld [vmem:[%s1529_s2 + $0x3f0] sm:$0xff] }
  0x48   :  { %417 = vmatpush.msrb.mxu2 %v200_v14  ;;  %436 = vmatpush.msrb.mxu3 %v268_v15  ;;  %v277_v11 = vld [vmem:[%s1529_s2 + $0x7d0] sm:$0xff] }
  0x49   :  { %377 = vmatpush.msrb.mxu0 %v72_v16  ;;  %396 = vmatpush.msrb.mxu1 %v140_v17  ;;  %v81_v12 = vld [vmem:[%s1529_s2 + $0x1b0] sm:$0xff] }
  0x4a   :  { %418 = vmatpush.msrb.mxu2 %v196_v18  ;;  %437 = vmatpush.msrb.mxu3 %v264_v19  ;;  %v205_v13 = vld [vmem:[%s1529_s2 + $0x590] sm:$0xff] }
  0x4b   :  { %378 = vmatpush.msrb.mxu0 %v68_v20  ;;  %397 = vmatpush.msrb.mxu1 %v136_v21  ;;  %v149_v14 = vld [vmem:[%s1529_s2 + $0x3d0] sm:$0xff] }
  0x4c   :  { %419 = vmatpush.msrb.mxu2 %v192_v22  ;;  %438 = vmatpush.msrb.mxu3 %v260_v23  ;;  %v273_v15 = vld [vmem:[%s1529_s2 + $0x7b0] sm:$0xff] }
  0x4d   :  { %379 = vmatpush.msrb.mxu0 %v64_v24  ;;  %398 = vmatpush.msrb.mxu1 %v132_v25  ;;  %v77_v16 = vld [vmem:[%s1529_s2 + $0x190] sm:$0xff] }
  0x4e   :  { %420 = vmatpush.msrb.mxu2 %v188_v26  ;;  %439 = vmatpush.msrb.mxu3 %v256_v27  ;;  %v201_v17 = vld [vmem:[%s1529_s2 + $0x570] sm:$0xff] }
  0x4f   :  { %380 = vmatpush.msrb.mxu0 %v60_v28  ;;  %399 = vmatpush.msrb.mxu1 %v128_v29  ;;  %v145_v18 = vld [vmem:[%s1529_s2 + $0x3b0] sm:$0xff] }
  0x50   :  { %421 = vmatpush.msrb.mxu2 %v184_v30  ;;  %440 = vmatpush.msrb.mxu3 %v252_v31  ;;  %v269_v19 = vld [vmem:[%s1529_s2 + $0x790] sm:$0xff] }
  0x51   :  { %381 = vmatpush.msrb.mxu0 %v56_v32  ;;  %400 = vmatpush.msrb.mxu1 %v124_v33  ;;  %v73_v20 = vld [vmem:[%s1529_s2 + $0x170] sm:$0xff] }
  0x52   :  { %422 = vmatpush.msrb.mxu2 %v180_v34  ;;  %441 = vmatpush.msrb.mxu3 %v248_v35  ;;  %v197_v21 = vld [vmem:[%s1529_s2 + $0x550] sm:$0xff] }
  0x53   :  { %382 = vmatpush.msrb.mxu0 %v52_v36  ;;  %401 = vmatpush.msrb.mxu1 %v120_v37  ;;  %v141_v22 = vld [vmem:[%s1529_s2 + $0x390] sm:$0xff] }
  0x54   :  { %423 = vmatpush.msrb.mxu2 %v176_v38  ;;  %442 = vmatpush.msrb.mxu3 %v244_v39  ;;  %v265_v23 = vld [vmem:[%s1529_s2 + $0x770] sm:$0xff] }
  0x55   :  { %383 = vmatpush.msrb.mxu0 %v48_v40  ;;  %402 = vmatpush.msrb.mxu1 %v116_v41  ;;  %v69_v24 = vld [vmem:[%s1529_s2 + $0x150] sm:$0xff] }
  0x56   :  { %424 = vmatpush.msrb.mxu2 %v172_v42  ;;  %443 = vmatpush.msrb.mxu3 %v240_v43  ;;  %v193_v25 = vld [vmem:[%s1529_s2 + $0x530] sm:$0xff] }
  0x57   :  { %384 = vmatpush.msrb.mxu0 %v44_v44  ;;  %403 = vmatpush.msrb.mxu1 %v112_v45  ;;  %v137_v26 = vld [vmem:[%s1529_s2 + $0x370] sm:$0xff] }
  0x58   :  { %425 = vmatpush.msrb.mxu2 %v168_v46  ;;  %444 = vmatpush.msrb.mxu3 %v236_v47  ;;  %v261_v27 = vld [vmem:[%s1529_s2 + $0x750] sm:$0xff] }
  0x59   :  { %385 = vmatpush.msrb.mxu0 %v40_v48  ;;  %404 = vmatpush.msrb.mxu1 %v108_v49  ;;  %v65_v28 = vld [vmem:[%s1529_s2 + $0x130] sm:$0xff] }
  0x5a   :  { %426 = vmatpush.msrb.mxu2 %v164_v50  ;;  %445 = vmatpush.msrb.mxu3 %v232_v51  ;;  %v189_v29 = vld [vmem:[%s1529_s2 + $0x510] sm:$0xff] }
  0x5b   :  { %386 = vmatpush.msrb.mxu0 %v36_v52  ;;  %405 = vmatpush.msrb.mxu1 %v104_v53  ;;  %v133_v30 = vld [vmem:[%s1529_s2 + $0x350] sm:$0xff] }
  0x5c   :  { %427 = vmatpush.msrb.mxu2 %v160_v54  ;;  %446 = vmatpush.msrb.mxu3 %v228_v55  ;;  %v257_v31 = vld [vmem:[%s1529_s2 + $0x730] sm:$0xff] }
  0x5d   :  { %387 = vmatpush.msrb.mxu0 %v32_v56  ;;  %406 = vmatpush.msrb.mxu1 %v100_v57  ;;  %v61_v32 = vld [vmem:[%s1529_s2 + $0x110] sm:$0xff] }
  0x5e   :  { %428 = vmatpush.msrb.mxu2 %v156_v58  ;;  %447 = vmatpush.msrb.mxu3 %v224_v59  ;;  %v185_v33 = vld [vmem:[%s1529_s2 + $0x4f0] sm:$0xff] }
  0x5f   :  { %388 = vmatpush.msrb.mxu0 %v28_v61  ;;  %407 = vmatpush.msrb.mxu1 %v96_v63  ;;  %v129_v34 = vld [vmem:[%s1529_s2 + $0x330] sm:$0xff] }
  0x60   :  { %493 = vmatpush.msra.mxu2 %v217_v62  ;;  %448 = vmatpush.msrb.mxu3 %v220_v0  ;;  %v253_v35 = vld [vmem:[%s1529_s2 + $0x710] sm:$0xff] }
  0x61   :  { %309 = vmatmul.f32.vlgmr.msra.gmra.mxu0 %v1084_v1  ;;  %369 = vmatmul.f32.vlgmr.msra.gmra.mxu3 %v1090_v2  ;;  %v57_v36 = vld [vmem:[%s1529_s2 + $0xf0] sm:$0xff] }
  0x62   :  { %453 = vmatpush.msra.mxu0 %v89_v3  ;;  %494 = vmatpush.msra.mxu2 %v213_v4  ;;  %v181_v37 = vld [vmem:[%s1529_s2 + $0x4d0] sm:$0xff]  ;;  %v218_v4 = vld [vmem:[%s1529_s2 + $0x5f8] sm:$0xff] }
  0x63   :  { %513 = vmatpush.msra.mxu3 %v281_v5  ;;  %408 = vmatpush.msrb.mxu1 %v92_v6  ;;  %v125_v38 = vld [vmem:[%s1529_s2 + $0x310] sm:$0xff] }
  0x64   :  { %454 = vmatpush.msra.mxu0 %v85_v7  ;;  %329 = vmatmul.f32.vlgmr.msra.gmra.mxu1 %v1112_v8  ;;  %v249_v39 = vld [vmem:[%s1529_s2 + $0x6f0] sm:$0xff]  ;;  %v90_v7 = vld [vmem:[%s1529_s2 + $0x1f8] sm:$0xff] }
  0x65   :  { %495 = vmatpush.msra.mxu2 %v209_v9  ;;  %473 = vmatpush.msra.mxu1 %v153_v10  ;;  %v53_v40 = vld [vmem:[%s1529_s2 + $0xd0] sm:$0xff]  ;;  %v214_v9 = vld [vmem:[%s1529_s2 + $0x5d8] sm:$0xff] }
  0x66   :  { %514 = vmatpush.msra.mxu3 %v277_v11  ;;  %455 = vmatpush.msra.mxu0 %v81_v12  ;;  %v177_v41 = vld [vmem:[%s1529_s2 + $0x4b0] sm:$0xff]  ;;  %v282_v10 = vld [vmem:[%s1529_s2 + $0x7f8] sm:$0xff] }
  0x67   :  { %496 = vmatpush.msra.mxu2 %v205_v13  ;;  %474 = vmatpush.msra.mxu1 %v149_v14  ;;  %v121_v42 = vld [vmem:[%s1529_s2 + $0x2f0] sm:$0xff]  ;;  %v86_v12 = vld [vmem:[%s1529_s2 + $0x1d8] sm:$0xff] }
  0x68   :  { %515 = vmatpush.msra.mxu3 %v273_v15  ;;  %456 = vmatpush.msra.mxu0 %v77_v16  ;;  %v245_v43 = vld [vmem:[%s1529_s2 + $0x6d0] sm:$0xff]  ;;  %v210_v13 = vld [vmem:[%s1529_s2 + $0x5b8] sm:$0xff] }
  0x69   :  { %497 = vmatpush.msra.mxu2 %v201_v17  ;;  %475 = vmatpush.msra.mxu1 %v145_v18  ;;  %v49_v44 = vld [vmem:[%s1529_s2 + $0xb0] sm:$0xff]  ;;  %v154_v14 = vld [vmem:[%s1529_s2 + $0x3f8] sm:$0xff] }
  0x6a   :  { %516 = vmatpush.msra.mxu3 %v269_v19  ;;  %457 = vmatpush.msra.mxu0 %v73_v20  ;;  %v173_v45 = vld [vmem:[%s1529_s2 + $0x490] sm:$0xff]  ;;  %v278_v15 = vld [vmem:[%s1529_s2 + $0x7d8] sm:$0xff] }
  0x6b   :  { %498 = vmatpush.msra.mxu2 %v197_v21  ;;  %476 = vmatpush.msra.mxu1 %v141_v22  ;;  %v117_v46 = vld [vmem:[%s1529_s2 + $0x2d0] sm:$0xff]  ;;  %v82_v16 = vld [vmem:[%s1529_s2 + $0x1b8] sm:$0xff] }
  0x6c   :  { %517 = vmatpush.msra.mxu3 %v265_v23  ;;  %458 = vmatpush.msra.mxu0 %v69_v24  ;;  %v241_v47 = vld [vmem:[%s1529_s2 + $0x6b0] sm:$0xff]  ;;  %v206_v17 = vld [vmem:[%s1529_s2 + $0x598] sm:$0xff] }
  0x6d   :  { %499 = vmatpush.msra.mxu2 %v193_v25  ;;  %477 = vmatpush.msra.mxu1 %v137_v26  ;;  %v45_v48 = vld [vmem:[%s1529_s2 + $0x90] sm:$0xff]  ;;  %v150_v18 = vld [vmem:[%s1529_s2 + $0x3d8] sm:$0xff] }
  0x6e   :  { %518 = vmatpush.msra.mxu3 %v261_v27  ;;  %459 = vmatpush.msra.mxu0 %v65_v28  ;;  %v169_v49 = vld [vmem:[%s1529_s2 + $0x470] sm:$0xff]  ;;  %v274_v19 = vld [vmem:[%s1529_s2 + $0x7b8] sm:$0xff] }
  0x6f   :  { %500 = vmatpush.msra.mxu2 %v189_v29  ;;  %478 = vmatpush.msra.mxu1 %v133_v30  ;;  %v113_v50 = vld [vmem:[%s1529_s2 + $0x2b0] sm:$0xff]  ;;  %v78_v20 = vld [vmem:[%s1529_s2 + $0x198] sm:$0xff] }
  0x70   :  { %519 = vmatpush.msra.mxu3 %v257_v31  ;;  %460 = vmatpush.msra.mxu0 %v61_v32  ;;  %v237_v51 = vld [vmem:[%s1529_s2 + $0x690] sm:$0xff]  ;;  %v202_v21 = vld [vmem:[%s1529_s2 + $0x578] sm:$0xff] }
  0x71   :  { %501 = vmatpush.msra.mxu2 %v185_v33  ;;  %479 = vmatpush.msra.mxu1 %v129_v34  ;;  %v41_v52 = vld [vmem:[%s1529_s2 + $0x70] sm:$0xff]  ;;  %v146_v22 = vld [vmem:[%s1529_s2 + $0x3b8] sm:$0xff] }
  0x72   :  { %520 = vmatpush.msra.mxu3 %v253_v35  ;;  %461 = vmatpush.msra.mxu0 %v57_v36  ;;  %v165_v53 = vld [vmem:[%s1529_s2 + $0x450] sm:$0xff]  ;;  %v270_v23 = vld [vmem:[%s1529_s2 + $0x798] sm:$0xff] }
  0x73   :  { %502 = vmatpush.msra.mxu2 %v181_v37  ;;  %480 = vmatpush.msra.mxu1 %v125_v38  ;;  %v109_v54 = vld [vmem:[%s1529_s2 + $0x290] sm:$0xff]  ;;  %v74_v24 = vld [vmem:[%s1529_s2 + $0x178] sm:$0xff] }
  0x74   :  { %521 = vmatpush.msra.mxu3 %v249_v39  ;;  %462 = vmatpush.msra.mxu0 %v53_v40  ;;  %v233_v55 = vld [vmem:[%s1529_s2 + $0x670] sm:$0xff]  ;;  %v198_v25 = vld [vmem:[%s1529_s2 + $0x558] sm:$0xff] }
  0x75   :  { %503 = vmatpush.msra.mxu2 %v177_v41  ;;  %481 = vmatpush.msra.mxu1 %v121_v42  ;;  %v37_v56 = vld [vmem:[%s1529_s2 + $0x50] sm:$0xff]  ;;  %v142_v26 = vld [vmem:[%s1529_s2 + $0x398] sm:$0xff] }
  0x76   :  { %522 = vmatpush.msra.mxu3 %v245_v43  ;;  %463 = vmatpush.msra.mxu0 %v49_v44  ;;  %v161_v57 = vld [vmem:[%s1529_s2 + $0x430] sm:$0xff]  ;;  %v266_v27 = vld [vmem:[%s1529_s2 + $0x778] sm:$0xff] }
  0x77   :  { %504 = vmatpush.msra.mxu2 %v173_v45  ;;  %482 = vmatpush.msra.mxu1 %v117_v46  ;;  %v105_v58 = vld [vmem:[%s1529_s2 + $0x270] sm:$0xff]  ;;  %v70_v28 = vld [vmem:[%s1529_s2 + $0x158] sm:$0xff] }
  0x78   :  { %523 = vmatpush.msra.mxu3 %v241_v47  ;;  %464 = vmatpush.msra.mxu0 %v45_v48  ;;  %v229_v59 = vld [vmem:[%s1529_s2 + $0x650] sm:$0xff]  ;;  %v194_v29 = vld [vmem:[%s1529_s2 + $0x538] sm:$0xff] }
  0x79   :  { %505 = vmatpush.msra.mxu2 %v169_v49  ;;  %483 = vmatpush.msra.mxu1 %v113_v50  ;;  %v33_v61 = vld [vmem:[%s1529_s2 + $0x30] sm:$0xff]  ;;  %v138_v30 = vld [vmem:[%s1529_s2 + $0x378] sm:$0xff] }
  0x7a   :  { %524 = vmatpush.msra.mxu3 %v237_v51  ;;  %465 = vmatpush.msra.mxu0 %v41_v52  ;;  %v157_v62 = vld [vmem:[%s1529_s2 + $0x410] sm:$0xff]  ;;  %v262_v31 = vld [vmem:[%s1529_s2 + $0x758] sm:$0xff] }
  0x7b   :  { %506 = vmatpush.msra.mxu2 %v165_v53  ;;  %484 = vmatpush.msra.mxu1 %v109_v54  ;;  %v101_v63 = vld [vmem:[%s1529_s2 + $0x250] sm:$0xff]  ;;  %v66_v32 = vld [vmem:[%s1529_s2 + $0x138] sm:$0xff] }
  0x7c   :  { %525 = vmatpush.msra.mxu3 %v233_v55  ;;  %466 = vmatpush.msra.mxu0 %v37_v56  ;;  %v225_v0 = vld [vmem:[%s1529_s2 + $0x630] sm:$0xff]  ;;  %v190_v33 = vld [vmem:[%s1529_s2 + $0x518] sm:$0xff] }
  0x7d   :  { %507 = vmatpush.msra.mxu2 %v161_v57  ;;  %485 = vmatpush.msra.mxu1 %v105_v58  ;;  %v29_v3 = vld [vmem:[%s1529_s2 + $0x10] sm:$0xff]  ;;  %v134_v34 = vld [vmem:[%s1529_s2 + $0x358] sm:$0xff] }
  0x7e   :  { %526 = vmatpush.msra.mxu3 %v229_v59  ;;  %467 = vmatpush.msra.mxu0 %v33_v61  ;;  %v97_v5 = vld [vmem:[%s1529_s2 + $0x230] sm:$0xff]  ;;  %v258_v35 = vld [vmem:[%s1529_s2 + $0x738] sm:$0xff] }
  0x7f   :  { %508 = vmatpush.msra.mxu2 %v157_v62  ;;  %486 = vmatpush.msra.mxu1 %v101_v63  ;;  %v221_v6 = vld [vmem:[%s1529_s2 + $0x610] sm:$0xff]  ;;  %v62_v36 = vld [vmem:[%s1529_s2 + $0x118] sm:$0xff] }
  0x80   :  { %527 = vmatpush.msra.mxu3 %v225_v0  ;;  %429 = vmatmul.f32.vlgmr.msrb.gmra.mxu2 %v1067_v60  ;;  %v93_v11 = vld [vmem:[%s1529_s2 + $0x210] sm:$0xff]  ;;  %v186_v37 = vld [vmem:[%s1529_s2 + $0x4f8] sm:$0xff] }
  0x81   :  { %468 = vmatpush.msra.mxu0 %v29_v3  ;;  %573 = vmatpush.msrb.mxu2 %v218_v4  ;;  %v130_v38 = vld [vmem:[%s1529_s2 + $0x338] sm:$0xff] }
  0x82   :  { %487 = vmatpush.msra.mxu1 %v97_v5  ;;  %528 = vmatpush.msra.mxu3 %v221_v6  ;;  %v254_v39 = vld [vmem:[%s1529_s2 + $0x718] sm:$0xff] }
  0x83   :  { %389 = vmatmul.f32.vlgmr.msrb.gmra.mxu0 %v1084_v1  ;;  %449 = vmatmul.f32.vlgmr.msrb.gmra.mxu3 %v1090_v2  ;;  %v58_v40 = vld [vmem:[%s1529_s2 + $0xf8] sm:$0xff] }
  0x84   :  { %533 = vmatpush.msrb.mxu0 %v90_v7  ;;  %574 = vmatpush.msrb.mxu2 %v214_v9  ;;  %v182_v41 = vld [vmem:[%s1529_s2 + $0x4d8] sm:$0xff] }
  0x85   :  { %593 = vmatpush.msrb.mxu3 %v282_v10  ;;  %488 = vmatpush.msra.mxu1 %v93_v11  ;;  %v126_v42 = vld [vmem:[%s1529_s2 + $0x318] sm:$0xff] }
  0x86   :  { %534 = vmatpush.msrb.mxu0 %v86_v12  ;;  %409 = vmatmul.f32.vlgmr.msrb.gmra.mxu1 %v1112_v8  ;;  %v250_v43 = vld [vmem:[%s1529_s2 + $0x6f8] sm:$0xff]  ;;  %v283_v12 = vld [vmem:[%s1531_s3] sm:$0xf] }
  0x87   :  { %575 = vmatpush.msrb.mxu2 %v210_v13  ;;  %553 = vmatpush.msrb.mxu1 %v154_v14  ;;  %v54_v44 = vld [vmem:[%s1529_s2 + $0xd8] sm:$0xff]  ;;  %v285_v13 = vperm.slane %v283_v12, 0 }
  0x88   :  { %594 = vmatpush.msrb.mxu3 %v278_v15  ;;  %535 = vmatpush.msrb.mxu0 %v82_v16  ;;  %v178_v45 = vld [vmem:[%s1529_s2 + $0x4b8] sm:$0xff] }
  0x89   :  { %576 = vmatpush.msrb.mxu2 %v206_v17  ;;  %554 = vmatpush.msrb.mxu1 %v150_v18  ;;  %v122_v46 = vld [vmem:[%s1529_s2 + $0x2f8] sm:$0xff]  ;;  %v621_v18 = vld [vmem:[%s1532_s4] sm:$0xf] }
  0x8a   :  { %595 = vmatpush.msrb.mxu3 %v274_v19  ;;  %536 = vmatpush.msrb.mxu0 %v78_v20  ;;  %v246_v47 = vld [vmem:[%s1529_s2 + $0x6d8] sm:$0xff] }
  0x8b   :  { %577 = vmatpush.msrb.mxu2 %v202_v21  ;;  %555 = vmatpush.msrb.mxu1 %v146_v22  ;;  %v50_v48 = vld [vmem:[%s1529_s2 + $0xb8] sm:$0xff]  ;;  %v623_v21 = vperm.slane %v621_v18, 0 }
  0x8c   :  { %596 = vmatpush.msrb.mxu3 %v270_v23  ;;  %537 = vmatpush.msrb.mxu0 %v74_v24  ;;  %v174_v49 = vld [vmem:[%s1529_s2 + $0x498] sm:$0xff] }
  0x8d   :  { %578 = vmatpush.msrb.mxu2 %v198_v25  ;;  %556 = vmatpush.msrb.mxu1 %v142_v26  ;;  %v118_v50 = vld [vmem:[%s1529_s2 + $0x2d8] sm:$0xff]  ;;  %v286_v26 = vperm.slane %v283_v12, 1 }
  0x8e   :  { %597 = vmatpush.msrb.mxu3 %v266_v27  ;;  %538 = vmatpush.msrb.mxu0 %v70_v28  ;;  %v242_v51 = vld [vmem:[%s1529_s2 + $0x6b8] sm:$0xff] }
  0x8f   :  { %579 = vmatpush.msrb.mxu2 %v194_v29  ;;  %557 = vmatpush.msrb.mxu1 %v138_v30  ;;  %v46_v52 = vld [vmem:[%s1529_s2 + $0x98] sm:$0xff] }
  0x90   :  { %598 = vmatpush.msrb.mxu3 %v262_v31  ;;  %539 = vmatpush.msrb.mxu0 %v66_v32  ;;  %v114_v53 = vld [vmem:[%s1529_s2 + $0x2b8] sm:$0xff] }
  0x91   :  { %580 = vmatpush.msrb.mxu2 %v190_v33  ;;  %558 = vmatpush.msrb.mxu1 %v134_v34  ;;  %v170_v54 = vld [vmem:[%s1529_s2 + $0x478] sm:$0xff]  ;;  %v614_v34 = vld [vmem:[%s1533_s1 + $0x8] sm:$0x3f] }
  0x92   :  { %599 = vmatpush.msrb.mxu3 %v258_v35  ;;  %540 = vmatpush.msrb.mxu0 %v62_v36  ;;  %v238_v55 = vld [vmem:[%s1529_s2 + $0x698] sm:$0xff]  ;;  %v624_v36 = vperm.slane %v621_v18, 1 }
  0x93   :  { %581 = vmatpush.msrb.mxu2 %v186_v37  ;;  %559 = vmatpush.msrb.mxu1 %v130_v38  ;;  %v42_v56 = vld [vmem:[%s1529_s2 + $0x78] sm:$0xff] }
  0x94   :  { %600 = vmatpush.msrb.mxu3 %v254_v39  ;;  %541 = vmatpush.msrb.mxu0 %v58_v40  ;;  %v110_v57 = vld [vmem:[%s1529_s2 + $0x298] sm:$0xff] }
  0x95   :  { %582 = vmatpush.msrb.mxu2 %v182_v41  ;;  %560 = vmatpush.msrb.mxu1 %v126_v42  ;;  %v166_v58 = vld [vmem:[%s1529_s2 + $0x458] sm:$0xff]  ;;  %v287_v41 = vperm.slane %v283_v12, 2 }
  0x96   :  { %601 = vmatpush.msrb.mxu3 %v250_v43  ;;  %542 = vmatpush.msrb.mxu0 %v54_v44  ;;  %v234_v59 = vld [vmem:[%s1529_s2 + $0x678] sm:$0xff] }
  0x97   :  { %583 = vmatpush.msrb.mxu2 %v178_v45  ;;  %561 = vmatpush.msrb.mxu1 %v122_v46  ;;  %v38_v61 = vld [vmem:[%s1529_s2 + $0x58] sm:$0xff] }
  0x98   :  { %602 = vmatpush.msrb.mxu3 %v246_v47  ;;  %543 = vmatpush.msrb.mxu0 %v50_v48  ;;  %v106_v62 = vld [vmem:[%s1529_s2 + $0x278] sm:$0xff] }
  0x99   :  { %584 = vmatpush.msrb.mxu2 %v174_v49  ;;  %562 = vmatpush.msrb.mxu1 %v118_v50  ;;  %v162_v63 = vld [vmem:[%s1529_s2 + $0x438] sm:$0xff]  ;;  %v615_v49 = vld [vmem:[%s1533_s1 + $0x10] sm:$0x3f]  ;;  %v288_v50 = vperm.slane %v283_v12, 3 }
  0x9a   :  { %603 = vmatpush.msrb.mxu3 %v242_v51  ;;  %509 = vmatmul.f32.vlgmr.msra.gmra.mxu2 %v1067_v60  ;;  %v230_v0 = vld [vmem:[%s1529_s2 + $0x658] sm:$0xff] }
  0x9b   :  { %544 = vmatpush.msrb.mxu0 %v46_v52  ;;  %563 = vmatpush.msrb.mxu1 %v114_v53  ;;  %v34_v3 = vld [vmem:[%s1529_s2 + $0x38] sm:$0xff]  ;;  %v625_v52 = vperm.slane %v621_v18, 2 }
  0x9c   :  { %585 = vmatpush.msrb.mxu2 %v170_v54  ;;  %604 = vmatpush.msrb.mxu3 %v238_v55  ;;  %v102_v4 = vld [vmem:[%s1529_s2 + $0x258] sm:$0xff] }
  0x9d   :  { %469 = vmatmul.f32.vlgmr.msra.gmra.mxu0 %v1084_v1  ;;  %529 = vmatmul.f32.vlgmr.msra.gmra.mxu3 %v1090_v2  ;;  %v158_v5 = vld [vmem:[%s1529_s2 + $0x418] sm:$0xff] }
  0x9e   :  { %545 = vmatpush.msrb.mxu0 %v42_v56  ;;  %564 = vmatpush.msrb.mxu1 %v110_v57  ;;  %v226_v6 = vld [vmem:[%s1529_s2 + $0x638] sm:$0xff] }
  0x9f   :  { %586 = vmatpush.msrb.mxu2 %v166_v58  ;;  %605 = vmatpush.msrb.mxu3 %v234_v59  ;;  %v30_v7 = vld [vmem:[%s1529_s2 + $0x18] sm:$0xff] }
  0xa0   :  { %489 = vmatmul.f32.vlgmr.msra.gmra.mxu1 %v1112_v8  ;;  %546 = vmatpush.msrb.mxu0 %v38_v61  ;;  %v98_v9 = vld [vmem:[%s1529_s2 + $0x238] sm:$0xff] }
  0xa1   :  { %565 = vmatpush.msrb.mxu1 %v106_v62  ;;  %587 = vmatpush.msrb.mxu2 %v162_v63  ;;  %v222_v10 = vld [vmem:[%s1529_s2 + $0x618] sm:$0xff] }
  0xa2   :  { %606 = vmatpush.msrb.mxu3 %v230_v0  ;;  %547 = vmatpush.msrb.mxu0 %v34_v3  ;;  %v94_v11 = vld [vmem:[%s1529_s2 + $0x218] sm:$0xff] }
  0xa3   :  { %566 = vmatpush.msrb.mxu1 %v102_v4  ;;  %588 = vmatpush.msrb.mxu2 %v158_v5  ;;  %v616_v3 = vld [vmem:[%s1533_s1 + $0x18] sm:$0x3f]  ;;  %v626_v5 = vperm.slane %v621_v18, 3 }
  0xa4   :  { %607 = vmatpush.msrb.mxu3 %v226_v6  ;;  %589 = vmatmul.f32.vlgmr.msrb.gmra.mxu2 %v1067_v60 }
  0xa5   :  { %548 = vmatpush.msrb.mxu0 %v30_v7  ;;  %567 = vmatpush.msrb.mxu1 %v98_v9 }
  0xa6   :  { %608 = vmatpush.msrb.mxu3 %v222_v10  ;;  %549 = vmatmul.f32.vlgmr.msrb.gmra.mxu0 %v1084_v1 }
  0xa7   :  { %609 = vmatmul.f32.vlgmr.msrb.gmra.mxu3 %v1090_v2  ;;  %568 = vmatpush.msrb.mxu1 %v94_v11  ;;  %v613_v2 = vld [vmem:[%s1533_s1] sm:$0x3f] }
  0xa8   :  { %569 = vmatmul.f32.vlgmr.msrb.gmra.mxu1 %v1112_v8  ;;  %v635_v8 = vld [vmem:[%s1534_s5] sm:$0xf] }
  0xa9   :  { %v637_v23 = vperm.slane %v635_v8, 0  ;;  %v638_v38 = vperm.slane %v635_v8, 1  ;;  %v639_v54 = vperm.slane %v635_v8, 2  ;;  %v640_v7 = vperm.slane %v635_v8, 3 }
  0xc2   :  { %v350_v16 = vpop.f32.mrf.mxu2 }
  0xde   :  { %v310_v60 = vpop.f32.mrf.mxu0 }
  0xdf   :  { %v311_v14 = vadd.f32 %v310_v60, %v285_v13 }
  0xe1   :  { %v330_v15 = vpop.f32.mrf.mxu1 }
  0xe2   :  { %v331_v17 = vadd.f32 %v330_v15, %v311_v14 }
  0xe4   :  { %v351_v1 = vadd.f32 %v350_v16, %v331_v17  ;;  %v370_v19 = vpop.f32.mrf.mxu3 }
  0xe6   :  { %v371_v20 = vadd.f32 %v370_v19, %v351_v1 }
  0xe8   :  { %v617_v22 = vadd.f32 %v613_v2, %v371_v20 }
  0xea   :  { %v631_v24 = vmul.f32 %v623_v21, %v617_v22 }
  0xec   :  { %v645_v25 = vadd.f32 %v637_v23, %v631_v24 }
  0xee   :  { %649 = vst [vmem:[%s1535_s6] sm:$0x3f] %v645_v25 }
 0x100   :  { %v390_v27 = vpop.f32.mrf.mxu0 }
 0x101   :  { %v391_v28 = vadd.f32 %v390_v27, %v286_v26 }
 0x103   :  { %v410_v29 = vpop.f32.mrf.mxu1  ;;  %v430_v30 = vpop.f32.mrf.mxu2 }
 0x104   :  { %v411_v31 = vadd.f32 %v410_v29, %v391_v28 }
 0x106   :  { %v431_v32 = vadd.f32 %v430_v30, %v411_v31  ;;  %v450_v33 = vpop.f32.mrf.mxu3 }
 0x108   :  { %v451_v35 = vadd.f32 %v450_v33, %v431_v32 }
 0x10a   :  { %v618_v37 = vadd.f32 %v614_v34, %v451_v35 }
 0x10c   :  { %v632_v39 = vmul.f32 %v624_v36, %v618_v37 }
 0x10e   :  { %v646_v40 = vadd.f32 %v638_v38, %v632_v39 }
 0x110   :  { %650 = vst [vmem:[%s1535_s6 + $0x8] sm:$0x3f] %v646_v40 }
 0x11a   :  { %v470_v42 = vpop.f32.mrf.mxu0 }
 0x11b   :  { %v471_v43 = vadd.f32 %v470_v42, %v287_v41 }
 0x11d   :  { %v490_v44 = vpop.f32.mrf.mxu1  ;;  %v510_v46 = vpop.f32.mrf.mxu2 }
 0x11e   :  { %v491_v45 = vadd.f32 %v490_v44, %v471_v43 }
 0x120   :  { %v511_v47 = vadd.f32 %v510_v46, %v491_v45  ;;  %v530_v48 = vpop.f32.mrf.mxu3 }
 0x122   :  { %v531_v51 = vadd.f32 %v530_v48, %v511_v47 }
 0x123   :  { %v550_v55 = vpop.f32.mrf.mxu0 }
 0x124   :  { %v619_v53 = vadd.f32 %v615_v49, %v531_v51  ;;  %v551_v56 = vadd.f32 %v550_v55, %v288_v50 }
 0x125   :  { %v570_v58 = vpop.f32.mrf.mxu1 }
 0x126   :  { %v633_v57 = vmul.f32 %v625_v52, %v619_v53  ;;  %v571_v59 = vadd.f32 %v570_v58, %v551_v56 }
 0x127   :  { %v590_v62 = vpop.f32.mrf.mxu2 }
 0x128   :  { %v647_v61 = vadd.f32 %v639_v54, %v633_v57  ;;  %v591_v63 = vadd.f32 %v590_v62, %v571_v59 }
 0x12a   :  { %651 = vst [vmem:[%s1535_s6 + $0x10] sm:$0x3f] %v647_v61  ;;  %v610_v0 = vpop.f32.mrf.mxu3 }
 0x12b   :  { %v611_v4 = vadd.f32 %v610_v0, %v591_v63 }
 0x12d   :  { %v620_v6 = vadd.f32 %v616_v3, %v611_v4 }
 0x12f   :  { %v634_v9 = vmul.f32 %v626_v5, %v620_v6 }
 0x131   :  { %v648_v10 = vadd.f32 %v640_v7, %v634_v9 }
 0x133   :  { %652 = vst [vmem:[%s1535_s6 + $0x18] sm:$0x3f] %v648_v10 }

// kernel: gwnet_forward.16
= control target key start
LH: loop header
LB: loop body
LE: loop exit
PB: predicated region body
PF: predicated region fallthrough
CT: control target
= control target key end

     0   :  { %s501_s0 = inlined_call_operand.vmem [shape: f32[32,64], index: 0, kind: input, shape index: {}]   ;;  %s502_s1 = inlined_call_operand.vmem [shape: f32[64,64], index: 1, kind: input, shape index: {}]   ;;  %s503_s2 = inlined_call_operand.vmem [shape: f32[1,64], index: 2, kind: input, shape index: {}]   ;;  %s504_s3 = inlined_call_operand.vmem [shape: f32[32,64], index: 3, kind: input, shape index: {}]   ;;  %s505_s4 = inlined_call_operand.vmem [shape: f32[1,64], index: 4, kind: input, shape index: {}]   ;;  %s506_s5 = inlined_call_operand.hbm [shape: f32[32,32], index: 5, kind: output, shape index: {0}]   ;;  %s507_s6 = inlined_call_operand.vmem [shape: f32[32,64], index: 6, kind: output, shape index: {1}]  }
   0x1   :  { %v34_v0 = vld [vmem:[%s502_s1 + $0x38] sm:$0xff]  ;;  %v33_v1 = vld [vmem:[%s502_s1 + $0x30] sm:$0xff]  ;;  %v32_v2 = vld [vmem:[%s502_s1 + $0x28] sm:$0xff] }
   0x2   :  { %60 = vmatpush.msra.mxu0 %v34_v0  ;;  %273 = vmatpush.msra.mxu2 %v34_v0  ;;  %v31_v3 = vld [vmem:[%s502_s1 + $0x20] sm:$0xff] }
   0x4   :  { %61 = vmatpush.msra.mxu0 %v33_v1  ;;  %274 = vmatpush.msra.mxu2 %v33_v1 }
   0x6   :  { %62 = vmatpush.msra.mxu0 %v32_v2  ;;  %275 = vmatpush.msra.mxu2 %v32_v2 }
   0x7   :  { %12 = vsyncpa [#allocation3], 0  ;;  %v30_v4 = vld [vmem:[%s502_s1 + $0x18] sm:$0xff]  ;;  %v29_v5 = vld [vmem:[%s502_s1 + $0x10] sm:$0xff]  ;;  %vm39_vm0 = vcmask 523264   ;;  %s341_s26 = smov 96  }
   0x8   :  { %63 = vmatpush.msra.mxu0 %v31_v3  ;;  %276 = vmatpush.msra.mxu2 %v31_v3  ;;  %v28_v6 = vld [vmem:[%s502_s1 + $0x8] sm:$0xff]  ;;  %v27_v7 = vld [vmem:[%s502_s1] sm:$0xff]  ;;  %v25_v9 = vld [vmem:[%s501_s0 + $0x10] sm:$0xff]  ;;  %s245_s8 = sshll.u32 %s506_s5, 4  ;;  %s343_s9 = smov 128   ;;  %s246_s8 = int_to_ptr.hbm [resolvable:$true] %s245_s8 }
   0x9   :  { %v23_v8 = vld [vmem:[%s501_s0] sm:$0xff]  ;;  %v24_v10 = vld [vmem:[%s501_s0 + $0x8] sm:$0xff]  ;;  %v26_v11 = vld [vmem:[%s501_s0 + $0x18] sm:$0xff]  ;;  %s344_s10 = smov 8  }
   0xa   :  { %64 = vmatpush.msra.mxu0 %v30_v4  ;;  %277 = vmatpush.msra.mxu2 %v30_v4  ;;  %v289_v12 = vld [vmem:[%s503_s2] ss:$0 sm:$0xff]  ;;  %v189_v31 = vld [vmem:[%s504_s3 + $0x18] sm:$0xff]  ;;  %v188_v32 = vld [vmem:[%s504_s3 + $0x10] sm:$0xff] }
   0xb   :  { %281 = vmatpush.msra.mxu3 %v189_v31  ;;  %218 = vmatpush.msra.mxu1 %v189_v31  ;;  %v187_v33 = vld [vmem:[%s504_s3 + $0x8] sm:$0xff] }
   0xc   :  { %65 = vmatpush.msra.mxu0 %v29_v5  ;;  %278 = vmatpush.msra.mxu2 %v29_v5 }
   0xd   :  { %282 = vmatpush.msra.mxu3 %v188_v32  ;;  %219 = vmatpush.msra.mxu1 %v188_v32 }
   0xe   :  { %66 = vmatpush.msra.mxu0 %v28_v6  ;;  %279 = vmatpush.msra.mxu2 %v28_v6 }
   0xf   :  { %283 = vmatpush.msra.mxu3 %v187_v33  ;;  %220 = vmatpush.msra.mxu1 %v187_v33 }
  0x10   :  { %67 = vmatpush.msra.mxu0 %v27_v7  ;;  %280 = vmatpush.msra.mxu2 %v27_v7 }
  0x11   :  { %261 = vmatmul.msk.f32.vlgmr.msra.gmra.mxu0 %vm39_vm0, %v23_v8  ;;  %263 = vmatmul.msk.f32.vlgmr.msra.gmra.mxu2 %vm39_vm0, %v25_v9 }
  0x19   :  { %262 = vmatmul.msk.f32.gmra.mxu0 %vm39_vm0, %v24_v10  ;;  %264 = vmatmul.msk.f32.gmra.mxu2 %vm39_vm0, %v26_v11 }
  0x8e   :  { %v69_v13 = vpop.f32.mrf.mxu0 }
  0x8f   :  { %v423_v14 = vadd.f32 %v289_v12, %v69_v13 }
  0x91   :  { %v265_v15 = vmul.f32 -1.442695, %v423_v14 }
  0x93   :  { %291 = vpow2.f32 %v265_v15 }
  0x94   :  { %v75_v16 = vpop.f32.mrf.mxu2 }
  0x95   :  { %v426_v17 = vadd.f32 %v289_v12, %v75_v16 }
  0x96   :  { %v72_v18 = vpop.f32.mrf.mxu0 }
  0x97   :  { %v267_v19 = vmul.f32 -1.442695, %v426_v17  ;;  %v429_v20 = vadd.f32 %v289_v12, %v72_v18 }
  0x99   :  { %293 = vpow2.f32 %v267_v19  ;;  %v266_v21 = vmul.f32 -1.442695, %v429_v20  ;;  %v292_v24 = vpop.eup %291 }
  0x9a   :  { %v437_v29 = vadd.f32 1.0, %v292_v24 }
  0x9b   :  { %295 = vpow2.f32 %v266_v21 }
  0x9c   :  { %v78_v22 = vpop.f32.mrf.mxu2  ;;  %v112_v7 = vand.u32 2147483648, %v437_v29  ;;  %vm106_vm14 = vweird.f32 %v437_v29  ;;  %v110_v8 = vand.u32 2147483647, %v437_v29 }
  0x9d   :  { %v432_v23 = vadd.f32 %v289_v12, %v78_v22  ;;  %v186_v12 = vld [vmem:[%s504_s3] sm:$0xff]  ;;  %s342_s3 = smov [#allocation2]  }
  0x9e   :  { %v113_v10 = vor.u32 1.1754944e-38, %v112_v7  ;;  %284 = vmatpush.msra.mxu3 %v186_v12  ;;  %221 = vmatpush.msra.mxu1 %v186_v12  ;;  %s243_s29 = sshll.u32 %s342_s3, 4  ;;  %s244_s29 = int_to_ptr.vmem [resolvable:$true] %s243_s29 }
  0x9f   :  { %v294_v25 = vpop.eup %293  ;;  %v268_v26 = vmul.f32 -1.442695, %v432_v23 }
  0xa0   :  { %v435_v27 = vadd.f32 1.0, %v294_v25 }
  0xa1   :  { %v296_v28 = vpop.eup %295  ;;  %297 = vpow2.f32 %v268_v26 }
  0xa2   :  { %299 = vrcp.f32 %v435_v27  ;;  %v98_v30 = vadd.f32 1.0, %v296_v28  ;;  %vm136_vm4 = vweird.f32 %v435_v27  ;;  %v142_v60 = vand.u32 2147483648, %v435_v27 }
  0xa3   :  { %v140_v62 = vand.u32 2147483647, %v435_v27 }
  0xa4   :  { %301 = vrcp.f32 %v98_v30  ;;  %v127_v43 = vand.u32 2147483648, %v98_v30  ;;  %v125_v45 = vand.u32 2147483647, %v98_v30  ;;  %vm121_vm2 = vweird.f32 %v98_v30 }
  0xa5   :  { %303 = vrcp.f32 %v437_v29  ;;  %v143_v4 = vor.u32 1.1754944e-38, %v142_v60  ;;  %vm141_vm12 = vcmp.eq.f32.partialorder %v140_v62, 8.507059e+37 }
  0xa6   :  { %v128_v51 = vor.u32 1.1754944e-38, %v127_v43  ;;  %vm126_vm5 = vcmp.eq.f32.partialorder %v125_v45, 8.507059e+37 }
  0xa7   :  { %v298_v34 = vpop.eup %297 }
  0xa8   :  { %v300_v35 = vpop.eup %299  ;;  %v100_v36 = vadd.f32 1.0, %v298_v34 }
  0xa9   :  { %v132_v37 = vmul.f32 %v300_v35, %v435_v27  ;;  %vm137_vm7 = vweird.f32 %v300_v35 }
  0xaa   :  { %v302_v38 = vpop.eup %301  ;;  %305 = vrcp.f32 %v100_v36  ;;  %vm151_vm6 = vweird.f32 %v100_v36  ;;  %v157_v56 = vand.u32 2147483648, %v100_v36  ;;  %v155_v58 = vand.u32 2147483647, %v100_v36  ;;  %vm138_vm9 = vmor %vm136_vm4, %vm137_vm7 }
  0xab   :  { %v117_v39 = vmul.f32 %v302_v38, %v98_v30  ;;  %v304_v40 = vpop.eup %303  ;;  %v133_v42 = vsub.f32 1.0, %v132_v37  ;;  %vm122_vm1 = vweird.f32 %v302_v38  ;;  %307 = vtanh.f32 %v429_v20 }
  0xac   :  { %v102_v46 = vmul.f32 %v304_v40, %v437_v29  ;;  %vm123_vm3 = vmor %vm121_vm2, %vm122_vm1  ;;  %v158_v0 = vor.u32 1.1754944e-38, %v157_v56  ;;  %vm156_vm11 = vcmp.eq.f32.partialorder %v155_v58, 8.507059e+37  ;;  %vm107_vm13 = vweird.f32 %v304_v40 }
  0xad   :  { %v118_v41 = vsub.f32 1.0, %v117_v39  ;;  %v134_v50 = vmul.f32 %v300_v35, %v133_v42  ;;  %vm108_vm15 = vmor %vm106_vm14, %vm107_vm13  ;;  %vm111_vm1 = vcmp.eq.f32.partialorder %v110_v8, 8.507059e+37  ;;  %309 = vtanh.f32 %v432_v23 }
  0xae   :  { %v103_v54 = vsub.f32 1.0, %v102_v46  ;;  %vm181_vm2 = vcmask 261120   ;;  %311 = vtanh.f32 %v426_v17 }
  0xaf   :  { %v119_v44 = vmul.f32 %v302_v38, %v118_v41  ;;  %v135_v59 = vadd.f32 %v300_v35, %v134_v50  ;;  %313 = vtanh.f32 %v423_v14  ;;  %v290_v14 = vld [vmem:[%s505_s4] ss:$0 sm:$0xff] }
  0xb0   :  { %v306_v47 = vpop.eup %305  ;;  %v104_v63 = vmul.f32 %v304_v40, %v103_v54 }
  0xb1   :  { %v120_v48 = vadd.f32 %v302_v38, %v119_v44  ;;  %v147_v49 = vmul.f32 %v306_v47, %v100_v36  ;;  %vm152_vm8 = vweird.f32 %v306_v47  ;;  %v139_v2 = vsel %vm138_vm9, %v300_v35, %v135_v59  ;;  %v308_v13 = vpop.eup %307 }
  0xb2   :  { %vm153_vm10 = vmor %vm151_vm6, %vm152_vm8  ;;  %v105_v5 = vadd.f32 %v304_v40, %v104_v63  ;;  %v144_v6 = vsel %vm141_vm12, %v143_v4, %v139_v2 }
  0xb3   :  { %v124_v52 = vsel %vm123_vm3, %v302_v38, %v120_v48  ;;  %v148_v53 = vsub.f32 1.0, %v147_v49  ;;  %v310_v18 = vpop.eup %309 }
  0xb4   :  { %v129_v55 = vsel %vm126_vm5, %v128_v51, %v124_v52  ;;  %v109_v9 = vsel %vm108_vm15, %v304_v40, %v105_v5  ;;  %v312_v22 = vpop.eup %311 }
  0xb5   :  { %167 = vrot.lane.b32.xlu0 %v129_v55, %s341_s26  ;;  %v149_v57 = vmul.f32 %v306_v47, %v148_v53  ;;  %v114_v11 = vsel %vm111_vm1, %v113_v10, %v109_v9  ;;  %v314_v23 = vpop.eup %313 }
  0xb7   :  { %v150_v61 = vadd.f32 %v306_v47, %v149_v57 }
  0xb9   :  { %v154_v1 = vsel %vm153_vm10, %v306_v47, %v150_v61 }
  0xba   :  { %v159_v3 = vsel %vm156_vm11, %v158_v0, %v154_v1 }
  0xbb   :  { %171 = vrot.lane.b32.xlu1 %v159_v3, %s341_s26 }
  0xbd   :  { %169 = vrot.lane.b32.xlu0 %v144_v6, %s341_s26 }
  0xc3   :  { %165 = vrot.lane.b32.xlu1 %v114_v11, %s341_s26 }
 0x127   :  { %v168_v15 = vpop.permute.xlu0 %167 }
 0x128   :  { %v178_v16 = vmul.f32 %v308_v13, %v168_v15 }
 0x12a   :  { %183 = vst.msk [vmem:[#allocation2 + $0x8] sm:$0xff] %vm181_vm2, %v178_v16  ;;  %270 = vmatmul.msk.f32.vlgmr.msra.gmra.mxu3 %vm181_vm2, %v178_v16 }
 0x12d   :  { %v172_v19 = vpop.permute.xlu1 %171 }
 0x12e   :  { %v180_v21 = vmul.f32 %v310_v18, %v172_v19 }
 0x12f   :  { %v170_v24 = vpop.permute.xlu0 %169 }
 0x130   :  { %185 = vst.msk [vmem:[#allocation2 + $0x18] sm:$0xff] %vm181_vm2, %v180_v21  ;;  %v179_v20 = vmul.f32 %v312_v22, %v170_v24 }
 0x132   :  { %184 = vst.msk [vmem:[#allocation2 + $0x10] sm:$0xff] %vm181_vm2, %v179_v20  ;;  %271 = vmatmul.msk.f32.gmra.mxu3 %vm181_vm2, %v179_v20 }
 0x135   :  { %v166_v17 = vpop.permute.xlu1 %165 }
 0x136   :  { %v177_v25 = vmul.f32 %v314_v23, %v166_v17 }
 0x138   :  { %182 = vst.msk [vmem:[#allocation2] sm:$0xff] %vm181_vm2, %v177_v25  ;;  %269 = vmatmul.msk.f32.vlgmr.msra.gmra.mxu1 %vm181_vm2, %v177_v25 }
 0x139   :  { %251 = dma.vmem_to_hbm [thread:$0]  %s244_s29, 512, %s246_s8, [#allocation3], %s343_s9, %s343_s9, %s344_s10  }
 0x13a   :  { %272 = vmatmul.msk.f32.gmra.mxu3 %vm181_vm2, %v180_v21 }
 0x1ad   :  { %v226_v26 = vpop.f32.mrf.mxu3 }
 0x1ae   :  { %v227_v27 = vadd.f32 %v290_v14, %v226_v26 }
 0x1b0   :  { %236 = vst.msk [vmem:[%s507_s6 + $0x8] sm:$0xff] %vm39_vm0, %v227_v27 }
 0x1b5   :  { %v223_v28 = vpop.f32.mrf.mxu1  ;;  %v229_v29 = vpop.f32.mrf.mxu3 }
 0x1b6   :  { %v224_v30 = vadd.f32 %v290_v14, %v223_v28  ;;  %v230_v31 = vadd.f32 %v290_v14, %v229_v29 }
 0x1b8   :  { %235 = vst.msk [vmem:[%s507_s6] sm:$0xff] %vm39_vm0, %v224_v30 }
 0x1b9   :  { %237 = vst.msk [vmem:[%s507_s6 + $0x10] sm:$0xff] %vm39_vm0, %v230_v31 }
 0x1bd   :  { %v232_v32 = vpop.f32.mrf.mxu3 }
 0x1be   :  { %v233_v33 = vadd.f32 %v290_v14, %v232_v32 }
 0x1c0   :  { %238 = vst.msk [vmem:[%s507_s6 + $0x18] sm:$0xff] %vm39_vm0, %v233_v33 }
 0x1c1   :  { %339 = dma.done.wait [#allocation3], 512  }
 0x1c2   :  { %340 = vsyncadd [#allocation3], 4294966784 }
 0x1c3   :  { %260 = vsyncpa [#allocation3], 1 }

// kernel: gwnet_forward.17
= control target key start
LH: loop header
LB: loop body
LE: loop exit
PB: predicated region body
PF: predicated region fallthrough
CT: control target
= control target key end

     0   :  { %vm40_vm0 = vcmask 523264   ;;  %vm135_vm1 = vcmask 97280   ;;  %s318_s1 = inlined_call_operand.vmem [shape: f32[64,128], index: 1, kind: input, shape index: {}]   ;;  %s319_s2 = inlined_call_operand.vmem [shape: f32[1,128], index: 2, kind: input, shape index: {}]   ;;  %s320_s3 = inlined_call_operand.vmem [shape: f32[128,12], index: 3, kind: input, shape index: {}]   ;;  %s321_s0 = inlined_call_operand.vmem [shape: f32[32,64], index: 0, kind: input, shape index: {}]   ;;  %s322_s4 = inlined_call_operand.vmem [shape: f32[1,12], index: 4, kind: input, shape index: {}]   ;;  %s323_s5 = inlined_call_operand.vmem [shape: f32[32,12], index: 5, kind: output, shape index: {}]  }
   0x1   :  { %v35_v0 = vld [vmem:[%s318_s1 + $0x38] sm:$0xff]  ;;  %v34_v1 = vld [vmem:[%s318_s1 + $0x30] sm:$0xff]  ;;  %v33_v2 = vld [vmem:[%s318_s1 + $0x28] sm:$0xff] }
   0x2   :  { %61 = vmatpush.msra.mxu0 %v35_v0  ;;  %v32_v3 = vld [vmem:[%s318_s1 + $0x20] sm:$0xff]  ;;  %v31_v4 = vld [vmem:[%s318_s1 + $0x18] sm:$0xff]  ;;  %v30_v5 = vld [vmem:[%s318_s1 + $0x10] sm:$0xff] }
   0x3   :  { %v101_v6 = vld [vmem:[%s320_s3 + $0x78] sm:$0xff]  ;;  %v100_v7 = vld [vmem:[%s320_s3 + $0x70] sm:$0xff]  ;;  %v20_v8 = vld [vmem:[%s321_s0] sm:$0xff] }
   0x4   :  { %62 = vmatpush.msra.mxu0 %v34_v1  ;;  %106 = vmatpush.msra.mxu1 %v101_v6  ;;  %v29_v9 = vld [vmem:[%s318_s1 + $0x8] sm:$0xff]  ;;  %v28_v11 = vld [vmem:[%s318_s1] sm:$0xff]  ;;  %v24_v12 = vmax.f32 %v20_v8, 0.0  ;;  %v97_v14 = vld [vmem:[%s320_s3 + $0x58] sm:$0xff] }
   0x5   :  { %v99_v10 = vld [vmem:[%s320_s3 + $0x68] sm:$0xff]  ;;  %148 = vmatpush.msra.mxu2 %v101_v6  ;;  %149 = vmatpush.msra.mxu3 %v101_v6  ;;  %v98_v13 = vld [vmem:[%s320_s3 + $0x60] sm:$0xff]  ;;  %v96_v15 = vld [vmem:[%s320_s3 + $0x50] sm:$0xff] }
   0x6   :  { %63 = vmatpush.msra.mxu0 %v33_v2  ;;  %107 = vmatpush.msra.mxu1 %v100_v7  ;;  %v21_v16 = vld [vmem:[%s321_s0 + $0x8] sm:$0xff]  ;;  %v94_v19 = vld [vmem:[%s320_s3 + $0x40] sm:$0xff]  ;;  %v93_v20 = vld [vmem:[%s320_s3 + $0x38] sm:$0xff] }
   0x7   :  { %150 = vmatpush.msra.mxu2 %v100_v7  ;;  %151 = vmatpush.msra.mxu3 %v100_v7  ;;  %v95_v17 = vld [vmem:[%s320_s3 + $0x48] sm:$0xff]  ;;  %v25_v18 = vmax.f32 %v21_v16, 0.0  ;;  %v92_v21 = vld [vmem:[%s320_s3 + $0x30] sm:$0xff]  ;;  %v90_v25 = vld [vmem:[%s320_s3 + $0x20] sm:$0xff] }
   0x8   :  { %64 = vmatpush.msra.mxu0 %v32_v3  ;;  %108 = vmatpush.msra.mxu1 %v99_v10  ;;  %v22_v22 = vld [vmem:[%s321_s0 + $0x10] sm:$0xff]  ;;  %v91_v23 = vld [vmem:[%s320_s3 + $0x28] sm:$0xff]  ;;  %v89_v26 = vld [vmem:[%s320_s3 + $0x18] sm:$0xff] }
   0x9   :  { %152 = vmatpush.msra.mxu2 %v99_v10  ;;  %153 = vmatpush.msra.mxu3 %v99_v10  ;;  %v26_v24 = vmax.f32 %v22_v22, 0.0  ;;  %v23_v27 = vld [vmem:[%s321_s0 + $0x18] sm:$0xff]  ;;  %v88_v29 = vld [vmem:[%s320_s3 + $0x10] sm:$0xff]  ;;  %v87_v30 = vld [vmem:[%s320_s3 + $0x8] sm:$0xff] }
   0xa   :  { %65 = vmatpush.msra.mxu0 %v31_v4  ;;  %109 = vmatpush.msra.mxu1 %v98_v13  ;;  %v27_v28 = vmax.f32 %v23_v27, 0.0  ;;  %v86_v31 = vld [vmem:[%s320_s3] sm:$0xff] }
   0xb   :  { %154 = vmatpush.msra.mxu2 %v98_v13  ;;  %155 = vmatpush.msra.mxu3 %v98_v13  ;;  %v180_v32 = vld [vmem:[%s319_s2] ss:$0 sm:$0xff] }
   0xc   :  { %66 = vmatpush.msra.mxu0 %v30_v5  ;;  %110 = vmatpush.msra.mxu1 %v97_v14  ;;  %v181_v45 = vld [vmem:[%s322_s4] ss:$0 sm:$0xff] }
   0xd   :  { %156 = vmatpush.msra.mxu2 %v97_v14  ;;  %157 = vmatpush.msra.mxu3 %v97_v14 }
   0xe   :  { %67 = vmatpush.msra.mxu0 %v29_v9  ;;  %111 = vmatpush.msra.mxu1 %v96_v15 }
   0xf   :  { %158 = vmatpush.msra.mxu2 %v96_v15  ;;  %159 = vmatpush.msra.mxu3 %v96_v15 }
  0x10   :  { %68 = vmatpush.msra.mxu0 %v28_v11  ;;  %112 = vmatpush.msra.mxu1 %v95_v17 }
  0x11   :  { %144 = vmatmul.msk.f32.vlgmr.msra.gmra.mxu0 %vm40_vm0, %v24_v12  ;;  %160 = vmatpush.msra.mxu2 %v95_v17 }
  0x12   :  { %113 = vmatpush.msra.mxu1 %v94_v19  ;;  %161 = vmatpush.msra.mxu3 %v95_v17 }
  0x13   :  { %162 = vmatpush.msra.mxu2 %v94_v19 }
  0x14   :  { %114 = vmatpush.msra.mxu1 %v93_v20  ;;  %163 = vmatpush.msra.mxu3 %v94_v19 }
  0x15   :  { %164 = vmatpush.msra.mxu2 %v93_v20 }
  0x16   :  { %115 = vmatpush.msra.mxu1 %v92_v21  ;;  %165 = vmatpush.msra.mxu3 %v93_v20 }
  0x17   :  { %166 = vmatpush.msra.mxu2 %v92_v21 }
  0x18   :  { %116 = vmatpush.msra.mxu1 %v91_v23  ;;  %167 = vmatpush.msra.mxu3 %v92_v21 }
  0x19   :  { %145 = vmatmul.msk.f32.gmra.mxu0 %vm40_vm0, %v25_v18  ;;  %168 = vmatpush.msra.mxu2 %v91_v23 }
  0x1a   :  { %117 = vmatpush.msra.mxu1 %v90_v25  ;;  %169 = vmatpush.msra.mxu3 %v91_v23 }
  0x1b   :  { %170 = vmatpush.msra.mxu2 %v90_v25 }
  0x1c   :  { %118 = vmatpush.msra.mxu1 %v89_v26  ;;  %171 = vmatpush.msra.mxu3 %v90_v25 }
  0x1d   :  { %172 = vmatpush.msra.mxu2 %v89_v26 }
  0x1e   :  { %173 = vmatpush.msra.mxu3 %v89_v26  ;;  %119 = vmatpush.msra.mxu1 %v88_v29 }
  0x1f   :  { %174 = vmatpush.msra.mxu2 %v88_v29 }
  0x20   :  { %175 = vmatpush.msra.mxu3 %v88_v29  ;;  %120 = vmatpush.msra.mxu1 %v87_v30 }
  0x21   :  { %146 = vmatmul.msk.f32.gmra.mxu0 %vm40_vm0, %v26_v24  ;;  %176 = vmatpush.msra.mxu2 %v87_v30 }
  0x22   :  { %177 = vmatpush.msra.mxu3 %v87_v30  ;;  %121 = vmatpush.msra.mxu1 %v86_v31 }
  0x23   :  { %178 = vmatpush.msra.mxu2 %v86_v31 }
  0x24   :  { %179 = vmatpush.msra.mxu3 %v86_v31 }
  0x29   :  { %147 = vmatmul.msk.f32.gmra.mxu0 %vm40_vm0, %v27_v28 }
  0x8e   :  { %v70_v33 = vpop.f32.mrf.mxu0 }
  0x8f   :  { %v71_v34 = vadd.f32 %v180_v32, %v70_v33 }
  0x91   :  { %v82_v35 = vmax.f32 %v71_v34, 0.0 }
  0x93   :  { %122 = vmatmul.f32.vlgmr.msra.gmra.mxu1 %v82_v35 }
  0x96   :  { %v73_v36 = vpop.f32.mrf.mxu0 }
  0x97   :  { %v74_v37 = vadd.f32 %v180_v32, %v73_v36 }
  0x99   :  { %v83_v38 = vmax.f32 %v74_v37, 0.0 }
  0x9b   :  { %125 = vmatmul.f32.vlgmr.msra.gmra.mxu2 %v83_v38 }
  0x9e   :  { %v76_v39 = vpop.f32.mrf.mxu0 }
  0x9f   :  { %v77_v40 = vadd.f32 %v180_v32, %v76_v39 }
  0xa1   :  { %v84_v41 = vmax.f32 %v77_v40, 0.0 }
  0xa3   :  { %128 = vmatmul.f32.vlgmr.msra.gmra.mxu3 %v84_v41 }
  0xa6   :  { %v79_v42 = vpop.f32.mrf.mxu0 }
  0xa7   :  { %v80_v43 = vadd.f32 %v180_v32, %v79_v42 }
  0xa9   :  { %v85_v44 = vmax.f32 %v80_v43, 0.0 }
  0xab   :  { %131 = vmatmul.f32.gmra.mxu3 %v85_v44 }
 0x110   :  { %v123_v46 = vpop.f32.mrf.mxu1 }
 0x111   :  { %v124_v47 = vadd.f32 %v181_v45, %v123_v46 }
 0x113   :  { %136 = vst.msk [vmem:[%s323_s5] sm:$0xff] %vm135_vm1, %v124_v47 }
 0x11e   :  { %v126_v48 = vpop.f32.mrf.mxu2 }
 0x11f   :  { %v127_v49 = vadd.f32 %v181_v45, %v126_v48 }
 0x121   :  { %137 = vst.msk [vmem:[%s323_s5 + $0x8] sm:$0xff] %vm135_vm1, %v127_v49 }
 0x126   :  { %v129_v50 = vpop.f32.mrf.mxu3 }
 0x127   :  { %v130_v51 = vadd.f32 %v181_v45, %v129_v50 }
 0x129   :  { %138 = vst.msk [vmem:[%s323_s5 + $0x10] sm:$0xff] %vm135_vm1, %v130_v51 }
 0x12e   :  { %v132_v52 = vpop.f32.mrf.mxu3 }
 0x12f   :  { %v133_v53 = vadd.f32 %v181_v45, %v132_v52 }
 0x131   :  { %139 = vst.msk [vmem:[%s323_s5 + $0x18] sm:$0xff] %vm135_vm1, %v133_v53 }

</bundles_post_ra>
